<compile_context>
chip_gen: v7x
topology: tpu7x:2x2x1
jax: 0.10.0
libtpu: 0.0.40
codegen_flags: <defaults>
</compile_context>

<pallas_src>
import jax
import jax.numpy as jnp
from jax.experimental import pallas as pl
from jax.experimental.pallas import tpu as pltpu

FEATURES = 2048   # ResNet-50 fc.in_features (what ConvModel_Pre's forward implies)
THETA = 82        # init_theta layout: [root_orient(3), pose_body(63), pose_hand(6), betas(10)]
HIDDEN = 1024
IEF_ITERS = 5     # hard-coded `iterations = 5` in ConvModel_Pre.forward


def resnet_fc_identity(x: jax.Array) -> jax.Array:
    """backbone.fc = Identity(): short-circuit (perf review item 1).

    A pure pass-through must not launch a kernel: that would pay a full HBM
    read + write plus launch overhead for zero useful compute.
    """
    return x


def _regressor_kernel(x_ref, theta0_ref, w1f_ref, w1t_ref, b1_ref,
                      w2_ref, b2_ref, wdec_ref, bdec_ref, out_ref):
    """Fused ParameterRegressor forward (eval mode) on one VMEM-resident block.

    fc1 on concat([x, theta]) is computed as x @ W1[:F] + theta @ W1[F:], which
    keeps every operand lane-aligned and avoids materializing the concat.
    The four decoder heads are fused into a single (HIDDEN, 82) matmul whose
    column layout matches init_theta, so the IEF update is one broadcast add.
    """
    x = x_ref[...]                                 # (Bp, F)
    theta0 = theta0_ref[...]                       # (1, 82)

    # fc1 + ReLU  (Dropout is identity in eval mode)
    h = jnp.dot(x, w1f_ref[...], preferred_element_type=jnp.float32)
    h = h + jnp.dot(theta0, w1t_ref[...], preferred_element_type=jnp.float32)
    h = jnp.maximum(h + b1_ref[...], 0.0)

    # fc2 + ReLU  (Dropout is identity in eval mode)
    h = jnp.maximum(
        jnp.dot(h, w2_ref[...], preferred_element_type=jnp.float32) + b2_ref[...],
        0.0)

    # Fused decoder heads: columns [root(3) | body(63) | hand(6) | betas(10)].
    delta = jnp.dot(h, wdec_ref[...], preferred_element_type=jnp.float32) + bdec_ref[...]

    # IEF loop: the torch code never feeds the refined theta back into fc1 and
    # dropout is identity at eval time, so fc1/fc2/delta are loop-invariant and
    # are hoisted; the 5 additive updates are kept so numerics match exactly.
    pred = jnp.broadcast_to(theta0, delta.shape)
    for _ in range(IEF_ITERS):
        pred = pred + delta

    out_ref[...] = pred.astype(out_ref.dtype)


def _parameter_regressor_impl(img_encoding, params):
    b, f = img_encoding.shape
    assert f == params["w1f"].shape[0]

    # Pad batch up to a sublane multiple (8 for f32).  Unlike the old identity
    # kernel's full-array pad/slice, this touches only the tiny activation
    # (Bp x F), negligible next to the ~13 MiB of weights the kernel must read.
    bp = max(8, ((b + 7) // 8) * 8)
    x = img_encoding
    if bp != b:
        x = jnp.pad(x, ((0, bp - b), (0, 0)))

    vmem = pl.BlockSpec(memory_space=pltpu.MemorySpace.VMEM)
    # No grid: a single invocation with every operand resident in VMEM
    # (~13 MiB total, single-buffered), well under the 32 MiB scoped default on
    # v5e/v6e/v7x.  B is tiny so the kernel is weight-load bound; one pass over
    # the weights is the roofline and tiling would only add per-step overhead.
    out = pl.pallas_call(
        _regressor_kernel,
        out_shape=jax.ShapeDtypeStruct((bp, THETA), jnp.float32),
        in_specs=[vmem] * 9,
        out_specs=vmem,
    )(x, params["init_theta"], params["w1f"], params["w1t"], params["b1"],
      params["w2"], params["b2"], params["wdec"], params["bdec"])

    out = out[:b]
    root_orient = out[:, 0:3]
    pose_body = out[:, 3:66]
    pose_hand = out[:, 66:72]
    betas = out[:, 72:82]
    return root_orient, pose_body, pose_hand, betas


parameter_regressor = jax.jit(_parameter_regressor_impl)


def parameter_regressor_ref(x, params, iterations=IEF_ITERS):
    """Pure-JAX reference mirroring the torch loop literally (eval mode)."""
    hi = jax.lax.Precision.HIGHEST
    b = x.shape[0]
    theta0 = params["init_theta"][0]
    pred_theta = jnp.broadcast_to(theta0, (b, THETA))
    pred_root = pred_theta[:, 0:3]
    pred_body = pred_theta[:, 3:66]
    pred_hand = pred_theta[:, 66:72]
    pred_beta = pred_theta[:, 72:82]
    w1 = jnp.concatenate([params["w1f"], params["w1t"]], axis=0)
    for _ in range(iterations):
        input_c = jnp.concatenate([x, pred_theta], axis=1)
        h = jax.nn.relu(jnp.dot(input_c, w1, precision=hi) + params["b1"][0])
        h = jax.nn.relu(jnp.dot(h, params["w2"], precision=hi) + params["b2"][0])
        dec = jnp.dot(h, params["wdec"], precision=hi) + params["bdec"][0]
        pred_root = dec[:, 0:3] + pred_root
        pred_body = dec[:, 3:66] + pred_body
        pred_hand = dec[:, 66:72] + pred_hand
        pred_beta = dec[:, 72:82] + pred_beta
    return pred_root, pred_body, pred_hand, pred_beta


def init_params(key):
    ks = jax.random.split(key, 8)

    def lin(k, fan_in, shape):
        bound = 1.0 / jnp.sqrt(jnp.float32(fan_in))
        return jax.random.uniform(k, shape, jnp.float32, -bound, bound)

    fan1 = FEATURES + THETA
    return {
        "w1f": lin(ks[0], fan1, (FEATURES, HIDDEN)),   # fc1 weight, feature block (in, out)
        "w1t": lin(ks[1], fan1, (THETA, HIDDEN)),      # fc1 weight, theta block
        "b1":  lin(ks[2], fan1, (1, HIDDEN)),
        "w2":  lin(ks[3], HIDDEN, (HIDDEN, HIDDEN)),
        "b2":  lin(ks[4], HIDDEN, (1, HIDDEN)),
        "wdec": lin(ks[5], HIDDEN, (HIDDEN, THETA)),   # 4 decoder heads fused, (in, out)
        "bdec": lin(ks[6], HIDDEN, (1, THETA)),
        # TODO(synk): torch loads init_theta (SMPL mean pose/shape) from an h5
        # file; a small deterministic stand-in is used here.
        "init_theta": 0.1 * jax.random.normal(ks[7], (1, THETA), jnp.float32),
    }


if __name__ == "__main__":
    key = jax.random.PRNGKey(0)
    k_feat, k_params = jax.random.split(key)

    B = 2
    # TODO(synk): the pretrained ResNet-50 backbone and the SMPL body model
    # (get_vertices_and_joints) need external assets / network; stand in for the
    # backbone's pooled output with deterministic random (B, 2048) features.
    backbone_features = jax.random.normal(k_feat, (B, FEATURES), dtype=jnp.float32)
    img_encoding = resnet_fc_identity(backbone_features)   # backbone.fc = Identity()

    params = init_params(k_params)

    root_orient, pose_body, pose_hand, betas = jax.block_until_ready(
        parameter_regressor(img_encoding, params))

    assert root_orient.shape == (B, 3)
    assert pose_body.shape == (B, 63)
    assert pose_hand.shape == (B, 6)
    assert betas.shape == (B, 10)

    ref = parameter_regressor_ref(img_encoding, params)
    for got, want in zip((root_orient, pose_body, pose_hand, betas), ref):
        assert got.shape == want.shape and got.dtype == want.dtype
        assert jnp.allclose(got, want, rtol=5e-3, atol=5e-3), (
            float(jnp.max(jnp.abs(got - want))))

    print("KERNEL_OK")
</pallas_src>

<mosaic_0001>
module attributes {stable_mosaic.version = 11 : i64} {
  func.func @_regressor_kernel(%arg0: memref<8x2048xf32, #tpu.memory_space<vmem>>, %arg1: memref<1x82xf32, #tpu.memory_space<vmem>>, %arg2: memref<2048x1024xf32, #tpu.memory_space<vmem>>, %arg3: memref<82x1024xf32, #tpu.memory_space<vmem>>, %arg4: memref<1x1024xf32, #tpu.memory_space<vmem>>, %arg5: memref<1024x1024xf32, #tpu.memory_space<vmem>>, %arg6: memref<1x1024xf32, #tpu.memory_space<vmem>>, %arg7: memref<1024x82xf32, #tpu.memory_space<vmem>>, %arg8: memref<1x82xf32, #tpu.memory_space<vmem>>, %arg9: memref<8x82xf32, #tpu.memory_space<vmem>>) attributes {dimension_semantics = [], scalar_prefetch = 0 : i64, scratch_operands = 0 : i64, tpu.core_type = #tpu.core_type<tc>} {
    %c0 = arith.constant 0 : index
    %c0_0 = arith.constant 0 : index
    %0 = vector.load %arg0[%c0, %c0_0] : memref<8x2048xf32, #tpu.memory_space<vmem>>, vector<8x2048xf32>
    %c0_1 = arith.constant 0 : index
    %c0_2 = arith.constant 0 : index
    %1 = vector.load %arg1[%c0_1, %c0_2] : memref<1x82xf32, #tpu.memory_space<vmem>>, vector<1x82xf32>
    %c0_3 = arith.constant 0 : index
    %c0_4 = arith.constant 0 : index
    %2 = vector.load %arg2[%c0_3, %c0_4] : memref<2048x1024xf32, #tpu.memory_space<vmem>>, vector<2048x1024xf32>
    %cst = arith.constant dense<0.000000e+00> : vector<8x1024xf32>
    %3 = tpu.matmul %0, %2, %cst {dimension_numbers = #tpu.dot_dimension_numbers<[1], [0], [0], [1], [0, 0, 1, 1], [], []>} : vector<8x2048xf32>, vector<2048x1024xf32>, vector<8x1024xf32> -> vector<8x1024xf32>
    %c0_5 = arith.constant 0 : index
    %c0_6 = arith.constant 0 : index
    %4 = vector.load %arg3[%c0_5, %c0_6] : memref<82x1024xf32, #tpu.memory_space<vmem>>, vector<82x1024xf32>
    %cst_7 = arith.constant dense<0.000000e+00> : vector<1x1024xf32>
    %5 = tpu.matmul %1, %4, %cst_7 {dimension_numbers = #tpu.dot_dimension_numbers<[1], [0], [0], [1], [0, 0, 1, 1], [], []>} : vector<1x82xf32>, vector<82x1024xf32>, vector<1x1024xf32> -> vector<1x1024xf32>
    %6 = vector.broadcast %5 : vector<1x1024xf32> to vector<8x1024xf32>
    %7 = arith.addf %3, %6 : vector<8x1024xf32>
    %c0_8 = arith.constant 0 : index
    %c0_9 = arith.constant 0 : index
    %8 = vector.load %arg4[%c0_8, %c0_9] : memref<1x1024xf32, #tpu.memory_space<vmem>>, vector<1x1024xf32>
    %9 = vector.broadcast %8 : vector<1x1024xf32> to vector<8x1024xf32>
    %10 = arith.addf %7, %9 : vector<8x1024xf32>
    %cst_10 = arith.constant 0.000000e+00 : f32
    %11 = vector.broadcast %cst_10 : f32 to vector<8x1024xf32>
    %12 = arith.maximumf %10, %11 : vector<8x1024xf32>
    %c0_11 = arith.constant 0 : index
    %c0_12 = arith.constant 0 : index
    %13 = vector.load %arg5[%c0_11, %c0_12] : memref<1024x1024xf32, #tpu.memory_space<vmem>>, vector<1024x1024xf32>
    %cst_13 = arith.constant dense<0.000000e+00> : vector<8x1024xf32>
    %14 = tpu.matmul %12, %13, %cst_13 {dimension_numbers = #tpu.dot_dimension_numbers<[1], [0], [0], [1], [0, 0, 1, 1], [], []>} : vector<8x1024xf32>, vector<1024x1024xf32>, vector<8x1024xf32> -> vector<8x1024xf32>
    %c0_14 = arith.constant 0 : index
    %c0_15 = arith.constant 0 : index
    %15 = vector.load %arg6[%c0_14, %c0_15] : memref<1x1024xf32, #tpu.memory_space<vmem>>, vector<1x1024xf32>
    %16 = vector.broadcast %15 : vector<1x1024xf32> to vector<8x1024xf32>
    %17 = arith.addf %14, %16 : vector<8x1024xf32>
    %cst_16 = arith.constant 0.000000e+00 : f32
    %18 = vector.broadcast %cst_16 : f32 to vector<8x1024xf32>
    %19 = arith.maximumf %17, %18 : vector<8x1024xf32>
    %c0_17 = arith.constant 0 : index
    %c0_18 = arith.constant 0 : index
    %20 = vector.load %arg7[%c0_17, %c0_18] : memref<1024x82xf32, #tpu.memory_space<vmem>>, vector<1024x82xf32>
    %cst_19 = arith.constant dense<0.000000e+00> : vector<8x82xf32>
    %21 = tpu.matmul %19, %20, %cst_19 {dimension_numbers = #tpu.dot_dimension_numbers<[1], [0], [0], [1], [0, 0, 1, 1], [], []>} : vector<8x1024xf32>, vector<1024x82xf32>, vector<8x82xf32> -> vector<8x82xf32>
    %c0_20 = arith.constant 0 : index
    %c0_21 = arith.constant 0 : index
    %22 = vector.load %arg8[%c0_20, %c0_21] : memref<1x82xf32, #tpu.memory_space<vmem>>, vector<1x82xf32>
    %23 = vector.broadcast %22 : vector<1x82xf32> to vector<8x82xf32>
    %24 = arith.addf %21, %23 : vector<8x82xf32>
    %25 = vector.shape_cast %1 : vector<1x82xf32> to vector<1x82xf32>
    %26 = vector.broadcast %25 : vector<1x82xf32> to vector<8x82xf32>
    %27 = arith.addf %26, %24 : vector<8x82xf32>
    %28 = arith.addf %27, %24 : vector<8x82xf32>
    %29 = arith.addf %28, %24 : vector<8x82xf32>
    %30 = arith.addf %29, %24 : vector<8x82xf32>
    %31 = arith.addf %30, %24 : vector<8x82xf32>
    %c0_22 = arith.constant 0 : index
    %c0_23 = arith.constant 0 : index
    %32 = vector.load %arg9[%c0_22, %c0_23] : memref<8x82xf32, #tpu.memory_space<vmem>>, vector<8x82xf32>
    tpu.vector_store %arg9[%c0_22, %c0_23], %31 {strides = array<i32>} : memref<8x82xf32, #tpu.memory_space<vmem>>, vector<8x82xf32>,
    return
  }
}

</mosaic_0001>

<bundles_post_ra>
// kernel: _parameter_regressor_impl.1
= control target key start
LH: loop header
LB: loop body
LE: loop exit
PB: predicated region body
PF: predicated region fallthrough
CT: control target
= control target key end

     0   :  { %14 = vsyncpa [#allocation3], 0  ;;  %s12141_s0 = inlined_call_operand.vmem [shape: f32[8,2048], index: 0, kind: input, shape index: {}]   ;;  %s12142_s1 = inlined_call_operand.hbm [shape: f32[1,82], index: 1, kind: input, shape index: {}]   ;;  %s12143_s2 = inlined_call_operand.hbm [shape: f32[2048,1024], index: 2, kind: input, shape index: {}]   ;;  %s12144_s3 = inlined_call_operand.hbm [shape: f32[82,1024], index: 3, kind: input, shape index: {}]   ;;  %s12145_s4 = inlined_call_operand.hbm [shape: f32[1,1024], index: 4, kind: input, shape index: {}]   ;;  %s12146_s5 = inlined_call_operand.hbm [shape: f32[1024,1024], index: 5, kind: input, shape index: {}]   ;;  %s12147_s6 = inlined_call_operand.hbm [shape: f32[1,1024], index: 6, kind: input, shape index: {}]   ;;  %s12148_s7 = inlined_call_operand.vmem [shape: f32[1024,82], index: 7, kind: input, shape index: {}]   ;;  %s12149_s8 = inlined_call_operand.hbm [shape: f32[1,82], index: 8, kind: input, shape index: {}]   ;;  %s12150_s9 = inlined_call_operand.vmem [shape: f32[8,82], index: 9, kind: output, shape index: {}]  }
   0x1   :  { %15 = vsyncpa [#allocation5], 0 }
   0x2   :  { %16 = vsyncpa [#allocation8], 0 }
   0x3   :  { %17 = vsyncpa [#allocation11], 0  ;;  %s11312_s30 = smov [#allocation4]   ;;  %s11150_s13 = scalar_lea.hbm %s12143_s2, 262144 }
   0x4   :  { %s35_s10 = sshll.u32 %s11312_s30, 4  ;;  %p11151_p0 = scmp.ne.s32.totalorder %s12143_s2, %s11150_s13  ;;  %s36_s10 = int_to_ptr.vmem [resolvable:$true] %s35_s10 }
   0x5   :  { %p11154_p1 = scmp.lt.u32.totalorder %s11150_s13, %s12143_s2 }
   0x7   :  { %p11156_p2 = pnand %p11154_p1, %p11151_p0 }
   0x9   :  { %11159 = shalt.err (!%p11156_p2)
}
   0xa   :  { %s11160_s18 = scalar_lea.vmem %s36_s10, 262144  ;;  %p11165_p4 = scmp.lt.s32.totalorder %s36_s10, %s36_s10 }
   0xb   :  { %p11161_p3 = scmp.ne.s32.totalorder %s36_s10, %s11160_s18  ;;  %p11166_p5 = scmp.lt.s32.totalorder %s11160_s18, %s11160_s18 }
   0xd   :  { %p11167_p6 = por %p11166_p5, %p11165_p4 }
   0xf   :  { %p11168_p7 = pnand %p11167_p6, %p11161_p3 }
  0x11   :  { %11171 = shalt.err (!%p11168_p7)
}
  0x12   :  { %s11313_s19 = smov 1024   ;;  %s11314_s20 = smov 64  }
  0x13   :  { %41 = dma.hbm_to_vmem [thread:$0]  %s12143_s2, 262144, %s36_s10, [#allocation5], %s11313_s19, %s11313_s19, %s11314_s20  }
  0x14   :  { %s11315_s23 = smov [#allocation7]   ;;  %s11316_s25 = smov [#allocation10]  }
  0x15   :  { %s60_s24 = sshll.u32 %s11315_s23, 4  ;;  %s82_s26 = sshll.u32 %s11316_s25, 4  ;;  %s61_s24 = int_to_ptr.vmem [resolvable:$true] %s60_s24  ;;  %s83_s26 = int_to_ptr.vmem [resolvable:$true] %s82_s26 }
  0x16   :  { %s11172_s29 = scalar_lea.hbm %s12145_s4, 128 }
  0x17   :  { %p11173_p8 = scmp.ne.s32.totalorder %s12145_s4, %s11172_s29  ;;  %p11176_p9 = scmp.lt.u32.totalorder %s11172_s29, %s12145_s4 }
  0x19   :  { %p11178_p10 = pnand %p11176_p9, %p11173_p8 }
  0x1b   :  { %11181 = shalt.err (!%p11178_p10)
}
  0x1c   :  { %s11182_s2 = scalar_lea.vmem %s61_s24, 128  ;;  %p11187_p12 = scmp.lt.s32.totalorder %s61_s24, %s61_s24 }
  0x1d   :  { %p11183_p11 = scmp.ne.s32.totalorder %s61_s24, %s11182_s2  ;;  %p11188_p13 = scmp.lt.s32.totalorder %s11182_s2, %s11182_s2 }
  0x1f   :  { %p11189_p0 = por %p11188_p13, %p11187_p12 }
  0x21   :  { %p11190_p1 = pnand %p11189_p0, %p11183_p11 }
  0x23   :  { %11193 = shalt.err (!%p11190_p1)
}
  0x24   :  { %63 = dma.hbm_to_vmem [thread:$0]  %s12145_s4, 128, %s61_s24, [#allocation8]  }
  0x25   :  { %s11194_s17 = scalar_lea.hbm %s12147_s6, 128 }
  0x26   :  { %p11195_p2 = scmp.ne.s32.totalorder %s12147_s6, %s11194_s17  ;;  %p11198_p3 = scmp.lt.u32.totalorder %s11194_s17, %s12147_s6 }
  0x28   :  { %p11200_p4 = pnand %p11198_p3, %p11195_p2 }
  0x2a   :  { %11203 = shalt.err (!%p11200_p4)
}
  0x2b   :  { %s11204_s25 = scalar_lea.vmem %s83_s26, 128  ;;  %p11209_p6 = scmp.lt.s32.totalorder %s83_s26, %s83_s26 }
  0x2c   :  { %p11205_p5 = scmp.ne.s32.totalorder %s83_s26, %s11204_s25  ;;  %p11210_p7 = scmp.lt.s32.totalorder %s11204_s25, %s11204_s25 }
  0x2e   :  { %p11211_p8 = por %p11210_p7, %p11209_p6 }
  0x30   :  { %p11212_p9 = pnand %p11211_p8, %p11205_p5 }
  0x32   :  { %11215 = shalt.err (!%p11212_p9)
}
  0x33   :  { %85 = dma.hbm_to_vmem [thread:$0]  %s12147_s6, 128, %s83_s26, [#allocation11]  }
  0x34   :  { %s11317_s27 = smov [#allocation2]   ;;  %s11318_s29 = smov [#allocation6]  }
  0x35   :  { %s26_s28 = sshll.u32 %s11317_s27, 4  ;;  %s47_s30 = sshll.u32 %s11318_s29, 4  ;;  %s27_s28 = int_to_ptr.vmem [resolvable:$true] %s26_s28  ;;  %s48_s30 = int_to_ptr.vmem [resolvable:$true] %s47_s30 }
  0x36   :  { %s11216_s13 = scalar_lea.hbm %s12142_s1, 16 }
  0x37   :  { %p11217_p10 = scmp.ne.s32.totalorder %s12142_s1, %s11216_s13  ;;  %p11220_p11 = scmp.lt.u32.totalorder %s11216_s13, %s12142_s1 }
  0x39   :  { %p11222_p12 = pnand %p11220_p11, %p11217_p10 }
  0x3b   :  { %11225 = shalt.err (!%p11222_p12)
}
  0x3c   :  { %s11226_s6 = scalar_lea.vmem %s27_s28, 16  ;;  %s11230_s26 = scalar_lea.vmem %s27_s28, 32 }
  0x3d   :  { %p11227_p13 = scmp.ne.s32.totalorder %s27_s28, %s11226_s6  ;;  %p11231_p0 = scmp.lt.s32.totalorder %s27_s28, %s27_s28 }
  0x3e   :  { %p11232_p1 = scmp.lt.s32.totalorder %s11230_s26, %s11226_s6 }
  0x40   :  { %p11233_p2 = por %p11232_p1, %p11231_p0 }
  0x42   :  { %p11234_p3 = pnand %p11233_p2, %p11227_p13 }
  0x44   :  { %11237 = shalt.err (!%p11234_p3)
}
  0x45   :  { %29 = dma.hbm_to_vmem [thread:$0]  %s12142_s1, 16, %s27_s28, [#allocation3]  }
  0x46   :  { %s11238_s22 = scalar_lea.hbm %s12144_s3, 11264 }
  0x47   :  { %p11239_p4 = scmp.ne.s32.totalorder %s12144_s3, %s11238_s22  ;;  %p11242_p5 = scmp.lt.u32.totalorder %s11238_s22, %s12144_s3 }
  0x49   :  { %p11244_p6 = pnand %p11242_p5, %p11239_p4 }
  0x4b   :  { %11247 = shalt.err (!%p11244_p6)
}
  0x4c   :  { %s11248_s27 = scalar_lea.vmem %s48_s30, 11264  ;;  %p11253_p8 = scmp.lt.s32.totalorder %s48_s30, %s48_s30 }
  0x4d   :  { %p11249_p7 = scmp.ne.s32.totalorder %s48_s30, %s11248_s27  ;;  %p11254_p9 = scmp.lt.s32.totalorder %s11248_s27, %s11248_s27 }
  0x4f   :  { %p11255_p10 = por %p11254_p9, %p11253_p8 }
  0x51   :  { %p11256_p11 = pnand %p11255_p10, %p11249_p7 }
  0x53   :  { %11259 = shalt.err (!%p11256_p11)
}
  0x54   :  { %53 = dma.hbm_to_vmem [thread:$0]  %s12144_s3, 11264, %s48_s30, [#allocation5], %s11313_s19, %s11313_s19, %s11314_s20  }
  0x55   :  { %s11319_s29 = smov [#allocation9]   ;;  %s11320_s12 = smov [#allocation12]  }
  0x56   :  { %s69_s11 = sshll.u32 %s11319_s29, 4  ;;  %s94_s13 = sshll.u32 %s11320_s12, 4  ;;  %s70_s11 = int_to_ptr.vmem [resolvable:$true] %s69_s11  ;;  %s95_s13 = int_to_ptr.vmem [resolvable:$true] %s94_s13 }
  0x57   :  { %s11260_s14 = scalar_lea.hbm %s12146_s5, 131072 }
  0x58   :  { %p11261_p12 = scmp.ne.s32.totalorder %s12146_s5, %s11260_s14  ;;  %p11264_p13 = scmp.lt.u32.totalorder %s11260_s14, %s12146_s5 }
  0x5a   :  { %p11266_p0 = pnand %p11264_p13, %p11261_p12 }
  0x5c   :  { %11269 = shalt.err (!%p11266_p0)
}
  0x5d   :  { %s11270_s3 = scalar_lea.vmem %s70_s11, 131072  ;;  %p11275_p2 = scmp.lt.s32.totalorder %s70_s11, %s70_s11 }
  0x5e   :  { %p11271_p1 = scmp.ne.s32.totalorder %s70_s11, %s11270_s3  ;;  %p11276_p3 = scmp.lt.s32.totalorder %s11270_s3, %s11270_s3 }
  0x60   :  { %p11277_p4 = por %p11276_p3, %p11275_p2 }
  0x62   :  { %p11278_p5 = pnand %p11277_p4, %p11271_p1 }
  0x64   :  { %11281 = shalt.err (!%p11278_p5)
}
  0x65   :  { %75 = dma.hbm_to_vmem [thread:$0]  %s12146_s5, 131072, %s70_s11, [#allocation8], %s11313_s19, %s11313_s19, %s11314_s20  }
  0x66   :  { %s11282_s22 = scalar_lea.hbm %s12149_s8, 16 }
  0x67   :  { %p11283_p6 = scmp.ne.s32.totalorder %s12149_s8, %s11282_s22  ;;  %p11286_p7 = scmp.lt.u32.totalorder %s11282_s22, %s12149_s8 }
  0x69   :  { %p11288_p8 = pnand %p11286_p7, %p11283_p6 }
  0x6b   :  { %11291 = shalt.err (!%p11288_p8)
}
  0x6c   :  { %s11292_s27 = scalar_lea.vmem %s95_s13, 16  ;;  %s11296_s1 = scalar_lea.vmem %s95_s13, 32 }
  0x6d   :  { %p11293_p9 = scmp.ne.s32.totalorder %s95_s13, %s11292_s27  ;;  %p11297_p10 = scmp.lt.s32.totalorder %s95_s13, %s95_s13 }
  0x6e   :  { %p11298_p11 = scmp.lt.s32.totalorder %s11296_s1, %s11292_s27 }
  0x70   :  { %p11299_p12 = por %p11298_p11, %p11297_p10 }
  0x72   :  { %p11300_p13 = pnand %p11299_p12, %p11293_p9 }
  0x74   :  { %11303 = shalt.err (!%p11300_p13)
}
  0x75   :  { %97 = dma.hbm_to_vmem [thread:$0]  %s12149_s8, 16, %s95_s13, [#allocation11]  }
  0x76   :  { %11304 = dma.done.wait [#allocation3], 16  }
  0x77   :  { %11305 = vsyncadd [#allocation3], 4294967280 }
  0x78   :  { %11306 = dma.done.wait [#allocation5], 273408  }
  0x79   :  { %11307 = vsyncadd [#allocation5], 4294693888 }
  0x7a   :  { %11308 = dma.done.wait [#allocation8], 131200  }
  0x7b   :  { %11309 = vsyncadd [#allocation8], 4294836096 }
  0x7c   :  { %11310 = dma.done.wait [#allocation11], 144  }
  0x7d   :  { %11311 = vsyncadd [#allocation11], 4294967152  ;;  %v11321_v0 = vmov 0.0   ;;  %v2185_v1 = vld [vmem:[#allocation6 + $0x8] sm:$0xff]  ;;  %v2187_v3 = vld [vmem:[#allocation6 + $0x18] sm:$0xff]  ;;  %vm2276_vm0 = vcmask 1041408  }
  0x7e   :  { %2365 = vmatprep.mubr.f32.mxu0 %v11321_v0  ;;  %2436 = vmatprep.mubr.f32.mxu1 %v11321_v0  ;;  %v2193_v2 = vld [vmem:[#allocation6 + $0x48] sm:$0xff]  ;;  %v2195_v5 = vld [vmem:[#allocation6 + $0x58] sm:$0xff]  ;;  %v2184_v6 = vld [vmem:[#allocation6] sm:$0xff]  ;;  %vm2272_vm1 = vcmask 670720  }
  0x7f   :  { %v7744_v4 = vpack.c.bf16 %v2193_v2, %v2185_v1  ;;  %v2192_v7 = vld [vmem:[#allocation6 + $0x40] sm:$0xff]  ;;  %v7764_v8 = vpack.c.bf16 %v2195_v5, %v2187_v3  ;;  %v2186_v10 = vld [vmem:[#allocation6 + $0x10] sm:$0xff]  ;;  %v2201_v12 = vld [vmem:[#allocation6 + $0x88] sm:$0xff] }
  0x80   :  { %v7746_v9 = vpack.c.bf16 %v2192_v7, %v2184_v6  ;;  %v2194_v11 = vld [vmem:[#allocation6 + $0x50] sm:$0xff]  ;;  %v2209_v14 = vld [vmem:[#allocation6 + $0xc8] sm:$0xff]  ;;  %v2203_v15 = vld [vmem:[#allocation6 + $0x98] sm:$0xff] }
  0x81   :  { %7745 = vmatprep.subr.bf16.mxu0 %v7744_v4  ;;  %v7766_v13 = vpack.c.bf16 %v2194_v11, %v2186_v10  ;;  %v2211_v16 = vld [vmem:[#allocation6 + $0xd8] sm:$0xff]  ;;  %7765 = vmatprep.subr.bf16.mxu1 %v7764_v8  ;;  %v7748_v17 = vpack.c.bf16 %v2209_v14, %v2201_v12  ;;  %v2200_v19 = vld [vmem:[#allocation6 + $0x80] sm:$0xff]  ;;  %v2202_v21 = vld [vmem:[#allocation6 + $0x90] sm:$0xff] }
  0x82   :  { %7747 = vmatpush1.bf16.msra.mxu0 %v7746_v9  ;;  %v7768_v18 = vpack.c.bf16 %v2211_v16, %v2203_v15  ;;  %v2208_v20 = vld [vmem:[#allocation6 + $0xc0] sm:$0xff]  ;;  %v2210_v23 = vld [vmem:[#allocation6 + $0xd0] sm:$0xff]  ;;  %v2217_v24 = vld [vmem:[#allocation6 + $0x108] sm:$0xff] }
  0x83   :  { %7767 = vmatpush1.bf16.msra.mxu1 %v7766_v13  ;;  %v7750_v22 = vpack.c.bf16 %v2208_v20, %v2200_v19  ;;  %v2225_v25 = vld [vmem:[#allocation6 + $0x148] sm:$0xff]  ;;  %7749 = vmatprep.subr.bf16.mxu0 %v7748_v17  ;;  %v7770_v26 = vpack.c.bf16 %v2210_v23, %v2202_v21  ;;  %v2219_v28 = vld [vmem:[#allocation6 + $0x118] sm:$0xff]  ;;  %v2216_v30 = vld [vmem:[#allocation6 + $0x100] sm:$0xff] }
  0x84   :  { %7769 = vmatprep.subr.bf16.mxu1 %v7768_v18  ;;  %v7752_v27 = vpack.c.bf16 %v2225_v25, %v2217_v24  ;;  %v2227_v29 = vld [vmem:[#allocation6 + $0x158] sm:$0xff]  ;;  %v2224_v32 = vld [vmem:[#allocation6 + $0x140] sm:$0xff]  ;;  %v2218_v33 = vld [vmem:[#allocation6 + $0x110] sm:$0xff] }
  0x85   :  { %v7772_v31 = vpack.c.bf16 %v2227_v29, %v2219_v28  ;;  %v2226_v34 = vld [vmem:[#allocation6 + $0x150] sm:$0xff]  ;;  %v7754_v35 = vpack.c.bf16 %v2224_v32, %v2216_v30  ;;  %v2233_v36 = vld [vmem:[#allocation6 + $0x188] sm:$0xff]  ;;  %v2235_v38 = vld [vmem:[#allocation6 + $0x198] sm:$0xff] }
  0x86   :  { %7751 = vmatpush1.bf16.msra.mxu0 %v7750_v22  ;;  %v2241_v37 = vld [vmem:[#allocation6 + $0x1c8] sm:$0xff]  ;;  %v7774_v39 = vpack.c.bf16 %v2226_v34, %v2218_v33  ;;  %v2243_v41 = vld [vmem:[#allocation6 + $0x1d8] sm:$0xff]  ;;  %v2232_v42 = vld [vmem:[#allocation6 + $0x180] sm:$0xff] }
  0x87   :  { %7771 = vmatpush1.bf16.msra.mxu1 %v7770_v26  ;;  %7753 = vmatprep.subr.bf16.mxu0 %v7752_v27  ;;  %v7756_v40 = vpack.c.bf16 %v2241_v37, %v2233_v36  ;;  %v2240_v43 = vld [vmem:[#allocation6 + $0x1c0] sm:$0xff]  ;;  %v7776_v44 = vpack.c.bf16 %v2243_v41, %v2235_v38  ;;  %v2234_v45 = vld [vmem:[#allocation6 + $0x190] sm:$0xff]  ;;  %v2249_v47 = vld [vmem:[#allocation6 + $0x208] sm:$0xff] }
  0x88   :  { %7773 = vmatprep.subr.bf16.mxu1 %v7772_v31  ;;  %v2242_v46 = vld [vmem:[#allocation6 + $0x1d0] sm:$0xff]  ;;  %v2257_v48 = vld [vmem:[#allocation6 + $0x248] sm:$0xff]  ;;  %v2251_v49 = vld [vmem:[#allocation6 + $0x218] sm:$0xff]  ;;  %v7758_v51 = vpack.c.bf16 %v2240_v43, %v2232_v42 }
  0x89   :  { %v2259_v50 = vld [vmem:[#allocation6 + $0x258] sm:$0xff]  ;;  %v7778_v52 = vpack.c.bf16 %v2242_v46, %v2234_v45  ;;  %v7760_v53 = vpack.c.bf16 %v2257_v48, %v2249_v47  ;;  %v2248_v54 = vld [vmem:[#allocation6 + $0x200] sm:$0xff]  ;;  %v2250_v57 = vld [vmem:[#allocation6 + $0x210] sm:$0xff] }
  0x8a   :  { %7755 = vmatpush1.bf16.msra.mxu0 %v7754_v35  ;;  %v2256_v55 = vld [vmem:[#allocation6 + $0x240] sm:$0xff]  ;;  %v7780_v56 = vpack.c.bf16 %v2259_v50, %v2251_v49  ;;  %v2258_v58 = vld [vmem:[#allocation6 + $0x250] sm:$0xff]  ;;  %v2265_v61 = vld [vmem:[#allocation6 + $0x288] sm:$0x3] }
  0x8b   :  { %7775 = vmatpush1.bf16.msra.mxu1 %v7774_v39  ;;  %7757 = vmatprep.subr.bf16.mxu0 %v7756_v40  ;;  %v7762_v59 = vpack.c.bf16 %v2256_v55, %v2248_v54  ;;  %v7782_v60 = vpack.c.bf16 %v2258_v58, %v2250_v57  ;;  %v2267_v62 = vld [vmem:[#allocation6 + $0x298] sm:$0x3]  ;;  %v2189_v63 = vld [vmem:[#allocation6 + $0x28] sm:$0xff]  ;;  %v2264_v1 = vld [vmem:[#allocation6 + $0x280] sm:$0x3] }
  0x8c   :  { %7777 = vmatprep.subr.bf16.mxu1 %v7776_v44  ;;  %v2197_v2 = vld [vmem:[#allocation6 + $0x68] sm:$0xff]  ;;  %v2191_v3 = vld [vmem:[#allocation6 + $0x38] sm:$0xff]  ;;  %v2266_v5 = vld [vmem:[#allocation6 + $0x290] sm:$0x3] }
  0x8d   :  { %v2199_v4 = vld [vmem:[#allocation6 + $0x78] sm:$0xff]  ;;  %v2188_v6 = vld [vmem:[#allocation6 + $0x20] sm:$0xff]  ;;  %v2190_v8 = vld [vmem:[#allocation6 + $0x30] sm:$0xff]  ;;  %v7784_v13 = vpack.c.bf16 %v2197_v2, %v2189_v63 }
  0x8e   :  { %7759 = vmatpush1.bf16.msra.mxu0 %v7758_v51  ;;  %v2196_v7 = vld [vmem:[#allocation6 + $0x60] sm:$0xff]  ;;  %v2198_v9 = vld [vmem:[#allocation6 + $0x70] sm:$0xff]  ;;  %v2205_v10 = vld [vmem:[#allocation6 + $0xa8] sm:$0xff]  ;;  %v7804_v14 = vpack.c.bf16 %v2199_v4, %v2191_v3 }
  0x8f   :  { %7779 = vmatpush1.bf16.msra.mxu1 %v7778_v52  ;;  %7761 = vmatprep.subr.bf16.mxu0 %v7760_v53  ;;  %v2213_v11 = vld [vmem:[#allocation6 + $0xe8] sm:$0xff]  ;;  %v11469_v12 = vld [vmem:[#allocation2] sm:$0x1]  ;;  %v7786_v17 = vpack.c.bf16 %v2196_v7, %v2188_v6  ;;  %v7806_v18 = vpack.c.bf16 %v2198_v9, %v2190_v8  ;;  %v2204_v20 = vld [vmem:[#allocation6 + $0xa0] sm:$0xff] }
  0x90   :  { %7781 = vmatprep.subr.bf16.mxu1 %v7780_v56  ;;  %v2207_v15 = vld [vmem:[#allocation6 + $0xb8] sm:$0xff]  ;;  %v7788_v19 = vpack.c.bf16 %v2213_v11, %v2205_v10  ;;  %v2212_v21 = vld [vmem:[#allocation6 + $0xe0] sm:$0xff]  ;;  %v2206_v22 = vld [vmem:[#allocation6 + $0xb0] sm:$0xff] }
  0x91   :  { %v2215_v16 = vld [vmem:[#allocation6 + $0xf8] sm:$0xff]  ;;  %v2214_v24 = vld [vmem:[#allocation6 + $0xf0] sm:$0xff]  ;;  %v2221_v25 = vld [vmem:[#allocation6 + $0x128] sm:$0xff]  ;;  %v7790_v29 = vpack.c.bf16 %v2212_v21, %v2204_v20 }
  0x92   :  { %7763 = vmatpush1.bf16.msra.mxu0 %v7762_v59  ;;  %v7808_v23 = vpack.c.bf16 %v2215_v16, %v2207_v15  ;;  %v2229_v26 = vld [vmem:[#allocation6 + $0x168] sm:$0xff]  ;;  %v2223_v27 = vld [vmem:[#allocation6 + $0x138] sm:$0xff]  ;;  %v7810_v30 = vpack.c.bf16 %v2214_v24, %v2206_v22  ;;  %v2220_v32 = vld [vmem:[#allocation6 + $0x120] sm:$0xff] }
  0x93   :  { %7783 = vmatpush1.bf16.msra.mxu1 %v7782_v60  ;;  %7591 = vmatprep.subr.msk.mxu0 %vm2276_vm0, %v2265_v61  ;;  %v2231_v28 = vld [vmem:[#allocation6 + $0x178] sm:$0xff]  ;;  %v7792_v31 = vpack.c.bf16 %v2229_v26, %v2221_v25  ;;  %v2228_v33 = vld [vmem:[#allocation6 + $0x160] sm:$0xff]  ;;  %v2222_v34 = vld [vmem:[#allocation6 + $0x130] sm:$0xff] }
  0x94   :  { %7594 = vmatprep.subr.msk.mxu1 %vm2276_vm0, %v2267_v62  ;;  %v7812_v35 = vpack.c.bf16 %v2231_v28, %v2223_v27  ;;  %v2230_v36 = vld [vmem:[#allocation6 + $0x170] sm:$0xff]  ;;  %v2237_v37 = vld [vmem:[#allocation6 + $0x1a8] sm:$0xff]  ;;  %v2239_v39 = vld [vmem:[#allocation6 + $0x1b8] sm:$0xff]  ;;  %v7794_v41 = vpack.c.bf16 %v2228_v33, %v2220_v32 }
  0x95   :  { %v2245_v38 = vld [vmem:[#allocation6 + $0x1e8] sm:$0xff]  ;;  %v2247_v40 = vld [vmem:[#allocation6 + $0x1f8] sm:$0xff]  ;;  %v7814_v42 = vpack.c.bf16 %v2230_v36, %v2222_v34  ;;  %v2236_v44 = vld [vmem:[#allocation6 + $0x1a0] sm:$0xff] }
  0x96   :  { %7592 = vmatpush1.msk.msra.mxu0 %vm2276_vm0, %v2264_v1  ;;  %v7796_v43 = vpack.c.bf16 %v2245_v38, %v2237_v37  ;;  %v2244_v45 = vld [vmem:[#allocation6 + $0x1e0] sm:$0xff]  ;;  %v2238_v46 = vld [vmem:[#allocation6 + $0x1b0] sm:$0xff]  ;;  %v7816_v47 = vpack.c.bf16 %v2247_v40, %v2239_v39  ;;  %v2253_v49 = vld [vmem:[#allocation6 + $0x228] sm:$0xff] }
  0x97   :  { %7595 = vmatpush1.msk.msra.mxu1 %vm2276_vm0, %v2266_v5  ;;  %7593 = vmatmul.mubr.msk.f32.vlgmr.msra.gmra.mrb[0].mxu0 %vm2272_vm1, %v11469_v12  ;;  %v2246_v48 = vld [vmem:[#allocation6 + $0x1f0] sm:$0xff]  ;;  %v2261_v50 = vld [vmem:[#allocation6 + $0x268] sm:$0xff]  ;;  %v2255_v51 = vld [vmem:[#allocation6 + $0x238] sm:$0xff]  ;;  %v7798_v53 = vpack.c.bf16 %v2244_v45, %v2236_v44 }
  0x98   :  { %7785 = vmatprep.subr.bf16.mxu0 %v7784_v13  ;;  %7805 = vmatprep.subr.bf16.mxu1 %v7804_v14  ;;  %v2263_v52 = vld [vmem:[#allocation6 + $0x278] sm:$0xff]  ;;  %v7800_v54 = vpack.c.bf16 %v2261_v50, %v2253_v49  ;;  %v2252_v55 = vld [vmem:[#allocation6 + $0x220] sm:$0xff]  ;;  %v2254_v58 = vld [vmem:[#allocation6 + $0x230] sm:$0xff] }
  0x99   :  { %7596 = vmatmul.mubr.msk.f32.vlgmr.msra.gmra.mrb[0].mxu1 %vm2272_vm1, %v11469_v12  ;;  %7787 = vmatpush1.bf16.msra.mxu0 %v7786_v17  ;;  %v2260_v56 = vld [vmem:[#allocation6 + $0x260] sm:$0xff]  ;;  %v7820_v57 = vpack.c.bf16 %v2263_v52, %v2255_v51  ;;  %v2262_v59 = vld [vmem:[#allocation6 + $0x270] sm:$0xff]  ;;  %v2269_v62 = vld [vmem:[#allocation6 + $0x2a8] sm:$0x3] }
  0x9a   :  { %7807 = vmatpush1.bf16.msra.mxu1 %v7806_v18  ;;  %7789 = vmatprep.subr.bf16.mxu0 %v7788_v19  ;;  %v7802_v60 = vpack.c.bf16 %v2260_v56, %v2252_v55  ;;  %v7822_v61 = vpack.c.bf16 %v2262_v59, %v2254_v58  ;;  %v2271_v63 = vld [vmem:[#allocation6 + $0x2b8] sm:$0x3]  ;;  %v137_v1 = vld [vmem:[#allocation4 + $0x8] sm:$0xff]  ;;  %v2268_v2 = vld [vmem:[#allocation6 + $0x2a0] sm:$0x3] }
  0x9b   :  { %7809 = vmatprep.subr.bf16.mxu1 %v7808_v23  ;;  %2507 = vmatprep.mubr.f32.mxu0 %v11321_v0  ;;  %v145_v3 = vld [vmem:[#allocation4 + $0x48] sm:$0xff]  ;;  %v139_v4 = vld [vmem:[#allocation4 + $0x18] sm:$0xff]  ;;  %v136_v6 = vld [vmem:[#allocation4] sm:$0xff] }
  0x9c   :  { %2578 = vmatprep.mubr.f32.mxu1 %v11321_v0  ;;  %v7818_v0 = vpack.c.bf16 %v2246_v48, %v2238_v46  ;;  %v147_v5 = vld [vmem:[#allocation4 + $0x58] sm:$0xff]  ;;  %v144_v7 = vld [vmem:[#allocation4 + $0x40] sm:$0xff]  ;;  %v138_v8 = vld [vmem:[#allocation4 + $0x10] sm:$0xff]  ;;  %v7824_v14 = vpack.c.bf16 %v145_v3, %v137_v1 }
  0x9d   :  { %7791 = vmatpush1.bf16.msra.mxu0 %v7790_v29  ;;  %v146_v9 = vld [vmem:[#allocation4 + $0x50] sm:$0xff]  ;;  %v153_v10 = vld [vmem:[#allocation4 + $0x88] sm:$0xff]  ;;  %v8336_v15 = vpack.c.bf16 %v147_v5, %v139_v4  ;;  %v155_v16 = vld [vmem:[#allocation4 + $0x98] sm:$0xff]  ;;  %v7826_v18 = vpack.c.bf16 %v144_v7, %v136_v6 }
  0x9e   :  { %7811 = vmatpush1.bf16.msra.mxu1 %v7810_v30  ;;  %7793 = vmatprep.subr.bf16.mxu0 %v7792_v31  ;;  %v161_v11 = vld [vmem:[#allocation4 + $0xc8] sm:$0xff]  ;;  %v2270_v13 = vld [vmem:[#allocation6 + $0x2b0] sm:$0x3]  ;;  %v163_v17 = vld [vmem:[#allocation4 + $0xd8] sm:$0xff]  ;;  %v8338_v19 = vpack.c.bf16 %v146_v9, %v138_v8 }
  0x9f   :  { %7813 = vmatprep.subr.bf16.mxu1 %v7812_v35  ;;  %v7828_v20 = vpack.c.bf16 %v161_v11, %v153_v10  ;;  %v152_v21 = vld [vmem:[#allocation4 + $0x80] sm:$0xff]  ;;  %v154_v23 = vld [vmem:[#allocation4 + $0x90] sm:$0xff]  ;;  %v8340_v24 = vpack.c.bf16 %v163_v17, %v155_v16  ;;  %v169_v26 = vld [vmem:[#allocation4 + $0x108] sm:$0xff] }
  0xa0   :  { %v160_v22 = vld [vmem:[#allocation4 + $0xc0] sm:$0xff]  ;;  %v162_v25 = vld [vmem:[#allocation4 + $0xd0] sm:$0xff]  ;;  %v177_v27 = vld [vmem:[#allocation4 + $0x148] sm:$0xff] }
  0xa1   :  { %7795 = vmatpush1.bf16.msra.mxu0 %v7794_v41  ;;  %v171_v28 = vld [vmem:[#allocation4 + $0x118] sm:$0xff]  ;;  %v7830_v30 = vpack.c.bf16 %v160_v22, %v152_v21  ;;  %v8342_v31 = vpack.c.bf16 %v162_v25, %v154_v23  ;;  %v7832_v32 = vpack.c.bf16 %v177_v27, %v169_v26  ;;  %v168_v33 = vld [vmem:[#allocation4 + $0x100] sm:$0xff]  ;;  %v170_v35 = vld [vmem:[#allocation4 + $0x110] sm:$0xff] }
  0xa2   :  { %7815 = vmatpush1.bf16.msra.mxu1 %v7814_v42  ;;  %7797 = vmatprep.subr.bf16.mxu0 %v7796_v43  ;;  %v179_v29 = vld [vmem:[#allocation4 + $0x158] sm:$0xff]  ;;  %v176_v34 = vld [vmem:[#allocation4 + $0x140] sm:$0xff]  ;;  %v178_v37 = vld [vmem:[#allocation4 + $0x150] sm:$0xff] }
  0xa3   :  { %7817 = vmatprep.subr.bf16.mxu1 %v7816_v47  ;;  %v8344_v36 = vpack.c.bf16 %v179_v29, %v171_v28  ;;  %v185_v38 = vld [vmem:[#allocation4 + $0x188] sm:$0xff]  ;;  %v187_v40 = vld [vmem:[#allocation4 + $0x198] sm:$0xff]  ;;  %v7834_v42 = vpack.c.bf16 %v176_v34, %v168_v33  ;;  %v184_v44 = vld [vmem:[#allocation4 + $0x180] sm:$0xff] }
  0xa4   :  { %v193_v39 = vld [vmem:[#allocation4 + $0x1c8] sm:$0xff]  ;;  %v195_v41 = vld [vmem:[#allocation4 + $0x1d8] sm:$0xff]  ;;  %v192_v45 = vld [vmem:[#allocation4 + $0x1c0] sm:$0xff] }
  0xa5   :  { %7799 = vmatpush1.bf16.msra.mxu0 %v7798_v53  ;;  %v7836_v43 = vpack.c.bf16 %v193_v39, %v185_v38  ;;  %v186_v46 = vld [vmem:[#allocation4 + $0x190] sm:$0xff]  ;;  %v8348_v47 = vpack.c.bf16 %v195_v41, %v187_v40  ;;  %v201_v49 = vld [vmem:[#allocation4 + $0x208] sm:$0xff]  ;;  %v203_v51 = vld [vmem:[#allocation4 + $0x218] sm:$0xff]  ;;  %v7838_v53 = vpack.c.bf16 %v192_v45, %v184_v44 }
  0xa6   :  { %7819 = vmatpush1.bf16.msra.mxu1 %v7818_v0  ;;  %7801 = vmatprep.subr.bf16.mxu0 %v7800_v54  ;;  %v194_v48 = vld [vmem:[#allocation4 + $0x1d0] sm:$0xff]  ;;  %v209_v50 = vld [vmem:[#allocation4 + $0x248] sm:$0xff]  ;;  %v211_v52 = vld [vmem:[#allocation4 + $0x258] sm:$0xff] }
  0xa7   :  { %7821 = vmatprep.subr.bf16.mxu1 %v7820_v57  ;;  %v8350_v0 = vpack.c.bf16 %v194_v48, %v186_v46  ;;  %v7840_v54 = vpack.c.bf16 %v209_v50, %v201_v49  ;;  %v200_v55 = vld [vmem:[#allocation4 + $0x200] sm:$0xff]  ;;  %v202_v57 = vld [vmem:[#allocation4 + $0x210] sm:$0xff]  ;;  %v8352_v58 = vpack.c.bf16 %v211_v52, %v203_v51  ;;  %v233_v9 = vld [vmem:[#allocation4 + $0x308] sm:$0xff] }
  0xa8   :  { %v208_v56 = vld [vmem:[#allocation4 + $0x240] sm:$0xff]  ;;  %v210_v59 = vld [vmem:[#allocation4 + $0x250] sm:$0xff]  ;;  %v241_v10 = vld [vmem:[#allocation4 + $0x348] sm:$0xff] }
  0xa9   :  { %7803 = vmatpush1.bf16.msra.mxu0 %v7802_v60  ;;  %v217_v60 = vld [vmem:[#allocation4 + $0x288] sm:$0xff]  ;;  %v7842_v1 = vpack.c.bf16 %v208_v56, %v200_v55  ;;  %v216_v4 = vld [vmem:[#allocation4 + $0x280] sm:$0xff]  ;;  %v218_v6 = vld [vmem:[#allocation4 + $0x290] sm:$0xff]  ;;  %v7848_v16 = vpack.c.bf16 %v241_v10, %v233_v9 }
  0xaa   :  { %7823 = vmatpush1.bf16.msra.mxu1 %v7822_v61  ;;  %7597 = vmatprep.subr.msk.mxu0 %vm2276_vm0, %v2269_v62  ;;  %v225_v61 = vld [vmem:[#allocation4 + $0x2c8] sm:$0xff]  ;;  %v219_v62 = vld [vmem:[#allocation4 + $0x298] sm:$0xff]  ;;  %v224_v5 = vld [vmem:[#allocation4 + $0x2c0] sm:$0xff] }
  0xab   :  { %7600 = vmatprep.subr.msk.mxu1 %vm2276_vm0, %v2271_v63  ;;  %v227_v63 = vld [vmem:[#allocation4 + $0x2d8] sm:$0xff]  ;;  %v7844_v3 = vpack.c.bf16 %v225_v61, %v217_v60  ;;  %v226_v8 = vld [vmem:[#allocation4 + $0x2d0] sm:$0xff]  ;;  %v232_v17 = vld [vmem:[#allocation4 + $0x300] sm:$0xff] }
  0xac   :  { %v8356_v7 = vpack.c.bf16 %v227_v63, %v219_v62  ;;  %v235_v11 = vld [vmem:[#allocation4 + $0x318] sm:$0xff]  ;;  %v242_v21 = vld [vmem:[#allocation4 + $0x350] sm:$0xff]  ;;  %v249_v22 = vld [vmem:[#allocation4 + $0x388] sm:$0xff] }
  0xad   :  { %7598 = vmatpush1.msk.msra.mxu0 %vm2276_vm0, %v2268_v2  ;;  %v8354_v2 = vpack.c.bf16 %v210_v59, %v202_v57  ;;  %v257_v23 = vld [vmem:[#allocation4 + $0x3c8] sm:$0xff]  ;;  %v259_v25 = vld [vmem:[#allocation4 + $0x3d8] sm:$0xff]  ;;  %v248_v27 = vld [vmem:[#allocation4 + $0x380] sm:$0xff] }
  0xae   :  { %7601 = vmatpush1.msk.msra.mxu1 %vm2276_vm0, %v2270_v13  ;;  %7599 = vmatmul.mubr.msk.f32.vlgmr.msra.gmra.mrb[2].mxu0 %vm2272_vm1, %v11469_v12  ;;  %v243_v13 = vld [vmem:[#allocation4 + $0x358] sm:$0xff]  ;;  %v7852_v29 = vpack.c.bf16 %v257_v23, %v249_v22  ;;  %v265_v34 = vld [vmem:[#allocation4 + $0x408] sm:$0xff]  ;;  %v274_v45 = vld [vmem:[#allocation4 + $0x450] sm:$0xff] }
  0xaf   :  { %7825 = vmatprep.subr.bf16.mxu0 %v7824_v14  ;;  %8337 = vmatprep.subr.bf16.mxu1 %v8336_v15  ;;  %v7846_v14 = vpack.c.bf16 %v224_v5, %v216_v4  ;;  %v8358_v15 = vpack.c.bf16 %v226_v8, %v218_v6  ;;  %v275_v38 = vld [vmem:[#allocation4 + $0x458] sm:$0xff]  ;;  %v281_v46 = vld [vmem:[#allocation4 + $0x488] sm:$0xff]  ;;  %v290_v56 = vld [vmem:[#allocation4 + $0x4d0] sm:$0xff] }
  0xb0   :  { %7602 = vmatmul.mubr.msk.f32.vlgmr.msra.gmra.mrb[2].mxu1 %vm2272_vm1, %v11469_v12  ;;  %7827 = vmatpush1.bf16.msra.mxu0 %v7826_v18  ;;  %v8346_v12 = vpack.c.bf16 %v178_v37, %v170_v35  ;;  %v240_v18 = vld [vmem:[#allocation4 + $0x340] sm:$0xff]  ;;  %v273_v35 = vld [vmem:[#allocation4 + $0x448] sm:$0xff]  ;;  %v267_v37 = vld [vmem:[#allocation4 + $0x418] sm:$0xff] }
  0xb1   :  { %8339 = vmatpush1.bf16.msra.mxu1 %v8338_v19  ;;  %7829 = vmatprep.subr.bf16.mxu0 %v7828_v20  ;;  %v234_v19 = vld [vmem:[#allocation4 + $0x310] sm:$0xff]  ;;  %v8360_v20 = vpack.c.bf16 %v243_v13, %v235_v11  ;;  %v7850_v26 = vpack.c.bf16 %v240_v18, %v232_v17  ;;  %v7856_v41 = vpack.c.bf16 %v273_v35, %v265_v34  ;;  %v283_v48 = vld [vmem:[#allocation4 + $0x498] sm:$0xff]  ;;  %v297_v57 = vld [vmem:[#allocation4 + $0x508] sm:$0xff] }
  0xb2   :  { %8341 = vmatprep.subr.bf16.mxu1 %v8340_v24  ;;  %v251_v24 = vld [vmem:[#allocation4 + $0x398] sm:$0xff]  ;;  %v8362_v28 = vpack.c.bf16 %v242_v21, %v234_v19  ;;  %v8368_v44 = vpack.c.bf16 %v275_v38, %v267_v37  ;;  %v306_v5 = vld [vmem:[#allocation4 + $0x550] sm:$0xff]  ;;  %v313_v6 = vld [vmem:[#allocation4 + $0x588] sm:$0xff] }
  0xb3   :  { %v8364_v33 = vpack.c.bf16 %v259_v25, %v251_v24  ;;  %v291_v49 = vld [vmem:[#allocation4 + $0x4d8] sm:$0xff]  ;;  %v322_v18 = vld [vmem:[#allocation4 + $0x5d0] sm:$0xff]  ;;  %v329_v19 = vld [vmem:[#allocation4 + $0x608] sm:$0xff] }
  0xb4   :  { %7831 = vmatpush1.bf16.msra.mxu0 %v7830_v30  ;;  %v256_v30 = vld [vmem:[#allocation4 + $0x3c0] sm:$0xff]  ;;  %v8372_v55 = vpack.c.bf16 %v291_v49, %v283_v48  ;;  %v299_v59 = vld [vmem:[#allocation4 + $0x518] sm:$0xff] }
  0xb5   :  { %8343 = vmatpush1.bf16.msra.mxu1 %v8342_v31  ;;  %7833 = vmatprep.subr.bf16.mxu0 %v7832_v32  ;;  %v250_v31 = vld [vmem:[#allocation4 + $0x390] sm:$0xff]  ;;  %v7854_v39 = vpack.c.bf16 %v256_v30, %v248_v27  ;;  %v307_v60 = vld [vmem:[#allocation4 + $0x558] sm:$0xff]  ;;  %v336_v27 = vld [vmem:[#allocation4 + $0x640] sm:$0xff] }
  0xb6   :  { %8345 = vmatprep.subr.bf16.mxu1 %v8344_v36  ;;  %v258_v32 = vld [vmem:[#allocation4 + $0x3d0] sm:$0xff]  ;;  %v120_v36 = vld [vmem:[%s12141_s0 + $0x8] sm:$0xff]  ;;  %v8376_v4 = vpack.c.bf16 %v307_v60, %v299_v59 }
  0xb7   :  { %2681 = vmatprep.mubr.f32.mxu0 %v120_v36  ;;  %3249 = vmatprep.mubr.f32.mxu1 %v120_v36  ;;  %v8366_v40 = vpack.c.bf16 %v258_v32, %v250_v31  ;;  %v315_v8 = vld [vmem:[#allocation4 + $0x598] sm:$0xff]  ;;  %v338_v30 = vld [vmem:[#allocation4 + $0x650] sm:$0xff]  ;;  %v345_v31 = vld [vmem:[#allocation4 + $0x688] sm:$0xff] }
  0xb8   :  { %7835 = vmatpush1.bf16.msra.mxu0 %v7834_v42  ;;  %v264_v42 = vld [vmem:[#allocation4 + $0x400] sm:$0xff]  ;;  %v323_v9 = vld [vmem:[#allocation4 + $0x5d8] sm:$0xff]  ;;  %v353_v32 = vld [vmem:[#allocation4 + $0x6c8] sm:$0xff] }
  0xb9   :  { %8347 = vmatpush1.bf16.msra.mxu1 %v8346_v12  ;;  %7837 = vmatprep.subr.bf16.mxu0 %v7836_v43  ;;  %v272_v12 = vld [vmem:[#allocation4 + $0x440] sm:$0xff]  ;;  %v266_v43 = vld [vmem:[#allocation4 + $0x410] sm:$0xff]  ;;  %v8380_v17 = vpack.c.bf16 %v323_v9, %v315_v8  ;;  %v331_v21 = vld [vmem:[#allocation4 + $0x618] sm:$0xff]  ;;  %v7876_v37 = vpack.c.bf16 %v353_v32, %v345_v31 }
  0xba   :  { %8349 = vmatprep.subr.bf16.mxu1 %v8348_v47  ;;  %v289_v47 = vld [vmem:[#allocation4 + $0x4c8] sm:$0xff]  ;;  %v7858_v50 = vpack.c.bf16 %v272_v12, %v264_v42  ;;  %v8370_v51 = vpack.c.bf16 %v274_v45, %v266_v43  ;;  %v339_v22 = vld [vmem:[#allocation4 + $0x658] sm:$0xff]  ;;  %v344_v38 = vld [vmem:[#allocation4 + $0x680] sm:$0xff] }
  0xbb   :  { %v7860_v52 = vpack.c.bf16 %v289_v47, %v281_v46  ;;  %v355_v34 = vld [vmem:[#allocation4 + $0x6d8] sm:$0xff]  ;;  %v354_v42 = vld [vmem:[#allocation4 + $0x6d0] sm:$0xff]  ;;  %v361_v12 = vld [vmem:[#allocation4 + $0x708] sm:$0xff] }
  0xbc   :  { %7839 = vmatpush1.bf16.msra.mxu0 %v7838_v53  ;;  %v280_v53 = vld [vmem:[#allocation4 + $0x480] sm:$0xff]  ;;  %v369_v43 = vld [vmem:[#allocation4 + $0x748] sm:$0xff]  ;;  %v371_v45 = vld [vmem:[#allocation4 + $0x758] sm:$0xff] }
  0xbd   :  { %8351 = vmatpush1.bf16.msra.mxu1 %v8350_v0  ;;  %7841 = vmatprep.subr.bf16.mxu0 %v7840_v54  ;;  %v288_v0 = vld [vmem:[#allocation4 + $0x4c0] sm:$0xff]  ;;  %v282_v54 = vld [vmem:[#allocation4 + $0x490] sm:$0xff]  ;;  %v7880_v48 = vpack.c.bf16 %v369_v43, %v361_v12  ;;  %v435_v31 = vld [vmem:[#allocation4 + $0x958] sm:$0xff] }
  0xbe   :  { %8353 = vmatprep.subr.bf16.mxu1 %v8352_v58  ;;  %v305_v58 = vld [vmem:[#allocation4 + $0x548] sm:$0xff]  ;;  %v7862_v61 = vpack.c.bf16 %v288_v0, %v280_v53  ;;  %v8374_v62 = vpack.c.bf16 %v290_v56, %v282_v54  ;;  %v360_v49 = vld [vmem:[#allocation4 + $0x700] sm:$0xff]  ;;  %v370_v53 = vld [vmem:[#allocation4 + $0x750] sm:$0xff] }
  0xbf   :  { %v7864_v63 = vpack.c.bf16 %v305_v58, %v297_v57  ;;  %v377_v0 = vld [vmem:[#allocation4 + $0x788] sm:$0xff]  ;;  %v387_v56 = vld [vmem:[#allocation4 + $0x7d8] sm:$0xff]  ;;  %v376_v60 = vld [vmem:[#allocation4 + $0x780] sm:$0xff] }
  0xc0   :  { %7843 = vmatpush1.bf16.msra.mxu0 %v7842_v1  ;;  %v296_v1 = vld [vmem:[#allocation4 + $0x500] sm:$0xff]  ;;  %v385_v54 = vld [vmem:[#allocation4 + $0x7c8] sm:$0xff]  ;;  %v443_v12 = vld [vmem:[#allocation4 + $0x998] sm:$0xff] }
  0xc1   :  { %8355 = vmatpush1.bf16.msra.mxu1 %v8354_v2  ;;  %7845 = vmatprep.subr.bf16.mxu0 %v7844_v3  ;;  %v304_v2 = vld [vmem:[#allocation4 + $0x540] sm:$0xff]  ;;  %v298_v3 = vld [vmem:[#allocation4 + $0x510] sm:$0xff]  ;;  %v7884_v59 = vpack.c.bf16 %v385_v54, %v377_v0  ;;  %v451_v43 = vld [vmem:[#allocation4 + $0x9d8] sm:$0xff] }
  0xc2   :  { %8357 = vmatprep.subr.bf16.mxu1 %v8356_v7  ;;  %v321_v7 = vld [vmem:[#allocation4 + $0x5c8] sm:$0xff]  ;;  %v7866_v10 = vpack.c.bf16 %v304_v2, %v296_v1  ;;  %v8378_v11 = vpack.c.bf16 %v306_v5, %v298_v3  ;;  %v386_v1 = vld [vmem:[#allocation4 + $0x7d0] sm:$0xff]  ;;  %v403_v5 = vld [vmem:[#allocation4 + $0x858] sm:$0xff] }
  0xc3   :  { %v7868_v13 = vpack.c.bf16 %v321_v7, %v313_v6  ;;  %v393_v2 = vld [vmem:[#allocation4 + $0x808] sm:$0xff]  ;;  %v392_v9 = vld [vmem:[#allocation4 + $0x800] sm:$0xff]  ;;  %v459_v0 = vld [vmem:[#allocation4 + $0xa18] sm:$0xff] }
  0xc4   :  { %7847 = vmatpush1.bf16.msra.mxu0 %v7846_v14  ;;  %v312_v14 = vld [vmem:[#allocation4 + $0x580] sm:$0xff]  ;;  %v401_v3 = vld [vmem:[#allocation4 + $0x848] sm:$0xff]  ;;  %v467_v54 = vld [vmem:[#allocation4 + $0xa58] sm:$0xff] }
  0xc5   :  { %8359 = vmatpush1.bf16.msra.mxu1 %v8358_v15  ;;  %7849 = vmatprep.subr.bf16.mxu0 %v7848_v16  ;;  %v320_v15 = vld [vmem:[#allocation4 + $0x5c0] sm:$0xff]  ;;  %v314_v16 = vld [vmem:[#allocation4 + $0x590] sm:$0xff]  ;;  %v7888_v8 = vpack.c.bf16 %v401_v3, %v393_v2  ;;  %v475_v2 = vld [vmem:[#allocation4 + $0xa98] sm:$0xff] }
  0xc6   :  { %8361 = vmatprep.subr.bf16.mxu1 %v8360_v20  ;;  %v337_v20 = vld [vmem:[#allocation4 + $0x648] sm:$0xff]  ;;  %v7870_v23 = vpack.c.bf16 %v320_v15, %v312_v14  ;;  %v8382_v24 = vpack.c.bf16 %v322_v18, %v314_v16  ;;  %v402_v14 = vld [vmem:[#allocation4 + $0x850] sm:$0xff]  ;;  %v419_v18 = vld [vmem:[#allocation4 + $0x8d8] sm:$0xff] }
  0xc7   :  { %v7872_v25 = vpack.c.bf16 %v337_v20, %v329_v19  ;;  %v409_v15 = vld [vmem:[#allocation4 + $0x888] sm:$0xff]  ;;  %v119_v19 = vld [vmem:[%s12141_s0] sm:$0xff] }
  0xc8   :  { %7851 = vmatpush1.bf16.msra.mxu0 %v7850_v26  ;;  %v328_v26 = vld [vmem:[#allocation4 + $0x600] sm:$0xff]  ;;  %v417_v16 = vld [vmem:[#allocation4 + $0x8c8] sm:$0xff]  ;;  %v483_v3 = vld [vmem:[#allocation4 + $0xad8] sm:$0xff] }
  0xc9   :  { %8363 = vmatpush1.bf16.msra.mxu1 %v8362_v28  ;;  %7853 = vmatprep.subr.bf16.mxu0 %v7852_v29  ;;  %v330_v28 = vld [vmem:[#allocation4 + $0x610] sm:$0xff]  ;;  %v8384_v29 = vpack.c.bf16 %v339_v22, %v331_v21  ;;  %v7874_v35 = vpack.c.bf16 %v336_v27, %v328_v26  ;;  %v7892_v22 = vpack.c.bf16 %v417_v16, %v409_v15  ;;  %v491_v15 = vld [vmem:[#allocation4 + $0xb18] sm:$0xff] }
  0xca   :  { %8365 = vmatprep.subr.bf16.mxu1 %v8364_v33  ;;  %v347_v33 = vld [vmem:[#allocation4 + $0x698] sm:$0xff]  ;;  %v8386_v36 = vpack.c.bf16 %v338_v30, %v330_v28  ;;  %v418_v27 = vld [vmem:[#allocation4 + $0x8d0] sm:$0xff]  ;;  %v425_v28 = vld [vmem:[#allocation4 + $0x908] sm:$0xff] }
  0xcb   :  { %v427_v30 = vld [vmem:[#allocation4 + $0x918] sm:$0xff] }
  0xcc   :  { %7855 = vmatpush1.bf16.msra.mxu0 %v7854_v39  ;;  %v352_v39 = vld [vmem:[#allocation4 + $0x6c0] sm:$0xff]  ;;  %v499_v16 = vld [vmem:[#allocation4 + $0xb58] sm:$0xff] }
  0xcd   :  { %8367 = vmatpush1.bf16.msra.mxu1 %v8366_v40  ;;  %7857 = vmatprep.subr.bf16.mxu0 %v7856_v41  ;;  %v346_v40 = vld [vmem:[#allocation4 + $0x690] sm:$0xff]  ;;  %v8388_v41 = vpack.c.bf16 %v355_v34, %v347_v33  ;;  %v7878_v46 = vpack.c.bf16 %v352_v39, %v344_v38  ;;  %v424_v33 = vld [vmem:[#allocation4 + $0x900] sm:$0xff]  ;;  %v8408_v39 = vpack.c.bf16 %v435_v31, %v427_v30 }
  0xce   :  { %8369 = vmatprep.subr.bf16.mxu1 %v8368_v44  ;;  %v363_v44 = vld [vmem:[#allocation4 + $0x718] sm:$0xff]  ;;  %v8390_v47 = vpack.c.bf16 %v354_v42, %v346_v40  ;;  %v122_v38 = vld [vmem:[%s12141_s0 + $0x18] sm:$0xff] }
  0xcf   :  { %v434_v40 = vld [vmem:[#allocation4 + $0x950] sm:$0xff]  ;;  %v449_v42 = vld [vmem:[#allocation4 + $0x9c8] sm:$0xff] }
  0xd0   :  { %7859 = vmatpush1.bf16.msra.mxu0 %v7858_v50  ;;  %v368_v50 = vld [vmem:[#allocation4 + $0x740] sm:$0xff] }
  0xd1   :  { %8371 = vmatpush1.bf16.msra.mxu1 %v8370_v51  ;;  %7861 = vmatprep.subr.bf16.mxu0 %v7860_v52  ;;  %v362_v51 = vld [vmem:[#allocation4 + $0x710] sm:$0xff]  ;;  %v8392_v52 = vpack.c.bf16 %v371_v45, %v363_v44  ;;  %v7882_v57 = vpack.c.bf16 %v368_v50, %v360_v49  ;;  %v8412_v50 = vpack.c.bf16 %v451_v43, %v443_v12  ;;  %v520_v43 = vld [vmem:[#allocation4 + $0xc00] sm:$0xff] }
  0xd2   :  { %8373 = vmatprep.subr.bf16.mxu1 %v8372_v55  ;;  %v379_v55 = vld [vmem:[#allocation4 + $0x798] sm:$0xff]  ;;  %v8394_v58 = vpack.c.bf16 %v370_v53, %v362_v51  ;;  %v442_v49 = vld [vmem:[#allocation4 + $0x990] sm:$0xff]  ;;  %v465_v53 = vld [vmem:[#allocation4 + $0xa48] sm:$0xff] }
  0xd3   :  { %v450_v51 = vld [vmem:[#allocation4 + $0x9d0] sm:$0xff] }
  0xd4   :  { %7863 = vmatpush1.bf16.msra.mxu0 %v7862_v61  ;;  %v384_v61 = vld [vmem:[#allocation4 + $0x7c0] sm:$0xff] }
  0xd5   :  { %8375 = vmatpush1.bf16.msra.mxu1 %v8374_v62  ;;  %7865 = vmatprep.subr.bf16.mxu0 %v7864_v63  ;;  %v378_v62 = vld [vmem:[#allocation4 + $0x790] sm:$0xff]  ;;  %v8396_v63 = vpack.c.bf16 %v387_v56, %v379_v55  ;;  %v7886_v6 = vpack.c.bf16 %v384_v61, %v376_v60  ;;  %v8414_v56 = vpack.c.bf16 %v450_v51, %v442_v49  ;;  %v545_v49 = vld [vmem:[#allocation4 + $0xcc8] sm:$0xff]  ;;  %v547_v51 = vld [vmem:[#allocation4 + $0xcd8] sm:$0xff] }
  0xd6   :  { %8377 = vmatprep.subr.bf16.mxu1 %v8376_v4  ;;  %v395_v4 = vld [vmem:[#allocation4 + $0x818] sm:$0xff]  ;;  %v8398_v7 = vpack.c.bf16 %v386_v1, %v378_v62  ;;  %v458_v60 = vld [vmem:[#allocation4 + $0xa10] sm:$0xff]  ;;  %v8416_v61 = vpack.c.bf16 %v467_v54, %v459_v0  ;;  %v481_v1 = vld [vmem:[#allocation4 + $0xac8] sm:$0xff] }
  0xd7   :  { %v466_v62 = vld [vmem:[#allocation4 + $0xa50] sm:$0xff]  ;;  %v536_v54 = vld [vmem:[#allocation4 + $0xc80] sm:$0xff] }
  0xd8   :  { %7867 = vmatpush1.bf16.msra.mxu0 %v7866_v10  ;;  %v400_v10 = vld [vmem:[#allocation4 + $0x840] sm:$0xff] }
  0xd9   :  { %8379 = vmatpush1.bf16.msra.mxu1 %v8378_v11  ;;  %7869 = vmatprep.subr.bf16.mxu0 %v7868_v13  ;;  %v394_v11 = vld [vmem:[#allocation4 + $0x810] sm:$0xff]  ;;  %v8400_v13 = vpack.c.bf16 %v403_v5, %v395_v4  ;;  %v7890_v20 = vpack.c.bf16 %v400_v10, %v392_v9  ;;  %v8418_v5 = vpack.c.bf16 %v466_v62, %v458_v60  ;;  %v561_v60 = vld [vmem:[#allocation4 + $0xd48] sm:$0xff]  ;;  %v563_v62 = vld [vmem:[#allocation4 + $0xd58] sm:$0xff] }
  0xda   :  { %8381 = vmatprep.subr.bf16.mxu1 %v8380_v17  ;;  %v411_v17 = vld [vmem:[#allocation4 + $0x898] sm:$0xff]  ;;  %v8402_v21 = vpack.c.bf16 %v402_v14, %v394_v11  ;;  %v474_v9 = vld [vmem:[#allocation4 + $0xa90] sm:$0xff]  ;;  %v8420_v10 = vpack.c.bf16 %v483_v3, %v475_v2  ;;  %v497_v14 = vld [vmem:[#allocation4 + $0xb48] sm:$0xff] }
  0xdb   :  { %v8404_v26 = vpack.c.bf16 %v419_v18, %v411_v17  ;;  %v482_v11 = vld [vmem:[#allocation4 + $0xad0] sm:$0xff]  ;;  %v552_v3 = vld [vmem:[#allocation4 + $0xd00] sm:$0xff] }
  0xdc   :  { %7871 = vmatpush1.bf16.msra.mxu0 %v7870_v23  ;;  %v408_v23 = vld [vmem:[#allocation4 + $0x880] sm:$0xff]  ;;  %v8422_v18 = vpack.c.bf16 %v482_v11, %v474_v9  ;;  %v577_v9 = vld [vmem:[#allocation4 + $0xdc8] sm:$0xff]  ;;  %v579_v11 = vld [vmem:[#allocation4 + $0xdd8] sm:$0xff] }
  0xdd   :  { %8383 = vmatpush1.bf16.msra.mxu1 %v8382_v24  ;;  %7873 = vmatprep.subr.bf16.mxu0 %v7872_v25  ;;  %v416_v24 = vld [vmem:[#allocation4 + $0x8c0] sm:$0xff]  ;;  %v410_v25 = vld [vmem:[#allocation4 + $0x890] sm:$0xff] }
  0xde   :  { %8385 = vmatprep.subr.bf16.mxu1 %v8384_v29  ;;  %v433_v29 = vld [vmem:[#allocation4 + $0x948] sm:$0xff]  ;;  %v7894_v32 = vpack.c.bf16 %v416_v24, %v408_v23  ;;  %v8406_v34 = vpack.c.bf16 %v418_v27, %v410_v25  ;;  %v8424_v23 = vpack.c.bf16 %v499_v16, %v491_v15  ;;  %v498_v24 = vld [vmem:[#allocation4 + $0xb50] sm:$0xff]  ;;  %v507_v27 = vld [vmem:[#allocation4 + $0xb98] sm:$0xff] }
  0xdf   :  { %v505_v25 = vld [vmem:[#allocation4 + $0xb88] sm:$0xff]  ;;  %v568_v16 = vld [vmem:[#allocation4 + $0xd80] sm:$0xff] }
  0xe0   :  { %7875 = vmatpush1.bf16.msra.mxu0 %v7874_v35  ;;  %v7896_v35 = vpack.c.bf16 %v433_v29, %v425_v28  ;;  %v515_v28 = vld [vmem:[#allocation4 + $0xbd8] sm:$0xff] }
  0xe1   :  { %8387 = vmatpush1.bf16.msra.mxu1 %v8386_v36  ;;  %7877 = vmatprep.subr.bf16.mxu0 %v7876_v37  ;;  %v432_v36 = vld [vmem:[#allocation4 + $0x940] sm:$0xff]  ;;  %v426_v37 = vld [vmem:[#allocation4 + $0x910] sm:$0xff] }
  0xe2   :  { %8389 = vmatprep.subr.bf16.mxu1 %v8388_v41  ;;  %v441_v41 = vld [vmem:[#allocation4 + $0x988] sm:$0xff]  ;;  %v7898_v44 = vpack.c.bf16 %v432_v36, %v424_v33  ;;  %v8410_v45 = vpack.c.bf16 %v434_v40, %v426_v37  ;;  %v512_v33 = vld [vmem:[#allocation4 + $0xbc0] sm:$0xff]  ;;  %v514_v36 = vld [vmem:[#allocation4 + $0xbd0] sm:$0xff] }
  0xe3   :  { %v521_v37 = vld [vmem:[#allocation4 + $0xc08] sm:$0xff]  ;;  %v531_v40 = vld [vmem:[#allocation4 + $0xc58] sm:$0xff] }
  0xe4   :  { %7879 = vmatpush1.bf16.msra.mxu0 %v7878_v46  ;;  %v7900_v46 = vpack.c.bf16 %v449_v42, %v441_v41 }
  0xe5   :  { %8391 = vmatpush1.bf16.msra.mxu1 %v8390_v47  ;;  %7881 = vmatprep.subr.bf16.mxu0 %v7880_v48  ;;  %v440_v47 = vld [vmem:[#allocation4 + $0x980] sm:$0xff] }
  0xe6   :  { %8393 = vmatprep.subr.bf16.mxu1 %v8392_v52  ;;  %v448_v48 = vld [vmem:[#allocation4 + $0x9c0] sm:$0xff]  ;;  %v457_v52 = vld [vmem:[#allocation4 + $0xa08] sm:$0xff] }
  0xe7   :  { %v7902_v55 = vpack.c.bf16 %v448_v48, %v440_v47  ;;  %v530_v47 = vld [vmem:[#allocation4 + $0xc50] sm:$0xff]  ;;  %v537_v48 = vld [vmem:[#allocation4 + $0xc88] sm:$0xff] }
  0xe8   :  { %7883 = vmatpush1.bf16.msra.mxu0 %v7882_v57  ;;  %v7904_v57 = vpack.c.bf16 %v465_v53, %v457_v52  ;;  %v7924_v0 = vpack.c.bf16 %v545_v49, %v537_v48 }
  0xe9   :  { %8395 = vmatpush1.bf16.msra.mxu1 %v8394_v58  ;;  %7885 = vmatprep.subr.bf16.mxu0 %v7884_v59  ;;  %v456_v58 = vld [vmem:[#allocation4 + $0xa00] sm:$0xff] }
  0xea   :  { %8397 = vmatprep.subr.bf16.mxu1 %v8396_v63  ;;  %v464_v59 = vld [vmem:[#allocation4 + $0xa40] sm:$0xff]  ;;  %v473_v63 = vld [vmem:[#allocation4 + $0xa88] sm:$0xff] }
  0xeb   :  { %v7906_v4 = vpack.c.bf16 %v464_v59, %v456_v58  ;;  %v546_v58 = vld [vmem:[#allocation4 + $0xcd0] sm:$0xff]  ;;  %v553_v59 = vld [vmem:[#allocation4 + $0xd08] sm:$0xff] }
  0xec   :  { %7887 = vmatpush1.bf16.msra.mxu0 %v7886_v6  ;;  %v7908_v6 = vpack.c.bf16 %v481_v1, %v473_v63  ;;  %v7928_v2 = vpack.c.bf16 %v561_v60, %v553_v59 }
  0xed   :  { %8399 = vmatpush1.bf16.msra.mxu1 %v8398_v7  ;;  %7889 = vmatprep.subr.bf16.mxu0 %v7888_v8  ;;  %v472_v7 = vld [vmem:[#allocation4 + $0xa80] sm:$0xff] }
  0xee   :  { %8401 = vmatprep.subr.bf16.mxu1 %v8400_v13  ;;  %v480_v8 = vld [vmem:[#allocation4 + $0xac0] sm:$0xff]  ;;  %v489_v13 = vld [vmem:[#allocation4 + $0xb08] sm:$0xff] }
  0xef   :  { %2682 = vmatmul.mubr.f32.vlgmr.msra.gmra.mrb[4].mxu0 %v119_v19  ;;  %v7910_v17 = vpack.c.bf16 %v480_v8, %v472_v7  ;;  %v562_v7 = vld [vmem:[#allocation4 + $0xd50] sm:$0xff]  ;;  %v569_v8 = vld [vmem:[#allocation4 + $0xd88] sm:$0xff] }
  0xf0   :  { %7891 = vmatpush1.bf16.msra.mxu0 %v7890_v20  ;;  %3250 = vmatmul.mubr.f32.vlgmr.msra.gmra.mrb[4].mxu1 %v119_v19  ;;  %v7912_v19 = vpack.c.bf16 %v497_v14, %v489_v13  ;;  %v488_v20 = vld [vmem:[#allocation4 + $0xb00] sm:$0xff]  ;;  %v7932_v15 = vpack.c.bf16 %v577_v9, %v569_v8 }
  0xf1   :  { %8403 = vmatpush1.bf16.msra.mxu1 %v8402_v21  ;;  %7893 = vmatprep.subr.bf16.mxu0 %v7892_v22  ;;  %v496_v21 = vld [vmem:[#allocation4 + $0xb40] sm:$0xff]  ;;  %v490_v22 = vld [vmem:[#allocation4 + $0xb10] sm:$0xff] }
  0xf2   :  { %8405 = vmatprep.subr.bf16.mxu1 %v8404_v26  ;;  %2752 = vmatprep.mubr.f32.mxu0 %v122_v38  ;;  %v513_v26 = vld [vmem:[#allocation4 + $0xbc8] sm:$0xff]  ;;  %v7914_v29 = vpack.c.bf16 %v496_v21, %v488_v20  ;;  %v8426_v30 = vpack.c.bf16 %v498_v24, %v490_v22  ;;  %v578_v20 = vld [vmem:[#allocation4 + $0xdd0] sm:$0xff]  ;;  %v595_v24 = vld [vmem:[#allocation4 + $0xe58] sm:$0xff] }
  0xf3   :  { %3320 = vmatprep.mubr.f32.mxu1 %v122_v38  ;;  %v7916_v31 = vpack.c.bf16 %v513_v26, %v505_v25  ;;  %v529_v38 = vld [vmem:[#allocation4 + $0xc48] sm:$0xff] }
  0xf4   :  { %7895 = vmatpush1.bf16.msra.mxu0 %v7894_v32  ;;  %v504_v32 = vld [vmem:[#allocation4 + $0xb80] sm:$0xff]  ;;  %v7920_v12 = vpack.c.bf16 %v529_v38, %v521_v37  ;;  %v585_v21 = vld [vmem:[#allocation4 + $0xe08] sm:$0xff] }
  0xf5   :  { %8407 = vmatpush1.bf16.msra.mxu1 %v8406_v34  ;;  %7897 = vmatprep.subr.bf16.mxu0 %v7896_v35  ;;  %v506_v34 = vld [vmem:[#allocation4 + $0xb90] sm:$0xff]  ;;  %v8428_v35 = vpack.c.bf16 %v515_v28, %v507_v27  ;;  %v7918_v41 = vpack.c.bf16 %v512_v33, %v504_v32  ;;  %v593_v22 = vld [vmem:[#allocation4 + $0xe48] sm:$0xff]  ;;  %v584_v28 = vld [vmem:[#allocation4 + $0xe00] sm:$0xff] }
  0xf6   :  { %8409 = vmatprep.subr.bf16.mxu1 %v8408_v39  ;;  %v523_v39 = vld [vmem:[#allocation4 + $0xc18] sm:$0xff]  ;;  %v8430_v42 = vpack.c.bf16 %v514_v36, %v506_v34  ;;  %v7936_v27 = vpack.c.bf16 %v593_v22, %v585_v21  ;;  %v594_v32 = vld [vmem:[#allocation4 + $0xe50] sm:$0xff]  ;;  %v601_v33 = vld [vmem:[#allocation4 + $0xe88] sm:$0xff] }
  0xf7   :  { %v609_v34 = vld [vmem:[#allocation4 + $0xec8] sm:$0xff]  ;;  %v611_v36 = vld [vmem:[#allocation4 + $0xed8] sm:$0xff] }
  0xf8   :  { %7899 = vmatpush1.bf16.msra.mxu0 %v7898_v44  ;;  %v528_v44 = vld [vmem:[#allocation4 + $0xc40] sm:$0xff] }
  0xf9   :  { %8411 = vmatpush1.bf16.msra.mxu1 %v8410_v45  ;;  %7901 = vmatprep.subr.bf16.mxu0 %v7900_v46  ;;  %v522_v45 = vld [vmem:[#allocation4 + $0xc10] sm:$0xff]  ;;  %v8432_v46 = vpack.c.bf16 %v531_v40, %v523_v39  ;;  %v7922_v52 = vpack.c.bf16 %v528_v44, %v520_v43  ;;  %v7940_v39 = vpack.c.bf16 %v609_v34, %v601_v33  ;;  %v600_v40 = vld [vmem:[#allocation4 + $0xe80] sm:$0xff]  ;;  %v617_v44 = vld [vmem:[#allocation4 + $0xf08] sm:$0xff] }
  0xfa   :  { %8413 = vmatprep.subr.bf16.mxu1 %v8412_v50  ;;  %v539_v50 = vld [vmem:[#allocation4 + $0xc98] sm:$0xff]  ;;  %v8434_v53 = vpack.c.bf16 %v530_v47, %v522_v45  ;;  %v610_v43 = vld [vmem:[#allocation4 + $0xed0] sm:$0xff]  ;;  %v625_v45 = vld [vmem:[#allocation4 + $0xf48] sm:$0xff] }
  0xfb   :  { %v627_v47 = vld [vmem:[#allocation4 + $0xf58] sm:$0xff]  ;;  %v121_v21 = vld [vmem:[%s12141_s0 + $0x10] sm:$0xff] }
  0xfc   :  { %7903 = vmatpush1.bf16.msra.mxu0 %v7902_v55  ;;  %v544_v55 = vld [vmem:[#allocation4 + $0xcc0] sm:$0xff]  ;;  %v691_v33 = vld [vmem:[#allocation4 + $0x1158] sm:$0xff] }
  0xfd   :  { %8415 = vmatpush1.bf16.msra.mxu1 %v8414_v56  ;;  %7905 = vmatprep.subr.bf16.mxu0 %v7904_v57  ;;  %v538_v56 = vld [vmem:[#allocation4 + $0xc90] sm:$0xff]  ;;  %v8436_v57 = vpack.c.bf16 %v547_v51, %v539_v50  ;;  %v7926_v63 = vpack.c.bf16 %v544_v55, %v536_v54  ;;  %v7944_v50 = vpack.c.bf16 %v625_v45, %v617_v44  ;;  %v616_v51 = vld [vmem:[#allocation4 + $0xf00] sm:$0xff]  ;;  %v633_v55 = vld [vmem:[#allocation4 + $0xf88] sm:$0xff] }
  0xfe   :  { %8417 = vmatprep.subr.bf16.mxu1 %v8416_v61  ;;  %v555_v61 = vld [vmem:[#allocation4 + $0xd18] sm:$0xff]  ;;  %v8438_v1 = vpack.c.bf16 %v546_v58, %v538_v56  ;;  %v626_v54 = vld [vmem:[#allocation4 + $0xf50] sm:$0xff]  ;;  %v641_v56 = vld [vmem:[#allocation4 + $0xfc8] sm:$0xff] }
  0xff   :  { %v643_v58 = vld [vmem:[#allocation4 + $0xfd8] sm:$0xff] }
 0x100   :  { %7907 = vmatpush1.bf16.msra.mxu0 %v7906_v4  ;;  %v560_v4 = vld [vmem:[#allocation4 + $0xd40] sm:$0xff]  ;;  %v699_v44 = vld [vmem:[#allocation4 + $0x1198] sm:$0xff] }
 0x101   :  { %8419 = vmatpush1.bf16.msra.mxu1 %v8418_v5  ;;  %7909 = vmatprep.subr.bf16.mxu0 %v7908_v6  ;;  %v554_v5 = vld [vmem:[#allocation4 + $0xd10] sm:$0xff]  ;;  %v8440_v6 = vpack.c.bf16 %v563_v62, %v555_v61  ;;  %v7930_v13 = vpack.c.bf16 %v560_v4, %v552_v3  ;;  %v7948_v61 = vpack.c.bf16 %v641_v56, %v633_v55  ;;  %v632_v62 = vld [vmem:[#allocation4 + $0xf80] sm:$0xff]  ;;  %v649_v4 = vld [vmem:[#allocation4 + $0x1008] sm:$0xff] }
 0x102   :  { %8421 = vmatprep.subr.bf16.mxu1 %v8420_v10  ;;  %v571_v10 = vld [vmem:[#allocation4 + $0xd98] sm:$0xff]  ;;  %v8442_v14 = vpack.c.bf16 %v562_v7, %v554_v5  ;;  %v642_v3 = vld [vmem:[#allocation4 + $0xfd0] sm:$0xff]  ;;  %v657_v5 = vld [vmem:[#allocation4 + $0x1048] sm:$0xff] }
 0x103   :  { %v659_v7 = vld [vmem:[#allocation4 + $0x1058] sm:$0xff] }
 0x104   :  { %7911 = vmatpush1.bf16.msra.mxu0 %v7910_v17  ;;  %v576_v17 = vld [vmem:[#allocation4 + $0xdc0] sm:$0xff]  ;;  %v707_v45 = vld [vmem:[#allocation4 + $0x11d8] sm:$0xff] }
 0x105   :  { %8423 = vmatpush1.bf16.msra.mxu1 %v8422_v18  ;;  %7913 = vmatprep.subr.bf16.mxu0 %v7912_v19  ;;  %v570_v18 = vld [vmem:[#allocation4 + $0xd90] sm:$0xff]  ;;  %v8444_v19 = vpack.c.bf16 %v579_v11, %v571_v10  ;;  %v7934_v25 = vpack.c.bf16 %v576_v17, %v568_v16  ;;  %v7952_v10 = vpack.c.bf16 %v657_v5, %v649_v4  ;;  %v648_v11 = vld [vmem:[#allocation4 + $0x1000] sm:$0xff]  ;;  %v665_v17 = vld [vmem:[#allocation4 + $0x1088] sm:$0xff] }
 0x106   :  { %8425 = vmatprep.subr.bf16.mxu1 %v8424_v23  ;;  %v587_v23 = vld [vmem:[#allocation4 + $0xe18] sm:$0xff]  ;;  %v8446_v26 = vpack.c.bf16 %v578_v20, %v570_v18  ;;  %v658_v16 = vld [vmem:[#allocation4 + $0x1050] sm:$0xff]  ;;  %v673_v18 = vld [vmem:[#allocation4 + $0x10c8] sm:$0xff] }
 0x107   :  { %v675_v20 = vld [vmem:[#allocation4 + $0x10d8] sm:$0xff] }
 0x108   :  { %7915 = vmatpush1.bf16.msra.mxu0 %v7914_v29  ;;  %v592_v29 = vld [vmem:[#allocation4 + $0xe40] sm:$0xff]  ;;  %v715_v55 = vld [vmem:[#allocation4 + $0x1218] sm:$0xff] }
 0x109   :  { %8427 = vmatpush1.bf16.msra.mxu1 %v8426_v30  ;;  %7917 = vmatprep.subr.bf16.mxu0 %v7916_v31  ;;  %v586_v30 = vld [vmem:[#allocation4 + $0xe10] sm:$0xff]  ;;  %v8448_v31 = vpack.c.bf16 %v595_v24, %v587_v23  ;;  %v7938_v37 = vpack.c.bf16 %v592_v29, %v584_v28  ;;  %v7956_v24 = vpack.c.bf16 %v673_v18, %v665_v17  ;;  %v124_v34 = vld [vmem:[%s12141_s0 + $0x28] sm:$0xff] }
 0x10a   :  { %8429 = vmatprep.subr.bf16.mxu1 %v8428_v35  ;;  %v603_v35 = vld [vmem:[#allocation4 + $0xe98] sm:$0xff]  ;;  %v8450_v38 = vpack.c.bf16 %v594_v32, %v586_v30  ;;  %v674_v29 = vld [vmem:[#allocation4 + $0x10d0] sm:$0xff]  ;;  %v681_v30 = vld [vmem:[#allocation4 + $0x1108] sm:$0xff] }
 0x10b   :  { %v683_v32 = vld [vmem:[#allocation4 + $0x1118] sm:$0xff] }
 0x10c   :  { %7919 = vmatpush1.bf16.msra.mxu0 %v7918_v41  ;;  %v608_v41 = vld [vmem:[#allocation4 + $0xec0] sm:$0xff]  ;;  %v723_v56 = vld [vmem:[#allocation4 + $0x1258] sm:$0xff] }
 0x10d   :  { %8431 = vmatpush1.bf16.msra.mxu1 %v8430_v42  ;;  %7921 = vmatprep.subr.bf16.mxu0 %v7920_v12  ;;  %v602_v42 = vld [vmem:[#allocation4 + $0xe90] sm:$0xff]  ;;  %v8452_v12 = vpack.c.bf16 %v611_v36, %v603_v35  ;;  %v7942_v48 = vpack.c.bf16 %v608_v41, %v600_v40  ;;  %v8472_v41 = vpack.c.bf16 %v691_v33, %v683_v32  ;;  %v731_v4 = vld [vmem:[#allocation4 + $0x1298] sm:$0xff] }
 0x10e   :  { %8433 = vmatprep.subr.bf16.mxu1 %v8432_v46  ;;  %v619_v46 = vld [vmem:[#allocation4 + $0xf18] sm:$0xff]  ;;  %v8454_v49 = vpack.c.bf16 %v610_v43, %v602_v42  ;;  %v682_v40 = vld [vmem:[#allocation4 + $0x1110] sm:$0xff]  ;;  %v705_v43 = vld [vmem:[#allocation4 + $0x11c8] sm:$0xff] }
 0x10f   :  { %v690_v42 = vld [vmem:[#allocation4 + $0x1150] sm:$0xff]  ;;  %v739_v5 = vld [vmem:[#allocation4 + $0x12d8] sm:$0xff] }
 0x110   :  { %7923 = vmatpush1.bf16.msra.mxu0 %v7922_v52  ;;  %v624_v52 = vld [vmem:[#allocation4 + $0xf40] sm:$0xff]  ;;  %v747_v17 = vld [vmem:[#allocation4 + $0x1318] sm:$0xff] }
 0x111   :  { %8435 = vmatpush1.bf16.msra.mxu1 %v8434_v53  ;;  %7925 = vmatprep.subr.bf16.mxu0 %v7924_v0  ;;  %v618_v53 = vld [vmem:[#allocation4 + $0xf10] sm:$0xff]  ;;  %v8456_v0 = vpack.c.bf16 %v627_v47, %v619_v46  ;;  %v7946_v59 = vpack.c.bf16 %v624_v52, %v616_v51  ;;  %v8474_v47 = vpack.c.bf16 %v690_v42, %v682_v40  ;;  %v755_v18 = vld [vmem:[#allocation4 + $0x1358] sm:$0xff]  ;;  %v785_v40 = vld [vmem:[#allocation4 + $0x1448] sm:$0xff] }
 0x112   :  { %8437 = vmatprep.subr.bf16.mxu1 %v8436_v57  ;;  %v635_v57 = vld [vmem:[#allocation4 + $0xf98] sm:$0xff]  ;;  %v8458_v60 = vpack.c.bf16 %v626_v54, %v618_v53  ;;  %v698_v51 = vld [vmem:[#allocation4 + $0x1190] sm:$0xff]  ;;  %v8476_v52 = vpack.c.bf16 %v707_v45, %v699_v44  ;;  %v721_v54 = vld [vmem:[#allocation4 + $0x1248] sm:$0xff] }
 0x113   :  { %v706_v53 = vld [vmem:[#allocation4 + $0x11d0] sm:$0xff]  ;;  %v787_v42 = vld [vmem:[#allocation4 + $0x1458] sm:$0xff]  ;;  %v776_v45 = vld [vmem:[#allocation4 + $0x1400] sm:$0xff] }
 0x114   :  { %7927 = vmatpush1.bf16.msra.mxu0 %v7926_v63  ;;  %v640_v63 = vld [vmem:[#allocation4 + $0xfc0] sm:$0xff] }
 0x115   :  { %8439 = vmatpush1.bf16.msra.mxu1 %v8438_v1  ;;  %7929 = vmatprep.subr.bf16.mxu0 %v7928_v2  ;;  %v634_v1 = vld [vmem:[#allocation4 + $0xf90] sm:$0xff]  ;;  %v8460_v2 = vpack.c.bf16 %v643_v58, %v635_v57  ;;  %v7950_v8 = vpack.c.bf16 %v640_v63, %v632_v62  ;;  %v8478_v58 = vpack.c.bf16 %v706_v53, %v698_v51  ;;  %v801_v51 = vld [vmem:[#allocation4 + $0x14c8] sm:$0xff]  ;;  %v803_v53 = vld [vmem:[#allocation4 + $0x14d8] sm:$0xff] }
 0x116   :  { %8441 = vmatprep.subr.bf16.mxu1 %v8440_v6  ;;  %v651_v6 = vld [vmem:[#allocation4 + $0x1018] sm:$0xff]  ;;  %v8462_v9 = vpack.c.bf16 %v642_v3, %v634_v1  ;;  %v714_v62 = vld [vmem:[#allocation4 + $0x1210] sm:$0xff]  ;;  %v8480_v63 = vpack.c.bf16 %v723_v56, %v715_v55  ;;  %v737_v3 = vld [vmem:[#allocation4 + $0x12c8] sm:$0xff] }
 0x117   :  { %v722_v1 = vld [vmem:[#allocation4 + $0x1250] sm:$0xff]  ;;  %v792_v56 = vld [vmem:[#allocation4 + $0x1480] sm:$0xff] }
 0x118   :  { %7931 = vmatpush1.bf16.msra.mxu0 %v7930_v13  ;;  %v656_v13 = vld [vmem:[#allocation4 + $0x1040] sm:$0xff] }
 0x119   :  { %8443 = vmatpush1.bf16.msra.mxu1 %v8442_v14  ;;  %7933 = vmatprep.subr.bf16.mxu0 %v7932_v15  ;;  %v650_v14 = vld [vmem:[#allocation4 + $0x1010] sm:$0xff]  ;;  %v8464_v15 = vpack.c.bf16 %v659_v7, %v651_v6  ;;  %v7954_v22 = vpack.c.bf16 %v656_v13, %v648_v11  ;;  %v8482_v7 = vpack.c.bf16 %v722_v1, %v714_v62  ;;  %v817_v62 = vld [vmem:[#allocation4 + $0x1548] sm:$0xff]  ;;  %v819_v1 = vld [vmem:[#allocation4 + $0x1558] sm:$0xff] }
 0x11a   :  { %8445 = vmatprep.subr.bf16.mxu1 %v8444_v19  ;;  %v667_v19 = vld [vmem:[#allocation4 + $0x1098] sm:$0xff]  ;;  %v8466_v23 = vpack.c.bf16 %v658_v16, %v650_v14  ;;  %v730_v11 = vld [vmem:[#allocation4 + $0x1290] sm:$0xff]  ;;  %v8484_v13 = vpack.c.bf16 %v739_v5, %v731_v4  ;;  %v753_v16 = vld [vmem:[#allocation4 + $0x1348] sm:$0xff] }
 0x11b   :  { %v8468_v28 = vpack.c.bf16 %v675_v20, %v667_v19  ;;  %v738_v14 = vld [vmem:[#allocation4 + $0x12d0] sm:$0xff]  ;;  %v808_v5 = vld [vmem:[#allocation4 + $0x1500] sm:$0xff] }
 0x11c   :  { %7935 = vmatpush1.bf16.msra.mxu0 %v7934_v25  ;;  %v664_v25 = vld [vmem:[#allocation4 + $0x1080] sm:$0xff]  ;;  %v8486_v20 = vpack.c.bf16 %v738_v14, %v730_v11  ;;  %v833_v11 = vld [vmem:[#allocation4 + $0x15c8] sm:$0xff]  ;;  %v835_v14 = vld [vmem:[#allocation4 + $0x15d8] sm:$0xff] }
 0x11d   :  { %8447 = vmatpush1.bf16.msra.mxu1 %v8446_v26  ;;  %7937 = vmatprep.subr.bf16.mxu0 %v7936_v27  ;;  %v672_v26 = vld [vmem:[#allocation4 + $0x10c0] sm:$0xff]  ;;  %v666_v27 = vld [vmem:[#allocation4 + $0x1090] sm:$0xff] }
 0x11e   :  { %8449 = vmatprep.subr.bf16.mxu1 %v8448_v31  ;;  %v689_v31 = vld [vmem:[#allocation4 + $0x1148] sm:$0xff]  ;;  %v7958_v35 = vpack.c.bf16 %v672_v26, %v664_v25  ;;  %v8470_v36 = vpack.c.bf16 %v674_v29, %v666_v27  ;;  %v8488_v25 = vpack.c.bf16 %v755_v18, %v747_v17  ;;  %v754_v26 = vld [vmem:[#allocation4 + $0x1350] sm:$0xff]  ;;  %v763_v29 = vld [vmem:[#allocation4 + $0x1398] sm:$0xff] }
 0x11f   :  { %v761_v27 = vld [vmem:[#allocation4 + $0x1388] sm:$0xff]  ;;  %v824_v18 = vld [vmem:[#allocation4 + $0x1580] sm:$0xff] }
 0x120   :  { %7939 = vmatpush1.bf16.msra.mxu0 %v7938_v37  ;;  %v7960_v37 = vpack.c.bf16 %v689_v31, %v681_v30  ;;  %v771_v30 = vld [vmem:[#allocation4 + $0x13d8] sm:$0xff] }
 0x121   :  { %8451 = vmatpush1.bf16.msra.mxu1 %v8450_v38  ;;  %7941 = vmatprep.subr.bf16.mxu0 %v7940_v39  ;;  %v680_v38 = vld [vmem:[#allocation4 + $0x1100] sm:$0xff] }
 0x122   :  { %8453 = vmatprep.subr.bf16.mxu1 %v8452_v12  ;;  %v688_v39 = vld [vmem:[#allocation4 + $0x1140] sm:$0xff]  ;;  %v697_v12 = vld [vmem:[#allocation4 + $0x1188] sm:$0xff] }
 0x123   :  { %v7962_v46 = vpack.c.bf16 %v688_v39, %v680_v38  ;;  %v770_v38 = vld [vmem:[#allocation4 + $0x13d0] sm:$0xff]  ;;  %v777_v39 = vld [vmem:[#allocation4 + $0x1408] sm:$0xff] }
 0x124   :  { %7943 = vmatpush1.bf16.msra.mxu0 %v7942_v48  ;;  %v7964_v48 = vpack.c.bf16 %v705_v43, %v697_v12  ;;  %v7984_v44 = vpack.c.bf16 %v785_v40, %v777_v39 }
 0x125   :  { %8455 = vmatpush1.bf16.msra.mxu1 %v8454_v49  ;;  %7945 = vmatprep.subr.bf16.mxu0 %v7944_v50  ;;  %v696_v49 = vld [vmem:[#allocation4 + $0x1180] sm:$0xff] }
 0x126   :  { %8457 = vmatprep.subr.bf16.mxu1 %v8456_v0  ;;  %v704_v50 = vld [vmem:[#allocation4 + $0x11c0] sm:$0xff]  ;;  %v713_v0 = vld [vmem:[#allocation4 + $0x1208] sm:$0xff] }
 0x127   :  { %v7966_v57 = vpack.c.bf16 %v704_v50, %v696_v49  ;;  %v786_v49 = vld [vmem:[#allocation4 + $0x1450] sm:$0xff]  ;;  %v793_v50 = vld [vmem:[#allocation4 + $0x1488] sm:$0xff] }
 0x128   :  { %7947 = vmatpush1.bf16.msra.mxu0 %v7946_v59  ;;  %v7968_v59 = vpack.c.bf16 %v721_v54, %v713_v0  ;;  %v7988_v55 = vpack.c.bf16 %v801_v51, %v793_v50 }
 0x129   :  { %8459 = vmatpush1.bf16.msra.mxu1 %v8458_v60  ;;  %7949 = vmatprep.subr.bf16.mxu0 %v7948_v61  ;;  %v712_v60 = vld [vmem:[#allocation4 + $0x1200] sm:$0xff] }
 0x12a   :  { %8461 = vmatprep.subr.bf16.mxu1 %v8460_v2  ;;  %v720_v61 = vld [vmem:[#allocation4 + $0x1240] sm:$0xff]  ;;  %v729_v2 = vld [vmem:[#allocation4 + $0x1288] sm:$0xff] }
 0x12b   :  { %v7970_v6 = vpack.c.bf16 %v720_v61, %v712_v60  ;;  %v802_v60 = vld [vmem:[#allocation4 + $0x14d0] sm:$0xff]  ;;  %v809_v61 = vld [vmem:[#allocation4 + $0x1508] sm:$0xff] }
 0x12c   :  { %7951 = vmatpush1.bf16.msra.mxu0 %v7950_v8  ;;  %v7972_v8 = vpack.c.bf16 %v737_v3, %v729_v2  ;;  %v7992_v4 = vpack.c.bf16 %v817_v62, %v809_v61 }
 0x12d   :  { %8463 = vmatpush1.bf16.msra.mxu1 %v8462_v9  ;;  %7953 = vmatprep.subr.bf16.mxu0 %v7952_v10  ;;  %v728_v9 = vld [vmem:[#allocation4 + $0x1280] sm:$0xff] }
 0x12e   :  { %8465 = vmatprep.subr.bf16.mxu1 %v8464_v15  ;;  %v736_v10 = vld [vmem:[#allocation4 + $0x12c0] sm:$0xff]  ;;  %v745_v15 = vld [vmem:[#allocation4 + $0x1308] sm:$0xff] }
 0x12f   :  { %2753 = vmatmul.mubr.f32.vlgmr.msra.gmra.mrb[4].mxu0 %v121_v21  ;;  %v7974_v19 = vpack.c.bf16 %v736_v10, %v728_v9  ;;  %v818_v9 = vld [vmem:[#allocation4 + $0x1550] sm:$0xff]  ;;  %v825_v10 = vld [vmem:[#allocation4 + $0x1588] sm:$0xff] }
 0x130   :  { %7955 = vmatpush1.bf16.msra.mxu0 %v7954_v22  ;;  %3321 = vmatmul.mubr.f32.vlgmr.msra.gmra.mrb[4].mxu1 %v121_v21  ;;  %v7976_v21 = vpack.c.bf16 %v753_v16, %v745_v15  ;;  %v744_v22 = vld [vmem:[#allocation4 + $0x1300] sm:$0xff]  ;;  %v7996_v17 = vpack.c.bf16 %v833_v11, %v825_v10 }
 0x131   :  { %8467 = vmatpush1.bf16.msra.mxu1 %v8466_v23  ;;  %7957 = vmatprep.subr.bf16.mxu0 %v7956_v24  ;;  %v752_v23 = vld [vmem:[#allocation4 + $0x1340] sm:$0xff]  ;;  %v746_v24 = vld [vmem:[#allocation4 + $0x1310] sm:$0xff] }
 0x132   :  { %8469 = vmatprep.subr.bf16.mxu1 %v8468_v28  ;;  %2823 = vmatprep.mubr.f32.mxu0 %v124_v34  ;;  %v769_v28 = vld [vmem:[#allocation4 + $0x13c8] sm:$0xff]  ;;  %v7978_v31 = vpack.c.bf16 %v752_v23, %v744_v22  ;;  %v8490_v32 = vpack.c.bf16 %v754_v26, %v746_v24  ;;  %v834_v22 = vld [vmem:[#allocation4 + $0x15d0] sm:$0xff]  ;;  %v851_v26 = vld [vmem:[#allocation4 + $0x1658] sm:$0xff] }
 0x133   :  { %3391 = vmatprep.mubr.f32.mxu1 %v124_v34  ;;  %v7980_v33 = vpack.c.bf16 %v769_v28, %v761_v27  ;;  %v760_v34 = vld [vmem:[#allocation4 + $0x1380] sm:$0xff]  ;;  %v841_v23 = vld [vmem:[#allocation4 + $0x1608] sm:$0xff] }
 0x134   :  { %7959 = vmatpush1.bf16.msra.mxu0 %v7958_v35  ;;  %v768_v35 = vld [vmem:[#allocation4 + $0x13c0] sm:$0xff]  ;;  %v849_v24 = vld [vmem:[#allocation4 + $0x1648] sm:$0xff] }
 0x135   :  { %8471 = vmatpush1.bf16.msra.mxu1 %v8470_v36  ;;  %7961 = vmatprep.subr.bf16.mxu0 %v7960_v37  ;;  %v762_v36 = vld [vmem:[#allocation4 + $0x1390] sm:$0xff]  ;;  %v8492_v37 = vpack.c.bf16 %v771_v30, %v763_v29  ;;  %v7982_v12 = vpack.c.bf16 %v768_v35, %v760_v34  ;;  %v8000_v29 = vpack.c.bf16 %v849_v24, %v841_v23  ;;  %v840_v30 = vld [vmem:[#allocation4 + $0x1600] sm:$0xff]  ;;  %v857_v35 = vld [vmem:[#allocation4 + $0x1688] sm:$0xff] }
 0x136   :  { %8473 = vmatprep.subr.bf16.mxu1 %v8472_v41  ;;  %v779_v41 = vld [vmem:[#allocation4 + $0x1418] sm:$0xff]  ;;  %v8494_v43 = vpack.c.bf16 %v770_v38, %v762_v36  ;;  %v850_v34 = vld [vmem:[#allocation4 + $0x1650] sm:$0xff]  ;;  %v865_v36 = vld [vmem:[#allocation4 + $0x16c8] sm:$0xff] }
 0x137   :  { %v867_v38 = vld [vmem:[#allocation4 + $0x16d8] sm:$0xff] }
 0x138   :  { %7963 = vmatpush1.bf16.msra.mxu0 %v7962_v46  ;;  %v784_v46 = vld [vmem:[#allocation4 + $0x1440] sm:$0xff]  ;;  %v923_v23 = vld [vmem:[#allocation4 + $0x1898] sm:$0xff] }
 0x139   :  { %8475 = vmatpush1.bf16.msra.mxu1 %v8474_v47  ;;  %7965 = vmatprep.subr.bf16.mxu0 %v7964_v48  ;;  %v778_v47 = vld [vmem:[#allocation4 + $0x1410] sm:$0xff]  ;;  %v8496_v48 = vpack.c.bf16 %v787_v42, %v779_v41  ;;  %v7986_v0 = vpack.c.bf16 %v784_v46, %v776_v45  ;;  %v8004_v41 = vpack.c.bf16 %v865_v36, %v857_v35  ;;  %v856_v42 = vld [vmem:[#allocation4 + $0x1680] sm:$0xff]  ;;  %v873_v46 = vld [vmem:[#allocation4 + $0x1708] sm:$0xff] }
 0x13a   :  { %8477 = vmatprep.subr.bf16.mxu1 %v8476_v52  ;;  %v795_v52 = vld [vmem:[#allocation4 + $0x1498] sm:$0xff]  ;;  %v8498_v54 = vpack.c.bf16 %v786_v49, %v778_v47  ;;  %v866_v45 = vld [vmem:[#allocation4 + $0x16d0] sm:$0xff]  ;;  %v881_v47 = vld [vmem:[#allocation4 + $0x1748] sm:$0xff] }
 0x13b   :  { %v883_v49 = vld [vmem:[#allocation4 + $0x1758] sm:$0xff]  ;;  %v930_v35 = vld [vmem:[#allocation4 + $0x18d0] sm:$0xff]  ;;  %v937_v36 = vld [vmem:[#allocation4 + $0x1908] sm:$0xff] }
 0x13c   :  { %7967 = vmatpush1.bf16.msra.mxu0 %v7966_v57  ;;  %v800_v57 = vld [vmem:[#allocation4 + $0x14c0] sm:$0xff]  ;;  %v931_v24 = vld [vmem:[#allocation4 + $0x18d8] sm:$0xff] }
 0x13d   :  { %8479 = vmatpush1.bf16.msra.mxu1 %v8478_v58  ;;  %7969 = vmatprep.subr.bf16.mxu0 %v7968_v59  ;;  %v794_v58 = vld [vmem:[#allocation4 + $0x1490] sm:$0xff]  ;;  %v8500_v59 = vpack.c.bf16 %v803_v53, %v795_v52  ;;  %v7990_v2 = vpack.c.bf16 %v800_v57, %v792_v56  ;;  %v8008_v52 = vpack.c.bf16 %v881_v47, %v873_v46  ;;  %v872_v53 = vld [vmem:[#allocation4 + $0x1700] sm:$0xff]  ;;  %v889_v57 = vld [vmem:[#allocation4 + $0x1788] sm:$0xff] }
 0x13e   :  { %8481 = vmatprep.subr.bf16.mxu1 %v8480_v63  ;;  %v811_v63 = vld [vmem:[#allocation4 + $0x1518] sm:$0xff]  ;;  %v8502_v3 = vpack.c.bf16 %v802_v60, %v794_v58  ;;  %v882_v56 = vld [vmem:[#allocation4 + $0x1750] sm:$0xff]  ;;  %v897_v58 = vld [vmem:[#allocation4 + $0x17c8] sm:$0xff] }
 0x13f   :  { %v899_v60 = vld [vmem:[#allocation4 + $0x17d8] sm:$0xff]  ;;  %v946_v47 = vld [vmem:[#allocation4 + $0x1950] sm:$0xff] }
 0x140   :  { %7971 = vmatpush1.bf16.msra.mxu0 %v7970_v6  ;;  %v816_v6 = vld [vmem:[#allocation4 + $0x1540] sm:$0xff] }
 0x141   :  { %8483 = vmatpush1.bf16.msra.mxu1 %v8482_v7  ;;  %7973 = vmatprep.subr.bf16.mxu0 %v7972_v8  ;;  %v810_v7 = vld [vmem:[#allocation4 + $0x1510] sm:$0xff]  ;;  %v8504_v8 = vpack.c.bf16 %v819_v1, %v811_v63  ;;  %v7994_v15 = vpack.c.bf16 %v816_v6, %v808_v5  ;;  %v8012_v63 = vpack.c.bf16 %v897_v58, %v889_v57  ;;  %v888_v1 = vld [vmem:[#allocation4 + $0x1780] sm:$0xff]  ;;  %v905_v6 = vld [vmem:[#allocation4 + $0x1808] sm:$0xff] }
 0x142   :  { %8485 = vmatprep.subr.bf16.mxu1 %v8484_v13  ;;  %v827_v13 = vld [vmem:[#allocation4 + $0x1598] sm:$0xff]  ;;  %v8506_v16 = vpack.c.bf16 %v818_v9, %v810_v7  ;;  %v898_v5 = vld [vmem:[#allocation4 + $0x17d0] sm:$0xff]  ;;  %v913_v7 = vld [vmem:[#allocation4 + $0x1848] sm:$0xff] }
 0x143   :  { %v915_v9 = vld [vmem:[#allocation4 + $0x1858] sm:$0xff]  ;;  %v962_v58 = vld [vmem:[#allocation4 + $0x19d0] sm:$0xff] }
 0x144   :  { %7975 = vmatpush1.bf16.msra.mxu0 %v7974_v19  ;;  %v832_v19 = vld [vmem:[#allocation4 + $0x15c0] sm:$0xff] }
 0x145   :  { %8487 = vmatpush1.bf16.msra.mxu1 %v8486_v20  ;;  %7977 = vmatprep.subr.bf16.mxu0 %v7976_v21  ;;  %v826_v20 = vld [vmem:[#allocation4 + $0x1590] sm:$0xff]  ;;  %v8508_v21 = vpack.c.bf16 %v835_v14, %v827_v13  ;;  %v7998_v27 = vpack.c.bf16 %v832_v19, %v824_v18  ;;  %v8016_v13 = vpack.c.bf16 %v913_v7, %v905_v6  ;;  %v904_v14 = vld [vmem:[#allocation4 + $0x1800] sm:$0xff] }
 0x146   :  { %8489 = vmatprep.subr.bf16.mxu1 %v8488_v25  ;;  %v843_v25 = vld [vmem:[#allocation4 + $0x1618] sm:$0xff]  ;;  %v8510_v28 = vpack.c.bf16 %v834_v22, %v826_v20  ;;  %v914_v19 = vld [vmem:[#allocation4 + $0x1850] sm:$0xff]  ;;  %v921_v20 = vld [vmem:[#allocation4 + $0x1888] sm:$0xff] }
 0x147   :  { %v978_v7 = vld [vmem:[#allocation4 + $0x1a50] sm:$0xff] }
 0x148   :  { %7979 = vmatpush1.bf16.msra.mxu0 %v7978_v31  ;;  %v848_v31 = vld [vmem:[#allocation4 + $0x1640] sm:$0xff] }
 0x149   :  { %8491 = vmatpush1.bf16.msra.mxu1 %v8490_v32  ;;  %7981 = vmatprep.subr.bf16.mxu0 %v7980_v33  ;;  %v842_v32 = vld [vmem:[#allocation4 + $0x1610] sm:$0xff]  ;;  %v8512_v33 = vpack.c.bf16 %v851_v26, %v843_v25  ;;  %v8002_v39 = vpack.c.bf16 %v848_v31, %v840_v30  ;;  %v920_v30 = vld [vmem:[#allocation4 + $0x1880] sm:$0xff] }
 0x14a   :  { %8493 = vmatprep.subr.bf16.mxu1 %v8492_v37  ;;  %v859_v37 = vld [vmem:[#allocation4 + $0x1698] sm:$0xff]  ;;  %v8514_v40 = vpack.c.bf16 %v850_v34, %v842_v32  ;;  %v928_v31 = vld [vmem:[#allocation4 + $0x18c0] sm:$0xff]  ;;  %v922_v32 = vld [vmem:[#allocation4 + $0x1890] sm:$0xff]  ;;  %v8532_v34 = vpack.c.bf16 %v931_v24, %v923_v23 }
 0x14b   :  { %v123_v25 = vld [vmem:[%s12141_s0 + $0x20] sm:$0xff]  ;;  %v1001_v23 = vld [vmem:[#allocation4 + $0x1b08] sm:$0xff] }
 0x14c   :  { %7983 = vmatpush1.bf16.msra.mxu0 %v7982_v12  ;;  %v864_v12 = vld [vmem:[#allocation4 + $0x16c0] sm:$0xff]  ;;  %v1009_v24 = vld [vmem:[#allocation4 + $0x1b48] sm:$0xff] }
 0x14d   :  { %8495 = vmatpush1.bf16.msra.mxu1 %v8494_v43  ;;  %7985 = vmatprep.subr.bf16.mxu0 %v7984_v44  ;;  %v858_v43 = vld [vmem:[#allocation4 + $0x1690] sm:$0xff]  ;;  %v8516_v44 = vpack.c.bf16 %v867_v38, %v859_v37  ;;  %v8006_v50 = vpack.c.bf16 %v864_v12, %v856_v42  ;;  %v945_v37 = vld [vmem:[#allocation4 + $0x1948] sm:$0xff]  ;;  %v939_v38 = vld [vmem:[#allocation4 + $0x1918] sm:$0xff]  ;;  %v8534_v42 = vpack.c.bf16 %v930_v35, %v922_v32 }
 0x14e   :  { %8497 = vmatprep.subr.bf16.mxu1 %v8496_v48  ;;  %v875_v48 = vld [vmem:[#allocation4 + $0x1718] sm:$0xff]  ;;  %v8518_v51 = vpack.c.bf16 %v866_v45, %v858_v43  ;;  %v8024_v12 = vpack.c.bf16 %v945_v37, %v937_v36  ;;  %v936_v43 = vld [vmem:[#allocation4 + $0x1900] sm:$0xff]  ;;  %v938_v45 = vld [vmem:[#allocation4 + $0x1910] sm:$0xff] }
 0x14f   :  { %v1000_v32 = vld [vmem:[#allocation4 + $0x1b00] sm:$0xff]  ;;  %v1002_v35 = vld [vmem:[#allocation4 + $0x1b10] sm:$0xff] }
 0x150   :  { %7987 = vmatpush1.bf16.msra.mxu0 %v7986_v0  ;;  %v880_v0 = vld [vmem:[#allocation4 + $0x1740] sm:$0xff] }
 0x151   :  { %8499 = vmatpush1.bf16.msra.mxu1 %v8498_v54  ;;  %7989 = vmatprep.subr.bf16.mxu0 %v7988_v55  ;;  %v874_v54 = vld [vmem:[#allocation4 + $0x1710] sm:$0xff]  ;;  %v8520_v55 = vpack.c.bf16 %v883_v49, %v875_v48  ;;  %v8010_v61 = vpack.c.bf16 %v880_v0, %v872_v53  ;;  %v953_v48 = vld [vmem:[#allocation4 + $0x1988] sm:$0xff]  ;;  %v8538_v53 = vpack.c.bf16 %v946_v47, %v938_v45  ;;  %v1016_v47 = vld [vmem:[#allocation4 + $0x1b80] sm:$0xff] }
 0x152   :  { %8501 = vmatprep.subr.bf16.mxu1 %v8500_v59  ;;  %v891_v59 = vld [vmem:[#allocation4 + $0x1798] sm:$0xff]  ;;  %v8522_v62 = vpack.c.bf16 %v882_v56, %v874_v54  ;;  %v961_v49 = vld [vmem:[#allocation4 + $0x19c8] sm:$0xff]  ;;  %v952_v54 = vld [vmem:[#allocation4 + $0x1980] sm:$0xff] }
 0x153   :  { %v8028_v0 = vpack.c.bf16 %v961_v49, %v953_v48  ;;  %v954_v56 = vld [vmem:[#allocation4 + $0x1990] sm:$0xff]  ;;  %v1024_v48 = vld [vmem:[#allocation4 + $0x1bc0] sm:$0xff] }
 0x154   :  { %7991 = vmatpush1.bf16.msra.mxu0 %v7990_v2  ;;  %v896_v2 = vld [vmem:[#allocation4 + $0x17c0] sm:$0xff]  ;;  %v1018_v49 = vld [vmem:[#allocation4 + $0x1b90] sm:$0xff] }
 0x155   :  { %8503 = vmatpush1.bf16.msra.mxu1 %v8502_v3  ;;  %7993 = vmatprep.subr.bf16.mxu0 %v7992_v4  ;;  %v890_v3 = vld [vmem:[#allocation4 + $0x1790] sm:$0xff]  ;;  %v8524_v4 = vpack.c.bf16 %v899_v60, %v891_v59  ;;  %v8014_v10 = vpack.c.bf16 %v896_v2, %v888_v1  ;;  %v969_v59 = vld [vmem:[#allocation4 + $0x1a08] sm:$0xff]  ;;  %v8542_v1 = vpack.c.bf16 %v962_v58, %v954_v56  ;;  %v1032_v58 = vld [vmem:[#allocation4 + $0x1c00] sm:$0xff] }
 0x156   :  { %8505 = vmatprep.subr.bf16.mxu1 %v8504_v8  ;;  %v907_v8 = vld [vmem:[#allocation4 + $0x1818] sm:$0xff]  ;;  %v8526_v11 = vpack.c.bf16 %v898_v5, %v890_v3  ;;  %v977_v60 = vld [vmem:[#allocation4 + $0x1a48] sm:$0xff]  ;;  %v968_v3 = vld [vmem:[#allocation4 + $0x1a00] sm:$0xff] }
 0x157   :  { %v8528_v18 = vpack.c.bf16 %v915_v9, %v907_v8  ;;  %v8032_v2 = vpack.c.bf16 %v977_v60, %v969_v59  ;;  %v970_v5 = vld [vmem:[#allocation4 + $0x1a10] sm:$0xff]  ;;  %v985_v8 = vld [vmem:[#allocation4 + $0x1a88] sm:$0xff]  ;;  %v1040_v59 = vld [vmem:[#allocation4 + $0x1c40] sm:$0xff] }
 0x158   :  { %7995 = vmatpush1.bf16.msra.mxu0 %v7994_v15  ;;  %v912_v15 = vld [vmem:[#allocation4 + $0x1840] sm:$0xff]  ;;  %v993_v9 = vld [vmem:[#allocation4 + $0x1ac8] sm:$0xff]  ;;  %v1034_v60 = vld [vmem:[#allocation4 + $0x1c10] sm:$0xff] }
 0x159   :  { %8507 = vmatpush1.bf16.msra.mxu1 %v8506_v16  ;;  %7997 = vmatprep.subr.bf16.mxu0 %v7996_v17  ;;  %v906_v16 = vld [vmem:[#allocation4 + $0x1810] sm:$0xff]  ;;  %v8018_v26 = vpack.c.bf16 %v912_v15, %v904_v14  ;;  %v8546_v14 = vpack.c.bf16 %v978_v7, %v970_v5  ;;  %v8036_v15 = vpack.c.bf16 %v993_v9, %v985_v8  ;;  %v1048_v7 = vld [vmem:[#allocation4 + $0x1c80] sm:$0xff] }
 0x15a   :  { %8509 = vmatprep.subr.bf16.mxu1 %v8508_v21  ;;  %v929_v21 = vld [vmem:[#allocation4 + $0x18c8] sm:$0xff]  ;;  %v1056_v8 = vld [vmem:[#allocation4 + $0x1cc0] sm:$0xff]  ;;  %v1050_v9 = vld [vmem:[#allocation4 + $0x1c90] sm:$0xff] }
 0x15c   :  { %7999 = vmatpush1.bf16.msra.mxu0 %v7998_v27 }
 0x15d   :  { %8511 = vmatpush1.bf16.msra.mxu1 %v8510_v28  ;;  %8001 = vmatprep.subr.bf16.mxu0 %v8000_v29  ;;  %v8530_v28 = vpack.c.bf16 %v914_v19, %v906_v16  ;;  %v8020_v29 = vpack.c.bf16 %v929_v21, %v921_v20  ;;  %v984_v16 = vld [vmem:[#allocation4 + $0x1a80] sm:$0xff]  ;;  %v986_v19 = vld [vmem:[#allocation4 + $0x1a90] sm:$0xff] }
 0x15e   :  { %8513 = vmatprep.subr.bf16.mxu1 %v8512_v33  ;;  %v994_v21 = vld [vmem:[#allocation4 + $0x1ad0] sm:$0xff] }
 0x160   :  { %8003 = vmatpush1.bf16.msra.mxu0 %v8002_v39  ;;  %v947_v39 = vld [vmem:[#allocation4 + $0x1958] sm:$0xff] }
 0x161   :  { %8515 = vmatpush1.bf16.msra.mxu1 %v8514_v40  ;;  %8005 = vmatprep.subr.bf16.mxu0 %v8004_v41  ;;  %v126_v40 = vld [vmem:[%s12141_s0 + $0x38] sm:$0xff]  ;;  %v8022_v41 = vpack.c.bf16 %v928_v31, %v920_v30  ;;  %v8536_v46 = vpack.c.bf16 %v947_v39, %v939_v38  ;;  %v8550_v30 = vpack.c.bf16 %v994_v21, %v986_v19  ;;  %v1064_v21 = vld [vmem:[#allocation4 + $0x1d00] sm:$0xff] }
 0x162   :  { %8517 = vmatprep.subr.bf16.mxu1 %v8516_v44  ;;  %v944_v44 = vld [vmem:[#allocation4 + $0x1940] sm:$0xff]  ;;  %v8040_v31 = vpack.c.bf16 %v1009_v24, %v1001_v23  ;;  %v1010_v38 = vld [vmem:[#allocation4 + $0x1b50] sm:$0xff]  ;;  %v1017_v39 = vld [vmem:[#allocation4 + $0x1b88] sm:$0xff] }
 0x163   :  { %v8554_v45 = vpack.c.bf16 %v1010_v38, %v1002_v35  ;;  %v1072_v23 = vld [vmem:[#allocation4 + $0x1d40] sm:$0xff]  ;;  %v1066_v24 = vld [vmem:[#allocation4 + $0x1d10] sm:$0xff] }
 0x164   :  { %8007 = vmatpush1.bf16.msra.mxu0 %v8006_v50  ;;  %v955_v50 = vld [vmem:[#allocation4 + $0x1998] sm:$0xff]  ;;  %v1080_v38 = vld [vmem:[#allocation4 + $0x1d80] sm:$0xff] }
 0x165   :  { %8519 = vmatpush1.bf16.msra.mxu1 %v8518_v51  ;;  %8009 = vmatprep.subr.bf16.mxu0 %v8008_v52  ;;  %v963_v51 = vld [vmem:[#allocation4 + $0x19d8] sm:$0xff]  ;;  %v8026_v52 = vpack.c.bf16 %v944_v44, %v936_v43 }
 0x166   :  { %8521 = vmatprep.subr.bf16.mxu1 %v8520_v55  ;;  %v960_v55 = vld [vmem:[#allocation4 + $0x19c0] sm:$0xff]  ;;  %v8540_v57 = vpack.c.bf16 %v963_v51, %v955_v50  ;;  %v1026_v51 = vld [vmem:[#allocation4 + $0x1bd0] sm:$0xff] }
 0x167   :  { %v8558_v56 = vpack.c.bf16 %v1026_v51, %v1018_v49  ;;  %v1096_v51 = vld [vmem:[#allocation4 + $0x1e00] sm:$0xff] }
 0x168   :  { %8011 = vmatpush1.bf16.msra.mxu0 %v8010_v61  ;;  %v971_v61 = vld [vmem:[#allocation4 + $0x1a18] sm:$0xff] }
 0x169   :  { %8523 = vmatpush1.bf16.msra.mxu1 %v8522_v62  ;;  %8013 = vmatprep.subr.bf16.mxu0 %v8012_v63  ;;  %v979_v62 = vld [vmem:[#allocation4 + $0x1a58] sm:$0xff]  ;;  %v8030_v63 = vpack.c.bf16 %v960_v55, %v952_v54  ;;  %v8046_v55 = vpack.c.bf16 %v1024_v48, %v1016_v47 }
 0x16a   :  { %8525 = vmatprep.subr.bf16.mxu1 %v8524_v4  ;;  %v11502_v17 = vpop.f32.mrb[0].mxu0  ;;  %v976_v4 = vld [vmem:[#allocation4 + $0x1a40] sm:$0xff]  ;;  %v8544_v6 = vpack.c.bf16 %v979_v62, %v971_v61  ;;  %v1043_v54 = vld [vmem:[#allocation4 + $0x1c58] sm:$0xff]  ;;  %v1042_v62 = vld [vmem:[#allocation4 + $0x1c50] sm:$0xff] }
 0x16b   :  { %v11504_v22 = vpop.f32.mrb[1].mxu0  ;;  %v8562_v5 = vpack.c.bf16 %v1042_v62, %v1034_v60  ;;  %v1107_v47 = vld [vmem:[#allocation4 + $0x1e58] sm:$0xff]  ;;  %v1112_v62 = vld [vmem:[#allocation4 + $0x1e80] sm:$0xff] }
 0x16c   :  { %8015 = vmatpush1.bf16.msra.mxu0 %v8014_v10  ;;  %v11509_v27 = vpop.f32.mrb[0].mxu1  ;;  %v987_v10 = vld [vmem:[#allocation4 + $0x1a98] sm:$0xff] }
 0x16d   :  { %8527 = vmatpush1.bf16.msra.mxu1 %v8526_v11  ;;  %8017 = vmatprep.subr.bf16.mxu0 %v8016_v13  ;;  %v11511_v33 = vpop.f32.mrb[1].mxu1  ;;  %v995_v11 = vld [vmem:[#allocation4 + $0x1ad8] sm:$0xff]  ;;  %v8034_v13 = vpack.c.bf16 %v976_v4, %v968_v3  ;;  %v8050_v4 = vpack.c.bf16 %v1040_v59, %v1032_v58 }
 0x16e   :  { %8529 = vmatprep.subr.bf16.mxu1 %v8528_v18  ;;  %v992_v18 = vld [vmem:[#allocation4 + $0x1ac0] sm:$0xff]  ;;  %v8548_v20 = vpack.c.bf16 %v995_v11, %v987_v10  ;;  %v1059_v3 = vld [vmem:[#allocation4 + $0x1cd8] sm:$0xff]  ;;  %v1058_v11 = vld [vmem:[#allocation4 + $0x1cd0] sm:$0xff] }
 0x16f   :  { %2824 = vmatmul.mubr.f32.vlgmr.msra.gmra.mrb[4].mxu0 %v123_v25  ;;  %v8566_v19 = vpack.c.bf16 %v1058_v11, %v1050_v9  ;;  %v1123_v58 = vld [vmem:[#allocation4 + $0x1ed8] sm:$0xff]  ;;  %v1128_v11 = vld [vmem:[#allocation4 + $0x1f00] sm:$0xff] }
 0x170   :  { %8019 = vmatpush1.bf16.msra.mxu0 %v8018_v26  ;;  %3392 = vmatmul.mubr.f32.vlgmr.msra.gmra.mrb[4].mxu1 %v123_v25  ;;  %v1003_v25 = vld [vmem:[#allocation4 + $0x1b18] sm:$0xff] }
 0x171   :  { %8531 = vmatpush1.bf16.msra.mxu1 %v8530_v28  ;;  %8021 = vmatprep.subr.bf16.mxu0 %v8020_v29  ;;  %v1011_v26 = vld [vmem:[#allocation4 + $0x1b58] sm:$0xff]  ;;  %v8038_v28 = vpack.c.bf16 %v992_v18, %v984_v16  ;;  %v8054_v18 = vpack.c.bf16 %v1056_v8, %v1048_v7 }
 0x172   :  { %8533 = vmatprep.subr.bf16.mxu1 %v8532_v34  ;;  %2894 = vmatprep.mubr.f32.mxu0 %v126_v40  ;;  %v1008_v34 = vld [vmem:[#allocation4 + $0x1b40] sm:$0xff]  ;;  %v8552_v37 = vpack.c.bf16 %v1011_v26, %v1003_v25  ;;  %v1075_v16 = vld [vmem:[#allocation4 + $0x1d58] sm:$0xff]  ;;  %v1074_v26 = vld [vmem:[#allocation4 + $0x1d50] sm:$0xff] }
 0x173   :  { %3462 = vmatprep.mubr.f32.mxu1 %v126_v40  ;;  %v1025_v40 = vld [vmem:[#allocation4 + $0x1bc8] sm:$0xff]  ;;  %v8042_v43 = vpack.c.bf16 %v1008_v34, %v1000_v32  ;;  %v1091_v32 = vld [vmem:[#allocation4 + $0x1dd8] sm:$0xff]  ;;  %v8058_v34 = vpack.c.bf16 %v1072_v23, %v1064_v21  ;;  %v8570_v35 = vpack.c.bf16 %v1074_v26, %v1066_v24  ;;  %v1144_v26 = vld [vmem:[#allocation4 + $0x1f80] sm:$0xff] }
 0x174   :  { %8023 = vmatpush1.bf16.msra.mxu0 %v8022_v41  ;;  %v1019_v41 = vld [vmem:[#allocation4 + $0x1b98] sm:$0xff] }
 0x175   :  { %8535 = vmatpush1.bf16.msra.mxu1 %v8534_v42  ;;  %8025 = vmatprep.subr.bf16.mxu0 %v8024_v12  ;;  %v1027_v42 = vld [vmem:[#allocation4 + $0x1bd8] sm:$0xff] }
 0x176   :  { %8537 = vmatprep.subr.bf16.mxu1 %v8536_v46  ;;  %v8044_v46 = vpack.c.bf16 %v1025_v40, %v1017_v39  ;;  %v8556_v50 = vpack.c.bf16 %v1027_v42, %v1019_v41  ;;  %v1088_v39 = vld [vmem:[#allocation4 + $0x1dc0] sm:$0xff]  ;;  %v1082_v40 = vld [vmem:[#allocation4 + $0x1d90] sm:$0xff]  ;;  %v1139_v7 = vld [vmem:[#allocation4 + $0x1f58] sm:$0xff] }
 0x177   :  { %v1090_v42 = vld [vmem:[#allocation4 + $0x1dd0] sm:$0xff]  ;;  %v8062_v48 = vpack.c.bf16 %v1088_v39, %v1080_v38  ;;  %v1155_v21 = vld [vmem:[#allocation4 + $0x1fd8] sm:$0xff] }
 0x178   :  { %8027 = vmatpush1.bf16.msra.mxu0 %v8026_v52  ;;  %v1033_v52 = vld [vmem:[#allocation4 + $0x1c08] sm:$0xff]  ;;  %v8574_v49 = vpack.c.bf16 %v1090_v42, %v1082_v40  ;;  %v1171_v38 = vld [vmem:[#allocation4 + $0x2058] sm:$0xff]  ;;  %v1160_v42 = vld [vmem:[#allocation4 + $0x2000] sm:$0xff] }
 0x179   :  { %8539 = vmatpush1.bf16.msra.mxu1 %v8538_v53  ;;  %8029 = vmatprep.subr.bf16.mxu0 %v8028_v0  ;;  %v1041_v53 = vld [vmem:[#allocation4 + $0x1c48] sm:$0xff]  ;;  %v1035_v0 = vld [vmem:[#allocation4 + $0x1c18] sm:$0xff] }
 0x17a   :  { %8541 = vmatprep.subr.bf16.mxu1 %v8540_v57  ;;  %v8048_v57 = vpack.c.bf16 %v1041_v53, %v1033_v52  ;;  %v8560_v61 = vpack.c.bf16 %v1043_v54, %v1035_v0  ;;  %v1104_v52 = vld [vmem:[#allocation4 + $0x1e40] sm:$0xff]  ;;  %v1098_v53 = vld [vmem:[#allocation4 + $0x1e10] sm:$0xff] }
 0x17b   :  { %v1106_v54 = vld [vmem:[#allocation4 + $0x1e50] sm:$0xff]  ;;  %v8066_v59 = vpack.c.bf16 %v1104_v52, %v1096_v51  ;;  %v1187_v51 = vld [vmem:[#allocation4 + $0x20d8] sm:$0xff]  ;;  %v125_v52 = vld [vmem:[%s12141_s0 + $0x30] sm:$0xff] }
 0x17c   :  { %8031 = vmatpush1.bf16.msra.mxu0 %v8030_v63  ;;  %v1049_v63 = vld [vmem:[#allocation4 + $0x1c88] sm:$0xff]  ;;  %v8578_v60 = vpack.c.bf16 %v1106_v54, %v1098_v53 }
 0x17d   :  { %8543 = vmatpush1.bf16.msra.mxu1 %v8542_v1  ;;  %8033 = vmatprep.subr.bf16.mxu0 %v8032_v2  ;;  %v1057_v1 = vld [vmem:[#allocation4 + $0x1cc8] sm:$0xff]  ;;  %v1051_v2 = vld [vmem:[#allocation4 + $0x1c98] sm:$0xff] }
 0x17e   :  { %8545 = vmatprep.subr.bf16.mxu1 %v8544_v6  ;;  %v8052_v6 = vpack.c.bf16 %v1057_v1, %v1049_v63  ;;  %v8564_v10 = vpack.c.bf16 %v1059_v3, %v1051_v2  ;;  %v1120_v63 = vld [vmem:[#allocation4 + $0x1ec0] sm:$0xff]  ;;  %v1114_v1 = vld [vmem:[#allocation4 + $0x1e90] sm:$0xff] }
 0x17f   :  { %v1122_v3 = vld [vmem:[#allocation4 + $0x1ed0] sm:$0xff]  ;;  %v8070_v8 = vpack.c.bf16 %v1120_v63, %v1112_v62  ;;  %v1195_v62 = vld [vmem:[#allocation4 + $0x2118] sm:$0xff] }
 0x180   :  { %8035 = vmatpush1.bf16.msra.mxu0 %v8034_v13  ;;  %v1065_v13 = vld [vmem:[#allocation4 + $0x1d08] sm:$0xff]  ;;  %v8582_v9 = vpack.c.bf16 %v1122_v3, %v1114_v1  ;;  %v1203_v63 = vld [vmem:[#allocation4 + $0x2158] sm:$0xff] }
 0x181   :  { %8547 = vmatpush1.bf16.msra.mxu1 %v8546_v14  ;;  %v11516_v29 = vpop.f32.mrb[2].mxu0  ;;  %8037 = vmatprep.subr.bf16.mxu0 %v8036_v15  ;;  %v1073_v14 = vld [vmem:[#allocation4 + $0x1d48] sm:$0xff]  ;;  %v1067_v15 = vld [vmem:[#allocation4 + $0x1d18] sm:$0xff] }
 0x182   :  { %v11518_v36 = vpop.f32.mrb[3].mxu0  ;;  %8549 = vmatprep.subr.bf16.mxu1 %v8548_v20  ;;  %v8056_v20 = vpack.c.bf16 %v1073_v14, %v1065_v13  ;;  %v8568_v25 = vpack.c.bf16 %v1075_v16, %v1067_v15  ;;  %v1136_v13 = vld [vmem:[#allocation4 + $0x1f40] sm:$0xff]  ;;  %v1130_v14 = vld [vmem:[#allocation4 + $0x1f10] sm:$0xff] }
 0x183   :  { %v11520_v12 = vpop.f32.mrb[2].mxu1  ;;  %v1138_v16 = vld [vmem:[#allocation4 + $0x1f50] sm:$0xff]  ;;  %v8074_v23 = vpack.c.bf16 %v1136_v13, %v1128_v11  ;;  %v128_v1 = vld [vmem:[%s12141_s0 + $0x48] sm:$0xff]  ;;  %v1217_v11 = vld [vmem:[#allocation4 + $0x21c8] sm:$0xff] }
 0x184   :  { %8039 = vmatpush1.bf16.msra.mxu0 %v8038_v28  ;;  %v11522_v44 = vpop.f32.mrb[3].mxu1  ;;  %v1081_v28 = vld [vmem:[#allocation4 + $0x1d88] sm:$0xff]  ;;  %v8586_v24 = vpack.c.bf16 %v1138_v16, %v1130_v14  ;;  %v1211_v13 = vld [vmem:[#allocation4 + $0x2198] sm:$0xff] }
 0x185   :  { %8551 = vmatpush1.bf16.msra.mxu1 %v8550_v30  ;;  %8041 = vmatprep.subr.bf16.mxu0 %v8040_v31  ;;  %v1089_v30 = vld [vmem:[#allocation4 + $0x1dc8] sm:$0xff]  ;;  %v1083_v31 = vld [vmem:[#allocation4 + $0x1d98] sm:$0xff] }
 0x186   :  { %8553 = vmatprep.subr.bf16.mxu1 %v8552_v37  ;;  %v8060_v37 = vpack.c.bf16 %v1089_v30, %v1081_v28  ;;  %v8572_v41 = vpack.c.bf16 %v1091_v32, %v1083_v31  ;;  %v1152_v28 = vld [vmem:[#allocation4 + $0x1fc0] sm:$0xff]  ;;  %v1146_v30 = vld [vmem:[#allocation4 + $0x1f90] sm:$0xff]  ;;  %v1219_v14 = vld [vmem:[#allocation4 + $0x21d8] sm:$0xff] }
 0x187   :  { %v1154_v32 = vld [vmem:[#allocation4 + $0x1fd0] sm:$0xff]  ;;  %v8078_v39 = vpack.c.bf16 %v1152_v28, %v1144_v26  ;;  %v1233_v26 = vld [vmem:[#allocation4 + $0x2248] sm:$0xff]  ;;  %v1227_v28 = vld [vmem:[#allocation4 + $0x2218] sm:$0xff] }
 0x188   :  { %8043 = vmatpush1.bf16.msra.mxu0 %v8042_v43  ;;  %v1097_v43 = vld [vmem:[#allocation4 + $0x1e08] sm:$0xff]  ;;  %v8590_v40 = vpack.c.bf16 %v1154_v32, %v1146_v30  ;;  %v1235_v30 = vld [vmem:[#allocation4 + $0x2258] sm:$0xff] }
 0x189   :  { %8555 = vmatpush1.bf16.msra.mxu1 %v8554_v45  ;;  %8045 = vmatprep.subr.bf16.mxu0 %v8044_v46  ;;  %v1105_v45 = vld [vmem:[#allocation4 + $0x1e48] sm:$0xff]  ;;  %v1099_v46 = vld [vmem:[#allocation4 + $0x1e18] sm:$0xff] }
 0x18a   :  { %8557 = vmatprep.subr.bf16.mxu1 %v8556_v50  ;;  %v8064_v50 = vpack.c.bf16 %v1105_v45, %v1097_v43  ;;  %v8576_v0 = vpack.c.bf16 %v1107_v47, %v1099_v46  ;;  %v1168_v43 = vld [vmem:[#allocation4 + $0x2040] sm:$0xff]  ;;  %v1162_v45 = vld [vmem:[#allocation4 + $0x2010] sm:$0xff] }
 0x18b   :  { %v1170_v47 = vld [vmem:[#allocation4 + $0x2050] sm:$0xff]  ;;  %v8082_v53 = vpack.c.bf16 %v1168_v43, %v1160_v42  ;;  %v1249_v42 = vld [vmem:[#allocation4 + $0x22c8] sm:$0xff]  ;;  %v1243_v43 = vld [vmem:[#allocation4 + $0x2298] sm:$0xff] }
 0x18c   :  { %8047 = vmatpush1.bf16.msra.mxu0 %v8046_v55  ;;  %v1113_v55 = vld [vmem:[#allocation4 + $0x1e88] sm:$0xff] }
 0x18d   :  { %8559 = vmatpush1.bf16.msra.mxu1 %v8558_v56  ;;  %8049 = vmatprep.subr.bf16.mxu0 %v8048_v57  ;;  %v1121_v56 = vld [vmem:[#allocation4 + $0x1ec8] sm:$0xff]  ;;  %v1115_v57 = vld [vmem:[#allocation4 + $0x1e98] sm:$0xff] }
 0x18e   :  { %8561 = vmatprep.subr.bf16.mxu1 %v8560_v61  ;;  %v8068_v61 = vpack.c.bf16 %v1121_v56, %v1113_v55  ;;  %v8580_v2 = vpack.c.bf16 %v1123_v58, %v1115_v57  ;;  %v1176_v55 = vld [vmem:[#allocation4 + $0x2080] sm:$0xff]  ;;  %v1178_v57 = vld [vmem:[#allocation4 + $0x2090] sm:$0xff] }
 0x18f   :  { %v1184_v56 = vld [vmem:[#allocation4 + $0x20c0] sm:$0xff] }
 0x190   :  { %8051 = vmatpush1.bf16.msra.mxu0 %v8050_v4  ;;  %v1129_v4 = vld [vmem:[#allocation4 + $0x1f08] sm:$0xff] }
 0x191   :  { %8563 = vmatpush1.bf16.msra.mxu1 %v8562_v5  ;;  %8053 = vmatprep.subr.bf16.mxu0 %v8052_v6  ;;  %v1137_v5 = vld [vmem:[#allocation4 + $0x1f48] sm:$0xff]  ;;  %v1131_v6 = vld [vmem:[#allocation4 + $0x1f18] sm:$0xff] }
 0x192   :  { %8565 = vmatprep.subr.bf16.mxu1 %v8564_v10  ;;  %v8072_v10 = vpack.c.bf16 %v1137_v5, %v1129_v4  ;;  %v8584_v15 = vpack.c.bf16 %v1139_v7, %v1131_v6  ;;  %v1192_v5 = vld [vmem:[#allocation4 + $0x2100] sm:$0xff]  ;;  %v1194_v7 = vld [vmem:[#allocation4 + $0x2110] sm:$0xff] }
 0x193   :  { %v1200_v6 = vld [vmem:[#allocation4 + $0x2140] sm:$0xff] }
 0x194   :  { %8055 = vmatpush1.bf16.msra.mxu0 %v8054_v18  ;;  %v1145_v18 = vld [vmem:[#allocation4 + $0x1f88] sm:$0xff] }
 0x195   :  { %8567 = vmatpush1.bf16.msra.mxu1 %v8566_v19  ;;  %8057 = vmatprep.subr.bf16.mxu0 %v8056_v20  ;;  %v1153_v19 = vld [vmem:[#allocation4 + $0x1fc8] sm:$0xff]  ;;  %v1147_v20 = vld [vmem:[#allocation4 + $0x1f98] sm:$0xff] }
 0x196   :  { %8569 = vmatprep.subr.bf16.mxu1 %v8568_v25  ;;  %v8076_v25 = vpack.c.bf16 %v1153_v19, %v1145_v18  ;;  %v8588_v31 = vpack.c.bf16 %v1155_v21, %v1147_v20  ;;  %v1208_v19 = vld [vmem:[#allocation4 + $0x2180] sm:$0xff]  ;;  %v1210_v21 = vld [vmem:[#allocation4 + $0x2190] sm:$0xff] }
 0x197   :  { %v1216_v20 = vld [vmem:[#allocation4 + $0x21c0] sm:$0xff] }
 0x198   :  { %8059 = vmatpush1.bf16.msra.mxu0 %v8058_v34  ;;  %v1161_v34 = vld [vmem:[#allocation4 + $0x2008] sm:$0xff] }
 0x199   :  { %8571 = vmatpush1.bf16.msra.mxu1 %v8570_v35  ;;  %8061 = vmatprep.subr.bf16.mxu0 %v8060_v37  ;;  %v1169_v35 = vld [vmem:[#allocation4 + $0x2048] sm:$0xff]  ;;  %v1163_v37 = vld [vmem:[#allocation4 + $0x2018] sm:$0xff] }
 0x19a   :  { %8573 = vmatprep.subr.bf16.mxu1 %v8572_v41  ;;  %v8080_v41 = vpack.c.bf16 %v1169_v35, %v1161_v34  ;;  %v8592_v46 = vpack.c.bf16 %v1171_v38, %v1163_v37  ;;  %v1224_v35 = vld [vmem:[#allocation4 + $0x2200] sm:$0xff]  ;;  %v1226_v38 = vld [vmem:[#allocation4 + $0x2210] sm:$0xff] }
 0x19b   :  { %v1232_v37 = vld [vmem:[#allocation4 + $0x2240] sm:$0xff] }
 0x19c   :  { %8063 = vmatpush1.bf16.msra.mxu0 %v8062_v48  ;;  %v1177_v48 = vld [vmem:[#allocation4 + $0x2088] sm:$0xff] }
 0x19d   :  { %8575 = vmatpush1.bf16.msra.mxu1 %v8574_v49  ;;  %8065 = vmatprep.subr.bf16.mxu0 %v8064_v50  ;;  %v1185_v49 = vld [vmem:[#allocation4 + $0x20c8] sm:$0xff]  ;;  %v1179_v50 = vld [vmem:[#allocation4 + $0x2098] sm:$0xff] }
 0x19e   :  { %8577 = vmatprep.subr.bf16.mxu1 %v8576_v0  ;;  %v8594_v0 = vpack.c.bf16 %v1170_v47, %v1162_v45  ;;  %v8084_v54 = vpack.c.bf16 %v1185_v49, %v1177_v48  ;;  %v8596_v58 = vpack.c.bf16 %v1187_v51, %v1179_v50  ;;  %v1251_v45 = vld [vmem:[#allocation4 + $0x22d8] sm:$0xff]  ;;  %v1240_v49 = vld [vmem:[#allocation4 + $0x2280] sm:$0xff]  ;;  %v1242_v51 = vld [vmem:[#allocation4 + $0x2290] sm:$0xff] }
 0x19f   :  { %v1248_v50 = vld [vmem:[#allocation4 + $0x22c0] sm:$0xff] }
 0x1a0   :  { %8067 = vmatpush1.bf16.msra.mxu0 %v8066_v59  ;;  %v1186_v59 = vld [vmem:[#allocation4 + $0x20d0] sm:$0xff] }
 0x1a1   :  { %8579 = vmatpush1.bf16.msra.mxu1 %v8578_v60  ;;  %8069 = vmatprep.subr.bf16.mxu0 %v8068_v61  ;;  %v1193_v60 = vld [vmem:[#allocation4 + $0x2108] sm:$0xff]  ;;  %v8598_v3 = vpack.c.bf16 %v1186_v59, %v1178_v57  ;;  %v8102_v57 = vpack.c.bf16 %v1248_v50, %v1240_v49  ;;  %v1331_v49 = vld [vmem:[#allocation4 + $0x2558] sm:$0xff] }
 0x1a2   :  { %8581 = vmatprep.subr.bf16.mxu1 %v8580_v2  ;;  %v1201_v61 = vld [vmem:[#allocation4 + $0x2148] sm:$0xff]  ;;  %v8086_v2 = vpack.c.bf16 %v1184_v56, %v1176_v55  ;;  %v1259_v55 = vld [vmem:[#allocation4 + $0x2318] sm:$0xff] }
 0x1a3   :  { %v8088_v4 = vpack.c.bf16 %v1201_v61, %v1193_v60  ;;  %v1267_v56 = vld [vmem:[#allocation4 + $0x2358] sm:$0xff]  ;;  %v1256_v60 = vld [vmem:[#allocation4 + $0x2300] sm:$0xff] }
 0x1a4   :  { %8071 = vmatpush1.bf16.msra.mxu0 %v8070_v8  ;;  %v8600_v8 = vpack.c.bf16 %v1203_v63, %v1195_v62  ;;  %v1264_v61 = vld [vmem:[#allocation4 + $0x2340] sm:$0xff]  ;;  %v1258_v62 = vld [vmem:[#allocation4 + $0x2310] sm:$0xff]  ;;  %v8616_v63 = vpack.c.bf16 %v1267_v56, %v1259_v55 }
 0x1a5   :  { %8583 = vmatpush1.bf16.msra.mxu1 %v8582_v9  ;;  %8073 = vmatprep.subr.bf16.mxu0 %v8072_v10  ;;  %v1202_v9 = vld [vmem:[#allocation4 + $0x2150] sm:$0xff]  ;;  %v1209_v10 = vld [vmem:[#allocation4 + $0x2188] sm:$0xff] }
 0x1a6   :  { %8585 = vmatprep.subr.bf16.mxu1 %v8584_v15  ;;  %v8090_v15 = vpack.c.bf16 %v1200_v6, %v1192_v5  ;;  %v8602_v16 = vpack.c.bf16 %v1202_v9, %v1194_v7  ;;  %v8092_v18 = vpack.c.bf16 %v1217_v11, %v1209_v10  ;;  %v1283_v5 = vld [vmem:[#allocation4 + $0x23d8] sm:$0xff]  ;;  %v8106_v6 = vpack.c.bf16 %v1264_v61, %v1256_v60  ;;  %v1272_v9 = vld [vmem:[#allocation4 + $0x2380] sm:$0xff]  ;;  %v1274_v11 = vld [vmem:[#allocation4 + $0x2390] sm:$0xff] }
 0x1a7   :  { %v1280_v10 = vld [vmem:[#allocation4 + $0x23c0] sm:$0xff]  ;;  %v1330_v56 = vld [vmem:[#allocation4 + $0x2550] sm:$0xff]  ;;  %v1347_v60 = vld [vmem:[#allocation4 + $0x25d8] sm:$0xff] }
 0x1a8   :  { %8075 = vmatpush1.bf16.msra.mxu0 %v8074_v23  ;;  %v8604_v23 = vpack.c.bf16 %v1219_v14, %v1211_v13  ;;  %v1282_v14 = vld [vmem:[#allocation4 + $0x23d0] sm:$0xff] }
 0x1a9   :  { %8587 = vmatpush1.bf16.msra.mxu1 %v8586_v24  ;;  %8077 = vmatprep.subr.bf16.mxu0 %v8076_v25  ;;  %v1218_v24 = vld [vmem:[#allocation4 + $0x21d0] sm:$0xff]  ;;  %v1225_v25 = vld [vmem:[#allocation4 + $0x2208] sm:$0xff] }
 0x1aa   :  { %8589 = vmatprep.subr.bf16.mxu1 %v8588_v31  ;;  %v8094_v31 = vpack.c.bf16 %v1216_v20, %v1208_v19  ;;  %v8606_v32 = vpack.c.bf16 %v1218_v24, %v1210_v21  ;;  %v8096_v34 = vpack.c.bf16 %v1233_v26, %v1225_v25  ;;  %v1299_v19 = vld [vmem:[#allocation4 + $0x2458] sm:$0xff]  ;;  %v8110_v20 = vpack.c.bf16 %v1280_v10, %v1272_v9  ;;  %v1288_v24 = vld [vmem:[#allocation4 + $0x2400] sm:$0xff]  ;;  %v1290_v26 = vld [vmem:[#allocation4 + $0x2410] sm:$0xff] }
 0x1ab   :  { %v8622_v21 = vpack.c.bf16 %v1282_v14, %v1274_v11  ;;  %v1296_v25 = vld [vmem:[#allocation4 + $0x2440] sm:$0xff]  ;;  %v1363_v9 = vld [vmem:[#allocation4 + $0x2658] sm:$0xff] }
 0x1ac   :  { %8079 = vmatpush1.bf16.msra.mxu0 %v8078_v39  ;;  %v8608_v39 = vpack.c.bf16 %v1235_v30, %v1227_v28  ;;  %v1298_v30 = vld [vmem:[#allocation4 + $0x2450] sm:$0xff]  ;;  %v1352_v14 = vld [vmem:[#allocation4 + $0x2600] sm:$0xff] }
 0x1ad   :  { %8591 = vmatpush1.bf16.msra.mxu1 %v8590_v40  ;;  %8081 = vmatprep.subr.bf16.mxu0 %v8080_v41  ;;  %v1234_v40 = vld [vmem:[#allocation4 + $0x2250] sm:$0xff]  ;;  %v1241_v41 = vld [vmem:[#allocation4 + $0x2288] sm:$0xff] }
 0x1ae   :  { %8593 = vmatprep.subr.bf16.mxu1 %v8592_v46  ;;  %v8098_v46 = vpack.c.bf16 %v1232_v37, %v1224_v35  ;;  %v8610_v47 = vpack.c.bf16 %v1234_v40, %v1226_v38  ;;  %v8100_v48 = vpack.c.bf16 %v1249_v42, %v1241_v41  ;;  %v1315_v35 = vld [vmem:[#allocation4 + $0x24d8] sm:$0xff]  ;;  %v8114_v37 = vpack.c.bf16 %v1296_v25, %v1288_v24  ;;  %v1304_v40 = vld [vmem:[#allocation4 + $0x2480] sm:$0xff]  ;;  %v1306_v42 = vld [vmem:[#allocation4 + $0x2490] sm:$0xff] }
 0x1af   :  { %2895 = vmatmul.mubr.f32.vlgmr.msra.gmra.mrb[4].mxu0 %v125_v52  ;;  %v8626_v38 = vpack.c.bf16 %v1298_v30, %v1290_v26  ;;  %v1312_v41 = vld [vmem:[#allocation4 + $0x24c0] sm:$0xff]  ;;  %v1379_v24 = vld [vmem:[#allocation4 + $0x26d8] sm:$0xff] }
 0x1b0   :  { %8083 = vmatpush1.bf16.msra.mxu0 %v8082_v53  ;;  %3463 = vmatmul.mubr.f32.vlgmr.msra.gmra.mrb[4].mxu1 %v125_v52  ;;  %v8612_v52 = vpack.c.bf16 %v1251_v45, %v1243_v43  ;;  %v1250_v53 = vld [vmem:[#allocation4 + $0x22d0] sm:$0xff]  ;;  %v8118_v50 = vpack.c.bf16 %v1312_v41, %v1304_v40  ;;  %v1368_v30 = vld [vmem:[#allocation4 + $0x2680] sm:$0xff]  ;;  %v1395_v40 = vld [vmem:[#allocation4 + $0x2758] sm:$0xff] }
 0x1b1   :  { %8595 = vmatpush1.bf16.msra.mxu1 %v8594_v0  ;;  %8085 = vmatprep.subr.bf16.mxu0 %v8084_v54  ;;  %v1257_v0 = vld [vmem:[#allocation4 + $0x2308] sm:$0xff]  ;;  %v1314_v45 = vld [vmem:[#allocation4 + $0x24d0] sm:$0xff] }
 0x1b2   :  { %8597 = vmatprep.subr.bf16.mxu1 %v8596_v58  ;;  %2965 = vmatprep.mubr.f32.mxu0 %v128_v1  ;;  %v1265_v54 = vld [vmem:[#allocation4 + $0x2348] sm:$0xff]  ;;  %v8614_v58 = vpack.c.bf16 %v1250_v53, %v1242_v51  ;;  %v8630_v51 = vpack.c.bf16 %v1314_v45, %v1306_v42  ;;  %v1320_v53 = vld [vmem:[#allocation4 + $0x2500] sm:$0xff] }
 0x1b3   :  { %3533 = vmatprep.mubr.f32.mxu1 %v128_v1  ;;  %v8104_v59 = vpack.c.bf16 %v1265_v54, %v1257_v0  ;;  %v1266_v1 = vld [vmem:[#allocation4 + $0x2350] sm:$0xff]  ;;  %v1328_v0 = vld [vmem:[#allocation4 + $0x2540] sm:$0xff] }
 0x1b4   :  { %8087 = vmatpush1.bf16.msra.mxu0 %v8086_v2  ;;  %v1273_v2 = vld [vmem:[#allocation4 + $0x2388] sm:$0xff]  ;;  %v8618_v7 = vpack.c.bf16 %v1266_v1, %v1258_v62  ;;  %v1322_v54 = vld [vmem:[#allocation4 + $0x2510] sm:$0xff]  ;;  %v8122_v61 = vpack.c.bf16 %v1328_v0, %v1320_v53  ;;  %v1336_v1 = vld [vmem:[#allocation4 + $0x2580] sm:$0xff] }
 0x1b5   :  { %8599 = vmatpush1.bf16.msra.mxu1 %v8598_v3  ;;  %8089 = vmatprep.subr.bf16.mxu0 %v8088_v4  ;;  %v1281_v3 = vld [vmem:[#allocation4 + $0x23c8] sm:$0xff]  ;;  %v1275_v4 = vld [vmem:[#allocation4 + $0x2398] sm:$0xff]  ;;  %v8634_v62 = vpack.c.bf16 %v1330_v56, %v1322_v54  ;;  %v1384_v45 = vld [vmem:[#allocation4 + $0x2700] sm:$0xff] }
 0x1b6   :  { %8601 = vmatprep.subr.bf16.mxu1 %v8600_v8  ;;  %v8108_v8 = vpack.c.bf16 %v1281_v3, %v1273_v2  ;;  %v8620_v13 = vpack.c.bf16 %v1283_v5, %v1275_v4  ;;  %v1344_v2 = vld [vmem:[#allocation4 + $0x25c0] sm:$0xff]  ;;  %v1338_v3 = vld [vmem:[#allocation4 + $0x2590] sm:$0xff]  ;;  %v1411_v53 = vld [vmem:[#allocation4 + $0x27d8] sm:$0xff] }
 0x1b7   :  { %v1346_v5 = vld [vmem:[#allocation4 + $0x25d0] sm:$0xff]  ;;  %v8126_v10 = vpack.c.bf16 %v1344_v2, %v1336_v1  ;;  %v1400_v56 = vld [vmem:[#allocation4 + $0x2780] sm:$0xff]  ;;  %v1427_v1 = vld [vmem:[#allocation4 + $0x2858] sm:$0xff] }
 0x1b8   :  { %8091 = vmatpush1.bf16.msra.mxu0 %v8090_v15  ;;  %v1289_v15 = vld [vmem:[#allocation4 + $0x2408] sm:$0xff]  ;;  %v8638_v11 = vpack.c.bf16 %v1346_v5, %v1338_v3  ;;  %v1416_v5 = vld [vmem:[#allocation4 + $0x2800] sm:$0xff] }
 0x1b9   :  { %8603 = vmatpush1.bf16.msra.mxu1 %v8602_v16  ;;  %8093 = vmatprep.subr.bf16.mxu0 %v8092_v18  ;;  %v1297_v16 = vld [vmem:[#allocation4 + $0x2448] sm:$0xff]  ;;  %v1291_v18 = vld [vmem:[#allocation4 + $0x2418] sm:$0xff] }
 0x1ba   :  { %8605 = vmatprep.subr.bf16.mxu1 %v8604_v23  ;;  %v8112_v23 = vpack.c.bf16 %v1297_v16, %v1289_v15  ;;  %v8624_v28 = vpack.c.bf16 %v1299_v19, %v1291_v18  ;;  %v1360_v15 = vld [vmem:[#allocation4 + $0x2640] sm:$0xff]  ;;  %v1354_v16 = vld [vmem:[#allocation4 + $0x2610] sm:$0xff] }
 0x1bb   :  { %v1362_v19 = vld [vmem:[#allocation4 + $0x2650] sm:$0xff]  ;;  %v8130_v25 = vpack.c.bf16 %v1360_v15, %v1352_v14  ;;  %v1443_v14 = vld [vmem:[#allocation4 + $0x28d8] sm:$0xff] }
 0x1bc   :  { %8095 = vmatpush1.bf16.msra.mxu0 %v8094_v31  ;;  %v1305_v31 = vld [vmem:[#allocation4 + $0x2488] sm:$0xff]  ;;  %v8642_v26 = vpack.c.bf16 %v1362_v19, %v1354_v16  ;;  %v127_v15 = vld [vmem:[%s12141_s0 + $0x40] sm:$0xff] }
 0x1bd   :  { %8607 = vmatpush1.bf16.msra.mxu1 %v8606_v32  ;;  %8097 = vmatprep.subr.bf16.mxu0 %v8096_v34  ;;  %v1313_v32 = vld [vmem:[#allocation4 + $0x24c8] sm:$0xff]  ;;  %v1307_v34 = vld [vmem:[#allocation4 + $0x2498] sm:$0xff] }
 0x1be   :  { %8609 = vmatprep.subr.bf16.mxu1 %v8608_v39  ;;  %v8116_v39 = vpack.c.bf16 %v1313_v32, %v1305_v31  ;;  %v8628_v43 = vpack.c.bf16 %v1315_v35, %v1307_v34  ;;  %v1376_v31 = vld [vmem:[#allocation4 + $0x26c0] sm:$0xff]  ;;  %v1370_v32 = vld [vmem:[#allocation4 + $0x2690] sm:$0xff] }
 0x1bf   :  { %v1378_v35 = vld [vmem:[#allocation4 + $0x26d0] sm:$0xff]  ;;  %v8134_v41 = vpack.c.bf16 %v1376_v31, %v1368_v30  ;;  %v1451_v30 = vld [vmem:[#allocation4 + $0x2918] sm:$0xff] }
 0x1c0   :  { %8099 = vmatpush1.bf16.msra.mxu0 %v8098_v46  ;;  %v1321_v46 = vld [vmem:[#allocation4 + $0x2508] sm:$0xff]  ;;  %v8646_v42 = vpack.c.bf16 %v1378_v35, %v1370_v32  ;;  %v1459_v31 = vld [vmem:[#allocation4 + $0x2958] sm:$0xff] }
 0x1c1   :  { %8611 = vmatpush1.bf16.msra.mxu1 %v8610_v47  ;;  %8101 = vmatprep.subr.bf16.mxu0 %v8100_v48  ;;  %v1329_v47 = vld [vmem:[#allocation4 + $0x2548] sm:$0xff]  ;;  %v1323_v48 = vld [vmem:[#allocation4 + $0x2518] sm:$0xff] }
 0x1c2   :  { %8613 = vmatprep.subr.bf16.mxu1 %v8612_v52  ;;  %v8120_v52 = vpack.c.bf16 %v1329_v47, %v1321_v46  ;;  %v8632_v55 = vpack.c.bf16 %v1331_v49, %v1323_v48  ;;  %v1392_v46 = vld [vmem:[#allocation4 + $0x2740] sm:$0xff]  ;;  %v1386_v47 = vld [vmem:[#allocation4 + $0x2710] sm:$0xff] }
 0x1c3   :  { %v1394_v49 = vld [vmem:[#allocation4 + $0x2750] sm:$0xff]  ;;  %v8138_v0 = vpack.c.bf16 %v1392_v46, %v1384_v45  ;;  %v1473_v45 = vld [vmem:[#allocation4 + $0x29c8] sm:$0xff]  ;;  %v1467_v46 = vld [vmem:[#allocation4 + $0x2998] sm:$0xff] }
 0x1c4   :  { %8103 = vmatpush1.bf16.msra.mxu0 %v8102_v57  ;;  %v1337_v57 = vld [vmem:[#allocation4 + $0x2588] sm:$0xff]  ;;  %v8650_v54 = vpack.c.bf16 %v1394_v49, %v1386_v47  ;;  %v1475_v47 = vld [vmem:[#allocation4 + $0x29d8] sm:$0xff] }
 0x1c5   :  { %8615 = vmatpush1.bf16.msra.mxu1 %v8614_v58  ;;  %8105 = vmatprep.subr.bf16.mxu0 %v8104_v59  ;;  %v1345_v58 = vld [vmem:[#allocation4 + $0x25c8] sm:$0xff]  ;;  %v1339_v59 = vld [vmem:[#allocation4 + $0x2598] sm:$0xff] }
 0x1c6   :  { %8617 = vmatprep.subr.bf16.mxu1 %v8616_v63  ;;  %v8124_v63 = vpack.c.bf16 %v1345_v58, %v1337_v57  ;;  %v8636_v4 = vpack.c.bf16 %v1347_v60, %v1339_v59  ;;  %v1408_v57 = vld [vmem:[#allocation4 + $0x27c0] sm:$0xff]  ;;  %v1402_v58 = vld [vmem:[#allocation4 + $0x2790] sm:$0xff] }
 0x1c7   :  { %v1410_v60 = vld [vmem:[#allocation4 + $0x27d0] sm:$0xff]  ;;  %v8142_v2 = vpack.c.bf16 %v1408_v57, %v1400_v56  ;;  %v1489_v56 = vld [vmem:[#allocation4 + $0x2a48] sm:$0xff]  ;;  %v1483_v57 = vld [vmem:[#allocation4 + $0x2a18] sm:$0xff] }
 0x1c8   :  { %8107 = vmatpush1.bf16.msra.mxu0 %v8106_v6  ;;  %v1353_v6 = vld [vmem:[#allocation4 + $0x2608] sm:$0xff]  ;;  %v8654_v3 = vpack.c.bf16 %v1410_v60, %v1402_v58  ;;  %v1491_v58 = vld [vmem:[#allocation4 + $0x2a58] sm:$0xff] }
 0x1c9   :  { %8619 = vmatpush1.bf16.msra.mxu1 %v8618_v7  ;;  %8109 = vmatprep.subr.bf16.mxu0 %v8108_v8  ;;  %v1361_v7 = vld [vmem:[#allocation4 + $0x2648] sm:$0xff]  ;;  %v1355_v8 = vld [vmem:[#allocation4 + $0x2618] sm:$0xff] }
 0x1ca   :  { %8621 = vmatprep.subr.bf16.mxu1 %v8620_v13  ;;  %v8128_v13 = vpack.c.bf16 %v1361_v7, %v1353_v6  ;;  %v8640_v18 = vpack.c.bf16 %v1363_v9, %v1355_v8  ;;  %v1424_v6 = vld [vmem:[#allocation4 + $0x2840] sm:$0xff]  ;;  %v1418_v7 = vld [vmem:[#allocation4 + $0x2810] sm:$0xff] }
 0x1cb   :  { %v1426_v9 = vld [vmem:[#allocation4 + $0x2850] sm:$0xff]  ;;  %v8146_v16 = vpack.c.bf16 %v1424_v6, %v1416_v5  ;;  %v1505_v5 = vld [vmem:[#allocation4 + $0x2ac8] sm:$0xff]  ;;  %v1499_v6 = vld [vmem:[#allocation4 + $0x2a98] sm:$0xff] }
 0x1cc   :  { %8111 = vmatpush1.bf16.msra.mxu0 %v8110_v20  ;;  %v1369_v20 = vld [vmem:[#allocation4 + $0x2688] sm:$0xff] }
 0x1cd   :  { %8623 = vmatpush1.bf16.msra.mxu1 %v8622_v21  ;;  %8113 = vmatprep.subr.bf16.mxu0 %v8112_v23  ;;  %v1377_v21 = vld [vmem:[#allocation4 + $0x26c8] sm:$0xff]  ;;  %v1371_v23 = vld [vmem:[#allocation4 + $0x2698] sm:$0xff] }
 0x1ce   :  { %8625 = vmatprep.subr.bf16.mxu1 %v8624_v28  ;;  %v8132_v28 = vpack.c.bf16 %v1377_v21, %v1369_v20  ;;  %v8644_v34 = vpack.c.bf16 %v1379_v24, %v1371_v23  ;;  %v1432_v20 = vld [vmem:[#allocation4 + $0x2880] sm:$0xff]  ;;  %v1434_v23 = vld [vmem:[#allocation4 + $0x2890] sm:$0xff] }
 0x1cf   :  { %v1440_v21 = vld [vmem:[#allocation4 + $0x28c0] sm:$0xff]  ;;  %v130_v32 = vld [vmem:[%s12141_s0 + $0x58] sm:$0xff] }
 0x1d0   :  { %8115 = vmatpush1.bf16.msra.mxu0 %v8114_v37  ;;  %v1385_v37 = vld [vmem:[#allocation4 + $0x2708] sm:$0xff] }
 0x1d1   :  { %8627 = vmatpush1.bf16.msra.mxu1 %v8626_v38  ;;  %8117 = vmatprep.subr.bf16.mxu0 %v8116_v39  ;;  %v1393_v38 = vld [vmem:[#allocation4 + $0x2748] sm:$0xff]  ;;  %v1387_v39 = vld [vmem:[#allocation4 + $0x2718] sm:$0xff] }
 0x1d2   :  { %8629 = vmatprep.subr.bf16.mxu1 %v8628_v43  ;;  %v8136_v43 = vpack.c.bf16 %v1393_v38, %v1385_v37  ;;  %v8648_v48 = vpack.c.bf16 %v1395_v40, %v1387_v39  ;;  %v1448_v38 = vld [vmem:[#allocation4 + $0x2900] sm:$0xff]  ;;  %v1450_v40 = vld [vmem:[#allocation4 + $0x2910] sm:$0xff] }
 0x1d3   :  { %v1456_v39 = vld [vmem:[#allocation4 + $0x2940] sm:$0xff] }
 0x1d4   :  { %8119 = vmatpush1.bf16.msra.mxu0 %v8118_v50  ;;  %v1401_v50 = vld [vmem:[#allocation4 + $0x2788] sm:$0xff] }
 0x1d5   :  { %8631 = vmatpush1.bf16.msra.mxu1 %v8630_v51  ;;  %8121 = vmatprep.subr.bf16.mxu0 %v8120_v52  ;;  %v1409_v51 = vld [vmem:[#allocation4 + $0x27c8] sm:$0xff]  ;;  %v1403_v52 = vld [vmem:[#allocation4 + $0x2798] sm:$0xff] }
 0x1d6   :  { %8633 = vmatprep.subr.bf16.mxu1 %v8632_v55  ;;  %v8140_v55 = vpack.c.bf16 %v1409_v51, %v1401_v50  ;;  %v8652_v59 = vpack.c.bf16 %v1411_v53, %v1403_v52  ;;  %v1464_v51 = vld [vmem:[#allocation4 + $0x2980] sm:$0xff]  ;;  %v1466_v53 = vld [vmem:[#allocation4 + $0x2990] sm:$0xff] }
 0x1d7   :  { %v1472_v52 = vld [vmem:[#allocation4 + $0x29c0] sm:$0xff] }
 0x1d8   :  { %8123 = vmatpush1.bf16.msra.mxu0 %v8122_v61  ;;  %v1417_v61 = vld [vmem:[#allocation4 + $0x2808] sm:$0xff] }
 0x1d9   :  { %8635 = vmatpush1.bf16.msra.mxu1 %v8634_v62  ;;  %8125 = vmatprep.subr.bf16.mxu0 %v8124_v63  ;;  %v1425_v62 = vld [vmem:[#allocation4 + $0x2848] sm:$0xff]  ;;  %v1419_v63 = vld [vmem:[#allocation4 + $0x2818] sm:$0xff] }
 0x1da   :  { %8637 = vmatprep.subr.bf16.mxu1 %v8636_v4  ;;  %v8144_v4 = vpack.c.bf16 %v1425_v62, %v1417_v61  ;;  %v8656_v8 = vpack.c.bf16 %v1427_v1, %v1419_v63  ;;  %v1480_v62 = vld [vmem:[#allocation4 + $0x2a00] sm:$0xff]  ;;  %v1482_v1 = vld [vmem:[#allocation4 + $0x2a10] sm:$0xff] }
 0x1db   :  { %v1488_v63 = vld [vmem:[#allocation4 + $0x2a40] sm:$0xff] }
 0x1dc   :  { %8127 = vmatpush1.bf16.msra.mxu0 %v8126_v10  ;;  %v1433_v10 = vld [vmem:[#allocation4 + $0x2888] sm:$0xff] }
 0x1dd   :  { %8639 = vmatpush1.bf16.msra.mxu1 %v8638_v11  ;;  %8129 = vmatprep.subr.bf16.mxu0 %v8128_v13  ;;  %v1441_v11 = vld [vmem:[#allocation4 + $0x28c8] sm:$0xff]  ;;  %v1435_v13 = vld [vmem:[#allocation4 + $0x2898] sm:$0xff] }
 0x1de   :  { %8641 = vmatprep.subr.bf16.mxu1 %v8640_v18  ;;  %v8658_v18 = vpack.c.bf16 %v1426_v9, %v1418_v7  ;;  %v8148_v19 = vpack.c.bf16 %v1441_v11, %v1433_v10  ;;  %v8660_v24 = vpack.c.bf16 %v1443_v14, %v1435_v13  ;;  %v1507_v7 = vld [vmem:[#allocation4 + $0x2ad8] sm:$0xff]  ;;  %v1496_v11 = vld [vmem:[#allocation4 + $0x2a80] sm:$0xff]  ;;  %v1498_v14 = vld [vmem:[#allocation4 + $0x2a90] sm:$0xff] }
 0x1df   :  { %v1504_v13 = vld [vmem:[#allocation4 + $0x2ac0] sm:$0xff] }
 0x1e0   :  { %8131 = vmatpush1.bf16.msra.mxu0 %v8130_v25  ;;  %v1442_v25 = vld [vmem:[#allocation4 + $0x28d0] sm:$0xff] }
 0x1e1   :  { %8643 = vmatpush1.bf16.msra.mxu1 %v8642_v26  ;;  %8133 = vmatprep.subr.bf16.mxu0 %v8132_v28  ;;  %v1449_v26 = vld [vmem:[#allocation4 + $0x2908] sm:$0xff]  ;;  %v8662_v35 = vpack.c.bf16 %v1442_v25, %v1434_v23  ;;  %v8166_v23 = vpack.c.bf16 %v1504_v13, %v1496_v11  ;;  %v1587_v11 = vld [vmem:[#allocation4 + $0x2d58] sm:$0xff] }
 0x1e2   :  { %8645 = vmatprep.subr.bf16.mxu1 %v8644_v34  ;;  %v1457_v28 = vld [vmem:[#allocation4 + $0x2948] sm:$0xff]  ;;  %v8150_v34 = vpack.c.bf16 %v1440_v21, %v1432_v20  ;;  %v1515_v20 = vld [vmem:[#allocation4 + $0x2b18] sm:$0xff] }
 0x1e3   :  { %v8152_v37 = vpack.c.bf16 %v1457_v28, %v1449_v26  ;;  %v1523_v21 = vld [vmem:[#allocation4 + $0x2b58] sm:$0xff]  ;;  %v1512_v26 = vld [vmem:[#allocation4 + $0x2b00] sm:$0xff] }
 0x1e4   :  { %8135 = vmatpush1.bf16.msra.mxu0 %v8134_v41  ;;  %v8664_v41 = vpack.c.bf16 %v1459_v31, %v1451_v30  ;;  %v1520_v28 = vld [vmem:[#allocation4 + $0x2b40] sm:$0xff]  ;;  %v1514_v30 = vld [vmem:[#allocation4 + $0x2b10] sm:$0xff]  ;;  %v8680_v31 = vpack.c.bf16 %v1523_v21, %v1515_v20 }
 0x1e5   :  { %8647 = vmatpush1.bf16.msra.mxu1 %v8646_v42  ;;  %8137 = vmatprep.subr.bf16.mxu0 %v8136_v43  ;;  %v1458_v42 = vld [vmem:[#allocation4 + $0x2950] sm:$0xff]  ;;  %v1465_v43 = vld [vmem:[#allocation4 + $0x2988] sm:$0xff] }
 0x1e6   :  { %8649 = vmatprep.subr.bf16.mxu1 %v8648_v48  ;;  %v8154_v48 = vpack.c.bf16 %v1456_v39, %v1448_v38  ;;  %v8666_v49 = vpack.c.bf16 %v1458_v42, %v1450_v40  ;;  %v8156_v50 = vpack.c.bf16 %v1473_v45, %v1465_v43  ;;  %v1539_v38 = vld [vmem:[#allocation4 + $0x2bd8] sm:$0xff]  ;;  %v8170_v39 = vpack.c.bf16 %v1520_v28, %v1512_v26  ;;  %v1528_v42 = vld [vmem:[#allocation4 + $0x2b80] sm:$0xff]  ;;  %v1530_v45 = vld [vmem:[#allocation4 + $0x2b90] sm:$0xff] }
 0x1e7   :  { %v1536_v43 = vld [vmem:[#allocation4 + $0x2bc0] sm:$0xff]  ;;  %v1586_v21 = vld [vmem:[#allocation4 + $0x2d50] sm:$0xff]  ;;  %v1603_v26 = vld [vmem:[#allocation4 + $0x2dd8] sm:$0xff] }
 0x1e8   :  { %8139 = vmatpush1.bf16.msra.mxu0 %v8138_v0  ;;  %v8668_v0 = vpack.c.bf16 %v1475_v47, %v1467_v46  ;;  %v1538_v47 = vld [vmem:[#allocation4 + $0x2bd0] sm:$0xff] }
 0x1e9   :  { %8651 = vmatpush1.bf16.msra.mxu1 %v8650_v54  ;;  %8141 = vmatprep.subr.bf16.mxu0 %v8140_v55  ;;  %v1474_v54 = vld [vmem:[#allocation4 + $0x29d0] sm:$0xff]  ;;  %v1481_v55 = vld [vmem:[#allocation4 + $0x2a08] sm:$0xff] }
 0x1ea   :  { %8653 = vmatprep.subr.bf16.mxu1 %v8652_v59  ;;  %v8158_v59 = vpack.c.bf16 %v1472_v52, %v1464_v51  ;;  %v8670_v60 = vpack.c.bf16 %v1474_v54, %v1466_v53  ;;  %v8160_v61 = vpack.c.bf16 %v1489_v56, %v1481_v55  ;;  %v1555_v51 = vld [vmem:[#allocation4 + $0x2c58] sm:$0xff]  ;;  %v8174_v52 = vpack.c.bf16 %v1536_v43, %v1528_v42  ;;  %v1544_v54 = vld [vmem:[#allocation4 + $0x2c00] sm:$0xff]  ;;  %v1546_v56 = vld [vmem:[#allocation4 + $0x2c10] sm:$0xff] }
 0x1eb   :  { %v8686_v53 = vpack.c.bf16 %v1538_v47, %v1530_v45  ;;  %v1552_v55 = vld [vmem:[#allocation4 + $0x2c40] sm:$0xff]  ;;  %v1619_v42 = vld [vmem:[#allocation4 + $0x2e58] sm:$0xff] }
 0x1ec   :  { %8143 = vmatpush1.bf16.msra.mxu0 %v8142_v2  ;;  %v8672_v2 = vpack.c.bf16 %v1491_v58, %v1483_v57  ;;  %v1554_v58 = vld [vmem:[#allocation4 + $0x2c50] sm:$0xff]  ;;  %v1608_v47 = vld [vmem:[#allocation4 + $0x2e00] sm:$0xff] }
 0x1ed   :  { %8655 = vmatpush1.bf16.msra.mxu1 %v8654_v3  ;;  %8145 = vmatprep.subr.bf16.mxu0 %v8144_v4  ;;  %v1490_v3 = vld [vmem:[#allocation4 + $0x2a50] sm:$0xff]  ;;  %v1497_v4 = vld [vmem:[#allocation4 + $0x2a88] sm:$0xff] }
 0x1ee   :  { %8657 = vmatprep.subr.bf16.mxu1 %v8656_v8  ;;  %v8162_v8 = vpack.c.bf16 %v1488_v63, %v1480_v62  ;;  %v8674_v9 = vpack.c.bf16 %v1490_v3, %v1482_v1  ;;  %v8164_v10 = vpack.c.bf16 %v1505_v5, %v1497_v4  ;;  %v1571_v62 = vld [vmem:[#allocation4 + $0x2cd8] sm:$0xff]  ;;  %v8178_v63 = vpack.c.bf16 %v1552_v55, %v1544_v54  ;;  %v1560_v3 = vld [vmem:[#allocation4 + $0x2c80] sm:$0xff]  ;;  %v1562_v5 = vld [vmem:[#allocation4 + $0x2c90] sm:$0xff] }
 0x1ef   :  { %2966 = vmatmul.mubr.f32.vlgmr.msra.gmra.mrb[4].mxu0 %v127_v15  ;;  %v8690_v1 = vpack.c.bf16 %v1554_v58, %v1546_v56  ;;  %v1568_v4 = vld [vmem:[#allocation4 + $0x2cc0] sm:$0xff]  ;;  %v1635_v54 = vld [vmem:[#allocation4 + $0x2ed8] sm:$0xff] }
 0x1f0   :  { %8147 = vmatpush1.bf16.msra.mxu0 %v8146_v16  ;;  %3534 = vmatmul.mubr.f32.vlgmr.msra.gmra.mrb[4].mxu1 %v127_v15  ;;  %v8676_v15 = vpack.c.bf16 %v1507_v7, %v1499_v6  ;;  %v1506_v16 = vld [vmem:[#allocation4 + $0x2ad0] sm:$0xff]  ;;  %v8182_v13 = vpack.c.bf16 %v1568_v4, %v1560_v3  ;;  %v1624_v58 = vld [vmem:[#allocation4 + $0x2e80] sm:$0xff]  ;;  %v1651_v3 = vld [vmem:[#allocation4 + $0x2f58] sm:$0xff] }
 0x1f1   :  { %8659 = vmatpush1.bf16.msra.mxu1 %v8658_v18  ;;  %8149 = vmatprep.subr.bf16.mxu0 %v8148_v19  ;;  %v1513_v18 = vld [vmem:[#allocation4 + $0x2b08] sm:$0xff]  ;;  %v1570_v7 = vld [vmem:[#allocation4 + $0x2cd0] sm:$0xff] }
 0x1f2   :  { %8661 = vmatprep.subr.bf16.mxu1 %v8660_v24  ;;  %3036 = vmatprep.mubr.f32.mxu0 %v130_v32  ;;  %v1521_v19 = vld [vmem:[#allocation4 + $0x2b48] sm:$0xff]  ;;  %v8678_v24 = vpack.c.bf16 %v1506_v16, %v1498_v14  ;;  %v8694_v14 = vpack.c.bf16 %v1570_v7, %v1562_v5  ;;  %v1576_v16 = vld [vmem:[#allocation4 + $0x2d00] sm:$0xff] }
 0x1f3   :  { %3604 = vmatprep.mubr.f32.mxu1 %v130_v32  ;;  %v8168_v25 = vpack.c.bf16 %v1521_v19, %v1513_v18  ;;  %v1522_v32 = vld [vmem:[#allocation4 + $0x2b50] sm:$0xff]  ;;  %v1584_v18 = vld [vmem:[#allocation4 + $0x2d40] sm:$0xff] }
 0x1f4   :  { %8151 = vmatpush1.bf16.msra.mxu0 %v8150_v34  ;;  %v1529_v34 = vld [vmem:[#allocation4 + $0x2b88] sm:$0xff]  ;;  %v8682_v40 = vpack.c.bf16 %v1522_v32, %v1514_v30  ;;  %v1578_v19 = vld [vmem:[#allocation4 + $0x2d10] sm:$0xff]  ;;  %v8186_v28 = vpack.c.bf16 %v1584_v18, %v1576_v16  ;;  %v1592_v32 = vld [vmem:[#allocation4 + $0x2d80] sm:$0xff] }
 0x1f5   :  { %8663 = vmatpush1.bf16.msra.mxu1 %v8662_v35  ;;  %8153 = vmatprep.subr.bf16.mxu0 %v8152_v37  ;;  %v1537_v35 = vld [vmem:[#allocation4 + $0x2bc8] sm:$0xff]  ;;  %v1531_v37 = vld [vmem:[#allocation4 + $0x2b98] sm:$0xff]  ;;  %v8698_v30 = vpack.c.bf16 %v1586_v21, %v1578_v19  ;;  %v1640_v7 = vld [vmem:[#allocation4 + $0x2f00] sm:$0xff] }
 0x1f6   :  { %8665 = vmatprep.subr.bf16.mxu1 %v8664_v41  ;;  %v8172_v41 = vpack.c.bf16 %v1537_v35, %v1529_v34  ;;  %v8684_v46 = vpack.c.bf16 %v1539_v38, %v1531_v37  ;;  %v1600_v34 = vld [vmem:[#allocation4 + $0x2dc0] sm:$0xff]  ;;  %v1594_v35 = vld [vmem:[#allocation4 + $0x2d90] sm:$0xff]  ;;  %v1667_v16 = vld [vmem:[#allocation4 + $0x2fd8] sm:$0xff] }
 0x1f7   :  { %v1602_v38 = vld [vmem:[#allocation4 + $0x2dd0] sm:$0xff]  ;;  %v8190_v43 = vpack.c.bf16 %v1600_v34, %v1592_v32  ;;  %v1656_v21 = vld [vmem:[#allocation4 + $0x2f80] sm:$0xff]  ;;  %v1683_v32 = vld [vmem:[#allocation4 + $0x3058] sm:$0xff] }
 0x1f8   :  { %8155 = vmatpush1.bf16.msra.mxu0 %v8154_v48  ;;  %v1545_v48 = vld [vmem:[#allocation4 + $0x2c08] sm:$0xff]  ;;  %v8702_v45 = vpack.c.bf16 %v1602_v38, %v1594_v35  ;;  %v1672_v38 = vld [vmem:[#allocation4 + $0x3000] sm:$0xff] }
 0x1f9   :  { %8667 = vmatpush1.bf16.msra.mxu1 %v8666_v49  ;;  %8157 = vmatprep.subr.bf16.mxu0 %v8156_v50  ;;  %v1553_v49 = vld [vmem:[#allocation4 + $0x2c48] sm:$0xff]  ;;  %v1547_v50 = vld [vmem:[#allocation4 + $0x2c18] sm:$0xff] }
 0x1fa   :  { %8669 = vmatprep.subr.bf16.mxu1 %v8668_v0  ;;  %v8176_v0 = vpack.c.bf16 %v1553_v49, %v1545_v48  ;;  %v8688_v57 = vpack.c.bf16 %v1555_v51, %v1547_v50  ;;  %v1616_v48 = vld [vmem:[#allocation4 + $0x2e40] sm:$0xff]  ;;  %v1610_v49 = vld [vmem:[#allocation4 + $0x2e10] sm:$0xff] }
 0x1fb   :  { %v1618_v51 = vld [vmem:[#allocation4 + $0x2e50] sm:$0xff]  ;;  %v8194_v55 = vpack.c.bf16 %v1616_v48, %v1608_v47  ;;  %v1699_v47 = vld [vmem:[#allocation4 + $0x30d8] sm:$0xff]  ;;  %v129_v48 = vld [vmem:[%s12141_s0 + $0x50] sm:$0xff] }
 0x1fc   :  { %8159 = vmatpush1.bf16.msra.mxu0 %v8158_v59  ;;  %v1561_v59 = vld [vmem:[#allocation4 + $0x2c88] sm:$0xff]  ;;  %v8706_v56 = vpack.c.bf16 %v1618_v51, %v1610_v49 }
 0x1fd   :  { %8671 = vmatpush1.bf16.msra.mxu1 %v8670_v60  ;;  %8161 = vmatprep.subr.bf16.mxu0 %v8160_v61  ;;  %v1569_v60 = vld [vmem:[#allocation4 + $0x2cc8] sm:$0xff]  ;;  %v1563_v61 = vld [vmem:[#allocation4 + $0x2c98] sm:$0xff] }
 0x1fe   :  { %8673 = vmatprep.subr.bf16.mxu1 %v8672_v2  ;;  %v8180_v2 = vpack.c.bf16 %v1569_v60, %v1561_v59  ;;  %v8692_v6 = vpack.c.bf16 %v1571_v62, %v1563_v61  ;;  %v1632_v59 = vld [vmem:[#allocation4 + $0x2ec0] sm:$0xff]  ;;  %v1626_v60 = vld [vmem:[#allocation4 + $0x2e90] sm:$0xff] }
 0x1ff   :  { %v1634_v62 = vld [vmem:[#allocation4 + $0x2ed0] sm:$0xff]  ;;  %v8198_v4 = vpack.c.bf16 %v1632_v59, %v1624_v58  ;;  %v1707_v58 = vld [vmem:[#allocation4 + $0x3118] sm:$0xff] }
 0x200   :  { %8163 = vmatpush1.bf16.msra.mxu0 %v8162_v8  ;;  %v1577_v8 = vld [vmem:[#allocation4 + $0x2d08] sm:$0xff]  ;;  %v8710_v5 = vpack.c.bf16 %v1634_v62, %v1626_v60  ;;  %v1715_v59 = vld [vmem:[#allocation4 + $0x3158] sm:$0xff] }
 0x201   :  { %8675 = vmatpush1.bf16.msra.mxu1 %v8674_v9  ;;  %8165 = vmatprep.subr.bf16.mxu0 %v8164_v10  ;;  %v1585_v9 = vld [vmem:[#allocation4 + $0x2d48] sm:$0xff]  ;;  %v1579_v10 = vld [vmem:[#allocation4 + $0x2d18] sm:$0xff] }
 0x202   :  { %8677 = vmatprep.subr.bf16.mxu1 %v8676_v15  ;;  %v8184_v15 = vpack.c.bf16 %v1585_v9, %v1577_v8  ;;  %v8696_v20 = vpack.c.bf16 %v1587_v11, %v1579_v10  ;;  %v1648_v8 = vld [vmem:[#allocation4 + $0x2f40] sm:$0xff]  ;;  %v1642_v9 = vld [vmem:[#allocation4 + $0x2f10] sm:$0xff] }
 0x203   :  { %v1650_v11 = vld [vmem:[#allocation4 + $0x2f50] sm:$0xff]  ;;  %v8202_v18 = vpack.c.bf16 %v1648_v8, %v1640_v7  ;;  %v132_v60 = vld [vmem:[%s12141_s0 + $0x68] sm:$0xff]  ;;  %v1729_v7 = vld [vmem:[#allocation4 + $0x31c8] sm:$0xff] }
 0x204   :  { %8167 = vmatpush1.bf16.msra.mxu0 %v8166_v23  ;;  %v1593_v23 = vld [vmem:[#allocation4 + $0x2d88] sm:$0xff]  ;;  %v8714_v19 = vpack.c.bf16 %v1650_v11, %v1642_v9  ;;  %v1723_v8 = vld [vmem:[#allocation4 + $0x3198] sm:$0xff] }
 0x205   :  { %8679 = vmatpush1.bf16.msra.mxu1 %v8678_v24  ;;  %8169 = vmatprep.subr.bf16.mxu0 %v8168_v25  ;;  %v1601_v24 = vld [vmem:[#allocation4 + $0x2dc8] sm:$0xff]  ;;  %v1595_v25 = vld [vmem:[#allocation4 + $0x2d98] sm:$0xff] }
 0x206   :  { %8681 = vmatprep.subr.bf16.mxu1 %v8680_v31  ;;  %v8188_v31 = vpack.c.bf16 %v1601_v24, %v1593_v23  ;;  %v8700_v37 = vpack.c.bf16 %v1603_v26, %v1595_v25  ;;  %v1664_v23 = vld [vmem:[#allocation4 + $0x2fc0] sm:$0xff]  ;;  %v1658_v24 = vld [vmem:[#allocation4 + $0x2f90] sm:$0xff]  ;;  %v1731_v9 = vld [vmem:[#allocation4 + $0x31d8] sm:$0xff] }
 0x207   :  { %v1666_v26 = vld [vmem:[#allocation4 + $0x2fd0] sm:$0xff]  ;;  %v8206_v34 = vpack.c.bf16 %v1664_v23, %v1656_v21  ;;  %v1745_v21 = vld [vmem:[#allocation4 + $0x3248] sm:$0xff]  ;;  %v1739_v23 = vld [vmem:[#allocation4 + $0x3218] sm:$0xff] }
 0x208   :  { %8171 = vmatpush1.bf16.msra.mxu0 %v8170_v39  ;;  %v1609_v39 = vld [vmem:[#allocation4 + $0x2e08] sm:$0xff]  ;;  %v8718_v35 = vpack.c.bf16 %v1666_v26, %v1658_v24  ;;  %v1747_v24 = vld [vmem:[#allocation4 + $0x3258] sm:$0xff] }
 0x209   :  { %8683 = vmatpush1.bf16.msra.mxu1 %v8682_v40  ;;  %8173 = vmatprep.subr.bf16.mxu0 %v8172_v41  ;;  %v1617_v40 = vld [vmem:[#allocation4 + $0x2e48] sm:$0xff]  ;;  %v1611_v41 = vld [vmem:[#allocation4 + $0x2e18] sm:$0xff] }
 0x20a   :  { %8685 = vmatprep.subr.bf16.mxu1 %v8684_v46  ;;  %v8192_v46 = vpack.c.bf16 %v1617_v40, %v1609_v39  ;;  %v8704_v50 = vpack.c.bf16 %v1619_v42, %v1611_v41  ;;  %v1680_v39 = vld [vmem:[#allocation4 + $0x3040] sm:$0xff]  ;;  %v1674_v40 = vld [vmem:[#allocation4 + $0x3010] sm:$0xff] }
 0x20b   :  { %v1682_v42 = vld [vmem:[#allocation4 + $0x3050] sm:$0xff]  ;;  %v8210_v49 = vpack.c.bf16 %v1680_v39, %v1672_v38  ;;  %v1761_v38 = vld [vmem:[#allocation4 + $0x32c8] sm:$0xff]  ;;  %v1755_v39 = vld [vmem:[#allocation4 + $0x3298] sm:$0xff] }
 0x20c   :  { %8175 = vmatpush1.bf16.msra.mxu0 %v8174_v52  ;;  %v1625_v52 = vld [vmem:[#allocation4 + $0x2e88] sm:$0xff] }
 0x20d   :  { %8687 = vmatpush1.bf16.msra.mxu1 %v8686_v53  ;;  %8177 = vmatprep.subr.bf16.mxu0 %v8176_v0  ;;  %v1633_v53 = vld [vmem:[#allocation4 + $0x2ec8] sm:$0xff]  ;;  %v1627_v0 = vld [vmem:[#allocation4 + $0x2e98] sm:$0xff] }
 0x20e   :  { %8689 = vmatprep.subr.bf16.mxu1 %v8688_v57  ;;  %v8196_v57 = vpack.c.bf16 %v1633_v53, %v1625_v52  ;;  %v8708_v61 = vpack.c.bf16 %v1635_v54, %v1627_v0  ;;  %v1688_v52 = vld [vmem:[#allocation4 + $0x3080] sm:$0xff]  ;;  %v1690_v0 = vld [vmem:[#allocation4 + $0x3090] sm:$0xff] }
 0x20f   :  { %v1696_v53 = vld [vmem:[#allocation4 + $0x30c0] sm:$0xff] }
 0x210   :  { %8179 = vmatpush1.bf16.msra.mxu0 %v8178_v63  ;;  %v1641_v63 = vld [vmem:[#allocation4 + $0x2f08] sm:$0xff] }
 0x211   :  { %8691 = vmatpush1.bf16.msra.mxu1 %v8690_v1  ;;  %8181 = vmatprep.subr.bf16.mxu0 %v8180_v2  ;;  %v1649_v1 = vld [vmem:[#allocation4 + $0x2f48] sm:$0xff]  ;;  %v1643_v2 = vld [vmem:[#allocation4 + $0x2f18] sm:$0xff] }
 0x212   :  { %8693 = vmatprep.subr.bf16.mxu1 %v8692_v6  ;;  %v8200_v6 = vpack.c.bf16 %v1649_v1, %v1641_v63  ;;  %v8712_v10 = vpack.c.bf16 %v1651_v3, %v1643_v2  ;;  %v1704_v1 = vld [vmem:[#allocation4 + $0x3100] sm:$0xff]  ;;  %v1706_v3 = vld [vmem:[#allocation4 + $0x3110] sm:$0xff] }
 0x213   :  { %v1712_v2 = vld [vmem:[#allocation4 + $0x3140] sm:$0xff] }
 0x214   :  { %8183 = vmatpush1.bf16.msra.mxu0 %v8182_v13  ;;  %v1657_v13 = vld [vmem:[#allocation4 + $0x2f88] sm:$0xff] }
 0x215   :  { %8695 = vmatpush1.bf16.msra.mxu1 %v8694_v14  ;;  %8185 = vmatprep.subr.bf16.mxu0 %v8184_v15  ;;  %v1665_v14 = vld [vmem:[#allocation4 + $0x2fc8] sm:$0xff]  ;;  %v1659_v15 = vld [vmem:[#allocation4 + $0x2f98] sm:$0xff] }
 0x216   :  { %8697 = vmatprep.subr.bf16.mxu1 %v8696_v20  ;;  %v8204_v20 = vpack.c.bf16 %v1665_v14, %v1657_v13  ;;  %v8716_v25 = vpack.c.bf16 %v1667_v16, %v1659_v15  ;;  %v1720_v14 = vld [vmem:[#allocation4 + $0x3180] sm:$0xff]  ;;  %v1722_v16 = vld [vmem:[#allocation4 + $0x3190] sm:$0xff] }
 0x217   :  { %v1728_v15 = vld [vmem:[#allocation4 + $0x31c0] sm:$0xff] }
 0x218   :  { %8187 = vmatpush1.bf16.msra.mxu0 %v8186_v28  ;;  %v1673_v28 = vld [vmem:[#allocation4 + $0x3008] sm:$0xff] }
 0x219   :  { %8699 = vmatpush1.bf16.msra.mxu1 %v8698_v30  ;;  %8189 = vmatprep.subr.bf16.mxu0 %v8188_v31  ;;  %v1681_v30 = vld [vmem:[#allocation4 + $0x3048] sm:$0xff]  ;;  %v1675_v31 = vld [vmem:[#allocation4 + $0x3018] sm:$0xff] }
 0x21a   :  { %8701 = vmatprep.subr.bf16.mxu1 %v8700_v37  ;;  %v8208_v37 = vpack.c.bf16 %v1681_v30, %v1673_v28  ;;  %v8720_v41 = vpack.c.bf16 %v1683_v32, %v1675_v31  ;;  %v1736_v30 = vld [vmem:[#allocation4 + $0x3200] sm:$0xff]  ;;  %v1738_v32 = vld [vmem:[#allocation4 + $0x3210] sm:$0xff] }
 0x21b   :  { %v1744_v31 = vld [vmem:[#allocation4 + $0x3240] sm:$0xff] }
 0x21c   :  { %8191 = vmatpush1.bf16.msra.mxu0 %v8190_v43  ;;  %v1689_v43 = vld [vmem:[#allocation4 + $0x3088] sm:$0xff] }
 0x21d   :  { %8703 = vmatpush1.bf16.msra.mxu1 %v8702_v45  ;;  %8193 = vmatprep.subr.bf16.mxu0 %v8192_v46  ;;  %v1697_v45 = vld [vmem:[#allocation4 + $0x30c8] sm:$0xff]  ;;  %v1691_v46 = vld [vmem:[#allocation4 + $0x3098] sm:$0xff] }
 0x21e   :  { %8705 = vmatprep.subr.bf16.mxu1 %v8704_v50  ;;  %v8722_v50 = vpack.c.bf16 %v1682_v42, %v1674_v40  ;;  %v8212_v51 = vpack.c.bf16 %v1697_v45, %v1689_v43  ;;  %v8724_v54 = vpack.c.bf16 %v1699_v47, %v1691_v46  ;;  %v1763_v40 = vld [vmem:[#allocation4 + $0x32d8] sm:$0xff]  ;;  %v1752_v45 = vld [vmem:[#allocation4 + $0x3280] sm:$0xff]  ;;  %v1754_v47 = vld [vmem:[#allocation4 + $0x3290] sm:$0xff] }
 0x21f   :  { %v1760_v46 = vld [vmem:[#allocation4 + $0x32c0] sm:$0xff] }
 0x220   :  { %8195 = vmatpush1.bf16.msra.mxu0 %v8194_v55  ;;  %v1698_v55 = vld [vmem:[#allocation4 + $0x30d0] sm:$0xff] }
 0x221   :  { %8707 = vmatpush1.bf16.msra.mxu1 %v8706_v56  ;;  %8197 = vmatprep.subr.bf16.mxu0 %v8196_v57  ;;  %v1705_v56 = vld [vmem:[#allocation4 + $0x3108] sm:$0xff]  ;;  %v8726_v62 = vpack.c.bf16 %v1698_v55, %v1690_v0  ;;  %v8230_v0 = vpack.c.bf16 %v1760_v46, %v1752_v45  ;;  %v1843_v45 = vld [vmem:[#allocation4 + $0x3558] sm:$0xff] }
 0x222   :  { %8709 = vmatprep.subr.bf16.mxu1 %v8708_v61  ;;  %v1713_v57 = vld [vmem:[#allocation4 + $0x3148] sm:$0xff]  ;;  %v8214_v61 = vpack.c.bf16 %v1696_v53, %v1688_v52  ;;  %v1771_v52 = vld [vmem:[#allocation4 + $0x3318] sm:$0xff] }
 0x223   :  { %v8216_v63 = vpack.c.bf16 %v1713_v57, %v1705_v56  ;;  %v1779_v53 = vld [vmem:[#allocation4 + $0x3358] sm:$0xff]  ;;  %v1768_v56 = vld [vmem:[#allocation4 + $0x3300] sm:$0xff] }
 0x224   :  { %8199 = vmatpush1.bf16.msra.mxu0 %v8198_v4  ;;  %v8728_v4 = vpack.c.bf16 %v1715_v59, %v1707_v58  ;;  %v1776_v57 = vld [vmem:[#allocation4 + $0x3340] sm:$0xff]  ;;  %v1770_v58 = vld [vmem:[#allocation4 + $0x3310] sm:$0xff]  ;;  %v8744_v59 = vpack.c.bf16 %v1779_v53, %v1771_v52 }
 0x225   :  { %8711 = vmatpush1.bf16.msra.mxu1 %v8710_v5  ;;  %8201 = vmatprep.subr.bf16.mxu0 %v8200_v6  ;;  %v1714_v5 = vld [vmem:[#allocation4 + $0x3150] sm:$0xff]  ;;  %v1721_v6 = vld [vmem:[#allocation4 + $0x3188] sm:$0xff] }
 0x226   :  { %8713 = vmatprep.subr.bf16.mxu1 %v8712_v10  ;;  %v8218_v10 = vpack.c.bf16 %v1712_v2, %v1704_v1  ;;  %v8730_v11 = vpack.c.bf16 %v1714_v5, %v1706_v3  ;;  %v8220_v13 = vpack.c.bf16 %v1729_v7, %v1721_v6  ;;  %v1795_v1 = vld [vmem:[#allocation4 + $0x33d8] sm:$0xff]  ;;  %v8234_v2 = vpack.c.bf16 %v1776_v57, %v1768_v56  ;;  %v1784_v5 = vld [vmem:[#allocation4 + $0x3380] sm:$0xff]  ;;  %v1786_v7 = vld [vmem:[#allocation4 + $0x3390] sm:$0xff] }
 0x227   :  { %v1792_v6 = vld [vmem:[#allocation4 + $0x33c0] sm:$0xff]  ;;  %v1842_v53 = vld [vmem:[#allocation4 + $0x3550] sm:$0xff]  ;;  %v1859_v56 = vld [vmem:[#allocation4 + $0x35d8] sm:$0xff] }
 0x228   :  { %8203 = vmatpush1.bf16.msra.mxu0 %v8202_v18  ;;  %v8732_v18 = vpack.c.bf16 %v1731_v9, %v1723_v8  ;;  %v1794_v9 = vld [vmem:[#allocation4 + $0x33d0] sm:$0xff] }
 0x229   :  { %8715 = vmatpush1.bf16.msra.mxu1 %v8714_v19  ;;  %8205 = vmatprep.subr.bf16.mxu0 %v8204_v20  ;;  %v1730_v19 = vld [vmem:[#allocation4 + $0x31d0] sm:$0xff]  ;;  %v1737_v20 = vld [vmem:[#allocation4 + $0x3208] sm:$0xff] }
 0x22a   :  { %8717 = vmatprep.subr.bf16.mxu1 %v8716_v25  ;;  %v8222_v25 = vpack.c.bf16 %v1728_v15, %v1720_v14  ;;  %v8734_v26 = vpack.c.bf16 %v1730_v19, %v1722_v16  ;;  %v8224_v28 = vpack.c.bf16 %v1745_v21, %v1737_v20  ;;  %v1811_v14 = vld [vmem:[#allocation4 + $0x3458] sm:$0xff]  ;;  %v8238_v15 = vpack.c.bf16 %v1792_v6, %v1784_v5  ;;  %v1800_v19 = vld [vmem:[#allocation4 + $0x3400] sm:$0xff]  ;;  %v1802_v21 = vld [vmem:[#allocation4 + $0x3410] sm:$0xff] }
 0x22b   :  { %v8750_v16 = vpack.c.bf16 %v1794_v9, %v1786_v7  ;;  %v1808_v20 = vld [vmem:[#allocation4 + $0x3440] sm:$0xff]  ;;  %v1875_v5 = vld [vmem:[#allocation4 + $0x3658] sm:$0xff] }
 0x22c   :  { %8207 = vmatpush1.bf16.msra.mxu0 %v8206_v34  ;;  %v8736_v34 = vpack.c.bf16 %v1747_v24, %v1739_v23  ;;  %v1810_v24 = vld [vmem:[#allocation4 + $0x3450] sm:$0xff]  ;;  %v1864_v9 = vld [vmem:[#allocation4 + $0x3600] sm:$0xff] }
 0x22d   :  { %8719 = vmatpush1.bf16.msra.mxu1 %v8718_v35  ;;  %8209 = vmatprep.subr.bf16.mxu0 %v8208_v37  ;;  %v1746_v35 = vld [vmem:[#allocation4 + $0x3250] sm:$0xff]  ;;  %v1753_v37 = vld [vmem:[#allocation4 + $0x3288] sm:$0xff] }
 0x22e   :  { %8721 = vmatprep.subr.bf16.mxu1 %v8720_v41  ;;  %v8226_v41 = vpack.c.bf16 %v1744_v31, %v1736_v30  ;;  %v8738_v42 = vpack.c.bf16 %v1746_v35, %v1738_v32  ;;  %v8228_v43 = vpack.c.bf16 %v1761_v38, %v1753_v37  ;;  %v1827_v30 = vld [vmem:[#allocation4 + $0x34d8] sm:$0xff]  ;;  %v8242_v31 = vpack.c.bf16 %v1808_v20, %v1800_v19  ;;  %v1816_v35 = vld [vmem:[#allocation4 + $0x3480] sm:$0xff]  ;;  %v1818_v38 = vld [vmem:[#allocation4 + $0x3490] sm:$0xff] }
 0x22f   :  { %3037 = vmatmul.mubr.f32.vlgmr.msra.gmra.mrb[4].mxu0 %v129_v48  ;;  %v8754_v32 = vpack.c.bf16 %v1810_v24, %v1802_v21  ;;  %v1824_v37 = vld [vmem:[#allocation4 + $0x34c0] sm:$0xff]  ;;  %v1891_v19 = vld [vmem:[#allocation4 + $0x36d8] sm:$0xff] }
 0x230   :  { %8211 = vmatpush1.bf16.msra.mxu0 %v8210_v49  ;;  %3605 = vmatmul.mubr.f32.vlgmr.msra.gmra.mrb[4].mxu1 %v129_v48  ;;  %v8740_v48 = vpack.c.bf16 %v1763_v40, %v1755_v39  ;;  %v1762_v49 = vld [vmem:[#allocation4 + $0x32d0] sm:$0xff]  ;;  %v8246_v46 = vpack.c.bf16 %v1824_v37, %v1816_v35  ;;  %v1880_v24 = vld [vmem:[#allocation4 + $0x3680] sm:$0xff]  ;;  %v1907_v35 = vld [vmem:[#allocation4 + $0x3758] sm:$0xff] }
 0x231   :  { %8723 = vmatpush1.bf16.msra.mxu1 %v8722_v50  ;;  %8213 = vmatprep.subr.bf16.mxu0 %v8212_v51  ;;  %v1769_v50 = vld [vmem:[#allocation4 + $0x3308] sm:$0xff]  ;;  %v1826_v40 = vld [vmem:[#allocation4 + $0x34d0] sm:$0xff] }
 0x232   :  { %8725 = vmatprep.subr.bf16.mxu1 %v8724_v54  ;;  %3107 = vmatprep.mubr.f32.mxu0 %v132_v60  ;;  %v1777_v51 = vld [vmem:[#allocation4 + $0x3348] sm:$0xff]  ;;  %v8742_v54 = vpack.c.bf16 %v1762_v49, %v1754_v47  ;;  %v8758_v47 = vpack.c.bf16 %v1826_v40, %v1818_v38  ;;  %v1832_v49 = vld [vmem:[#allocation4 + $0x3500] sm:$0xff] }
 0x233   :  { %3675 = vmatprep.mubr.f32.mxu1 %v132_v60  ;;  %v8232_v55 = vpack.c.bf16 %v1777_v51, %v1769_v50  ;;  %v1778_v60 = vld [vmem:[#allocation4 + $0x3350] sm:$0xff]  ;;  %v1840_v50 = vld [vmem:[#allocation4 + $0x3540] sm:$0xff] }
 0x234   :  { %8215 = vmatpush1.bf16.msra.mxu0 %v8214_v61  ;;  %v1785_v61 = vld [vmem:[#allocation4 + $0x3388] sm:$0xff]  ;;  %v8746_v3 = vpack.c.bf16 %v1778_v60, %v1770_v58  ;;  %v1834_v51 = vld [vmem:[#allocation4 + $0x3510] sm:$0xff]  ;;  %v8250_v57 = vpack.c.bf16 %v1840_v50, %v1832_v49  ;;  %v1848_v60 = vld [vmem:[#allocation4 + $0x3580] sm:$0xff] }
 0x235   :  { %8727 = vmatpush1.bf16.msra.mxu1 %v8726_v62  ;;  %8217 = vmatprep.subr.bf16.mxu0 %v8216_v63  ;;  %v1793_v62 = vld [vmem:[#allocation4 + $0x33c8] sm:$0xff]  ;;  %v1787_v63 = vld [vmem:[#allocation4 + $0x3398] sm:$0xff]  ;;  %v8762_v58 = vpack.c.bf16 %v1842_v53, %v1834_v51  ;;  %v1896_v40 = vld [vmem:[#allocation4 + $0x3700] sm:$0xff] }
 0x236   :  { %8729 = vmatprep.subr.bf16.mxu1 %v8728_v4  ;;  %v8236_v4 = vpack.c.bf16 %v1793_v62, %v1785_v61  ;;  %v8748_v8 = vpack.c.bf16 %v1795_v1, %v1787_v63  ;;  %v1856_v61 = vld [vmem:[#allocation4 + $0x35c0] sm:$0xff]  ;;  %v1850_v62 = vld [vmem:[#allocation4 + $0x3590] sm:$0xff]  ;;  %v1923_v49 = vld [vmem:[#allocation4 + $0x37d8] sm:$0xff] }
 0x237   :  { %v1858_v1 = vld [vmem:[#allocation4 + $0x35d0] sm:$0xff]  ;;  %v8254_v6 = vpack.c.bf16 %v1856_v61, %v1848_v60  ;;  %v1912_v53 = vld [vmem:[#allocation4 + $0x3780] sm:$0xff]  ;;  %v1939_v60 = vld [vmem:[#allocation4 + $0x3858] sm:$0xff] }
 0x238   :  { %8219 = vmatpush1.bf16.msra.mxu0 %v8218_v10  ;;  %v1801_v10 = vld [vmem:[#allocation4 + $0x3408] sm:$0xff]  ;;  %v8766_v7 = vpack.c.bf16 %v1858_v1, %v1850_v62  ;;  %v1928_v1 = vld [vmem:[#allocation4 + $0x3800] sm:$0xff] }
 0x239   :  { %8731 = vmatpush1.bf16.msra.mxu1 %v8730_v11  ;;  %8221 = vmatprep.subr.bf16.mxu0 %v8220_v13  ;;  %v1809_v11 = vld [vmem:[#allocation4 + $0x3448] sm:$0xff]  ;;  %v1803_v13 = vld [vmem:[#allocation4 + $0x3418] sm:$0xff] }
 0x23a   :  { %8733 = vmatprep.subr.bf16.mxu1 %v8732_v18  ;;  %v8240_v18 = vpack.c.bf16 %v1809_v11, %v1801_v10  ;;  %v8752_v23 = vpack.c.bf16 %v1811_v14, %v1803_v13  ;;  %v1872_v10 = vld [vmem:[#allocation4 + $0x3640] sm:$0xff]  ;;  %v1866_v11 = vld [vmem:[#allocation4 + $0x3610] sm:$0xff] }
 0x23b   :  { %v1874_v14 = vld [vmem:[#allocation4 + $0x3650] sm:$0xff]  ;;  %v8258_v20 = vpack.c.bf16 %v1872_v10, %v1864_v9  ;;  %v1955_v9 = vld [vmem:[#allocation4 + $0x38d8] sm:$0xff] }
 0x23c   :  { %8223 = vmatpush1.bf16.msra.mxu0 %v8222_v25  ;;  %v1817_v25 = vld [vmem:[#allocation4 + $0x3488] sm:$0xff]  ;;  %v8770_v21 = vpack.c.bf16 %v1874_v14, %v1866_v11  ;;  %v131_v10 = vld [vmem:[%s12141_s0 + $0x60] sm:$0xff] }
 0x23d   :  { %8735 = vmatpush1.bf16.msra.mxu1 %v8734_v26  ;;  %8225 = vmatprep.subr.bf16.mxu0 %v8224_v28  ;;  %v1825_v26 = vld [vmem:[#allocation4 + $0x34c8] sm:$0xff]  ;;  %v1819_v28 = vld [vmem:[#allocation4 + $0x3498] sm:$0xff] }
 0x23e   :  { %8737 = vmatprep.subr.bf16.mxu1 %v8736_v34  ;;  %v8244_v34 = vpack.c.bf16 %v1825_v26, %v1817_v25  ;;  %v8756_v39 = vpack.c.bf16 %v1827_v30, %v1819_v28  ;;  %v1888_v25 = vld [vmem:[#allocation4 + $0x36c0] sm:$0xff]  ;;  %v1882_v26 = vld [vmem:[#allocation4 + $0x3690] sm:$0xff] }
 0x23f   :  { %v1890_v30 = vld [vmem:[#allocation4 + $0x36d0] sm:$0xff]  ;;  %v8262_v37 = vpack.c.bf16 %v1888_v25, %v1880_v24  ;;  %v1963_v24 = vld [vmem:[#allocation4 + $0x3918] sm:$0xff] }
 0x240   :  { %8227 = vmatpush1.bf16.msra.mxu0 %v8226_v41  ;;  %v1833_v41 = vld [vmem:[#allocation4 + $0x3508] sm:$0xff]  ;;  %v8774_v38 = vpack.c.bf16 %v1890_v30, %v1882_v26  ;;  %v1971_v25 = vld [vmem:[#allocation4 + $0x3958] sm:$0xff] }
 0x241   :  { %8739 = vmatpush1.bf16.msra.mxu1 %v8738_v42  ;;  %8229 = vmatprep.subr.bf16.mxu0 %v8228_v43  ;;  %v1841_v42 = vld [vmem:[#allocation4 + $0x3548] sm:$0xff]  ;;  %v1835_v43 = vld [vmem:[#allocation4 + $0x3518] sm:$0xff] }
 0x242   :  { %8741 = vmatprep.subr.bf16.mxu1 %v8740_v48  ;;  %v8248_v48 = vpack.c.bf16 %v1841_v42, %v1833_v41  ;;  %v8760_v52 = vpack.c.bf16 %v1843_v45, %v1835_v43  ;;  %v1904_v41 = vld [vmem:[#allocation4 + $0x3740] sm:$0xff]  ;;  %v1898_v42 = vld [vmem:[#allocation4 + $0x3710] sm:$0xff] }
 0x243   :  { %v1906_v45 = vld [vmem:[#allocation4 + $0x3750] sm:$0xff]  ;;  %v8266_v50 = vpack.c.bf16 %v1904_v41, %v1896_v40  ;;  %v1985_v40 = vld [vmem:[#allocation4 + $0x39c8] sm:$0xff]  ;;  %v1979_v41 = vld [vmem:[#allocation4 + $0x3998] sm:$0xff] }
 0x244   :  { %8231 = vmatpush1.bf16.msra.mxu0 %v8230_v0  ;;  %v1849_v0 = vld [vmem:[#allocation4 + $0x3588] sm:$0xff]  ;;  %v8778_v51 = vpack.c.bf16 %v1906_v45, %v1898_v42  ;;  %v1987_v42 = vld [vmem:[#allocation4 + $0x39d8] sm:$0xff] }
 0x245   :  { %8743 = vmatpush1.bf16.msra.mxu1 %v8742_v54  ;;  %8233 = vmatprep.subr.bf16.mxu0 %v8232_v55  ;;  %v1857_v54 = vld [vmem:[#allocation4 + $0x35c8] sm:$0xff]  ;;  %v1851_v55 = vld [vmem:[#allocation4 + $0x3598] sm:$0xff] }
 0x246   :  { %8745 = vmatprep.subr.bf16.mxu1 %v8744_v59  ;;  %v8252_v59 = vpack.c.bf16 %v1857_v54, %v1849_v0  ;;  %v8764_v63 = vpack.c.bf16 %v1859_v56, %v1851_v55  ;;  %v1920_v0 = vld [vmem:[#allocation4 + $0x37c0] sm:$0xff]  ;;  %v1914_v54 = vld [vmem:[#allocation4 + $0x3790] sm:$0xff] }
 0x247   :  { %v1922_v56 = vld [vmem:[#allocation4 + $0x37d0] sm:$0xff]  ;;  %v8270_v61 = vpack.c.bf16 %v1920_v0, %v1912_v53  ;;  %v2001_v53 = vld [vmem:[#allocation4 + $0x3a48] sm:$0xff]  ;;  %v1995_v0 = vld [vmem:[#allocation4 + $0x3a18] sm:$0xff] }
 0x248   :  { %8235 = vmatpush1.bf16.msra.mxu0 %v8234_v2  ;;  %v1865_v2 = vld [vmem:[#allocation4 + $0x3608] sm:$0xff]  ;;  %v8782_v62 = vpack.c.bf16 %v1922_v56, %v1914_v54  ;;  %v2003_v54 = vld [vmem:[#allocation4 + $0x3a58] sm:$0xff] }
 0x249   :  { %8747 = vmatpush1.bf16.msra.mxu1 %v8746_v3  ;;  %8237 = vmatprep.subr.bf16.mxu0 %v8236_v4  ;;  %v1873_v3 = vld [vmem:[#allocation4 + $0x3648] sm:$0xff]  ;;  %v1867_v4 = vld [vmem:[#allocation4 + $0x3618] sm:$0xff] }
 0x24a   :  { %8749 = vmatprep.subr.bf16.mxu1 %v8748_v8  ;;  %v8256_v8 = vpack.c.bf16 %v1873_v3, %v1865_v2  ;;  %v8768_v13 = vpack.c.bf16 %v1875_v5, %v1867_v4  ;;  %v1936_v2 = vld [vmem:[#allocation4 + $0x3840] sm:$0xff]  ;;  %v1930_v3 = vld [vmem:[#allocation4 + $0x3810] sm:$0xff] }
 0x24b   :  { %v1938_v5 = vld [vmem:[#allocation4 + $0x3850] sm:$0xff]  ;;  %v8274_v11 = vpack.c.bf16 %v1936_v2, %v1928_v1  ;;  %v2017_v1 = vld [vmem:[#allocation4 + $0x3ac8] sm:$0xff]  ;;  %v2011_v2 = vld [vmem:[#allocation4 + $0x3a98] sm:$0xff] }
 0x24c   :  { %8239 = vmatpush1.bf16.msra.mxu0 %v8238_v15  ;;  %v1881_v15 = vld [vmem:[#allocation4 + $0x3688] sm:$0xff] }
 0x24d   :  { %8751 = vmatpush1.bf16.msra.mxu1 %v8750_v16  ;;  %8241 = vmatprep.subr.bf16.mxu0 %v8240_v18  ;;  %v1889_v16 = vld [vmem:[#allocation4 + $0x36c8] sm:$0xff]  ;;  %v1883_v18 = vld [vmem:[#allocation4 + $0x3698] sm:$0xff] }
 0x24e   :  { %8753 = vmatprep.subr.bf16.mxu1 %v8752_v23  ;;  %v8260_v23 = vpack.c.bf16 %v1889_v16, %v1881_v15  ;;  %v8772_v28 = vpack.c.bf16 %v1891_v19, %v1883_v18  ;;  %v1944_v15 = vld [vmem:[#allocation4 + $0x3880] sm:$0xff]  ;;  %v1946_v18 = vld [vmem:[#allocation4 + $0x3890] sm:$0xff] }
 0x24f   :  { %v1952_v16 = vld [vmem:[#allocation4 + $0x38c0] sm:$0xff]  ;;  %v134_v26 = vld [vmem:[%s12141_s0 + $0x78] sm:$0xff] }
 0x250   :  { %8243 = vmatpush1.bf16.msra.mxu0 %v8242_v31  ;;  %v1897_v31 = vld [vmem:[#allocation4 + $0x3708] sm:$0xff] }
 0x251   :  { %8755 = vmatpush1.bf16.msra.mxu1 %v8754_v32  ;;  %8245 = vmatprep.subr.bf16.mxu0 %v8244_v34  ;;  %v1905_v32 = vld [vmem:[#allocation4 + $0x3748] sm:$0xff]  ;;  %v1899_v34 = vld [vmem:[#allocation4 + $0x3718] sm:$0xff] }
 0x252   :  { %8757 = vmatprep.subr.bf16.mxu1 %v8756_v39  ;;  %v8264_v39 = vpack.c.bf16 %v1905_v32, %v1897_v31  ;;  %v8776_v43 = vpack.c.bf16 %v1907_v35, %v1899_v34  ;;  %v1960_v32 = vld [vmem:[#allocation4 + $0x3900] sm:$0xff]  ;;  %v1962_v35 = vld [vmem:[#allocation4 + $0x3910] sm:$0xff] }
 0x253   :  { %v1968_v34 = vld [vmem:[#allocation4 + $0x3940] sm:$0xff] }
 0x254   :  { %8247 = vmatpush1.bf16.msra.mxu0 %v8246_v46  ;;  %v1913_v46 = vld [vmem:[#allocation4 + $0x3788] sm:$0xff] }
 0x255   :  { %8759 = vmatpush1.bf16.msra.mxu1 %v8758_v47  ;;  %8249 = vmatprep.subr.bf16.mxu0 %v8248_v48  ;;  %v1921_v47 = vld [vmem:[#allocation4 + $0x37c8] sm:$0xff]  ;;  %v1915_v48 = vld [vmem:[#allocation4 + $0x3798] sm:$0xff] }
 0x256   :  { %8761 = vmatprep.subr.bf16.mxu1 %v8760_v52  ;;  %v8268_v52 = vpack.c.bf16 %v1921_v47, %v1913_v46  ;;  %v8780_v55 = vpack.c.bf16 %v1923_v49, %v1915_v48  ;;  %v1976_v47 = vld [vmem:[#allocation4 + $0x3980] sm:$0xff]  ;;  %v1978_v49 = vld [vmem:[#allocation4 + $0x3990] sm:$0xff] }
 0x257   :  { %v1984_v48 = vld [vmem:[#allocation4 + $0x39c0] sm:$0xff] }
 0x258   :  { %8251 = vmatpush1.bf16.msra.mxu0 %v8250_v57  ;;  %v1929_v57 = vld [vmem:[#allocation4 + $0x3808] sm:$0xff] }
 0x259   :  { %8763 = vmatpush1.bf16.msra.mxu1 %v8762_v58  ;;  %8253 = vmatprep.subr.bf16.mxu0 %v8252_v59  ;;  %v1937_v58 = vld [vmem:[#allocation4 + $0x3848] sm:$0xff]  ;;  %v1931_v59 = vld [vmem:[#allocation4 + $0x3818] sm:$0xff] }
 0x25a   :  { %8765 = vmatprep.subr.bf16.mxu1 %v8764_v63  ;;  %v8272_v63 = vpack.c.bf16 %v1937_v58, %v1929_v57  ;;  %v8784_v4 = vpack.c.bf16 %v1939_v60, %v1931_v59  ;;  %v1992_v58 = vld [vmem:[#allocation4 + $0x3a00] sm:$0xff]  ;;  %v1994_v60 = vld [vmem:[#allocation4 + $0x3a10] sm:$0xff] }
 0x25b   :  { %v2000_v59 = vld [vmem:[#allocation4 + $0x3a40] sm:$0xff] }
 0x25c   :  { %8255 = vmatpush1.bf16.msra.mxu0 %v8254_v6  ;;  %v1945_v6 = vld [vmem:[#allocation4 + $0x3888] sm:$0xff] }
 0x25d   :  { %8767 = vmatpush1.bf16.msra.mxu1 %v8766_v7  ;;  %8257 = vmatprep.subr.bf16.mxu0 %v8256_v8  ;;  %v1953_v7 = vld [vmem:[#allocation4 + $0x38c8] sm:$0xff]  ;;  %v1947_v8 = vld [vmem:[#allocation4 + $0x3898] sm:$0xff] }
 0x25e   :  { %8769 = vmatprep.subr.bf16.mxu1 %v8768_v13  ;;  %v8786_v13 = vpack.c.bf16 %v1938_v5, %v1930_v3  ;;  %v8276_v14 = vpack.c.bf16 %v1953_v7, %v1945_v6  ;;  %v8788_v19 = vpack.c.bf16 %v1955_v9, %v1947_v8  ;;  %v2019_v3 = vld [vmem:[#allocation4 + $0x3ad8] sm:$0xff]  ;;  %v2008_v7 = vld [vmem:[#allocation4 + $0x3a80] sm:$0xff]  ;;  %v2010_v9 = vld [vmem:[#allocation4 + $0x3a90] sm:$0xff] }
 0x25f   :  { %v2016_v8 = vld [vmem:[#allocation4 + $0x3ac0] sm:$0xff] }
 0x260   :  { %8259 = vmatpush1.bf16.msra.mxu0 %v8258_v20  ;;  %v1954_v20 = vld [vmem:[#allocation4 + $0x38d0] sm:$0xff] }
 0x261   :  { %8771 = vmatpush1.bf16.msra.mxu1 %v8770_v21  ;;  %8261 = vmatprep.subr.bf16.mxu0 %v8260_v23  ;;  %v1961_v21 = vld [vmem:[#allocation4 + $0x3908] sm:$0xff]  ;;  %v8790_v30 = vpack.c.bf16 %v1954_v20, %v1946_v18  ;;  %v8294_v18 = vpack.c.bf16 %v2016_v8, %v2008_v7  ;;  %v2099_v7 = vld [vmem:[#allocation4 + $0x3d58] sm:$0xff] }
 0x262   :  { %8773 = vmatprep.subr.bf16.mxu1 %v8772_v28  ;;  %v1969_v23 = vld [vmem:[#allocation4 + $0x3948] sm:$0xff]  ;;  %v8278_v28 = vpack.c.bf16 %v1952_v16, %v1944_v15  ;;  %v2027_v15 = vld [vmem:[#allocation4 + $0x3b18] sm:$0xff] }
 0x263   :  { %v8280_v31 = vpack.c.bf16 %v1969_v23, %v1961_v21  ;;  %v2035_v16 = vld [vmem:[#allocation4 + $0x3b58] sm:$0xff]  ;;  %v2024_v21 = vld [vmem:[#allocation4 + $0x3b00] sm:$0xff] }
 0x264   :  { %8263 = vmatpush1.bf16.msra.mxu0 %v8262_v37  ;;  %v8792_v37 = vpack.c.bf16 %v1971_v25, %v1963_v24  ;;  %v2032_v23 = vld [vmem:[#allocation4 + $0x3b40] sm:$0xff]  ;;  %v2026_v24 = vld [vmem:[#allocation4 + $0x3b10] sm:$0xff]  ;;  %v8808_v25 = vpack.c.bf16 %v2035_v16, %v2027_v15 }
 0x265   :  { %8775 = vmatpush1.bf16.msra.mxu1 %v8774_v38  ;;  %8265 = vmatprep.subr.bf16.mxu0 %v8264_v39  ;;  %v1970_v38 = vld [vmem:[#allocation4 + $0x3950] sm:$0xff]  ;;  %v1977_v39 = vld [vmem:[#allocation4 + $0x3988] sm:$0xff] }
 0x266   :  { %8777 = vmatprep.subr.bf16.mxu1 %v8776_v43  ;;  %v8282_v43 = vpack.c.bf16 %v1968_v34, %v1960_v32  ;;  %v8794_v45 = vpack.c.bf16 %v1970_v38, %v1962_v35  ;;  %v8284_v46 = vpack.c.bf16 %v1985_v40, %v1977_v39  ;;  %v2051_v32 = vld [vmem:[#allocation4 + $0x3bd8] sm:$0xff]  ;;  %v8298_v34 = vpack.c.bf16 %v2032_v23, %v2024_v21  ;;  %v2040_v38 = vld [vmem:[#allocation4 + $0x3b80] sm:$0xff]  ;;  %v2042_v40 = vld [vmem:[#allocation4 + $0x3b90] sm:$0xff] }
 0x267   :  { %v2048_v39 = vld [vmem:[#allocation4 + $0x3bc0] sm:$0xff]  ;;  %v2098_v16 = vld [vmem:[#allocation4 + $0x3d50] sm:$0xff]  ;;  %v2115_v21 = vld [vmem:[#allocation4 + $0x3dd8] sm:$0xff] }
 0x268   :  { %8267 = vmatpush1.bf16.msra.mxu0 %v8266_v50  ;;  %v8796_v50 = vpack.c.bf16 %v1987_v42, %v1979_v41  ;;  %v2050_v42 = vld [vmem:[#allocation4 + $0x3bd0] sm:$0xff] }
 0x269   :  { %8779 = vmatpush1.bf16.msra.mxu1 %v8778_v51  ;;  %8269 = vmatprep.subr.bf16.mxu0 %v8268_v52  ;;  %v1986_v51 = vld [vmem:[#allocation4 + $0x39d0] sm:$0xff]  ;;  %v1993_v52 = vld [vmem:[#allocation4 + $0x3a08] sm:$0xff] }
 0x26a   :  { %8781 = vmatprep.subr.bf16.mxu1 %v8780_v55  ;;  %v8286_v55 = vpack.c.bf16 %v1984_v48, %v1976_v47  ;;  %v8798_v56 = vpack.c.bf16 %v1986_v51, %v1978_v49  ;;  %v8288_v57 = vpack.c.bf16 %v2001_v53, %v1993_v52  ;;  %v2067_v47 = vld [vmem:[#allocation4 + $0x3c58] sm:$0xff]  ;;  %v8302_v48 = vpack.c.bf16 %v2048_v39, %v2040_v38  ;;  %v2056_v51 = vld [vmem:[#allocation4 + $0x3c00] sm:$0xff]  ;;  %v2058_v53 = vld [vmem:[#allocation4 + $0x3c10] sm:$0xff] }
 0x26b   :  { %v8814_v49 = vpack.c.bf16 %v2050_v42, %v2042_v40  ;;  %v2064_v52 = vld [vmem:[#allocation4 + $0x3c40] sm:$0xff]  ;;  %v2131_v38 = vld [vmem:[#allocation4 + $0x3e58] sm:$0xff] }
 0x26c   :  { %8271 = vmatpush1.bf16.msra.mxu0 %v8270_v61  ;;  %v8800_v61 = vpack.c.bf16 %v2003_v54, %v1995_v0  ;;  %v2066_v54 = vld [vmem:[#allocation4 + $0x3c50] sm:$0xff]  ;;  %v2120_v42 = vld [vmem:[#allocation4 + $0x3e00] sm:$0xff] }
 0x26d   :  { %8783 = vmatpush1.bf16.msra.mxu1 %v8782_v62  ;;  %8273 = vmatprep.subr.bf16.mxu0 %v8272_v63  ;;  %v2002_v62 = vld [vmem:[#allocation4 + $0x3a50] sm:$0xff]  ;;  %v2009_v63 = vld [vmem:[#allocation4 + $0x3a88] sm:$0xff] }
 0x26e   :  { %8785 = vmatprep.subr.bf16.mxu1 %v8784_v4  ;;  %v8290_v4 = vpack.c.bf16 %v2000_v59, %v1992_v58  ;;  %v8802_v5 = vpack.c.bf16 %v2002_v62, %v1994_v60  ;;  %v8292_v6 = vpack.c.bf16 %v2017_v1, %v2009_v63  ;;  %v2083_v58 = vld [vmem:[#allocation4 + $0x3cd8] sm:$0xff]  ;;  %v8306_v59 = vpack.c.bf16 %v2064_v52, %v2056_v51  ;;  %v2072_v62 = vld [vmem:[#allocation4 + $0x3c80] sm:$0xff]  ;;  %v2074_v1 = vld [vmem:[#allocation4 + $0x3c90] sm:$0xff] }
 0x26f   :  { %3108 = vmatmul.mubr.f32.vlgmr.msra.gmra.mrb[4].mxu0 %v131_v10  ;;  %v8818_v60 = vpack.c.bf16 %v2066_v54, %v2058_v53  ;;  %v2080_v63 = vld [vmem:[#allocation4 + $0x3cc0] sm:$0xff]  ;;  %v2147_v51 = vld [vmem:[#allocation4 + $0x3ed8] sm:$0xff] }
 0x270   :  { %8275 = vmatpush1.bf16.msra.mxu0 %v8274_v11  ;;  %3676 = vmatmul.mubr.f32.vlgmr.msra.gmra.mrb[4].mxu1 %v131_v10  ;;  %v8804_v10 = vpack.c.bf16 %v2019_v3, %v2011_v2  ;;  %v2018_v11 = vld [vmem:[#allocation4 + $0x3ad0] sm:$0xff]  ;;  %v8310_v8 = vpack.c.bf16 %v2080_v63, %v2072_v62  ;;  %v2136_v54 = vld [vmem:[#allocation4 + $0x3e80] sm:$0xff]  ;;  %v2163_v62 = vld [vmem:[#allocation4 + $0x3f58] sm:$0xff] }
 0x271   :  { %8787 = vmatpush1.bf16.msra.mxu1 %v8786_v13  ;;  %8277 = vmatprep.subr.bf16.mxu0 %v8276_v14  ;;  %v2025_v13 = vld [vmem:[#allocation4 + $0x3b08] sm:$0xff]  ;;  %v2082_v3 = vld [vmem:[#allocation4 + $0x3cd0] sm:$0xff] }
 0x272   :  { %8789 = vmatprep.subr.bf16.mxu1 %v8788_v19  ;;  %3178 = vmatprep.mubr.f32.mxu0 %v134_v26  ;;  %v2033_v14 = vld [vmem:[#allocation4 + $0x3b48] sm:$0xff]  ;;  %v8806_v19 = vpack.c.bf16 %v2018_v11, %v2010_v9  ;;  %v8822_v9 = vpack.c.bf16 %v2082_v3, %v2074_v1  ;;  %v2088_v11 = vld [vmem:[#allocation4 + $0x3d00] sm:$0xff] }
 0x273   :  { %3746 = vmatprep.mubr.f32.mxu1 %v134_v26  ;;  %v8296_v20 = vpack.c.bf16 %v2033_v14, %v2025_v13  ;;  %v2034_v26 = vld [vmem:[#allocation4 + $0x3b50] sm:$0xff]  ;;  %v2096_v13 = vld [vmem:[#allocation4 + $0x3d40] sm:$0xff] }
 0x274   :  { %8279 = vmatpush1.bf16.msra.mxu0 %v8278_v28  ;;  %v2041_v28 = vld [vmem:[#allocation4 + $0x3b88] sm:$0xff]  ;;  %v8810_v35 = vpack.c.bf16 %v2034_v26, %v2026_v24  ;;  %v2090_v14 = vld [vmem:[#allocation4 + $0x3d10] sm:$0xff]  ;;  %v8314_v23 = vpack.c.bf16 %v2096_v13, %v2088_v11  ;;  %v2104_v26 = vld [vmem:[#allocation4 + $0x3d80] sm:$0xff] }
 0x275   :  { %8791 = vmatpush1.bf16.msra.mxu1 %v8790_v30  ;;  %8281 = vmatprep.subr.bf16.mxu0 %v8280_v31  ;;  %v2049_v30 = vld [vmem:[#allocation4 + $0x3bc8] sm:$0xff]  ;;  %v2043_v31 = vld [vmem:[#allocation4 + $0x3b98] sm:$0xff]  ;;  %v8826_v24 = vpack.c.bf16 %v2098_v16, %v2090_v14  ;;  %v2152_v3 = vld [vmem:[#allocation4 + $0x3f00] sm:$0xff] }
 0x276   :  { %8793 = vmatprep.subr.bf16.mxu1 %v8792_v37  ;;  %v8300_v37 = vpack.c.bf16 %v2049_v30, %v2041_v28  ;;  %v8812_v41 = vpack.c.bf16 %v2051_v32, %v2043_v31  ;;  %v2112_v28 = vld [vmem:[#allocation4 + $0x3dc0] sm:$0xff]  ;;  %v2106_v30 = vld [vmem:[#allocation4 + $0x3d90] sm:$0xff]  ;;  %v2179_v11 = vld [vmem:[#allocation4 + $0x3fd8] sm:$0xff] }
 0x277   :  { %v2114_v32 = vld [vmem:[#allocation4 + $0x3dd0] sm:$0xff]  ;;  %v8318_v39 = vpack.c.bf16 %v2112_v28, %v2104_v26  ;;  %v2168_v16 = vld [vmem:[#allocation4 + $0x3f80] sm:$0xff]  ;;  %v151_v26 = vld [vmem:[#allocation4 + $0x78] sm:$0xff] }
 0x278   :  { %8283 = vmatpush1.bf16.msra.mxu0 %v8282_v43  ;;  %v2057_v43 = vld [vmem:[#allocation4 + $0x3c08] sm:$0xff]  ;;  %v8830_v40 = vpack.c.bf16 %v2114_v32, %v2106_v30  ;;  %v140_v32 = vld [vmem:[#allocation4 + $0x20] sm:$0xff] }
 0x279   :  { %8795 = vmatpush1.bf16.msra.mxu1 %v8794_v45  ;;  %8285 = vmatprep.subr.bf16.mxu0 %v8284_v46  ;;  %v2065_v45 = vld [vmem:[#allocation4 + $0x3c48] sm:$0xff]  ;;  %v2059_v46 = vld [vmem:[#allocation4 + $0x3c18] sm:$0xff] }
 0x27a   :  { %8797 = vmatprep.subr.bf16.mxu1 %v8796_v50  ;;  %v8304_v50 = vpack.c.bf16 %v2065_v45, %v2057_v43  ;;  %v8816_v0 = vpack.c.bf16 %v2067_v47, %v2059_v46  ;;  %v2128_v43 = vld [vmem:[#allocation4 + $0x3e40] sm:$0xff]  ;;  %v2122_v45 = vld [vmem:[#allocation4 + $0x3e10] sm:$0xff] }
 0x27b   :  { %v2130_v47 = vld [vmem:[#allocation4 + $0x3e50] sm:$0xff]  ;;  %v8322_v52 = vpack.c.bf16 %v2128_v43, %v2120_v42  ;;  %v167_v42 = vld [vmem:[#allocation4 + $0xf8] sm:$0xff]  ;;  %v133_v43 = vld [vmem:[%s12141_s0 + $0x70] sm:$0xff] }
 0x27c   :  { %8287 = vmatpush1.bf16.msra.mxu0 %v8286_v55  ;;  %v2073_v55 = vld [vmem:[#allocation4 + $0x3c88] sm:$0xff]  ;;  %v8834_v53 = vpack.c.bf16 %v2130_v47, %v2122_v45 }
 0x27d   :  { %8799 = vmatpush1.bf16.msra.mxu1 %v8798_v56  ;;  %8289 = vmatprep.subr.bf16.mxu0 %v8288_v57  ;;  %v2081_v56 = vld [vmem:[#allocation4 + $0x3cc8] sm:$0xff]  ;;  %v2075_v57 = vld [vmem:[#allocation4 + $0x3c98] sm:$0xff] }
 0x27e   :  { %8801 = vmatprep.subr.bf16.mxu1 %v8800_v61  ;;  %v8308_v61 = vpack.c.bf16 %v2081_v56, %v2073_v55  ;;  %v8820_v2 = vpack.c.bf16 %v2083_v58, %v2075_v57  ;;  %v2144_v55 = vld [vmem:[#allocation4 + $0x3ec0] sm:$0xff]  ;;  %v2138_v56 = vld [vmem:[#allocation4 + $0x3e90] sm:$0xff] }
 0x27f   :  { %v2146_v58 = vld [vmem:[#allocation4 + $0x3ed0] sm:$0xff]  ;;  %v8326_v63 = vpack.c.bf16 %v2144_v55, %v2136_v54  ;;  %v175_v54 = vld [vmem:[#allocation4 + $0x138] sm:$0xff] }
 0x280   :  { %8291 = vmatpush1.bf16.msra.mxu0 %v8290_v4  ;;  %v2089_v4 = vld [vmem:[#allocation4 + $0x3d08] sm:$0xff]  ;;  %v8838_v1 = vpack.c.bf16 %v2146_v58, %v2138_v56  ;;  %v183_v55 = vld [vmem:[#allocation4 + $0x178] sm:$0xff] }
 0x281   :  { %8803 = vmatpush1.bf16.msra.mxu1 %v8802_v5  ;;  %8293 = vmatprep.subr.bf16.mxu0 %v8292_v6  ;;  %v2097_v5 = vld [vmem:[#allocation4 + $0x3d48] sm:$0xff]  ;;  %v2091_v6 = vld [vmem:[#allocation4 + $0x3d18] sm:$0xff] }
 0x282   :  { %8805 = vmatprep.subr.bf16.mxu1 %v8804_v10  ;;  %v8312_v10 = vpack.c.bf16 %v2097_v5, %v2089_v4  ;;  %v8824_v15 = vpack.c.bf16 %v2099_v7, %v2091_v6  ;;  %v2160_v4 = vld [vmem:[#allocation4 + $0x3f40] sm:$0xff]  ;;  %v2154_v5 = vld [vmem:[#allocation4 + $0x3f10] sm:$0xff] }
 0x283   :  { %v2162_v7 = vld [vmem:[#allocation4 + $0x3f50] sm:$0xff]  ;;  %v8330_v13 = vpack.c.bf16 %v2160_v4, %v2152_v3  ;;  %v11130_v3 = vld [vmem:[%s12141_s0 + $0x8] sm:$0xff] }
 0x284   :  { %8295 = vmatpush1.bf16.msra.mxu0 %v8294_v18  ;;  %v2105_v18 = vld [vmem:[#allocation4 + $0x3d88] sm:$0xff]  ;;  %v8842_v14 = vpack.c.bf16 %v2162_v7, %v2154_v5  ;;  %v191_v4 = vld [vmem:[#allocation4 + $0x1b8] sm:$0xff] }
 0x285   :  { %8807 = vmatpush1.bf16.msra.mxu1 %v8806_v19  ;;  %8297 = vmatprep.subr.bf16.mxu0 %v8296_v20  ;;  %v2113_v19 = vld [vmem:[#allocation4 + $0x3dc8] sm:$0xff]  ;;  %v2107_v20 = vld [vmem:[#allocation4 + $0x3d98] sm:$0xff] }
 0x286   :  { %8809 = vmatprep.subr.bf16.mxu1 %v8808_v25  ;;  %v8316_v25 = vpack.c.bf16 %v2113_v19, %v2105_v18  ;;  %v8828_v31 = vpack.c.bf16 %v2115_v21, %v2107_v20  ;;  %v2176_v18 = vld [vmem:[#allocation4 + $0x3fc0] sm:$0xff]  ;;  %v2170_v19 = vld [vmem:[#allocation4 + $0x3f90] sm:$0xff]  ;;  %v199_v5 = vld [vmem:[#allocation4 + $0x1f8] sm:$0xff] }
 0x287   :  { %v2178_v21 = vld [vmem:[#allocation4 + $0x3fd0] sm:$0xff]  ;;  %v8334_v28 = vpack.c.bf16 %v2176_v18, %v2168_v16  ;;  %v213_v16 = vld [vmem:[#allocation4 + $0x268] sm:$0xff]  ;;  %v207_v18 = vld [vmem:[#allocation4 + $0x238] sm:$0xff] }
 0x288   :  { %8299 = vmatpush1.bf16.msra.mxu0 %v8298_v34  ;;  %v2121_v34 = vld [vmem:[#allocation4 + $0x3e08] sm:$0xff]  ;;  %v8846_v30 = vpack.c.bf16 %v2178_v21, %v2170_v19  ;;  %v215_v19 = vld [vmem:[#allocation4 + $0x278] sm:$0xff] }
 0x289   :  { %8811 = vmatpush1.bf16.msra.mxu1 %v8810_v35  ;;  %8301 = vmatprep.subr.bf16.mxu0 %v8300_v37  ;;  %v2129_v35 = vld [vmem:[#allocation4 + $0x3e48] sm:$0xff]  ;;  %v2123_v37 = vld [vmem:[#allocation4 + $0x3e18] sm:$0xff] }
 0x28a   :  { %8813 = vmatprep.subr.bf16.mxu1 %v8812_v41  ;;  %v8320_v41 = vpack.c.bf16 %v2129_v35, %v2121_v34  ;;  %v8832_v46 = vpack.c.bf16 %v2131_v38, %v2123_v37  ;;  %v148_v34 = vld [vmem:[#allocation4 + $0x60] sm:$0xff]  ;;  %v142_v35 = vld [vmem:[#allocation4 + $0x30] sm:$0xff] }
 0x28b   :  { %v150_v38 = vld [vmem:[#allocation4 + $0x70] sm:$0xff]  ;;  %v8850_v45 = vpack.c.bf16 %v148_v34, %v140_v32  ;;  %v229_v32 = vld [vmem:[#allocation4 + $0x2e8] sm:$0xff]  ;;  %v223_v34 = vld [vmem:[#allocation4 + $0x2b8] sm:$0xff] }
 0x28c   :  { %8303 = vmatpush1.bf16.msra.mxu0 %v8302_v48  ;;  %v2137_v48 = vld [vmem:[#allocation4 + $0x3e88] sm:$0xff] }
 0x28d   :  { %8815 = vmatpush1.bf16.msra.mxu1 %v8814_v49  ;;  %8305 = vmatprep.subr.bf16.mxu0 %v8304_v50  ;;  %v2145_v49 = vld [vmem:[#allocation4 + $0x3ec8] sm:$0xff]  ;;  %v2139_v50 = vld [vmem:[#allocation4 + $0x3e98] sm:$0xff] }
 0x28e   :  { %8817 = vmatprep.subr.bf16.mxu1 %v8816_v0  ;;  %v8324_v0 = vpack.c.bf16 %v2145_v49, %v2137_v48  ;;  %v8836_v57 = vpack.c.bf16 %v2147_v51, %v2139_v50  ;;  %v156_v48 = vld [vmem:[#allocation4 + $0xa0] sm:$0xff]  ;;  %v158_v50 = vld [vmem:[#allocation4 + $0xb0] sm:$0xff] }
 0x28f   :  { %v164_v49 = vld [vmem:[#allocation4 + $0xe0] sm:$0xff] }
 0x290   :  { %8307 = vmatpush1.bf16.msra.mxu0 %v8306_v59  ;;  %v2153_v59 = vld [vmem:[#allocation4 + $0x3f08] sm:$0xff]  ;;  %v8854_v56 = vpack.c.bf16 %v164_v49, %v156_v48  ;;  %v239_v48 = vld [vmem:[#allocation4 + $0x338] sm:$0xff] }
 0x291   :  { %8819 = vmatpush1.bf16.msra.mxu1 %v8818_v60  ;;  %8309 = vmatprep.subr.bf16.mxu0 %v8308_v61  ;;  %v2161_v60 = vld [vmem:[#allocation4 + $0x3f48] sm:$0xff]  ;;  %v2155_v61 = vld [vmem:[#allocation4 + $0x3f18] sm:$0xff] }
 0x292   :  { %8821 = vmatprep.subr.bf16.mxu1 %v8820_v2  ;;  %v8328_v2 = vpack.c.bf16 %v2161_v60, %v2153_v59  ;;  %v8840_v6 = vpack.c.bf16 %v2163_v62, %v2155_v61  ;;  %v172_v59 = vld [vmem:[#allocation4 + $0x120] sm:$0xff]  ;;  %v174_v61 = vld [vmem:[#allocation4 + $0x130] sm:$0xff]  ;;  %v9368_v62 = vpack.c.bf16 %v183_v55, %v175_v54  ;;  %v247_v49 = vld [vmem:[#allocation4 + $0x378] sm:$0xff] }
 0x293   :  { %v180_v60 = vld [vmem:[#allocation4 + $0x160] sm:$0xff]  ;;  %v238_v54 = vld [vmem:[#allocation4 + $0x330] sm:$0xff]  ;;  %v9384_v55 = vpack.c.bf16 %v247_v49, %v239_v48 }
 0x294   :  { %8311 = vmatpush1.bf16.msra.mxu0 %v8310_v8  ;;  %v2169_v8 = vld [vmem:[#allocation4 + $0x3f88] sm:$0xff]  ;;  %v310_v49 = vld [vmem:[#allocation4 + $0x570] sm:$0xff] }
 0x295   :  { %8823 = vmatpush1.bf16.msra.mxu1 %v8822_v9  ;;  %8313 = vmatprep.subr.bf16.mxu0 %v8312_v10  ;;  %v2177_v9 = vld [vmem:[#allocation4 + $0x3fc8] sm:$0xff]  ;;  %v2171_v10 = vld [vmem:[#allocation4 + $0x3f98] sm:$0xff] }
 0x296   :  { %8825 = vmatprep.subr.bf16.mxu1 %v8824_v15  ;;  %v8332_v15 = vpack.c.bf16 %v2177_v9, %v2169_v8  ;;  %v8844_v20 = vpack.c.bf16 %v2179_v11, %v2171_v10  ;;  %v188_v9 = vld [vmem:[#allocation4 + $0x1a0] sm:$0xff]  ;;  %v190_v11 = vld [vmem:[#allocation4 + $0x1b0] sm:$0xff] }
 0x297   :  { %v196_v10 = vld [vmem:[#allocation4 + $0x1e0] sm:$0xff] }
 0x298   :  { %8315 = vmatpush1.bf16.msra.mxu0 %v8314_v23  ;;  %v141_v23 = vld [vmem:[#allocation4 + $0x28] sm:$0xff] }
 0x299   :  { %8827 = vmatpush1.bf16.msra.mxu1 %v8826_v24  ;;  %8317 = vmatprep.subr.bf16.mxu0 %v8316_v25  ;;  %v149_v24 = vld [vmem:[#allocation4 + $0x68] sm:$0xff]  ;;  %v143_v25 = vld [vmem:[#allocation4 + $0x38] sm:$0xff] }
 0x29a   :  { %8829 = vmatprep.subr.bf16.mxu1 %v8828_v31  ;;  %v8848_v31 = vpack.c.bf16 %v149_v24, %v141_v23  ;;  %v9360_v37 = vpack.c.bf16 %v151_v26, %v143_v25  ;;  %v204_v24 = vld [vmem:[#allocation4 + $0x220] sm:$0xff]  ;;  %v206_v26 = vld [vmem:[#allocation4 + $0x230] sm:$0xff] }
 0x29b   :  { %v212_v25 = vld [vmem:[#allocation4 + $0x260] sm:$0xff] }
 0x29c   :  { %8319 = vmatpush1.bf16.msra.mxu0 %v8318_v39  ;;  %v157_v39 = vld [vmem:[#allocation4 + $0xa8] sm:$0xff] }
 0x29d   :  { %8831 = vmatpush1.bf16.msra.mxu1 %v8830_v40  ;;  %8321 = vmatprep.subr.bf16.mxu0 %v8320_v41  ;;  %v165_v40 = vld [vmem:[#allocation4 + $0xe8] sm:$0xff]  ;;  %v159_v41 = vld [vmem:[#allocation4 + $0xb8] sm:$0xff] }
 0x29e   :  { %8833 = vmatprep.subr.bf16.mxu1 %v8832_v46  ;;  %v9362_v46 = vpack.c.bf16 %v150_v38, %v142_v35  ;;  %v8852_v47 = vpack.c.bf16 %v165_v40, %v157_v39  ;;  %v9364_v51 = vpack.c.bf16 %v167_v42, %v159_v41  ;;  %v231_v35 = vld [vmem:[#allocation4 + $0x2f8] sm:$0xff]  ;;  %v220_v40 = vld [vmem:[#allocation4 + $0x2a0] sm:$0xff]  ;;  %v222_v42 = vld [vmem:[#allocation4 + $0x2b0] sm:$0xff] }
 0x29f   :  { %v228_v41 = vld [vmem:[#allocation4 + $0x2e0] sm:$0xff] }
 0x2a0   :  { %8323 = vmatpush1.bf16.msra.mxu0 %v8322_v52  ;;  %v166_v52 = vld [vmem:[#allocation4 + $0xf0] sm:$0xff] }
 0x2a1   :  { %8835 = vmatpush1.bf16.msra.mxu1 %v8834_v53  ;;  %8325 = vmatprep.subr.bf16.mxu0 %v8324_v0  ;;  %v173_v53 = vld [vmem:[#allocation4 + $0x128] sm:$0xff] }
 0x2a2   :  { %8837 = vmatprep.subr.bf16.mxu1 %v8836_v57  ;;  %v181_v0 = vld [vmem:[#allocation4 + $0x168] sm:$0xff]  ;;  %v9366_v57 = vpack.c.bf16 %v166_v52, %v158_v50  ;;  %v8870_v50 = vpack.c.bf16 %v228_v41, %v220_v40  ;;  %v311_v40 = vld [vmem:[#allocation4 + $0x578] sm:$0xff] }
 0x2a3   :  { %v8856_v58 = vpack.c.bf16 %v181_v0, %v173_v53  ;;  %v236_v53 = vld [vmem:[#allocation4 + $0x320] sm:$0xff] }
 0x2a4   :  { %8327 = vmatpush1.bf16.msra.mxu0 %v8326_v63  ;;  %v182_v63 = vld [vmem:[#allocation4 + $0x170] sm:$0xff]  ;;  %v244_v0 = vld [vmem:[#allocation4 + $0x360] sm:$0xff] }
 0x2a5   :  { %8839 = vmatpush1.bf16.msra.mxu1 %v8838_v1  ;;  %8329 = vmatprep.subr.bf16.mxu0 %v8328_v2  ;;  %v189_v1 = vld [vmem:[#allocation4 + $0x1a8] sm:$0xff]  ;;  %v9370_v7 = vpack.c.bf16 %v182_v63, %v174_v61  ;;  %v8874_v61 = vpack.c.bf16 %v244_v0, %v236_v53  ;;  %v327_v53 = vld [vmem:[#allocation4 + $0x5f8] sm:$0xff] }
 0x2a6   :  { %8841 = vmatprep.subr.bf16.mxu1 %v8840_v6  ;;  %v197_v2 = vld [vmem:[#allocation4 + $0x1e8] sm:$0xff]  ;;  %v8858_v6 = vpack.c.bf16 %v180_v60, %v172_v59  ;;  %v255_v59 = vld [vmem:[#allocation4 + $0x3b8] sm:$0xff] }
 0x2a7   :  { %v8860_v8 = vpack.c.bf16 %v197_v2, %v189_v1  ;;  %v263_v60 = vld [vmem:[#allocation4 + $0x3f8] sm:$0xff]  ;;  %v252_v1 = vld [vmem:[#allocation4 + $0x3a0] sm:$0xff] }
 0x2a8   :  { %8331 = vmatpush1.bf16.msra.mxu0 %v8330_v13  ;;  %v9372_v13 = vpack.c.bf16 %v199_v5, %v191_v4  ;;  %v260_v2 = vld [vmem:[#allocation4 + $0x3e0] sm:$0xff]  ;;  %v9388_v4 = vpack.c.bf16 %v263_v60, %v255_v59  ;;  %v262_v5 = vld [vmem:[#allocation4 + $0x3f0] sm:$0xff] }
 0x2a9   :  { %8843 = vmatpush1.bf16.msra.mxu1 %v8842_v14  ;;  %8333 = vmatprep.subr.bf16.mxu0 %v8332_v15  ;;  %v198_v14 = vld [vmem:[#allocation4 + $0x1f0] sm:$0xff]  ;;  %v205_v15 = vld [vmem:[#allocation4 + $0x228] sm:$0xff] }
 0x2aa   :  { %8845 = vmatprep.subr.bf16.mxu1 %v8844_v20  ;;  %v8862_v20 = vpack.c.bf16 %v196_v10, %v188_v9  ;;  %v9374_v21 = vpack.c.bf16 %v198_v14, %v190_v11  ;;  %v8864_v23 = vpack.c.bf16 %v213_v16, %v205_v15  ;;  %v279_v9 = vld [vmem:[#allocation4 + $0x478] sm:$0xff]  ;;  %v8878_v10 = vpack.c.bf16 %v260_v2, %v252_v1  ;;  %v268_v14 = vld [vmem:[#allocation4 + $0x420] sm:$0xff]  ;;  %v270_v16 = vld [vmem:[#allocation4 + $0x430] sm:$0xff] }
 0x2ab   :  { %v276_v15 = vld [vmem:[#allocation4 + $0x460] sm:$0xff]  ;;  %v326_v60 = vld [vmem:[#allocation4 + $0x5f0] sm:$0xff]  ;;  %v343_v1 = vld [vmem:[#allocation4 + $0x678] sm:$0xff] }
 0x2ac   :  { %8335 = vmatpush1.bf16.msra.mxu0 %v8334_v28  ;;  %v9376_v28 = vpack.c.bf16 %v215_v19, %v207_v18  ;;  %v278_v19 = vld [vmem:[#allocation4 + $0x470] sm:$0xff] }
 0x2ad   :  { %8847 = vmatpush1.bf16.msra.mxu1 %v8846_v30  ;;  %8849 = vmatprep.subr.bf16.mxu0 %v8848_v31  ;;  %v214_v30 = vld [vmem:[#allocation4 + $0x270] sm:$0xff]  ;;  %v221_v31 = vld [vmem:[#allocation4 + $0x2a8] sm:$0xff] }
 0x2ae   :  { %9361 = vmatprep.subr.bf16.mxu1 %v9360_v37  ;;  %v8866_v37 = vpack.c.bf16 %v212_v25, %v204_v24  ;;  %v9378_v38 = vpack.c.bf16 %v214_v30, %v206_v26  ;;  %v8868_v39 = vpack.c.bf16 %v229_v32, %v221_v31  ;;  %v295_v24 = vld [vmem:[#allocation4 + $0x4f8] sm:$0xff]  ;;  %v8882_v25 = vpack.c.bf16 %v276_v15, %v268_v14  ;;  %v284_v30 = vld [vmem:[#allocation4 + $0x4a0] sm:$0xff]  ;;  %v286_v32 = vld [vmem:[#allocation4 + $0x4b0] sm:$0xff] }
 0x2af   :  { %3179 = vmatmul.mubr.f32.vlgmr.msra.gmra.mrb[4].mxu0 %v133_v43  ;;  %v9394_v26 = vpack.c.bf16 %v278_v19, %v270_v16  ;;  %v292_v31 = vld [vmem:[#allocation4 + $0x4e0] sm:$0xff]  ;;  %v359_v14 = vld [vmem:[#allocation4 + $0x6f8] sm:$0xff] }
 0x2b0   :  { %3747 = vmatmul.mubr.f32.vlgmr.msra.gmra.mrb[4].mxu1 %v133_v43  ;;  %8851 = vmatpush1.bf16.msra.mxu0 %v8850_v45  ;;  %v9380_v43 = vpack.c.bf16 %v231_v35, %v223_v34  ;;  %v230_v45 = vld [vmem:[#allocation4 + $0x2f0] sm:$0xff]  ;;  %v8886_v41 = vpack.c.bf16 %v292_v31, %v284_v30  ;;  %v348_v19 = vld [vmem:[#allocation4 + $0x6a0] sm:$0xff]  ;;  %v375_v30 = vld [vmem:[#allocation4 + $0x778] sm:$0xff] }
 0x2b1   :  { %9363 = vmatpush1.bf16.msra.mxu1 %v9362_v46  ;;  %8853 = vmatprep.subr.bf16.mxu0 %v8852_v47  ;;  %v237_v46 = vld [vmem:[#allocation4 + $0x328] sm:$0xff]  ;;  %v294_v35 = vld [vmem:[#allocation4 + $0x4f0] sm:$0xff] }
 0x2b2   :  { %9365 = vmatprep.subr.bf16.mxu1 %v9364_v51  ;;  %3817 = vmatprep.mubr.f32.mxu0 %v11130_v3  ;;  %v245_v47 = vld [vmem:[#allocation4 + $0x368] sm:$0xff]  ;;  %v9382_v51 = vpack.c.bf16 %v230_v45, %v222_v42  ;;  %v9398_v42 = vpack.c.bf16 %v294_v35, %v286_v32  ;;  %v300_v45 = vld [vmem:[#allocation4 + $0x520] sm:$0xff] }
 0x2b3   :  { %4385 = vmatprep.mubr.f32.mxu1 %v11130_v3  ;;  %v8872_v52 = vpack.c.bf16 %v245_v47, %v237_v46  ;;  %v254_v3 = vld [vmem:[#allocation4 + $0x3b0] sm:$0xff]  ;;  %v308_v46 = vld [vmem:[#allocation4 + $0x560] sm:$0xff] }
 0x2b4   :  { %8855 = vmatpush1.bf16.msra.mxu0 %v8854_v56  ;;  %v246_v56 = vld [vmem:[#allocation4 + $0x370] sm:$0xff]  ;;  %v9390_v11 = vpack.c.bf16 %v262_v5, %v254_v3  ;;  %v8890_v0 = vpack.c.bf16 %v308_v46, %v300_v45  ;;  %v332_v5 = vld [vmem:[#allocation4 + $0x620] sm:$0xff]  ;;  %v391_v45 = vld [vmem:[#allocation4 + $0x7f8] sm:$0xff] }
 0x2b5   :  { %9367 = vmatpush1.bf16.msra.mxu1 %v9366_v57  ;;  %8857 = vmatprep.subr.bf16.mxu0 %v8856_v58  ;;  %v253_v57 = vld [vmem:[#allocation4 + $0x3a8] sm:$0xff]  ;;  %v302_v47 = vld [vmem:[#allocation4 + $0x530] sm:$0xff]  ;;  %v364_v35 = vld [vmem:[#allocation4 + $0x720] sm:$0xff] }
 0x2b6   :  { %9369 = vmatprep.subr.bf16.mxu1 %v9368_v62  ;;  %v261_v58 = vld [vmem:[#allocation4 + $0x3e8] sm:$0xff]  ;;  %v9386_v62 = vpack.c.bf16 %v246_v56, %v238_v54  ;;  %v9402_v54 = vpack.c.bf16 %v310_v49, %v302_v47  ;;  %v316_v56 = vld [vmem:[#allocation4 + $0x5a0] sm:$0xff] }
 0x2b7   :  { %v8876_v63 = vpack.c.bf16 %v261_v58, %v253_v57  ;;  %v324_v57 = vld [vmem:[#allocation4 + $0x5e0] sm:$0xff]  ;;  %v318_v58 = vld [vmem:[#allocation4 + $0x5b0] sm:$0xff] }
 0x2b8   :  { %8859 = vmatpush1.bf16.msra.mxu0 %v8858_v6  ;;  %v269_v6 = vld [vmem:[#allocation4 + $0x428] sm:$0xff]  ;;  %v8894_v2 = vpack.c.bf16 %v324_v57, %v316_v56  ;;  %v9406_v3 = vpack.c.bf16 %v326_v60, %v318_v58  ;;  %v380_v49 = vld [vmem:[#allocation4 + $0x7a0] sm:$0xff]  ;;  %v407_v56 = vld [vmem:[#allocation4 + $0x878] sm:$0xff] }
 0x2b9   :  { %9371 = vmatpush1.bf16.msra.mxu1 %v9370_v7  ;;  %8861 = vmatprep.subr.bf16.mxu0 %v8860_v8  ;;  %v277_v7 = vld [vmem:[#allocation4 + $0x468] sm:$0xff]  ;;  %v271_v8 = vld [vmem:[#allocation4 + $0x438] sm:$0xff]  ;;  %v396_v60 = vld [vmem:[#allocation4 + $0x820] sm:$0xff] }
 0x2ba   :  { %9373 = vmatprep.subr.bf16.mxu1 %v9372_v13  ;;  %v8880_v13 = vpack.c.bf16 %v277_v7, %v269_v6  ;;  %v9392_v18 = vpack.c.bf16 %v279_v9, %v271_v8  ;;  %v340_v6 = vld [vmem:[#allocation4 + $0x660] sm:$0xff]  ;;  %v334_v7 = vld [vmem:[#allocation4 + $0x630] sm:$0xff] }
 0x2bb   :  { %v342_v9 = vld [vmem:[#allocation4 + $0x670] sm:$0xff]  ;;  %v8898_v15 = vpack.c.bf16 %v340_v6, %v332_v5  ;;  %v423_v5 = vld [vmem:[#allocation4 + $0x8f8] sm:$0xff] }
 0x2bc   :  { %8863 = vmatpush1.bf16.msra.mxu0 %v8862_v20  ;;  %v285_v20 = vld [vmem:[#allocation4 + $0x4a8] sm:$0xff]  ;;  %v9410_v16 = vpack.c.bf16 %v342_v9, %v334_v7  ;;  %v412_v9 = vld [vmem:[#allocation4 + $0x8a0] sm:$0xff] }
 0x2bd   :  { %9375 = vmatpush1.bf16.msra.mxu1 %v9374_v21  ;;  %8865 = vmatprep.subr.bf16.mxu0 %v8864_v23  ;;  %v293_v21 = vld [vmem:[#allocation4 + $0x4e8] sm:$0xff]  ;;  %v287_v23 = vld [vmem:[#allocation4 + $0x4b8] sm:$0xff] }
 0x2be   :  { %9377 = vmatprep.subr.bf16.mxu1 %v9376_v28  ;;  %v8884_v28 = vpack.c.bf16 %v293_v21, %v285_v20  ;;  %v9396_v34 = vpack.c.bf16 %v295_v24, %v287_v23  ;;  %v356_v20 = vld [vmem:[#allocation4 + $0x6e0] sm:$0xff]  ;;  %v350_v21 = vld [vmem:[#allocation4 + $0x6b0] sm:$0xff] }
 0x2bf   :  { %v358_v24 = vld [vmem:[#allocation4 + $0x6f0] sm:$0xff]  ;;  %v8902_v31 = vpack.c.bf16 %v356_v20, %v348_v19  ;;  %v431_v19 = vld [vmem:[#allocation4 + $0x938] sm:$0xff] }
 0x2c0   :  { %8867 = vmatpush1.bf16.msra.mxu0 %v8866_v37  ;;  %v301_v37 = vld [vmem:[#allocation4 + $0x528] sm:$0xff]  ;;  %v9414_v32 = vpack.c.bf16 %v358_v24, %v350_v21  ;;  %v439_v20 = vld [vmem:[#allocation4 + $0x978] sm:$0xff] }
 0x2c1   :  { %9379 = vmatpush1.bf16.msra.mxu1 %v9378_v38  ;;  %8869 = vmatprep.subr.bf16.mxu0 %v8868_v39  ;;  %v309_v38 = vld [vmem:[#allocation4 + $0x568] sm:$0xff]  ;;  %v303_v39 = vld [vmem:[#allocation4 + $0x538] sm:$0xff] }
 0x2c2   :  { %9381 = vmatprep.subr.bf16.mxu1 %v9380_v43  ;;  %v8888_v43 = vpack.c.bf16 %v309_v38, %v301_v37  ;;  %v9400_v48 = vpack.c.bf16 %v311_v40, %v303_v39  ;;  %v372_v37 = vld [vmem:[#allocation4 + $0x760] sm:$0xff]  ;;  %v366_v38 = vld [vmem:[#allocation4 + $0x730] sm:$0xff] }
 0x2c3   :  { %v374_v40 = vld [vmem:[#allocation4 + $0x770] sm:$0xff]  ;;  %v8906_v46 = vpack.c.bf16 %v372_v37, %v364_v35  ;;  %v447_v37 = vld [vmem:[#allocation4 + $0x9b8] sm:$0xff] }
 0x2c4   :  { %8871 = vmatpush1.bf16.msra.mxu0 %v8870_v50  ;;  %v317_v50 = vld [vmem:[#allocation4 + $0x5a8] sm:$0xff]  ;;  %v9418_v47 = vpack.c.bf16 %v374_v40, %v366_v38  ;;  %v455_v38 = vld [vmem:[#allocation4 + $0x9f8] sm:$0xff] }
 0x2c5   :  { %9383 = vmatpush1.bf16.msra.mxu1 %v9382_v51  ;;  %8873 = vmatprep.subr.bf16.mxu0 %v8872_v52  ;;  %v325_v51 = vld [vmem:[#allocation4 + $0x5e8] sm:$0xff]  ;;  %v319_v52 = vld [vmem:[#allocation4 + $0x5b8] sm:$0xff] }
 0x2c6   :  { %9385 = vmatprep.subr.bf16.mxu1 %v9384_v55  ;;  %v8892_v55 = vpack.c.bf16 %v325_v51, %v317_v50  ;;  %v9404_v59 = vpack.c.bf16 %v327_v53, %v319_v52  ;;  %v388_v50 = vld [vmem:[#allocation4 + $0x7e0] sm:$0xff]  ;;  %v382_v51 = vld [vmem:[#allocation4 + $0x7b0] sm:$0xff] }
 0x2c7   :  { %v390_v53 = vld [vmem:[#allocation4 + $0x7f0] sm:$0xff]  ;;  %v8910_v57 = vpack.c.bf16 %v388_v50, %v380_v49  ;;  %v469_v49 = vld [vmem:[#allocation4 + $0xa68] sm:$0xff]  ;;  %v463_v50 = vld [vmem:[#allocation4 + $0xa38] sm:$0xff] }
 0x2c8   :  { %8875 = vmatpush1.bf16.msra.mxu0 %v8874_v61  ;;  %v333_v61 = vld [vmem:[#allocation4 + $0x628] sm:$0xff]  ;;  %v9422_v58 = vpack.c.bf16 %v390_v53, %v382_v51  ;;  %v471_v51 = vld [vmem:[#allocation4 + $0xa78] sm:$0xff] }
 0x2c9   :  { %9387 = vmatpush1.bf16.msra.mxu1 %v9386_v62  ;;  %8877 = vmatprep.subr.bf16.mxu0 %v8876_v63  ;;  %v341_v62 = vld [vmem:[#allocation4 + $0x668] sm:$0xff]  ;;  %v335_v63 = vld [vmem:[#allocation4 + $0x638] sm:$0xff] }
 0x2ca   :  { %9389 = vmatprep.subr.bf16.mxu1 %v9388_v4  ;;  %v8896_v4 = vpack.c.bf16 %v341_v62, %v333_v61  ;;  %v9408_v8 = vpack.c.bf16 %v343_v1, %v335_v63  ;;  %v404_v61 = vld [vmem:[#allocation4 + $0x860] sm:$0xff]  ;;  %v398_v62 = vld [vmem:[#allocation4 + $0x830] sm:$0xff] }
 0x2cb   :  { %v406_v1 = vld [vmem:[#allocation4 + $0x870] sm:$0xff]  ;;  %v8914_v6 = vpack.c.bf16 %v404_v61, %v396_v60  ;;  %v485_v60 = vld [vmem:[#allocation4 + $0xae8] sm:$0xff]  ;;  %v479_v61 = vld [vmem:[#allocation4 + $0xab8] sm:$0xff] }
 0x2cc   :  { %8879 = vmatpush1.bf16.msra.mxu0 %v8878_v10  ;;  %v349_v10 = vld [vmem:[#allocation4 + $0x6a8] sm:$0xff]  ;;  %v9426_v7 = vpack.c.bf16 %v406_v1, %v398_v62  ;;  %v487_v62 = vld [vmem:[#allocation4 + $0xaf8] sm:$0xff] }
 0x2cd   :  { %9391 = vmatpush1.bf16.msra.mxu1 %v9390_v11  ;;  %8881 = vmatprep.subr.bf16.mxu0 %v8880_v13  ;;  %v357_v11 = vld [vmem:[#allocation4 + $0x6e8] sm:$0xff]  ;;  %v351_v13 = vld [vmem:[#allocation4 + $0x6b8] sm:$0xff] }
 0x2ce   :  { %9393 = vmatprep.subr.bf16.mxu1 %v9392_v18  ;;  %v8900_v18 = vpack.c.bf16 %v357_v11, %v349_v10  ;;  %v9412_v23 = vpack.c.bf16 %v359_v14, %v351_v13  ;;  %v420_v10 = vld [vmem:[#allocation4 + $0x8e0] sm:$0xff]  ;;  %v414_v11 = vld [vmem:[#allocation4 + $0x8b0] sm:$0xff] }
 0x2cf   :  { %v422_v14 = vld [vmem:[#allocation4 + $0x8f0] sm:$0xff]  ;;  %v8918_v21 = vpack.c.bf16 %v420_v10, %v412_v9  ;;  %v501_v9 = vld [vmem:[#allocation4 + $0xb68] sm:$0xff]  ;;  %v495_v10 = vld [vmem:[#allocation4 + $0xb38] sm:$0xff] }
 0x2d0   :  { %8883 = vmatpush1.bf16.msra.mxu0 %v8882_v25  ;;  %v365_v25 = vld [vmem:[#allocation4 + $0x728] sm:$0xff] }
 0x2d1   :  { %9395 = vmatpush1.bf16.msra.mxu1 %v9394_v26  ;;  %8885 = vmatprep.subr.bf16.mxu0 %v8884_v28  ;;  %v373_v26 = vld [vmem:[#allocation4 + $0x768] sm:$0xff]  ;;  %v367_v28 = vld [vmem:[#allocation4 + $0x738] sm:$0xff] }
 0x2d2   :  { %9397 = vmatprep.subr.bf16.mxu1 %v9396_v34  ;;  %v8904_v34 = vpack.c.bf16 %v373_v26, %v365_v25  ;;  %v9416_v39 = vpack.c.bf16 %v375_v30, %v367_v28  ;;  %v428_v25 = vld [vmem:[#allocation4 + $0x920] sm:$0xff]  ;;  %v430_v28 = vld [vmem:[#allocation4 + $0x930] sm:$0xff]  ;;  %v9432_v30 = vpack.c.bf16 %v439_v20, %v431_v19 }
 0x2d3   :  { %v436_v26 = vld [vmem:[#allocation4 + $0x960] sm:$0xff]  ;;  %v11132_v35 = vld [vmem:[%s12141_s0 + $0x18] sm:$0xff] }
 0x2d4   :  { %8887 = vmatpush1.bf16.msra.mxu0 %v8886_v41  ;;  %v381_v41 = vld [vmem:[#allocation4 + $0x7a8] sm:$0xff]  ;;  %v494_v19 = vld [vmem:[#allocation4 + $0xb30] sm:$0xff] }
 0x2d5   :  { %9399 = vmatpush1.bf16.msra.mxu1 %v9398_v42  ;;  %8889 = vmatprep.subr.bf16.mxu0 %v8888_v43  ;;  %v389_v42 = vld [vmem:[#allocation4 + $0x7e8] sm:$0xff]  ;;  %v383_v43 = vld [vmem:[#allocation4 + $0x7b8] sm:$0xff] }
 0x2d6   :  { %9401 = vmatprep.subr.bf16.mxu1 %v9400_v48  ;;  %v8908_v48 = vpack.c.bf16 %v389_v42, %v381_v41  ;;  %v9420_v52 = vpack.c.bf16 %v391_v45, %v383_v43  ;;  %v444_v42 = vld [vmem:[#allocation4 + $0x9a0] sm:$0xff]  ;;  %v446_v45 = vld [vmem:[#allocation4 + $0x9b0] sm:$0xff] }
 0x2d7   :  { %v452_v43 = vld [vmem:[#allocation4 + $0x9e0] sm:$0xff] }
 0x2d8   :  { %8891 = vmatpush1.bf16.msra.mxu0 %v8890_v0  ;;  %v397_v0 = vld [vmem:[#allocation4 + $0x828] sm:$0xff] }
 0x2d9   :  { %9403 = vmatpush1.bf16.msra.mxu1 %v9402_v54  ;;  %8893 = vmatprep.subr.bf16.mxu0 %v8892_v55  ;;  %v405_v54 = vld [vmem:[#allocation4 + $0x868] sm:$0xff]  ;;  %v399_v55 = vld [vmem:[#allocation4 + $0x838] sm:$0xff] }
 0x2da   :  { %9405 = vmatprep.subr.bf16.mxu1 %v9404_v59  ;;  %v8912_v59 = vpack.c.bf16 %v405_v54, %v397_v0  ;;  %v9424_v63 = vpack.c.bf16 %v407_v56, %v399_v55  ;;  %v460_v54 = vld [vmem:[#allocation4 + $0xa20] sm:$0xff]  ;;  %v462_v56 = vld [vmem:[#allocation4 + $0xa30] sm:$0xff] }
 0x2db   :  { %v468_v55 = vld [vmem:[#allocation4 + $0xa60] sm:$0xff] }
 0x2dc   :  { %8895 = vmatpush1.bf16.msra.mxu0 %v8894_v2  ;;  %v413_v2 = vld [vmem:[#allocation4 + $0x8a8] sm:$0xff] }
 0x2dd   :  { %9407 = vmatpush1.bf16.msra.mxu1 %v9406_v3  ;;  %8897 = vmatprep.subr.bf16.mxu0 %v8896_v4  ;;  %v421_v3 = vld [vmem:[#allocation4 + $0x8e8] sm:$0xff]  ;;  %v415_v4 = vld [vmem:[#allocation4 + $0x8b8] sm:$0xff] }
 0x2de   :  { %9409 = vmatprep.subr.bf16.mxu1 %v9408_v8  ;;  %v8916_v8 = vpack.c.bf16 %v421_v3, %v413_v2  ;;  %v9428_v13 = vpack.c.bf16 %v423_v5, %v415_v4  ;;  %v476_v3 = vld [vmem:[#allocation4 + $0xaa0] sm:$0xff]  ;;  %v478_v5 = vld [vmem:[#allocation4 + $0xab0] sm:$0xff] }
 0x2df   :  { %v484_v4 = vld [vmem:[#allocation4 + $0xae0] sm:$0xff] }
 0x2e0   :  { %8899 = vmatpush1.bf16.msra.mxu0 %v8898_v15  ;;  %v429_v15 = vld [vmem:[#allocation4 + $0x928] sm:$0xff] }
 0x2e1   :  { %9411 = vmatpush1.bf16.msra.mxu1 %v9410_v16  ;;  %8901 = vmatprep.subr.bf16.mxu0 %v8900_v18  ;;  %v437_v16 = vld [vmem:[#allocation4 + $0x968] sm:$0xff]  ;;  %v11131_v18 = vld [vmem:[%s12141_s0] sm:$0xff] }
 0x2e2   :  { %9413 = vmatprep.subr.bf16.mxu1 %v9412_v23  ;;  %v9430_v23 = vpack.c.bf16 %v422_v14, %v414_v11  ;;  %v8920_v24 = vpack.c.bf16 %v437_v16, %v429_v15  ;;  %v503_v11 = vld [vmem:[#allocation4 + $0xb78] sm:$0xff]  ;;  %v492_v16 = vld [vmem:[#allocation4 + $0xb20] sm:$0xff] }
 0x2e3   :  { %v9448_v20 = vpack.c.bf16 %v503_v11, %v495_v10  ;;  %v566_v11 = vld [vmem:[#allocation4 + $0xd70] sm:$0xff] }
 0x2e4   :  { %8903 = vmatpush1.bf16.msra.mxu0 %v8902_v31  ;;  %v438_v31 = vld [vmem:[#allocation4 + $0x970] sm:$0xff] }
 0x2e5   :  { %9415 = vmatpush1.bf16.msra.mxu1 %v9414_v32  ;;  %8905 = vmatprep.subr.bf16.mxu0 %v8904_v34  ;;  %v445_v32 = vld [vmem:[#allocation4 + $0x9a8] sm:$0xff]  ;;  %v9434_v40 = vpack.c.bf16 %v438_v31, %v430_v28 }
 0x2e6   :  { %9417 = vmatprep.subr.bf16.mxu1 %v9416_v39  ;;  %v453_v34 = vld [vmem:[#allocation4 + $0x9e8] sm:$0xff]  ;;  %v8922_v39 = vpack.c.bf16 %v436_v26, %v428_v25  ;;  %v511_v25 = vld [vmem:[#allocation4 + $0xbb8] sm:$0xff] }
 0x2e7   :  { %v8924_v41 = vpack.c.bf16 %v453_v34, %v445_v32  ;;  %v519_v26 = vld [vmem:[#allocation4 + $0xbf8] sm:$0xff]  ;;  %v508_v32 = vld [vmem:[#allocation4 + $0xba0] sm:$0xff] }
 0x2e8   :  { %8907 = vmatpush1.bf16.msra.mxu0 %v8906_v46  ;;  %v9436_v46 = vpack.c.bf16 %v455_v38, %v447_v37  ;;  %v516_v34 = vld [vmem:[#allocation4 + $0xbe0] sm:$0xff]  ;;  %v9452_v37 = vpack.c.bf16 %v519_v26, %v511_v25  ;;  %v518_v38 = vld [vmem:[#allocation4 + $0xbf0] sm:$0xff] }
 0x2e9   :  { %9419 = vmatpush1.bf16.msra.mxu1 %v9418_v47  ;;  %8909 = vmatprep.subr.bf16.mxu0 %v8908_v48  ;;  %v454_v47 = vld [vmem:[#allocation4 + $0x9f0] sm:$0xff]  ;;  %v461_v48 = vld [vmem:[#allocation4 + $0xa28] sm:$0xff] }
 0x2ea   :  { %9421 = vmatprep.subr.bf16.mxu1 %v9420_v52  ;;  %v8926_v52 = vpack.c.bf16 %v452_v43, %v444_v42  ;;  %v9438_v53 = vpack.c.bf16 %v454_v47, %v446_v45  ;;  %v8928_v0 = vpack.c.bf16 %v469_v49, %v461_v48  ;;  %v535_v42 = vld [vmem:[#allocation4 + $0xc78] sm:$0xff]  ;;  %v8942_v43 = vpack.c.bf16 %v516_v34, %v508_v32  ;;  %v524_v47 = vld [vmem:[#allocation4 + $0xc20] sm:$0xff]  ;;  %v526_v49 = vld [vmem:[#allocation4 + $0xc30] sm:$0xff] }
 0x2eb   :  { %v532_v48 = vld [vmem:[#allocation4 + $0xc60] sm:$0xff]  ;;  %v582_v26 = vld [vmem:[#allocation4 + $0xdf0] sm:$0xff]  ;;  %v599_v32 = vld [vmem:[#allocation4 + $0xe78] sm:$0xff] }
 0x2ec   :  { %8911 = vmatpush1.bf16.msra.mxu0 %v8910_v57  ;;  %v9440_v57 = vpack.c.bf16 %v471_v51, %v463_v50  ;;  %v534_v51 = vld [vmem:[#allocation4 + $0xc70] sm:$0xff] }
 0x2ed   :  { %9423 = vmatpush1.bf16.msra.mxu1 %v9422_v58  ;;  %8913 = vmatprep.subr.bf16.mxu0 %v8912_v59  ;;  %v470_v58 = vld [vmem:[#allocation4 + $0xa70] sm:$0xff]  ;;  %v477_v59 = vld [vmem:[#allocation4 + $0xaa8] sm:$0xff] }
 0x2ee   :  { %9425 = vmatprep.subr.bf16.mxu1 %v9424_v63  ;;  %v8930_v63 = vpack.c.bf16 %v468_v55, %v460_v54  ;;  %v9442_v1 = vpack.c.bf16 %v470_v58, %v462_v56  ;;  %v8932_v2 = vpack.c.bf16 %v485_v60, %v477_v59  ;;  %v551_v54 = vld [vmem:[#allocation4 + $0xcf8] sm:$0xff]  ;;  %v8946_v55 = vpack.c.bf16 %v532_v48, %v524_v47  ;;  %v540_v58 = vld [vmem:[#allocation4 + $0xca0] sm:$0xff]  ;;  %v542_v60 = vld [vmem:[#allocation4 + $0xcb0] sm:$0xff] }
 0x2ef   :  { %3818 = vmatmul.mubr.f32.vlgmr.msra.gmra.mrb[6].mxu0 %v11131_v18  ;;  %v9458_v56 = vpack.c.bf16 %v534_v51, %v526_v49  ;;  %v548_v59 = vld [vmem:[#allocation4 + $0xce0] sm:$0xff]  ;;  %v615_v47 = vld [vmem:[#allocation4 + $0xef8] sm:$0xff] }
 0x2f0   :  { %8915 = vmatpush1.bf16.msra.mxu0 %v8914_v6  ;;  %4386 = vmatmul.mubr.f32.vlgmr.msra.gmra.mrb[6].mxu1 %v11131_v18  ;;  %v9444_v6 = vpack.c.bf16 %v487_v62, %v479_v61  ;;  %v500_v18 = vld [vmem:[#allocation4 + $0xb60] sm:$0xff]  ;;  %v550_v62 = vld [vmem:[#allocation4 + $0xcf0] sm:$0xff] }
 0x2f1   :  { %9427 = vmatpush1.bf16.msra.mxu1 %v9426_v7  ;;  %8917 = vmatprep.subr.bf16.mxu0 %v8916_v8  ;;  %v486_v7 = vld [vmem:[#allocation4 + $0xaf0] sm:$0xff]  ;;  %v493_v8 = vld [vmem:[#allocation4 + $0xb28] sm:$0xff]  ;;  %v8938_v28 = vpack.c.bf16 %v500_v18, %v492_v16  ;;  %v583_v16 = vld [vmem:[#allocation4 + $0xdf8] sm:$0xff] }
 0x2f2   :  { %9429 = vmatprep.subr.bf16.mxu1 %v9428_v13  ;;  %3888 = vmatprep.mubr.f32.mxu0 %v11132_v35  ;;  %v8934_v13 = vpack.c.bf16 %v484_v4, %v476_v3  ;;  %v9446_v14 = vpack.c.bf16 %v486_v7, %v478_v5  ;;  %v8936_v15 = vpack.c.bf16 %v501_v9, %v493_v8  ;;  %v567_v3 = vld [vmem:[#allocation4 + $0xd78] sm:$0xff]  ;;  %v556_v7 = vld [vmem:[#allocation4 + $0xd20] sm:$0xff]  ;;  %v558_v9 = vld [vmem:[#allocation4 + $0xd30] sm:$0xff] }
 0x2f3   :  { %4456 = vmatprep.mubr.f32.mxu1 %v11132_v35  ;;  %v510_v35 = vld [vmem:[#allocation4 + $0xbb0] sm:$0xff]  ;;  %v8950_v4 = vpack.c.bf16 %v548_v59, %v540_v58  ;;  %v9462_v5 = vpack.c.bf16 %v550_v62, %v542_v60  ;;  %v564_v8 = vld [vmem:[#allocation4 + $0xd60] sm:$0xff]  ;;  %v631_v58 = vld [vmem:[#allocation4 + $0xf78] sm:$0xff] }
 0x2f4   :  { %8919 = vmatpush1.bf16.msra.mxu0 %v8918_v21  ;;  %v502_v21 = vld [vmem:[#allocation4 + $0xb70] sm:$0xff]  ;;  %v9454_v45 = vpack.c.bf16 %v518_v38, %v510_v35  ;;  %v8954_v18 = vpack.c.bf16 %v564_v8, %v556_v7  ;;  %v588_v38 = vld [vmem:[#allocation4 + $0xe20] sm:$0xff]  ;;  %v647_v7 = vld [vmem:[#allocation4 + $0xff8] sm:$0xff] }
 0x2f5   :  { %9431 = vmatpush1.bf16.msra.mxu1 %v9430_v23  ;;  %8921 = vmatprep.subr.bf16.mxu0 %v8920_v24  ;;  %v509_v23 = vld [vmem:[#allocation4 + $0xba8] sm:$0xff]  ;;  %v604_v51 = vld [vmem:[#allocation4 + $0xea0] sm:$0xff] }
 0x2f6   :  { %9433 = vmatprep.subr.bf16.mxu1 %v9432_v30  ;;  %v517_v24 = vld [vmem:[#allocation4 + $0xbe8] sm:$0xff]  ;;  %v9450_v30 = vpack.c.bf16 %v502_v21, %v494_v19  ;;  %v9466_v19 = vpack.c.bf16 %v566_v11, %v558_v9  ;;  %v572_v21 = vld [vmem:[#allocation4 + $0xda0] sm:$0xff] }
 0x2f7   :  { %v8940_v31 = vpack.c.bf16 %v517_v24, %v509_v23  ;;  %v580_v23 = vld [vmem:[#allocation4 + $0xde0] sm:$0xff]  ;;  %v574_v24 = vld [vmem:[#allocation4 + $0xdb0] sm:$0xff] }
 0x2f8   :  { %8923 = vmatpush1.bf16.msra.mxu0 %v8922_v39  ;;  %v525_v39 = vld [vmem:[#allocation4 + $0xc28] sm:$0xff]  ;;  %v8958_v34 = vpack.c.bf16 %v580_v23, %v572_v21  ;;  %v9470_v35 = vpack.c.bf16 %v582_v26, %v574_v24  ;;  %v620_v62 = vld [vmem:[#allocation4 + $0xf20] sm:$0xff]  ;;  %v663_v21 = vld [vmem:[#allocation4 + $0x1078] sm:$0xff] }
 0x2f9   :  { %9435 = vmatpush1.bf16.msra.mxu1 %v9434_v40  ;;  %8925 = vmatprep.subr.bf16.mxu0 %v8924_v41  ;;  %v533_v40 = vld [vmem:[#allocation4 + $0xc68] sm:$0xff]  ;;  %v527_v41 = vld [vmem:[#allocation4 + $0xc38] sm:$0xff]  ;;  %v636_v11 = vld [vmem:[#allocation4 + $0xfa0] sm:$0xff] }
 0x2fa   :  { %9437 = vmatprep.subr.bf16.mxu1 %v9436_v46  ;;  %v8944_v46 = vpack.c.bf16 %v533_v40, %v525_v39  ;;  %v9456_v50 = vpack.c.bf16 %v535_v42, %v527_v41  ;;  %v596_v39 = vld [vmem:[#allocation4 + $0xe60] sm:$0xff]  ;;  %v590_v40 = vld [vmem:[#allocation4 + $0xe30] sm:$0xff] }
 0x2fb   :  { %v598_v42 = vld [vmem:[#allocation4 + $0xe70] sm:$0xff]  ;;  %v8962_v48 = vpack.c.bf16 %v596_v39, %v588_v38  ;;  %v652_v26 = vld [vmem:[#allocation4 + $0x1020] sm:$0xff]  ;;  %v679_v38 = vld [vmem:[#allocation4 + $0x10f8] sm:$0xff] }
 0x2fc   :  { %8927 = vmatpush1.bf16.msra.mxu0 %v8926_v52  ;;  %v541_v52 = vld [vmem:[#allocation4 + $0xca8] sm:$0xff]  ;;  %v9474_v49 = vpack.c.bf16 %v598_v42, %v590_v40  ;;  %v668_v42 = vld [vmem:[#allocation4 + $0x10a0] sm:$0xff] }
 0x2fd   :  { %9439 = vmatpush1.bf16.msra.mxu1 %v9438_v53  ;;  %8929 = vmatprep.subr.bf16.mxu0 %v8928_v0  ;;  %v549_v53 = vld [vmem:[#allocation4 + $0xce8] sm:$0xff]  ;;  %v543_v0 = vld [vmem:[#allocation4 + $0xcb8] sm:$0xff] }
 0x2fe   :  { %9441 = vmatprep.subr.bf16.mxu1 %v9440_v57  ;;  %v8948_v57 = vpack.c.bf16 %v549_v53, %v541_v52  ;;  %v9460_v61 = vpack.c.bf16 %v551_v54, %v543_v0  ;;  %v612_v52 = vld [vmem:[#allocation4 + $0xee0] sm:$0xff]  ;;  %v606_v53 = vld [vmem:[#allocation4 + $0xeb0] sm:$0xff] }
 0x2ff   :  { %v614_v54 = vld [vmem:[#allocation4 + $0xef0] sm:$0xff]  ;;  %v8966_v59 = vpack.c.bf16 %v612_v52, %v604_v51  ;;  %v687_v51 = vld [vmem:[#allocation4 + $0x1138] sm:$0xff] }
 0x300   :  { %8931 = vmatpush1.bf16.msra.mxu0 %v8930_v63  ;;  %v557_v63 = vld [vmem:[#allocation4 + $0xd28] sm:$0xff]  ;;  %v9478_v60 = vpack.c.bf16 %v614_v54, %v606_v53  ;;  %v695_v52 = vld [vmem:[#allocation4 + $0x1178] sm:$0xff] }
 0x301   :  { %9443 = vmatpush1.bf16.msra.mxu1 %v9442_v1  ;;  %8933 = vmatprep.subr.bf16.mxu0 %v8932_v2  ;;  %v565_v1 = vld [vmem:[#allocation4 + $0xd68] sm:$0xff]  ;;  %v559_v2 = vld [vmem:[#allocation4 + $0xd38] sm:$0xff] }
 0x302   :  { %9445 = vmatprep.subr.bf16.mxu1 %v9444_v6  ;;  %v8952_v6 = vpack.c.bf16 %v565_v1, %v557_v63  ;;  %v9464_v10 = vpack.c.bf16 %v567_v3, %v559_v2  ;;  %v628_v63 = vld [vmem:[#allocation4 + $0xf60] sm:$0xff]  ;;  %v622_v1 = vld [vmem:[#allocation4 + $0xf30] sm:$0xff] }
 0x303   :  { %v630_v3 = vld [vmem:[#allocation4 + $0xf70] sm:$0xff]  ;;  %v8970_v8 = vpack.c.bf16 %v628_v63, %v620_v62  ;;  %v11134_v62 = vld [vmem:[%s12141_s0 + $0x28] sm:$0xff] }
 0x304   :  { %8935 = vmatpush1.bf16.msra.mxu0 %v8934_v13  ;;  %v573_v13 = vld [vmem:[#allocation4 + $0xda8] sm:$0xff]  ;;  %v9482_v9 = vpack.c.bf16 %v630_v3, %v622_v1  ;;  %v703_v63 = vld [vmem:[#allocation4 + $0x11b8] sm:$0xff] }
 0x305   :  { %9447 = vmatpush1.bf16.msra.mxu1 %v9446_v14  ;;  %8937 = vmatprep.subr.bf16.mxu0 %v8936_v15  ;;  %v581_v14 = vld [vmem:[#allocation4 + $0xde8] sm:$0xff]  ;;  %v575_v15 = vld [vmem:[#allocation4 + $0xdb8] sm:$0xff] }
 0x306   :  { %9449 = vmatprep.subr.bf16.mxu1 %v9448_v20  ;;  %v8956_v20 = vpack.c.bf16 %v581_v14, %v573_v13  ;;  %v9468_v25 = vpack.c.bf16 %v583_v16, %v575_v15  ;;  %v644_v13 = vld [vmem:[#allocation4 + $0xfe0] sm:$0xff]  ;;  %v638_v14 = vld [vmem:[#allocation4 + $0xfb0] sm:$0xff]  ;;  %v711_v1 = vld [vmem:[#allocation4 + $0x11f8] sm:$0xff] }
 0x307   :  { %v646_v16 = vld [vmem:[#allocation4 + $0xff0] sm:$0xff]  ;;  %v8974_v23 = vpack.c.bf16 %v644_v13, %v636_v11  ;;  %v725_v11 = vld [vmem:[#allocation4 + $0x1268] sm:$0xff]  ;;  %v719_v13 = vld [vmem:[#allocation4 + $0x1238] sm:$0xff] }
 0x308   :  { %8939 = vmatpush1.bf16.msra.mxu0 %v8938_v28  ;;  %v589_v28 = vld [vmem:[#allocation4 + $0xe28] sm:$0xff]  ;;  %v9486_v24 = vpack.c.bf16 %v646_v16, %v638_v14  ;;  %v727_v14 = vld [vmem:[#allocation4 + $0x1278] sm:$0xff] }
 0x309   :  { %9451 = vmatpush1.bf16.msra.mxu1 %v9450_v30  ;;  %8941 = vmatprep.subr.bf16.mxu0 %v8940_v31  ;;  %v597_v30 = vld [vmem:[#allocation4 + $0xe68] sm:$0xff]  ;;  %v591_v31 = vld [vmem:[#allocation4 + $0xe38] sm:$0xff] }
 0x30a   :  { %9453 = vmatprep.subr.bf16.mxu1 %v9452_v37  ;;  %v8960_v37 = vpack.c.bf16 %v597_v30, %v589_v28  ;;  %v9472_v41 = vpack.c.bf16 %v599_v32, %v591_v31  ;;  %v660_v28 = vld [vmem:[#allocation4 + $0x1060] sm:$0xff]  ;;  %v654_v30 = vld [vmem:[#allocation4 + $0x1030] sm:$0xff] }
 0x30b   :  { %v662_v32 = vld [vmem:[#allocation4 + $0x1070] sm:$0xff]  ;;  %v8978_v39 = vpack.c.bf16 %v660_v28, %v652_v26  ;;  %v741_v26 = vld [vmem:[#allocation4 + $0x12e8] sm:$0xff]  ;;  %v735_v28 = vld [vmem:[#allocation4 + $0x12b8] sm:$0xff] }
 0x30c   :  { %8943 = vmatpush1.bf16.msra.mxu0 %v8942_v43  ;;  %v605_v43 = vld [vmem:[#allocation4 + $0xea8] sm:$0xff]  ;;  %v9490_v40 = vpack.c.bf16 %v662_v32, %v654_v30  ;;  %v743_v30 = vld [vmem:[#allocation4 + $0x12f8] sm:$0xff] }
 0x30d   :  { %9455 = vmatpush1.bf16.msra.mxu1 %v9454_v45  ;;  %8945 = vmatprep.subr.bf16.mxu0 %v8944_v46  ;;  %v613_v45 = vld [vmem:[#allocation4 + $0xee8] sm:$0xff]  ;;  %v607_v46 = vld [vmem:[#allocation4 + $0xeb8] sm:$0xff] }
 0x30e   :  { %9457 = vmatprep.subr.bf16.mxu1 %v9456_v50  ;;  %v8964_v50 = vpack.c.bf16 %v613_v45, %v605_v43  ;;  %v9476_v0 = vpack.c.bf16 %v615_v47, %v607_v46  ;;  %v676_v43 = vld [vmem:[#allocation4 + $0x10e0] sm:$0xff]  ;;  %v670_v45 = vld [vmem:[#allocation4 + $0x10b0] sm:$0xff] }
 0x30f   :  { %v678_v47 = vld [vmem:[#allocation4 + $0x10f0] sm:$0xff]  ;;  %v8982_v53 = vpack.c.bf16 %v676_v43, %v668_v42  ;;  %v757_v42 = vld [vmem:[#allocation4 + $0x1368] sm:$0xff]  ;;  %v751_v43 = vld [vmem:[#allocation4 + $0x1338] sm:$0xff] }
 0x310   :  { %8947 = vmatpush1.bf16.msra.mxu0 %v8946_v55  ;;  %v621_v55 = vld [vmem:[#allocation4 + $0xf28] sm:$0xff] }
 0x311   :  { %9459 = vmatpush1.bf16.msra.mxu1 %v9458_v56  ;;  %8949 = vmatprep.subr.bf16.mxu0 %v8948_v57  ;;  %v629_v56 = vld [vmem:[#allocation4 + $0xf68] sm:$0xff]  ;;  %v623_v57 = vld [vmem:[#allocation4 + $0xf38] sm:$0xff] }
 0x312   :  { %9461 = vmatprep.subr.bf16.mxu1 %v9460_v61  ;;  %v8968_v61 = vpack.c.bf16 %v629_v56, %v621_v55  ;;  %v9480_v2 = vpack.c.bf16 %v631_v58, %v623_v57  ;;  %v684_v55 = vld [vmem:[#allocation4 + $0x1120] sm:$0xff]  ;;  %v686_v57 = vld [vmem:[#allocation4 + $0x1130] sm:$0xff]  ;;  %v9496_v58 = vpack.c.bf16 %v695_v52, %v687_v51 }
 0x313   :  { %v692_v56 = vld [vmem:[#allocation4 + $0x1160] sm:$0xff]  ;;  %v750_v51 = vld [vmem:[#allocation4 + $0x1330] sm:$0xff] }
 0x314   :  { %8951 = vmatpush1.bf16.msra.mxu0 %v8950_v4  ;;  %v637_v4 = vld [vmem:[#allocation4 + $0xfa8] sm:$0xff] }
 0x315   :  { %9463 = vmatpush1.bf16.msra.mxu1 %v9462_v5  ;;  %8953 = vmatprep.subr.bf16.mxu0 %v8952_v6  ;;  %v645_v5 = vld [vmem:[#allocation4 + $0xfe8] sm:$0xff]  ;;  %v639_v6 = vld [vmem:[#allocation4 + $0xfb8] sm:$0xff] }
 0x316   :  { %9465 = vmatprep.subr.bf16.mxu1 %v9464_v10  ;;  %v8972_v10 = vpack.c.bf16 %v645_v5, %v637_v4  ;;  %v9484_v15 = vpack.c.bf16 %v647_v7, %v639_v6  ;;  %v700_v5 = vld [vmem:[#allocation4 + $0x11a0] sm:$0xff]  ;;  %v702_v7 = vld [vmem:[#allocation4 + $0x11b0] sm:$0xff] }
 0x317   :  { %v708_v6 = vld [vmem:[#allocation4 + $0x11e0] sm:$0xff] }
 0x318   :  { %8955 = vmatpush1.bf16.msra.mxu0 %v8954_v18  ;;  %v653_v18 = vld [vmem:[#allocation4 + $0x1028] sm:$0xff] }
 0x319   :  { %9467 = vmatpush1.bf16.msra.mxu1 %v9466_v19  ;;  %8957 = vmatprep.subr.bf16.mxu0 %v8956_v20  ;;  %v661_v19 = vld [vmem:[#allocation4 + $0x1068] sm:$0xff]  ;;  %v655_v20 = vld [vmem:[#allocation4 + $0x1038] sm:$0xff] }
 0x31a   :  { %9469 = vmatprep.subr.bf16.mxu1 %v9468_v25  ;;  %v8976_v25 = vpack.c.bf16 %v661_v19, %v653_v18  ;;  %v9488_v31 = vpack.c.bf16 %v663_v21, %v655_v20  ;;  %v716_v19 = vld [vmem:[#allocation4 + $0x1220] sm:$0xff]  ;;  %v718_v21 = vld [vmem:[#allocation4 + $0x1230] sm:$0xff] }
 0x31b   :  { %v724_v20 = vld [vmem:[#allocation4 + $0x1260] sm:$0xff] }
 0x31c   :  { %8959 = vmatpush1.bf16.msra.mxu0 %v8958_v34  ;;  %v669_v34 = vld [vmem:[#allocation4 + $0x10a8] sm:$0xff] }
 0x31d   :  { %9471 = vmatpush1.bf16.msra.mxu1 %v9470_v35  ;;  %8961 = vmatprep.subr.bf16.mxu0 %v8960_v37  ;;  %v677_v35 = vld [vmem:[#allocation4 + $0x10e8] sm:$0xff]  ;;  %v671_v37 = vld [vmem:[#allocation4 + $0x10b8] sm:$0xff] }
 0x31e   :  { %9473 = vmatprep.subr.bf16.mxu1 %v9472_v41  ;;  %v8980_v41 = vpack.c.bf16 %v677_v35, %v669_v34  ;;  %v9492_v46 = vpack.c.bf16 %v679_v38, %v671_v37  ;;  %v732_v35 = vld [vmem:[#allocation4 + $0x12a0] sm:$0xff]  ;;  %v734_v38 = vld [vmem:[#allocation4 + $0x12b0] sm:$0xff] }
 0x31f   :  { %v740_v37 = vld [vmem:[#allocation4 + $0x12e0] sm:$0xff] }
 0x320   :  { %8963 = vmatpush1.bf16.msra.mxu0 %v8962_v48  ;;  %v685_v48 = vld [vmem:[#allocation4 + $0x1128] sm:$0xff] }
 0x321   :  { %9475 = vmatpush1.bf16.msra.mxu1 %v9474_v49  ;;  %8965 = vmatprep.subr.bf16.mxu0 %v8964_v50  ;;  %v693_v49 = vld [vmem:[#allocation4 + $0x1168] sm:$0xff] }
 0x322   :  { %9477 = vmatprep.subr.bf16.mxu1 %v9476_v0  ;;  %v11133_v50 = vld [vmem:[%s12141_s0 + $0x10] sm:$0xff]  ;;  %v9494_v0 = vpack.c.bf16 %v678_v47, %v670_v45  ;;  %v8984_v54 = vpack.c.bf16 %v693_v49, %v685_v48  ;;  %v759_v45 = vld [vmem:[#allocation4 + $0x1378] sm:$0xff] }
 0x323   :  { %v748_v49 = vld [vmem:[#allocation4 + $0x1320] sm:$0xff]  ;;  %v9512_v52 = vpack.c.bf16 %v759_v45, %v751_v43  ;;  %v822_v45 = vld [vmem:[#allocation4 + $0x1570] sm:$0xff] }
 0x324   :  { %8967 = vmatpush1.bf16.msra.mxu0 %v8966_v59  ;;  %v694_v59 = vld [vmem:[#allocation4 + $0x1170] sm:$0xff] }
 0x325   :  { %9479 = vmatpush1.bf16.msra.mxu1 %v9478_v60  ;;  %8969 = vmatprep.subr.bf16.mxu0 %v8968_v61  ;;  %v701_v60 = vld [vmem:[#allocation4 + $0x11a8] sm:$0xff]  ;;  %v9498_v3 = vpack.c.bf16 %v694_v59, %v686_v57 }
 0x326   :  { %9481 = vmatprep.subr.bf16.mxu1 %v9480_v2  ;;  %v709_v61 = vld [vmem:[#allocation4 + $0x11e8] sm:$0xff]  ;;  %v8986_v2 = vpack.c.bf16 %v692_v56, %v684_v55  ;;  %v767_v55 = vld [vmem:[#allocation4 + $0x13b8] sm:$0xff] }
 0x327   :  { %v8988_v4 = vpack.c.bf16 %v709_v61, %v701_v60  ;;  %v775_v56 = vld [vmem:[#allocation4 + $0x13f8] sm:$0xff]  ;;  %v764_v60 = vld [vmem:[#allocation4 + $0x13a0] sm:$0xff] }
 0x328   :  { %8971 = vmatpush1.bf16.msra.mxu0 %v8970_v8  ;;  %v9500_v8 = vpack.c.bf16 %v711_v1, %v703_v63  ;;  %v772_v61 = vld [vmem:[#allocation4 + $0x13e0] sm:$0xff]  ;;  %v9516_v63 = vpack.c.bf16 %v775_v56, %v767_v55  ;;  %v774_v1 = vld [vmem:[#allocation4 + $0x13f0] sm:$0xff] }
 0x329   :  { %9483 = vmatpush1.bf16.msra.mxu1 %v9482_v9  ;;  %8973 = vmatprep.subr.bf16.mxu0 %v8972_v10  ;;  %v710_v9 = vld [vmem:[#allocation4 + $0x11f0] sm:$0xff]  ;;  %v717_v10 = vld [vmem:[#allocation4 + $0x1228] sm:$0xff] }
 0x32a   :  { %9485 = vmatprep.subr.bf16.mxu1 %v9484_v15  ;;  %v8990_v15 = vpack.c.bf16 %v708_v6, %v700_v5  ;;  %v9502_v16 = vpack.c.bf16 %v710_v9, %v702_v7  ;;  %v8992_v18 = vpack.c.bf16 %v725_v11, %v717_v10  ;;  %v791_v5 = vld [vmem:[#allocation4 + $0x1478] sm:$0xff]  ;;  %v9006_v6 = vpack.c.bf16 %v772_v61, %v764_v60  ;;  %v780_v9 = vld [vmem:[#allocation4 + $0x1420] sm:$0xff]  ;;  %v782_v11 = vld [vmem:[#allocation4 + $0x1430] sm:$0xff] }
 0x32b   :  { %v788_v10 = vld [vmem:[#allocation4 + $0x1460] sm:$0xff]  ;;  %v838_v56 = vld [vmem:[#allocation4 + $0x15f0] sm:$0xff]  ;;  %v855_v60 = vld [vmem:[#allocation4 + $0x1678] sm:$0xff] }
 0x32c   :  { %8975 = vmatpush1.bf16.msra.mxu0 %v8974_v23  ;;  %v9504_v23 = vpack.c.bf16 %v727_v14, %v719_v13  ;;  %v790_v14 = vld [vmem:[#allocation4 + $0x1470] sm:$0xff] }
 0x32d   :  { %9487 = vmatpush1.bf16.msra.mxu1 %v9486_v24  ;;  %8977 = vmatprep.subr.bf16.mxu0 %v8976_v25  ;;  %v726_v24 = vld [vmem:[#allocation4 + $0x1270] sm:$0xff]  ;;  %v733_v25 = vld [vmem:[#allocation4 + $0x12a8] sm:$0xff] }
 0x32e   :  { %9489 = vmatprep.subr.bf16.mxu1 %v9488_v31  ;;  %v8994_v31 = vpack.c.bf16 %v724_v20, %v716_v19  ;;  %v9506_v32 = vpack.c.bf16 %v726_v24, %v718_v21  ;;  %v8996_v34 = vpack.c.bf16 %v741_v26, %v733_v25  ;;  %v807_v19 = vld [vmem:[#allocation4 + $0x14f8] sm:$0xff]  ;;  %v9010_v20 = vpack.c.bf16 %v788_v10, %v780_v9  ;;  %v796_v24 = vld [vmem:[#allocation4 + $0x14a0] sm:$0xff]  ;;  %v798_v26 = vld [vmem:[#allocation4 + $0x14b0] sm:$0xff] }
 0x32f   :  { %3889 = vmatmul.mubr.f32.vlgmr.msra.gmra.mrb[6].mxu0 %v11133_v50  ;;  %v9522_v21 = vpack.c.bf16 %v790_v14, %v782_v11  ;;  %v804_v25 = vld [vmem:[#allocation4 + $0x14e0] sm:$0xff]  ;;  %v871_v9 = vld [vmem:[#allocation4 + $0x16f8] sm:$0xff] }
 0x330   :  { %8979 = vmatpush1.bf16.msra.mxu0 %v8978_v39  ;;  %4457 = vmatmul.mubr.f32.vlgmr.msra.gmra.mrb[6].mxu1 %v11133_v50  ;;  %v9508_v39 = vpack.c.bf16 %v743_v30, %v735_v28  ;;  %v756_v50 = vld [vmem:[#allocation4 + $0x1360] sm:$0xff]  ;;  %v806_v30 = vld [vmem:[#allocation4 + $0x14f0] sm:$0xff] }
 0x331   :  { %9491 = vmatpush1.bf16.msra.mxu1 %v9490_v40  ;;  %8981 = vmatprep.subr.bf16.mxu0 %v8980_v41  ;;  %v742_v40 = vld [vmem:[#allocation4 + $0x12f0] sm:$0xff]  ;;  %v749_v41 = vld [vmem:[#allocation4 + $0x1328] sm:$0xff]  ;;  %v9002_v57 = vpack.c.bf16 %v756_v50, %v748_v49  ;;  %v839_v49 = vld [vmem:[#allocation4 + $0x15f8] sm:$0xff] }
 0x332   :  { %9493 = vmatprep.subr.bf16.mxu1 %v9492_v46  ;;  %3959 = vmatprep.mubr.f32.mxu0 %v11134_v62  ;;  %v8998_v46 = vpack.c.bf16 %v740_v37, %v732_v35  ;;  %v9510_v47 = vpack.c.bf16 %v742_v40, %v734_v38  ;;  %v9000_v48 = vpack.c.bf16 %v757_v42, %v749_v41  ;;  %v823_v35 = vld [vmem:[#allocation4 + $0x1578] sm:$0xff]  ;;  %v812_v40 = vld [vmem:[#allocation4 + $0x1520] sm:$0xff]  ;;  %v814_v42 = vld [vmem:[#allocation4 + $0x1530] sm:$0xff] }
 0x333   :  { %4527 = vmatprep.mubr.f32.mxu1 %v11134_v62  ;;  %v766_v62 = vld [vmem:[#allocation4 + $0x13b0] sm:$0xff]  ;;  %v9014_v37 = vpack.c.bf16 %v804_v25, %v796_v24  ;;  %v9526_v38 = vpack.c.bf16 %v806_v30, %v798_v26  ;;  %v820_v41 = vld [vmem:[#allocation4 + $0x1560] sm:$0xff]  ;;  %v887_v24 = vld [vmem:[#allocation4 + $0x1778] sm:$0xff] }
 0x334   :  { %8983 = vmatpush1.bf16.msra.mxu0 %v8982_v53  ;;  %v758_v53 = vld [vmem:[#allocation4 + $0x1370] sm:$0xff]  ;;  %v9518_v7 = vpack.c.bf16 %v774_v1, %v766_v62  ;;  %v9018_v50 = vpack.c.bf16 %v820_v41, %v812_v40  ;;  %v844_v1 = vld [vmem:[#allocation4 + $0x1620] sm:$0xff]  ;;  %v903_v40 = vld [vmem:[#allocation4 + $0x17f8] sm:$0xff] }
 0x335   :  { %9495 = vmatpush1.bf16.msra.mxu1 %v9494_v0  ;;  %8985 = vmatprep.subr.bf16.mxu0 %v8984_v54  ;;  %v765_v0 = vld [vmem:[#allocation4 + $0x13a8] sm:$0xff]  ;;  %v860_v14 = vld [vmem:[#allocation4 + $0x16a0] sm:$0xff] }
 0x336   :  { %9497 = vmatprep.subr.bf16.mxu1 %v9496_v58  ;;  %v773_v54 = vld [vmem:[#allocation4 + $0x13e8] sm:$0xff]  ;;  %v9514_v58 = vpack.c.bf16 %v758_v53, %v750_v51  ;;  %v9530_v51 = vpack.c.bf16 %v822_v45, %v814_v42  ;;  %v828_v53 = vld [vmem:[#allocation4 + $0x15a0] sm:$0xff] }
 0x337   :  { %v9004_v59 = vpack.c.bf16 %v773_v54, %v765_v0  ;;  %v836_v0 = vld [vmem:[#allocation4 + $0x15e0] sm:$0xff]  ;;  %v830_v54 = vld [vmem:[#allocation4 + $0x15b0] sm:$0xff] }
 0x338   :  { %8987 = vmatpush1.bf16.msra.mxu0 %v8986_v2  ;;  %v781_v2 = vld [vmem:[#allocation4 + $0x1428] sm:$0xff]  ;;  %v9022_v61 = vpack.c.bf16 %v836_v0, %v828_v53  ;;  %v9534_v62 = vpack.c.bf16 %v838_v56, %v830_v54  ;;  %v876_v30 = vld [vmem:[#allocation4 + $0x1720] sm:$0xff]  ;;  %v919_v53 = vld [vmem:[#allocation4 + $0x1878] sm:$0xff] }
 0x339   :  { %9499 = vmatpush1.bf16.msra.mxu1 %v9498_v3  ;;  %8989 = vmatprep.subr.bf16.mxu0 %v8988_v4  ;;  %v789_v3 = vld [vmem:[#allocation4 + $0x1468] sm:$0xff]  ;;  %v783_v4 = vld [vmem:[#allocation4 + $0x1438] sm:$0xff]  ;;  %v892_v45 = vld [vmem:[#allocation4 + $0x17a0] sm:$0xff] }
 0x33a   :  { %9501 = vmatprep.subr.bf16.mxu1 %v9500_v8  ;;  %v9008_v8 = vpack.c.bf16 %v789_v3, %v781_v2  ;;  %v9520_v13 = vpack.c.bf16 %v791_v5, %v783_v4  ;;  %v852_v2 = vld [vmem:[#allocation4 + $0x1660] sm:$0xff]  ;;  %v846_v3 = vld [vmem:[#allocation4 + $0x1630] sm:$0xff] }
 0x33b   :  { %v854_v5 = vld [vmem:[#allocation4 + $0x1670] sm:$0xff]  ;;  %v9026_v10 = vpack.c.bf16 %v852_v2, %v844_v1  ;;  %v908_v56 = vld [vmem:[#allocation4 + $0x1820] sm:$0xff]  ;;  %v935_v1 = vld [vmem:[#allocation4 + $0x18f8] sm:$0xff] }
 0x33c   :  { %8991 = vmatpush1.bf16.msra.mxu0 %v8990_v15  ;;  %v797_v15 = vld [vmem:[#allocation4 + $0x14a8] sm:$0xff]  ;;  %v9538_v11 = vpack.c.bf16 %v854_v5, %v846_v3  ;;  %v924_v5 = vld [vmem:[#allocation4 + $0x18a0] sm:$0xff] }
 0x33d   :  { %9503 = vmatpush1.bf16.msra.mxu1 %v9502_v16  ;;  %8993 = vmatprep.subr.bf16.mxu0 %v8992_v18  ;;  %v805_v16 = vld [vmem:[#allocation4 + $0x14e8] sm:$0xff]  ;;  %v799_v18 = vld [vmem:[#allocation4 + $0x14b8] sm:$0xff] }
 0x33e   :  { %9505 = vmatprep.subr.bf16.mxu1 %v9504_v23  ;;  %v9012_v23 = vpack.c.bf16 %v805_v16, %v797_v15  ;;  %v9524_v28 = vpack.c.bf16 %v807_v19, %v799_v18  ;;  %v868_v15 = vld [vmem:[#allocation4 + $0x16e0] sm:$0xff]  ;;  %v862_v16 = vld [vmem:[#allocation4 + $0x16b0] sm:$0xff] }
 0x33f   :  { %v870_v19 = vld [vmem:[#allocation4 + $0x16f0] sm:$0xff]  ;;  %v9030_v25 = vpack.c.bf16 %v868_v15, %v860_v14  ;;  %v943_v14 = vld [vmem:[#allocation4 + $0x1938] sm:$0xff] }
 0x340   :  { %8995 = vmatpush1.bf16.msra.mxu0 %v8994_v31  ;;  %v813_v31 = vld [vmem:[#allocation4 + $0x1528] sm:$0xff]  ;;  %v9542_v26 = vpack.c.bf16 %v870_v19, %v862_v16  ;;  %v951_v15 = vld [vmem:[#allocation4 + $0x1978] sm:$0xff] }
 0x341   :  { %9507 = vmatpush1.bf16.msra.mxu1 %v9506_v32  ;;  %8997 = vmatprep.subr.bf16.mxu0 %v8996_v34  ;;  %v821_v32 = vld [vmem:[#allocation4 + $0x1568] sm:$0xff]  ;;  %v815_v34 = vld [vmem:[#allocation4 + $0x1538] sm:$0xff] }
 0x342   :  { %9509 = vmatprep.subr.bf16.mxu1 %v9508_v39  ;;  %v9016_v39 = vpack.c.bf16 %v821_v32, %v813_v31  ;;  %v9528_v43 = vpack.c.bf16 %v823_v35, %v815_v34  ;;  %v884_v31 = vld [vmem:[#allocation4 + $0x1760] sm:$0xff]  ;;  %v878_v32 = vld [vmem:[#allocation4 + $0x1730] sm:$0xff] }
 0x343   :  { %v886_v35 = vld [vmem:[#allocation4 + $0x1770] sm:$0xff]  ;;  %v9034_v41 = vpack.c.bf16 %v884_v31, %v876_v30  ;;  %v959_v31 = vld [vmem:[#allocation4 + $0x19b8] sm:$0xff] }
 0x344   :  { %8999 = vmatpush1.bf16.msra.mxu0 %v8998_v46  ;;  %v829_v46 = vld [vmem:[#allocation4 + $0x15a8] sm:$0xff]  ;;  %v9546_v42 = vpack.c.bf16 %v886_v35, %v878_v32  ;;  %v967_v32 = vld [vmem:[#allocation4 + $0x19f8] sm:$0xff]  ;;  %v2585_v35 = vlaneseq }
 0x345   :  { %9511 = vmatpush1.bf16.msra.mxu1 %v9510_v47  ;;  %9001 = vmatprep.subr.bf16.mxu0 %v9000_v48  ;;  %v837_v47 = vld [vmem:[#allocation4 + $0x15e8] sm:$0xff]  ;;  %v831_v48 = vld [vmem:[#allocation4 + $0x15b8] sm:$0xff] }
 0x346   :  { %9513 = vmatprep.subr.bf16.mxu1 %v9512_v52  ;;  %v9020_v52 = vpack.c.bf16 %v837_v47, %v829_v46  ;;  %v9532_v55 = vpack.c.bf16 %v839_v49, %v831_v48  ;;  %v900_v46 = vld [vmem:[#allocation4 + $0x17e0] sm:$0xff]  ;;  %v894_v47 = vld [vmem:[#allocation4 + $0x17b0] sm:$0xff] }
 0x347   :  { %v902_v49 = vld [vmem:[#allocation4 + $0x17f0] sm:$0xff]  ;;  %v9038_v0 = vpack.c.bf16 %v900_v46, %v892_v45  ;;  %v973_v45 = vld [vmem:[#allocation4 + $0x1a28] sm:$0xff] }
 0x348   :  { %9003 = vmatpush1.bf16.msra.mxu0 %v9002_v57  ;;  %v845_v57 = vld [vmem:[#allocation4 + $0x1628] sm:$0xff]  ;;  %v9550_v54 = vpack.c.bf16 %v902_v49, %v894_v47  ;;  %v975_v47 = vld [vmem:[#allocation4 + $0x1a38] sm:$0xff] }
 0x349   :  { %9515 = vmatpush1.bf16.msra.mxu1 %v9514_v58  ;;  %9005 = vmatprep.subr.bf16.mxu0 %v9004_v59  ;;  %v853_v58 = vld [vmem:[#allocation4 + $0x1668] sm:$0xff]  ;;  %v847_v59 = vld [vmem:[#allocation4 + $0x1638] sm:$0xff] }
 0x34a   :  { %9517 = vmatprep.subr.bf16.mxu1 %v9516_v63  ;;  %v9024_v63 = vpack.c.bf16 %v853_v58, %v845_v57  ;;  %v9536_v4 = vpack.c.bf16 %v855_v60, %v847_v59  ;;  %v916_v57 = vld [vmem:[#allocation4 + $0x1860] sm:$0xff]  ;;  %v910_v58 = vld [vmem:[#allocation4 + $0x1830] sm:$0xff]  ;;  %v981_v46 = vld [vmem:[#allocation4 + $0x1a68] sm:$0xff] }
 0x34b   :  { %v918_v60 = vld [vmem:[#allocation4 + $0x1870] sm:$0xff]  ;;  %v9042_v2 = vpack.c.bf16 %v916_v57, %v908_v56  ;;  %v989_v57 = vld [vmem:[#allocation4 + $0x1aa8] sm:$0xff] }
 0x34c   :  { %9007 = vmatpush1.bf16.msra.mxu0 %v9006_v6  ;;  %v861_v6 = vld [vmem:[#allocation4 + $0x16a8] sm:$0xff]  ;;  %v9554_v3 = vpack.c.bf16 %v918_v60, %v910_v58  ;;  %v982_v56 = vld [vmem:[#allocation4 + $0x1a70] sm:$0xff]  ;;  %v999_v60 = vld [vmem:[#allocation4 + $0x1af8] sm:$0xff] }
 0x34d   :  { %9519 = vmatpush1.bf16.msra.mxu1 %v9518_v7  ;;  %9009 = vmatprep.subr.bf16.mxu0 %v9008_v8  ;;  %v869_v7 = vld [vmem:[#allocation4 + $0x16e8] sm:$0xff]  ;;  %v863_v8 = vld [vmem:[#allocation4 + $0x16b8] sm:$0xff] }
 0x34e   :  { %9521 = vmatprep.subr.bf16.mxu1 %v9520_v13  ;;  %v9028_v13 = vpack.c.bf16 %v869_v7, %v861_v6  ;;  %v9540_v18 = vpack.c.bf16 %v871_v9, %v863_v8  ;;  %v932_v6 = vld [vmem:[#allocation4 + $0x18e0] sm:$0xff]  ;;  %v926_v7 = vld [vmem:[#allocation4 + $0x18b0] sm:$0xff]  ;;  %v997_v58 = vld [vmem:[#allocation4 + $0x1ae8] sm:$0xff] }
 0x34f   :  { %v934_v9 = vld [vmem:[#allocation4 + $0x18f0] sm:$0xff]  ;;  %v9046_v16 = vpack.c.bf16 %v932_v6, %v924_v5 }
 0x350   :  { %9011 = vmatpush1.bf16.msra.mxu0 %v9010_v20  ;;  %v877_v20 = vld [vmem:[#allocation4 + $0x1728] sm:$0xff]  ;;  %v998_v6 = vld [vmem:[#allocation4 + $0x1af0] sm:$0xff] }
 0x351   :  { %9523 = vmatpush1.bf16.msra.mxu1 %v9522_v21  ;;  %9013 = vmatprep.subr.bf16.mxu0 %v9012_v23  ;;  %v885_v21 = vld [vmem:[#allocation4 + $0x1768] sm:$0xff]  ;;  %v879_v23 = vld [vmem:[#allocation4 + $0x1738] sm:$0xff] }
 0x352   :  { %9525 = vmatprep.subr.bf16.mxu1 %v9524_v28  ;;  %v9032_v28 = vpack.c.bf16 %v885_v21, %v877_v20  ;;  %v9544_v34 = vpack.c.bf16 %v887_v24, %v879_v23  ;;  %v940_v20 = vld [vmem:[#allocation4 + $0x1920] sm:$0xff]  ;;  %v942_v23 = vld [vmem:[#allocation4 + $0x1930] sm:$0xff]  ;;  %v9560_v24 = vpack.c.bf16 %v951_v15, %v943_v14 }
 0x353   :  { %v948_v21 = vld [vmem:[#allocation4 + $0x1960] sm:$0xff]  ;;  %v11136_v30 = vld [vmem:[%s12141_s0 + $0x38] sm:$0xff] }
 0x354   :  { %9015 = vmatpush1.bf16.msra.mxu0 %v9014_v37  ;;  %v893_v37 = vld [vmem:[#allocation4 + $0x17a8] sm:$0xff] }
 0x355   :  { %9527 = vmatpush1.bf16.msra.mxu1 %v9526_v38  ;;  %9017 = vmatprep.subr.bf16.mxu0 %v9016_v39  ;;  %v901_v38 = vld [vmem:[#allocation4 + $0x17e8] sm:$0xff]  ;;  %v895_v39 = vld [vmem:[#allocation4 + $0x17b8] sm:$0xff] }
 0x356   :  { %9529 = vmatprep.subr.bf16.mxu1 %v9528_v43  ;;  %v9036_v43 = vpack.c.bf16 %v901_v38, %v893_v37  ;;  %v9548_v48 = vpack.c.bf16 %v903_v40, %v895_v39  ;;  %v956_v39 = vld [vmem:[#allocation4 + $0x19a0] sm:$0xff] }
 0x357   :  { %v964_v40 = vld [vmem:[#allocation4 + $0x19e0] sm:$0xff] }
 0x358   :  { %9019 = vmatpush1.bf16.msra.mxu0 %v9018_v50  ;;  %v909_v50 = vld [vmem:[#allocation4 + $0x1828] sm:$0xff]  ;;  %v9054_v49 = vpack.c.bf16 %v964_v40, %v956_v39 }
 0x359   :  { %9531 = vmatpush1.bf16.msra.mxu1 %v9530_v51  ;;  %9021 = vmatprep.subr.bf16.mxu0 %v9020_v52  ;;  %v917_v51 = vld [vmem:[#allocation4 + $0x1868] sm:$0xff]  ;;  %v911_v52 = vld [vmem:[#allocation4 + $0x1838] sm:$0xff] }
 0x35a   :  { %9533 = vmatprep.subr.bf16.mxu1 %v9532_v55  ;;  %v9040_v55 = vpack.c.bf16 %v917_v51, %v909_v50  ;;  %v9552_v59 = vpack.c.bf16 %v919_v53, %v911_v52  ;;  %v11572_v50 = vshrl.u32 %v2585_v35, 7  ;;  %v9056_v52 = vpack.c.bf16 %v981_v46, %v973_v45  ;;  %v972_v53 = vld [vmem:[#allocation4 + $0x1a20] sm:$0xff]  ;;  %v1031_v35 = vld [vmem:[#allocation4 + $0x1bf8] sm:$0xff]  ;;  %v1030_v46 = vld [vmem:[#allocation4 + $0x1bf0] sm:$0xff] }
 0x35c   :  { %9023 = vmatpush1.bf16.msra.mxu0 %v9022_v61  ;;  %v925_v61 = vld [vmem:[#allocation4 + $0x18a8] sm:$0xff] }
 0x35d   :  { %9535 = vmatpush1.bf16.msra.mxu1 %v9534_v62  ;;  %9025 = vmatprep.subr.bf16.mxu0 %v9024_v63  ;;  %v933_v62 = vld [vmem:[#allocation4 + $0x18e8] sm:$0xff]  ;;  %v927_v63 = vld [vmem:[#allocation4 + $0x18b8] sm:$0xff] }
 0x35e   :  { %9537 = vmatprep.subr.bf16.mxu1 %v9536_v4  ;;  %v9044_v4 = vpack.c.bf16 %v933_v62, %v925_v61  ;;  %v9556_v8 = vpack.c.bf16 %v935_v1, %v927_v63  ;;  %v11575_v62 = vsub.s32 0, %v11572_v50  ;;  %v9060_v1 = vpack.c.bf16 %v997_v58, %v989_v57  ;;  %v1046_v58 = vld [vmem:[#allocation4 + $0x1c70] sm:$0xff] }
 0x360   :  { %9027 = vmatpush1.bf16.msra.mxu0 %v9026_v10  ;;  %v941_v10 = vld [vmem:[#allocation4 + $0x1928] sm:$0xff] }
 0x361   :  { %9539 = vmatpush1.bf16.msra.mxu1 %v9538_v11  ;;  %9029 = vmatprep.subr.bf16.mxu0 %v9028_v13  ;;  %v949_v11 = vld [vmem:[#allocation4 + $0x1968] sm:$0xff]  ;;  %v11135_v13 = vld [vmem:[%s12141_s0 + $0x20] sm:$0xff] }
 0x362   :  { %9541 = vmatprep.subr.bf16.mxu1 %v9540_v18  ;;  %v9558_v18 = vpack.c.bf16 %v934_v9, %v926_v7  ;;  %v9048_v19 = vpack.c.bf16 %v949_v11, %v941_v10  ;;  %v1005_v7 = vld [vmem:[#allocation4 + $0x1b28] sm:$0xff]  ;;  %v1007_v9 = vld [vmem:[#allocation4 + $0x1b38] sm:$0xff] }
 0x363   :  { %v1015_v10 = vld [vmem:[#allocation4 + $0x1b78] sm:$0xff] }
 0x364   :  { %9031 = vmatpush1.bf16.msra.mxu0 %v9030_v25  ;;  %v950_v25 = vld [vmem:[#allocation4 + $0x1970] sm:$0xff] }
 0x365   :  { %9543 = vmatpush1.bf16.msra.mxu1 %v9542_v26  ;;  %9033 = vmatprep.subr.bf16.mxu0 %v9032_v28  ;;  %v957_v26 = vld [vmem:[#allocation4 + $0x19a8] sm:$0xff]  ;;  %v9562_v37 = vpack.c.bf16 %v950_v25, %v942_v23  ;;  %v1014_v25 = vld [vmem:[#allocation4 + $0x1b70] sm:$0xff] }
 0x366   :  { %9545 = vmatprep.subr.bf16.mxu1 %v9544_v34  ;;  %v965_v28 = vld [vmem:[#allocation4 + $0x19e8] sm:$0xff]  ;;  %v9050_v34 = vpack.c.bf16 %v948_v21, %v940_v20  ;;  %v2592_v20 = vrot.slane %v11504_v22, %v11575_v62  ;;  %v2596_v21 = vrot.slane %v11509_v27, %v11575_v62 }
 0x367   :  { %v9052_v38 = vpack.c.bf16 %v965_v28, %v957_v26  ;;  %v1021_v26 = vld [vmem:[#allocation4 + $0x1ba8] sm:$0xff] }
 0x368   :  { %9035 = vmatpush1.bf16.msra.mxu0 %v9034_v41  ;;  %v958_v41 = vld [vmem:[#allocation4 + $0x19b0] sm:$0xff]  ;;  %v1029_v28 = vld [vmem:[#allocation4 + $0x1be8] sm:$0xff] }
 0x369   :  { %9547 = vmatpush1.bf16.msra.mxu1 %v9546_v42  ;;  %9037 = vmatprep.subr.bf16.mxu0 %v9036_v43  ;;  %v9564_v42 = vpack.c.bf16 %v967_v32, %v959_v31  ;;  %v966_v43 = vld [vmem:[#allocation4 + $0x19f0] sm:$0xff] }
 0x36a   :  { %9549 = vmatprep.subr.bf16.mxu1 %v9548_v48  ;;  %v983_v48 = vld [vmem:[#allocation4 + $0x1a78] sm:$0xff]  ;;  %v9566_v51 = vpack.c.bf16 %v966_v43, %v958_v41  ;;  %v9068_v41 = vpack.c.bf16 %v1029_v28, %v1021_v26  ;;  %v1022_v43 = vld [vmem:[#allocation4 + $0x1bb0] sm:$0xff] }
 0x36b   :  { %v1087_v26 = vld [vmem:[#allocation4 + $0x1db8] sm:$0xff] }
 0x36c   :  { %9039 = vmatpush1.bf16.msra.mxu0 %v9038_v0  ;;  %v980_v0 = vld [vmem:[#allocation4 + $0x1a60] sm:$0xff]  ;;  %v1095_v28 = vld [vmem:[#allocation4 + $0x1df8] sm:$0xff] }
 0x36d   :  { %9551 = vmatpush1.bf16.msra.mxu1 %v9550_v54  ;;  %9041 = vmatprep.subr.bf16.mxu0 %v9040_v55  ;;  %v974_v54 = vld [vmem:[#allocation4 + $0x1a30] sm:$0xff]  ;;  %v9568_v55 = vpack.c.bf16 %v983_v48, %v975_v47  ;;  %v9058_v61 = vpack.c.bf16 %v980_v0, %v972_v53  ;;  %v1037_v47 = vld [vmem:[#allocation4 + $0x1c28] sm:$0xff]  ;;  %v9582_v53 = vpack.c.bf16 %v1030_v46, %v1022_v43  ;;  %v1111_v43 = vld [vmem:[#allocation4 + $0x1e78] sm:$0xff] }
 0x36e   :  { %9553 = vmatprep.subr.bf16.mxu1 %v9552_v59  ;;  %v991_v59 = vld [vmem:[#allocation4 + $0x1ab8] sm:$0xff]  ;;  %v9570_v63 = vpack.c.bf16 %v982_v56, %v974_v54  ;;  %v1045_v48 = vld [vmem:[#allocation4 + $0x1c68] sm:$0xff]  ;;  %v1036_v54 = vld [vmem:[#allocation4 + $0x1c20] sm:$0xff] }
 0x36f   :  { %3960 = vmatmul.mubr.f32.vlgmr.msra.gmra.mrb[6].mxu0 %v11135_v13  ;;  %v9572_v5 = vpack.c.bf16 %v999_v60, %v991_v59  ;;  %v9072_v0 = vpack.c.bf16 %v1045_v48, %v1037_v47  ;;  %v1038_v56 = vld [vmem:[#allocation4 + $0x1c30] sm:$0xff]  ;;  %v1053_v59 = vld [vmem:[#allocation4 + $0x1ca8] sm:$0xff]  ;;  %v1100_v48 = vld [vmem:[#allocation4 + $0x1e20] sm:$0xff] }
 0x370   :  { %9043 = vmatpush1.bf16.msra.mxu0 %v9042_v2  ;;  %4528 = vmatmul.mubr.f32.vlgmr.msra.gmra.mrb[6].mxu1 %v11135_v13  ;;  %v988_v2 = vld [vmem:[#allocation4 + $0x1aa0] sm:$0xff]  ;;  %v2588_v13 = vrot.slane %v11502_v17, %v11575_v62  ;;  %v2600_v17 = vrot.slane %v11511_v33, %v11575_v62  ;;  %v1061_v60 = vld [vmem:[#allocation4 + $0x1ce8] sm:$0xff] }
 0x371   :  { %9555 = vmatpush1.bf16.msra.mxu1 %v9554_v3  ;;  %9045 = vmatprep.subr.bf16.mxu0 %v9044_v4  ;;  %v996_v3 = vld [vmem:[#allocation4 + $0x1ae0] sm:$0xff]  ;;  %v990_v4 = vld [vmem:[#allocation4 + $0x1ab0] sm:$0xff] }
 0x372   :  { %9557 = vmatprep.subr.bf16.mxu1 %v9556_v8  ;;  %4030 = vmatprep.mubr.f32.mxu0 %v11136_v30  ;;  %v1013_v8 = vld [vmem:[#allocation4 + $0x1b68] sm:$0xff]  ;;  %v9062_v11 = vpack.c.bf16 %v996_v3, %v988_v2  ;;  %v9574_v14 = vpack.c.bf16 %v998_v6, %v990_v4  ;;  %v1020_v33 = vld [vmem:[#allocation4 + $0x1ba0] sm:$0xff]  ;;  %v9586_v2 = vpack.c.bf16 %v1046_v58, %v1038_v56  ;;  %v1054_v6 = vld [vmem:[#allocation4 + $0x1cb0] sm:$0xff] }
 0x373   :  { %4598 = vmatprep.mubr.f32.mxu1 %v11136_v30  ;;  %v9064_v15 = vpack.c.bf16 %v1013_v8, %v1005_v7  ;;  %v9076_v3 = vpack.c.bf16 %v1061_v60, %v1053_v59  ;;  %v1052_v4 = vld [vmem:[#allocation4 + $0x1ca0] sm:$0xff]  ;;  %v1062_v8 = vld [vmem:[#allocation4 + $0x1cf0] sm:$0xff]  ;;  %v1127_v56 = vld [vmem:[#allocation4 + $0x1ef8] sm:$0xff] }
 0x374   :  { %9047 = vmatpush1.bf16.msra.mxu0 %v9046_v16  ;;  %v1004_v16 = vld [vmem:[#allocation4 + $0x1b20] sm:$0xff] }
 0x375   :  { %9559 = vmatpush1.bf16.msra.mxu1 %v9558_v18  ;;  %9049 = vmatprep.subr.bf16.mxu0 %v9048_v19  ;;  %v1012_v18 = vld [vmem:[#allocation4 + $0x1b60] sm:$0xff]  ;;  %v1006_v19 = vld [vmem:[#allocation4 + $0x1b30] sm:$0xff] }
 0x376   :  { %9561 = vmatprep.subr.bf16.mxu1 %v9560_v24  ;;  %v9576_v24 = vpack.c.bf16 %v1015_v10, %v1007_v9  ;;  %v9578_v40 = vpack.c.bf16 %v1014_v25, %v1006_v19  ;;  %v1069_v9 = vld [vmem:[#allocation4 + $0x1d28] sm:$0xff]  ;;  %v1076_v19 = vld [vmem:[#allocation4 + $0x1d60] sm:$0xff] }
 0x377   :  { %v1077_v10 = vld [vmem:[#allocation4 + $0x1d68] sm:$0xff]  ;;  %v1116_v60 = vld [vmem:[#allocation4 + $0x1ea0] sm:$0xff] }
 0x378   :  { %9051 = vmatpush1.bf16.msra.mxu0 %v9050_v34  ;;  %v1023_v34 = vld [vmem:[#allocation4 + $0x1bb8] sm:$0xff]  ;;  %v1093_v25 = vld [vmem:[#allocation4 + $0x1de8] sm:$0xff] }
 0x379   :  { %9563 = vmatpush1.bf16.msra.mxu1 %v9562_v37  ;;  %9053 = vmatprep.subr.bf16.mxu0 %v9052_v38  ;;  %v9066_v38 = vpack.c.bf16 %v1012_v18, %v1004_v16  ;;  %v9580_v45 = vpack.c.bf16 %v1031_v35, %v1023_v34  ;;  %v9080_v16 = vpack.c.bf16 %v1077_v10, %v1069_v9  ;;  %v1068_v18 = vld [vmem:[#allocation4 + $0x1d20] sm:$0xff] }
 0x37a   :  { %9565 = vmatprep.subr.bf16.mxu1 %v9564_v42  ;;  %v1028_v42 = vld [vmem:[#allocation4 + $0x1be0] sm:$0xff] }
 0x37b   :  { %v1084_v34 = vld [vmem:[#allocation4 + $0x1da0] sm:$0xff] }
 0x37c   :  { %9055 = vmatpush1.bf16.msra.mxu0 %v9054_v49  ;;  %v1039_v49 = vld [vmem:[#allocation4 + $0x1c38] sm:$0xff]  ;;  %v1092_v35 = vld [vmem:[#allocation4 + $0x1de0] sm:$0xff] }
 0x37d   :  { %9567 = vmatpush1.bf16.msra.mxu1 %v9566_v51  ;;  %9057 = vmatprep.subr.bf16.mxu0 %v9056_v52  ;;  %v1047_v51 = vld [vmem:[#allocation4 + $0x1c78] sm:$0xff]  ;;  %v9070_v52 = vpack.c.bf16 %v1028_v42, %v1020_v33  ;;  %v1109_v33 = vld [vmem:[#allocation4 + $0x1e68] sm:$0xff]  ;;  %v1132_v10 = vld [vmem:[#allocation4 + $0x1f20] sm:$0xff] }
 0x37e   :  { %9569 = vmatprep.subr.bf16.mxu1 %v9568_v55  ;;  %v1044_v55 = vld [vmem:[#allocation4 + $0x1c60] sm:$0xff]  ;;  %v9584_v57 = vpack.c.bf16 %v1047_v51, %v1039_v49  ;;  %v1103_v42 = vld [vmem:[#allocation4 + $0x1e38] sm:$0xff]  ;;  %v1102_v51 = vld [vmem:[#allocation4 + $0x1e30] sm:$0xff] }
 0x37f   :  { %v1108_v49 = vld [vmem:[#allocation4 + $0x1e60] sm:$0xff] }
 0x380   :  { %9059 = vmatpush1.bf16.msra.mxu0 %v9058_v61  ;;  %v1055_v61 = vld [vmem:[#allocation4 + $0x1cb8] sm:$0xff] }
 0x381   :  { %9571 = vmatpush1.bf16.msra.mxu1 %v9570_v63  ;;  %9061 = vmatprep.subr.bf16.mxu0 %v9060_v1  ;;  %v1063_v63 = vld [vmem:[#allocation4 + $0x1cf8] sm:$0xff]  ;;  %v9074_v1 = vpack.c.bf16 %v1044_v55, %v1036_v54  ;;  %v1125_v54 = vld [vmem:[#allocation4 + $0x1ee8] sm:$0xff] }
 0x382   :  { %v3180_v23 = vpop.f32.mrb[4].mxu0  ;;  %9573 = vmatprep.subr.bf16.mxu1 %v9572_v5  ;;  %v1060_v5 = vld [vmem:[#allocation4 + $0x1ce0] sm:$0xff]  ;;  %v9588_v7 = vpack.c.bf16 %v1063_v63, %v1055_v61  ;;  %v1119_v55 = vld [vmem:[#allocation4 + $0x1eb8] sm:$0xff]  ;;  %v1118_v63 = vld [vmem:[#allocation4 + $0x1eb0] sm:$0xff] }
 0x383   :  { %v11585_v30 = vadd.f32 %v3180_v23, %v2588_v13  ;;  %v3748_v31 = vpop.f32.mrb[4].mxu1  ;;  %v3182_v32 = vpop.f32.mrb[5].mxu0  ;;  %v1079_v13 = vld [vmem:[#allocation4 + $0x1d78] sm:$0xff]  ;;  %v1078_v23 = vld [vmem:[#allocation4 + $0x1d70] sm:$0xff]  ;;  %v1124_v61 = vld [vmem:[#allocation4 + $0x1ee0] sm:$0xff] }
 0x384   :  { %v11587_v37 = vadd.f32 %v3748_v31, %v2596_v21  ;;  %v11589_v22 = vadd.f32 %v3182_v32, %v2592_v20  ;;  %v3750_v27 = vpop.f32.mrb[5].mxu1  ;;  %9063 = vmatpush1.bf16.msra.mxu0 %v9062_v11  ;;  %v1071_v11 = vld [vmem:[#allocation4 + $0x1d38] sm:$0xff]  ;;  %v1070_v20 = vld [vmem:[#allocation4 + $0x1d30] sm:$0xff] }
 0x385   :  { %v11591_v39 = vadd.f32 %v3750_v27, %v2600_v17  ;;  %9575 = vmatpush1.bf16.msra.mxu1 %v9574_v14  ;;  %9065 = vmatprep.subr.bf16.mxu0 %v9064_v15  ;;  %v9078_v14 = vpack.c.bf16 %v1060_v5, %v1052_v4  ;;  %v9590_v15 = vpack.c.bf16 %v1062_v8, %v1054_v6  ;;  %v1086_v27 = vld [vmem:[#allocation4 + $0x1db0] sm:$0xff]  ;;  %v1141_v4 = vld [vmem:[#allocation4 + $0x1f68] sm:$0xff]  ;;  %v1135_v5 = vld [vmem:[#allocation4 + $0x1f38] sm:$0xff] }
 0x386   :  { %9577 = vmatprep.subr.bf16.mxu1 %v9576_v24  ;;  %v9592_v21 = vpack.c.bf16 %v1079_v13, %v1071_v11  ;;  %v1085_v24 = vld [vmem:[#allocation4 + $0x1da8] sm:$0xff]  ;;  %v9082_v17 = vpack.c.bf16 %v1076_v19, %v1068_v18  ;;  %v9594_v31 = vpack.c.bf16 %v1078_v23, %v1070_v20  ;;  %v1143_v6 = vld [vmem:[#allocation4 + $0x1f78] sm:$0xff]  ;;  %v1140_v11 = vld [vmem:[#allocation4 + $0x1f60] sm:$0xff] }
 0x387   :  { %v9084_v32 = vpack.c.bf16 %v1093_v25, %v1085_v24  ;;  %v1134_v13 = vld [vmem:[#allocation4 + $0x1f30] sm:$0xff]  ;;  %v1157_v18 = vld [vmem:[#allocation4 + $0x1fe8] sm:$0xff]  ;;  %v1151_v19 = vld [vmem:[#allocation4 + $0x1fb8] sm:$0xff] }
 0x388   :  { %9067 = vmatpush1.bf16.msra.mxu0 %v9066_v38  ;;  %v9596_v38 = vpack.c.bf16 %v1095_v28, %v1087_v26  ;;  %v1159_v20 = vld [vmem:[#allocation4 + $0x1ff8] sm:$0xff]  ;;  %v1148_v25 = vld [vmem:[#allocation4 + $0x1fa0] sm:$0xff]  ;;  %v1150_v28 = vld [vmem:[#allocation4 + $0x1fb0] sm:$0xff] }
 0x389   :  { %9579 = vmatpush1.bf16.msra.mxu1 %v9578_v40  ;;  %9069 = vmatprep.subr.bf16.mxu0 %v9068_v41  ;;  %v1094_v40 = vld [vmem:[#allocation4 + $0x1df0] sm:$0xff]  ;;  %v1101_v41 = vld [vmem:[#allocation4 + $0x1e28] sm:$0xff]  ;;  %v1156_v26 = vld [vmem:[#allocation4 + $0x1fe0] sm:$0xff] }
 0x38a   :  { %9581 = vmatprep.subr.bf16.mxu1 %v9580_v45  ;;  %v9086_v45 = vpack.c.bf16 %v1092_v35, %v1084_v34  ;;  %v9598_v46 = vpack.c.bf16 %v1094_v40, %v1086_v27  ;;  %v9088_v47 = vpack.c.bf16 %v1109_v33, %v1101_v41  ;;  %v1173_v34 = vld [vmem:[#allocation4 + $0x2068] sm:$0xff]  ;;  %v1167_v35 = vld [vmem:[#allocation4 + $0x2038] sm:$0xff]  ;;  %v1164_v33 = vld [vmem:[#allocation4 + $0x2020] sm:$0xff] }
 0x38b   :  { %v1175_v27 = vld [vmem:[#allocation4 + $0x2078] sm:$0xff] }
 0x38c   :  { %9071 = vmatpush1.bf16.msra.mxu0 %v9070_v52  ;;  %v9600_v52 = vpack.c.bf16 %v1111_v43, %v1103_v42  ;;  %v1172_v42 = vld [vmem:[#allocation4 + $0x2060] sm:$0xff]  ;;  %v1166_v43 = vld [vmem:[#allocation4 + $0x2030] sm:$0xff] }
 0x38d   :  { %9583 = vmatpush1.bf16.msra.mxu1 %v9582_v53  ;;  %9073 = vmatprep.subr.bf16.mxu0 %v9072_v0  ;;  %v1110_v53 = vld [vmem:[#allocation4 + $0x1e70] sm:$0xff]  ;;  %v1117_v0 = vld [vmem:[#allocation4 + $0x1ea8] sm:$0xff] }
 0x38e   :  { %9585 = vmatprep.subr.bf16.mxu1 %v9584_v57  ;;  %v9090_v57 = vpack.c.bf16 %v1108_v49, %v1100_v48  ;;  %v9602_v58 = vpack.c.bf16 %v1110_v53, %v1102_v51  ;;  %v9092_v59 = vpack.c.bf16 %v1125_v54, %v1117_v0  ;;  %v1189_v48 = vld [vmem:[#allocation4 + $0x20e8] sm:$0xff]  ;;  %v1183_v49 = vld [vmem:[#allocation4 + $0x20b8] sm:$0xff]  ;;  %v1180_v54 = vld [vmem:[#allocation4 + $0x20a0] sm:$0xff] }
 0x38f   :  { %v1191_v51 = vld [vmem:[#allocation4 + $0x20f8] sm:$0xff] }
 0x390   :  { %9075 = vmatpush1.bf16.msra.mxu0 %v9074_v1  ;;  %v9604_v1 = vpack.c.bf16 %v1127_v56, %v1119_v55  ;;  %v1188_v55 = vld [vmem:[#allocation4 + $0x20e0] sm:$0xff]  ;;  %v1182_v56 = vld [vmem:[#allocation4 + $0x20b0] sm:$0xff] }
 0x391   :  { %9587 = vmatpush1.bf16.msra.mxu1 %v9586_v2  ;;  %9077 = vmatprep.subr.bf16.mxu0 %v9076_v3  ;;  %v1126_v2 = vld [vmem:[#allocation4 + $0x1ef0] sm:$0xff]  ;;  %v1133_v3 = vld [vmem:[#allocation4 + $0x1f28] sm:$0xff] }
 0x392   :  { %9589 = vmatprep.subr.bf16.mxu1 %v9588_v7  ;;  %v9094_v7 = vpack.c.bf16 %v1124_v61, %v1116_v60  ;;  %v9606_v8 = vpack.c.bf16 %v1126_v2, %v1118_v63  ;;  %v9096_v9 = vpack.c.bf16 %v1141_v4, %v1133_v3  ;;  %v1205_v60 = vld [vmem:[#allocation4 + $0x2168] sm:$0xff]  ;;  %v1199_v63 = vld [vmem:[#allocation4 + $0x2138] sm:$0xff]  ;;  %v9110_v2 = vpack.c.bf16 %v1188_v55, %v1180_v54  ;;  %v1254_v54 = vld [vmem:[#allocation4 + $0x22f0] sm:$0xff] }
 0x393   :  { %v11137_v61 = vld [vmem:[%s12141_s0 + $0x30] sm:$0xff] }
 0x394   :  { %9079 = vmatpush1.bf16.msra.mxu0 %v9078_v14  ;;  %v9608_v14 = vpack.c.bf16 %v1143_v6, %v1135_v5  ;;  %v1196_v5 = vld [vmem:[#allocation4 + $0x2120] sm:$0xff]  ;;  %v1261_v55 = vld [vmem:[#allocation4 + $0x2328] sm:$0xff] }
 0x395   :  { %9591 = vmatpush1.bf16.msra.mxu1 %v9590_v15  ;;  %9081 = vmatprep.subr.bf16.mxu0 %v9080_v16  ;;  %v1142_v15 = vld [vmem:[#allocation4 + $0x1f70] sm:$0xff]  ;;  %v1149_v16 = vld [vmem:[#allocation4 + $0x1fa8] sm:$0xff]  ;;  %v1204_v6 = vld [vmem:[#allocation4 + $0x2160] sm:$0xff] }
 0x396   :  { %9593 = vmatprep.subr.bf16.mxu1 %v9592_v21  ;;  %v9098_v21 = vpack.c.bf16 %v1140_v11, %v1132_v10  ;;  %v9610_v23 = vpack.c.bf16 %v1142_v15, %v1134_v13  ;;  %v9100_v24 = vpack.c.bf16 %v1157_v18, %v1149_v16  ;;  %v1213_v10 = vld [vmem:[#allocation4 + $0x21a8] sm:$0xff]  ;;  %v11138_v13 = vld [vmem:[%s12141_s0 + $0x48] sm:$0xff]  ;;  %v9114_v16 = vpack.c.bf16 %v1204_v6, %v1196_v5 }
 0x397   :  { %v1221_v11 = vld [vmem:[#allocation4 + $0x21e8] sm:$0xff]  ;;  %v1223_v15 = vld [vmem:[#allocation4 + $0x21f8] sm:$0xff] }
 0x398   :  { %9083 = vmatpush1.bf16.msra.mxu0 %v9082_v17  ;;  %v9612_v17 = vpack.c.bf16 %v1159_v20, %v1151_v19  ;;  %v9116_v19 = vpack.c.bf16 %v1221_v11, %v1213_v10  ;;  %v1212_v20 = vld [vmem:[#allocation4 + $0x21a0] sm:$0xff]  ;;  %v1277_v5 = vld [vmem:[#allocation4 + $0x23a8] sm:$0xff] }
 0x399   :  { %9595 = vmatpush1.bf16.msra.mxu1 %v9594_v31  ;;  %9085 = vmatprep.subr.bf16.mxu0 %v9084_v32  ;;  %v1158_v31 = vld [vmem:[#allocation4 + $0x1ff0] sm:$0xff]  ;;  %v1165_v32 = vld [vmem:[#allocation4 + $0x2028] sm:$0xff] }
 0x39a   :  { %9597 = vmatprep.subr.bf16.mxu1 %v9596_v38  ;;  %v9102_v38 = vpack.c.bf16 %v1156_v26, %v1148_v25  ;;  %v9614_v40 = vpack.c.bf16 %v1158_v31, %v1150_v28  ;;  %v9104_v41 = vpack.c.bf16 %v1173_v34, %v1165_v32  ;;  %v1222_v25 = vld [vmem:[#allocation4 + $0x21f0] sm:$0xff]  ;;  %v1229_v26 = vld [vmem:[#allocation4 + $0x2228] sm:$0xff]  ;;  %v1239_v31 = vld [vmem:[#allocation4 + $0x2278] sm:$0xff] }
 0x39b   :  { %v1237_v28 = vld [vmem:[#allocation4 + $0x2268] sm:$0xff] }
 0x39c   :  { %9087 = vmatpush1.bf16.msra.mxu0 %v9086_v45  ;;  %v9616_v45 = vpack.c.bf16 %v1175_v27, %v1167_v35  ;;  %v9120_v35 = vpack.c.bf16 %v1237_v28, %v1229_v26  ;;  %v1228_v27 = vld [vmem:[#allocation4 + $0x2220] sm:$0xff]  ;;  %v1285_v6 = vld [vmem:[#allocation4 + $0x23e8] sm:$0xff] }
 0x39d   :  { %9599 = vmatpush1.bf16.msra.mxu1 %v9598_v46  ;;  %9089 = vmatprep.subr.bf16.mxu0 %v9088_v47  ;;  %v1174_v46 = vld [vmem:[#allocation4 + $0x2070] sm:$0xff]  ;;  %v1181_v47 = vld [vmem:[#allocation4 + $0x20a8] sm:$0xff]  ;;  %v9132_v11 = vpack.c.bf16 %v1285_v6, %v1277_v5  ;;  %v1292_v28 = vld [vmem:[#allocation4 + $0x2420] sm:$0xff] }
 0x39e   :  { %9601 = vmatprep.subr.bf16.mxu1 %v9600_v52  ;;  %v9106_v52 = vpack.c.bf16 %v1172_v42, %v1164_v33  ;;  %v9618_v53 = vpack.c.bf16 %v1174_v46, %v1166_v43  ;;  %v9108_v0 = vpack.c.bf16 %v1189_v48, %v1181_v47  ;;  %v1238_v33 = vld [vmem:[#allocation4 + $0x2270] sm:$0xff]  ;;  %v1245_v42 = vld [vmem:[#allocation4 + $0x22a8] sm:$0xff]  ;;  %v1255_v46 = vld [vmem:[#allocation4 + $0x22f8] sm:$0xff] }
 0x39f   :  { %v1253_v43 = vld [vmem:[#allocation4 + $0x22e8] sm:$0xff]  ;;  %v1340_v6 = vld [vmem:[#allocation4 + $0x25a0] sm:$0xff] }
 0x3a0   :  { %9091 = vmatpush1.bf16.msra.mxu0 %v9090_v57  ;;  %v9620_v57 = vpack.c.bf16 %v1191_v51, %v1183_v49  ;;  %v9124_v49 = vpack.c.bf16 %v1253_v43, %v1245_v42  ;;  %v1244_v51 = vld [vmem:[#allocation4 + $0x22a0] sm:$0xff] }
 0x3a1   :  { %9603 = vmatpush1.bf16.msra.mxu1 %v9602_v58  ;;  %9093 = vmatprep.subr.bf16.mxu0 %v9092_v59  ;;  %v1190_v58 = vld [vmem:[#allocation4 + $0x20f0] sm:$0xff]  ;;  %v1197_v59 = vld [vmem:[#allocation4 + $0x2128] sm:$0xff]  ;;  %v1308_v43 = vld [vmem:[#allocation4 + $0x24a0] sm:$0xff] }
 0x3a2   :  { %9605 = vmatprep.subr.bf16.mxu1 %v9604_v1  ;;  %v1207_v1 = vld [vmem:[#allocation4 + $0x2178] sm:$0xff]  ;;  %v9622_v3 = vpack.c.bf16 %v1190_v58, %v1182_v56  ;;  %v9112_v4 = vpack.c.bf16 %v1205_v60, %v1197_v59  ;;  %v1269_v56 = vld [vmem:[#allocation4 + $0x2368] sm:$0xff] }
 0x3a3   :  { %v1271_v58 = vld [vmem:[#allocation4 + $0x2378] sm:$0xff] }
 0x3a4   :  { %9095 = vmatpush1.bf16.msra.mxu0 %v9094_v7  ;;  %v1198_v7 = vld [vmem:[#allocation4 + $0x2130] sm:$0xff] }
 0x3a5   :  { %9607 = vmatpush1.bf16.msra.mxu1 %v9606_v8  ;;  %9097 = vmatprep.subr.bf16.mxu0 %v9096_v9  ;;  %v9624_v8 = vpack.c.bf16 %v1207_v1, %v1199_v63  ;;  %v1206_v9 = vld [vmem:[#allocation4 + $0x2170] sm:$0xff]  ;;  %v1260_v63 = vld [vmem:[#allocation4 + $0x2320] sm:$0xff] }
 0x3a6   :  { %9609 = vmatprep.subr.bf16.mxu1 %v9608_v14  ;;  %v1215_v14 = vld [vmem:[#allocation4 + $0x21b8] sm:$0xff]  ;;  %v9626_v18 = vpack.c.bf16 %v1206_v9, %v1198_v7  ;;  %v1268_v1 = vld [vmem:[#allocation4 + $0x2360] sm:$0xff] }
 0x3a7   :  { %v1279_v7 = vld [vmem:[#allocation4 + $0x23b8] sm:$0xff]  ;;  %v9130_v9 = vpack.c.bf16 %v1268_v1, %v1260_v63  ;;  %v1349_v63 = vld [vmem:[#allocation4 + $0x25e8] sm:$0xff] }
 0x3a8   :  { %9099 = vmatpush1.bf16.msra.mxu0 %v9098_v21  ;;  %v1220_v21 = vld [vmem:[#allocation4 + $0x21e0] sm:$0xff]  ;;  %v1343_v1 = vld [vmem:[#allocation4 + $0x25b8] sm:$0xff] }
 0x3a9   :  { %9611 = vmatpush1.bf16.msra.mxu1 %v9610_v23  ;;  %9101 = vmatprep.subr.bf16.mxu0 %v9100_v24  ;;  %v1214_v23 = vld [vmem:[#allocation4 + $0x21b0] sm:$0xff]  ;;  %v9628_v24 = vpack.c.bf16 %v1223_v15, %v1215_v14  ;;  %v9118_v32 = vpack.c.bf16 %v1220_v21, %v1212_v20  ;;  %v1284_v14 = vld [vmem:[#allocation4 + $0x23e0] sm:$0xff]  ;;  %v1301_v20 = vld [vmem:[#allocation4 + $0x2468] sm:$0xff] }
 0x3aa   :  { %9613 = vmatprep.subr.bf16.mxu1 %v9612_v17  ;;  %v1231_v17 = vld [vmem:[#allocation4 + $0x2238] sm:$0xff]  ;;  %v9630_v34 = vpack.c.bf16 %v1222_v25, %v1214_v23  ;;  %v1278_v15 = vld [vmem:[#allocation4 + $0x23b0] sm:$0xff] }
 0x3ab   :  { %v1295_v21 = vld [vmem:[#allocation4 + $0x2438] sm:$0xff] }
 0x3ac   :  { %9103 = vmatpush1.bf16.msra.mxu0 %v9102_v38  ;;  %v1236_v38 = vld [vmem:[#allocation4 + $0x2260] sm:$0xff]  ;;  %v1303_v23 = vld [vmem:[#allocation4 + $0x2478] sm:$0xff] }
 0x3ad   :  { %9615 = vmatpush1.bf16.msra.mxu1 %v9614_v40  ;;  %9105 = vmatprep.subr.bf16.mxu0 %v9104_v41  ;;  %v1230_v40 = vld [vmem:[#allocation4 + $0x2230] sm:$0xff]  ;;  %v9632_v41 = vpack.c.bf16 %v1239_v31, %v1231_v17  ;;  %v9122_v47 = vpack.c.bf16 %v1236_v38, %v1228_v27  ;;  %v1300_v17 = vld [vmem:[#allocation4 + $0x2460] sm:$0xff]  ;;  %v1317_v27 = vld [vmem:[#allocation4 + $0x24e8] sm:$0xff] }
 0x3ae   :  { %9617 = vmatprep.subr.bf16.mxu1 %v9616_v45  ;;  %v1247_v45 = vld [vmem:[#allocation4 + $0x22b8] sm:$0xff]  ;;  %v9634_v48 = vpack.c.bf16 %v1238_v33, %v1230_v40  ;;  %v1294_v31 = vld [vmem:[#allocation4 + $0x2430] sm:$0xff] }
 0x3af   :  { %4031 = vmatmul.mubr.f32.vlgmr.msra.gmra.mrb[6].mxu0 %v11137_v61  ;;  %v1311_v38 = vld [vmem:[#allocation4 + $0x24b8] sm:$0xff] }
 0x3b0   :  { %9107 = vmatpush1.bf16.msra.mxu0 %v9106_v52  ;;  %4599 = vmatmul.mubr.f32.vlgmr.msra.gmra.mrb[6].mxu1 %v11137_v61  ;;  %v1252_v52 = vld [vmem:[#allocation4 + $0x22e0] sm:$0xff]  ;;  %v9128_v61 = vpack.c.bf16 %v1269_v56, %v1261_v55  ;;  %v1319_v40 = vld [vmem:[#allocation4 + $0x24f8] sm:$0xff] }
 0x3b1   :  { %9619 = vmatpush1.bf16.msra.mxu1 %v9618_v53  ;;  %9109 = vmatprep.subr.bf16.mxu0 %v9108_v0  ;;  %v1246_v53 = vld [vmem:[#allocation4 + $0x22b0] sm:$0xff]  ;;  %v9636_v0 = vpack.c.bf16 %v1255_v46, %v1247_v45  ;;  %v9126_v59 = vpack.c.bf16 %v1252_v52, %v1244_v51  ;;  %v1316_v45 = vld [vmem:[#allocation4 + $0x24e0] sm:$0xff]  ;;  %v1333_v51 = vld [vmem:[#allocation4 + $0x2568] sm:$0xff] }
 0x3b2   :  { %9621 = vmatprep.subr.bf16.mxu1 %v9620_v57  ;;  %4101 = vmatprep.mubr.f32.mxu0 %v11138_v13  ;;  %v1263_v57 = vld [vmem:[#allocation4 + $0x2338] sm:$0xff]  ;;  %v9638_v60 = vpack.c.bf16 %v1254_v54, %v1246_v53  ;;  %v1310_v46 = vld [vmem:[#allocation4 + $0x24b0] sm:$0xff]  ;;  %v1324_v56 = vld [vmem:[#allocation4 + $0x2520] sm:$0xff] }
 0x3b3   :  { %4669 = vmatprep.mubr.f32.mxu1 %v11138_v13  ;;  %v1276_v13 = vld [vmem:[#allocation4 + $0x23a0] sm:$0xff]  ;;  %v1327_v52 = vld [vmem:[#allocation4 + $0x2538] sm:$0xff] }
 0x3b4   :  { %9111 = vmatpush1.bf16.msra.mxu0 %v9110_v2  ;;  %v1262_v2 = vld [vmem:[#allocation4 + $0x2330] sm:$0xff]  ;;  %v1335_v53 = vld [vmem:[#allocation4 + $0x2578] sm:$0xff] }
 0x3b5   :  { %9623 = vmatpush1.bf16.msra.mxu1 %v9622_v3  ;;  %9113 = vmatprep.subr.bf16.mxu0 %v9112_v4  ;;  %v9640_v3 = vpack.c.bf16 %v1271_v58, %v1263_v57  ;;  %v1270_v4 = vld [vmem:[#allocation4 + $0x2370] sm:$0xff]  ;;  %v1332_v57 = vld [vmem:[#allocation4 + $0x2560] sm:$0xff] }
 0x3b6   :  { %9625 = vmatprep.subr.bf16.mxu1 %v9624_v8  ;;  %v1287_v8 = vld [vmem:[#allocation4 + $0x23f8] sm:$0xff]  ;;  %v9642_v10 = vpack.c.bf16 %v1270_v4, %v1262_v2  ;;  %v1326_v58 = vld [vmem:[#allocation4 + $0x2530] sm:$0xff] }
 0x3b7   :  { %v1351_v2 = vld [vmem:[#allocation4 + $0x25f8] sm:$0xff] }
 0x3b8   :  { %9115 = vmatpush1.bf16.msra.mxu0 %v9114_v16  ;;  %v9644_v16 = vpack.c.bf16 %v1287_v8, %v1279_v7  ;;  %v1348_v7 = vld [vmem:[#allocation4 + $0x25e0] sm:$0xff]  ;;  %v1342_v8 = vld [vmem:[#allocation4 + $0x25b0] sm:$0xff] }
 0x3b9   :  { %9627 = vmatpush1.bf16.msra.mxu1 %v9626_v18  ;;  %9117 = vmatprep.subr.bf16.mxu0 %v9116_v19  ;;  %v1286_v18 = vld [vmem:[#allocation4 + $0x23f0] sm:$0xff]  ;;  %v1293_v19 = vld [vmem:[#allocation4 + $0x2428] sm:$0xff] }
 0x3ba   :  { %9629 = vmatprep.subr.bf16.mxu1 %v9628_v24  ;;  %v9134_v24 = vpack.c.bf16 %v1284_v14, %v1276_v13  ;;  %v9646_v25 = vpack.c.bf16 %v1286_v18, %v1278_v15  ;;  %v9136_v26 = vpack.c.bf16 %v1301_v20, %v1293_v19  ;;  %v1365_v13 = vld [vmem:[#allocation4 + $0x2668] sm:$0xff]  ;;  %v1359_v14 = vld [vmem:[#allocation4 + $0x2638] sm:$0xff]  ;;  %v1356_v20 = vld [vmem:[#allocation4 + $0x2620] sm:$0xff] }
 0x3bb   :  { %v1367_v15 = vld [vmem:[#allocation4 + $0x2678] sm:$0xff] }
 0x3bc   :  { %9119 = vmatpush1.bf16.msra.mxu0 %v9118_v32  ;;  %v9648_v32 = vpack.c.bf16 %v1303_v23, %v1295_v21  ;;  %v1364_v21 = vld [vmem:[#allocation4 + $0x2660] sm:$0xff]  ;;  %v1358_v23 = vld [vmem:[#allocation4 + $0x2630] sm:$0xff] }
 0x3bd   :  { %9631 = vmatpush1.bf16.msra.mxu1 %v9630_v34  ;;  %9121 = vmatprep.subr.bf16.mxu0 %v9120_v35  ;;  %v1302_v34 = vld [vmem:[#allocation4 + $0x2470] sm:$0xff]  ;;  %v1309_v35 = vld [vmem:[#allocation4 + $0x24a8] sm:$0xff] }
 0x3be   :  { %9633 = vmatprep.subr.bf16.mxu1 %v9632_v41  ;;  %v9138_v41 = vpack.c.bf16 %v1300_v17, %v1292_v28  ;;  %v9650_v33 = vpack.c.bf16 %v1302_v34, %v1294_v31  ;;  %v9140_v42 = vpack.c.bf16 %v1317_v27, %v1309_v35  ;;  %v1381_v28 = vld [vmem:[#allocation4 + $0x26e8] sm:$0xff]  ;;  %v1375_v17 = vld [vmem:[#allocation4 + $0x26b8] sm:$0xff]  ;;  %v1372_v27 = vld [vmem:[#allocation4 + $0x26a0] sm:$0xff] }
 0x3bf   :  { %v1383_v31 = vld [vmem:[#allocation4 + $0x26f8] sm:$0xff] }
 0x3c0   :  { %9123 = vmatpush1.bf16.msra.mxu0 %v9122_v47  ;;  %v9652_v47 = vpack.c.bf16 %v1319_v40, %v1311_v38  ;;  %v1380_v38 = vld [vmem:[#allocation4 + $0x26e0] sm:$0xff]  ;;  %v1374_v40 = vld [vmem:[#allocation4 + $0x26b0] sm:$0xff] }
 0x3c1   :  { %9635 = vmatpush1.bf16.msra.mxu1 %v9634_v48  ;;  %9125 = vmatprep.subr.bf16.mxu0 %v9124_v49  ;;  %v1318_v48 = vld [vmem:[#allocation4 + $0x24f0] sm:$0xff]  ;;  %v1325_v49 = vld [vmem:[#allocation4 + $0x2528] sm:$0xff] }
 0x3c2   :  { %9637 = vmatprep.subr.bf16.mxu1 %v9636_v0  ;;  %v9142_v0 = vpack.c.bf16 %v1316_v45, %v1308_v43  ;;  %v9654_v54 = vpack.c.bf16 %v1318_v48, %v1310_v46  ;;  %v9144_v55 = vpack.c.bf16 %v1333_v51, %v1325_v49  ;;  %v1397_v43 = vld [vmem:[#allocation4 + $0x2768] sm:$0xff]  ;;  %v1391_v45 = vld [vmem:[#allocation4 + $0x2738] sm:$0xff]  ;;  %v1388_v51 = vld [vmem:[#allocation4 + $0x2720] sm:$0xff] }
 0x3c3   :  { %v1399_v46 = vld [vmem:[#allocation4 + $0x2778] sm:$0xff] }
 0x3c4   :  { %9127 = vmatpush1.bf16.msra.mxu0 %v9126_v59  ;;  %v9656_v59 = vpack.c.bf16 %v1335_v53, %v1327_v52  ;;  %v1396_v52 = vld [vmem:[#allocation4 + $0x2760] sm:$0xff]  ;;  %v1390_v53 = vld [vmem:[#allocation4 + $0x2730] sm:$0xff] }
 0x3c5   :  { %9639 = vmatpush1.bf16.msra.mxu1 %v9638_v60  ;;  %9129 = vmatprep.subr.bf16.mxu0 %v9128_v61  ;;  %v1334_v60 = vld [vmem:[#allocation4 + $0x2570] sm:$0xff]  ;;  %v1341_v61 = vld [vmem:[#allocation4 + $0x25a8] sm:$0xff] }
 0x3c6   :  { %9641 = vmatprep.subr.bf16.mxu1 %v9640_v3  ;;  %v9146_v3 = vpack.c.bf16 %v1332_v57, %v1324_v56  ;;  %v9658_v4 = vpack.c.bf16 %v1334_v60, %v1326_v58  ;;  %v9148_v5 = vpack.c.bf16 %v1349_v63, %v1341_v61  ;;  %v1413_v56 = vld [vmem:[#allocation4 + $0x27e8] sm:$0xff]  ;;  %v1407_v57 = vld [vmem:[#allocation4 + $0x27b8] sm:$0xff]  ;;  %v1404_v63 = vld [vmem:[#allocation4 + $0x27a0] sm:$0xff] }
 0x3c7   :  { %v1415_v58 = vld [vmem:[#allocation4 + $0x27f8] sm:$0xff] }
 0x3c8   :  { %9131 = vmatpush1.bf16.msra.mxu0 %v9130_v9  ;;  %v9660_v9 = vpack.c.bf16 %v1351_v2, %v1343_v1  ;;  %v1412_v1 = vld [vmem:[#allocation4 + $0x27e0] sm:$0xff]  ;;  %v1406_v2 = vld [vmem:[#allocation4 + $0x27b0] sm:$0xff] }
 0x3c9   :  { %9643 = vmatpush1.bf16.msra.mxu1 %v9642_v10  ;;  %9133 = vmatprep.subr.bf16.mxu0 %v9132_v11  ;;  %v1350_v10 = vld [vmem:[#allocation4 + $0x25f0] sm:$0xff]  ;;  %v1357_v11 = vld [vmem:[#allocation4 + $0x2628] sm:$0xff] }
 0x3ca   :  { %9645 = vmatprep.subr.bf16.mxu1 %v9644_v16  ;;  %v9150_v16 = vpack.c.bf16 %v1348_v7, %v1340_v6  ;;  %v9662_v18 = vpack.c.bf16 %v1350_v10, %v1342_v8  ;;  %v9152_v19 = vpack.c.bf16 %v1365_v13, %v1357_v11  ;;  %v1429_v6 = vld [vmem:[#allocation4 + $0x2868] sm:$0xff]  ;;  %v1423_v7 = vld [vmem:[#allocation4 + $0x2838] sm:$0xff]  ;;  %v1420_v13 = vld [vmem:[#allocation4 + $0x2820] sm:$0xff] }
 0x3cb   :  { %v1431_v8 = vld [vmem:[#allocation4 + $0x2878] sm:$0xff] }
 0x3cc   :  { %9135 = vmatpush1.bf16.msra.mxu0 %v9134_v24  ;;  %v9664_v24 = vpack.c.bf16 %v1367_v15, %v1359_v14  ;;  %v1428_v14 = vld [vmem:[#allocation4 + $0x2860] sm:$0xff]  ;;  %v1422_v15 = vld [vmem:[#allocation4 + $0x2830] sm:$0xff] }
 0x3cd   :  { %9647 = vmatpush1.bf16.msra.mxu1 %v9646_v25  ;;  %9137 = vmatprep.subr.bf16.mxu0 %v9136_v26  ;;  %v1366_v25 = vld [vmem:[#allocation4 + $0x2670] sm:$0xff]  ;;  %v1373_v26 = vld [vmem:[#allocation4 + $0x26a8] sm:$0xff] }
 0x3ce   :  { %9649 = vmatprep.subr.bf16.mxu1 %v9648_v32  ;;  %v9154_v32 = vpack.c.bf16 %v1364_v21, %v1356_v20  ;;  %v9666_v34 = vpack.c.bf16 %v1366_v25, %v1358_v23  ;;  %v9156_v35 = vpack.c.bf16 %v1381_v28, %v1373_v26  ;;  %v1445_v20 = vld [vmem:[#allocation4 + $0x28e8] sm:$0xff]  ;;  %v1439_v21 = vld [vmem:[#allocation4 + $0x28b8] sm:$0xff]  ;;  %v1436_v28 = vld [vmem:[#allocation4 + $0x28a0] sm:$0xff] }
 0x3cf   :  { %v1447_v23 = vld [vmem:[#allocation4 + $0x28f8] sm:$0xff] }
 0x3d0   :  { %9139 = vmatpush1.bf16.msra.mxu0 %v9138_v41  ;;  %v9668_v41 = vpack.c.bf16 %v1383_v31, %v1375_v17  ;;  %v1444_v17 = vld [vmem:[#allocation4 + $0x28e0] sm:$0xff]  ;;  %v1438_v31 = vld [vmem:[#allocation4 + $0x28b0] sm:$0xff] }
 0x3d1   :  { %9651 = vmatpush1.bf16.msra.mxu1 %v9650_v33  ;;  %9141 = vmatprep.subr.bf16.mxu0 %v9140_v42  ;;  %v1382_v33 = vld [vmem:[#allocation4 + $0x26f0] sm:$0xff]  ;;  %v1389_v42 = vld [vmem:[#allocation4 + $0x2728] sm:$0xff] }
 0x3d2   :  { %9653 = vmatprep.subr.bf16.mxu1 %v9652_v47  ;;  %v9158_v47 = vpack.c.bf16 %v1380_v38, %v1372_v27  ;;  %v9670_v48 = vpack.c.bf16 %v1382_v33, %v1374_v40  ;;  %v9160_v49 = vpack.c.bf16 %v1397_v43, %v1389_v42  ;;  %v1461_v27 = vld [vmem:[#allocation4 + $0x2968] sm:$0xff]  ;;  %v11139_v38 = vld [vmem:[%s12141_s0 + $0x40] sm:$0xff]  ;;  %v9174_v33 = vpack.c.bf16 %v1444_v17, %v1436_v28 }
 0x3d3   :  { %v1455_v40 = vld [vmem:[#allocation4 + $0x2938] sm:$0xff]  ;;  %v1510_v28 = vld [vmem:[#allocation4 + $0x2af0] sm:$0xff]  ;;  %v1517_v17 = vld [vmem:[#allocation4 + $0x2b28] sm:$0xff] }
 0x3d4   :  { %9143 = vmatpush1.bf16.msra.mxu0 %v9142_v0  ;;  %v9672_v0 = vpack.c.bf16 %v1399_v46, %v1391_v45  ;;  %v1452_v45 = vld [vmem:[#allocation4 + $0x2920] sm:$0xff] }
 0x3d5   :  { %9655 = vmatpush1.bf16.msra.mxu1 %v9654_v54  ;;  %9145 = vmatprep.subr.bf16.mxu0 %v9144_v55  ;;  %v1398_v54 = vld [vmem:[#allocation4 + $0x2770] sm:$0xff]  ;;  %v1405_v55 = vld [vmem:[#allocation4 + $0x27a8] sm:$0xff]  ;;  %v1460_v46 = vld [vmem:[#allocation4 + $0x2960] sm:$0xff] }
 0x3d6   :  { %9657 = vmatprep.subr.bf16.mxu1 %v9656_v59  ;;  %v9162_v59 = vpack.c.bf16 %v1396_v52, %v1388_v51  ;;  %v9674_v60 = vpack.c.bf16 %v1398_v54, %v1390_v53  ;;  %v9164_v61 = vpack.c.bf16 %v1413_v56, %v1405_v55  ;;  %v1469_v51 = vld [vmem:[#allocation4 + $0x29a8] sm:$0xff]  ;;  %v1479_v54 = vld [vmem:[#allocation4 + $0x29f8] sm:$0xff]  ;;  %v9178_v55 = vpack.c.bf16 %v1460_v46, %v1452_v45 }
 0x3d7   :  { %v1477_v52 = vld [vmem:[#allocation4 + $0x29e8] sm:$0xff] }
 0x3d8   :  { %9147 = vmatpush1.bf16.msra.mxu0 %v9146_v3  ;;  %v9676_v3 = vpack.c.bf16 %v1415_v58, %v1407_v57  ;;  %v11140_v53 = vld [vmem:[%s12141_s0 + $0x58] sm:$0xff]  ;;  %v9180_v57 = vpack.c.bf16 %v1477_v52, %v1469_v51  ;;  %v1468_v58 = vld [vmem:[#allocation4 + $0x29a0] sm:$0xff] }
 0x3d9   :  { %9659 = vmatpush1.bf16.msra.mxu1 %v9658_v4  ;;  %9149 = vmatprep.subr.bf16.mxu0 %v9148_v5  ;;  %v1414_v4 = vld [vmem:[#allocation4 + $0x27f0] sm:$0xff]  ;;  %v1421_v5 = vld [vmem:[#allocation4 + $0x2828] sm:$0xff] }
 0x3da   :  { %9661 = vmatprep.subr.bf16.mxu1 %v9660_v9  ;;  %v9166_v9 = vpack.c.bf16 %v1412_v1, %v1404_v63  ;;  %v9678_v10 = vpack.c.bf16 %v1414_v4, %v1406_v2  ;;  %v9168_v11 = vpack.c.bf16 %v1429_v6, %v1421_v5  ;;  %v1478_v63 = vld [vmem:[#allocation4 + $0x29f0] sm:$0xff]  ;;  %v1485_v1 = vld [vmem:[#allocation4 + $0x2a28] sm:$0xff]  ;;  %v1495_v4 = vld [vmem:[#allocation4 + $0x2a78] sm:$0xff] }
 0x3db   :  { %v1493_v2 = vld [vmem:[#allocation4 + $0x2a68] sm:$0xff] }
 0x3dc   :  { %9151 = vmatpush1.bf16.msra.mxu0 %v9150_v16  ;;  %v9680_v16 = vpack.c.bf16 %v1431_v8, %v1423_v7  ;;  %v9184_v7 = vpack.c.bf16 %v1493_v2, %v1485_v1  ;;  %v1484_v8 = vld [vmem:[#allocation4 + $0x2a20] sm:$0xff]  ;;  %v1533_v45 = vld [vmem:[#allocation4 + $0x2ba8] sm:$0xff] }
 0x3dd   :  { %9663 = vmatpush1.bf16.msra.mxu1 %v9662_v18  ;;  %9153 = vmatprep.subr.bf16.mxu0 %v9152_v19  ;;  %v1430_v18 = vld [vmem:[#allocation4 + $0x2870] sm:$0xff]  ;;  %v1437_v19 = vld [vmem:[#allocation4 + $0x28a8] sm:$0xff]  ;;  %v1548_v2 = vld [vmem:[#allocation4 + $0x2c20] sm:$0xff] }
 0x3de   :  { %9665 = vmatprep.subr.bf16.mxu1 %v9664_v24  ;;  %v9170_v24 = vpack.c.bf16 %v1428_v14, %v1420_v13  ;;  %v9682_v25 = vpack.c.bf16 %v1430_v18, %v1422_v15  ;;  %v9172_v26 = vpack.c.bf16 %v1445_v20, %v1437_v19  ;;  %v1494_v13 = vld [vmem:[#allocation4 + $0x2a70] sm:$0xff]  ;;  %v1501_v14 = vld [vmem:[#allocation4 + $0x2aa8] sm:$0xff]  ;;  %v1511_v18 = vld [vmem:[#allocation4 + $0x2af8] sm:$0xff] }
 0x3df   :  { %v1509_v15 = vld [vmem:[#allocation4 + $0x2ae8] sm:$0xff] }
 0x3e0   :  { %9155 = vmatpush1.bf16.msra.mxu0 %v9154_v32  ;;  %v9684_v32 = vpack.c.bf16 %v1447_v23, %v1439_v21  ;;  %v9188_v21 = vpack.c.bf16 %v1509_v15, %v1501_v14  ;;  %v1500_v23 = vld [vmem:[#allocation4 + $0x2aa0] sm:$0xff]  ;;  %v1541_v46 = vld [vmem:[#allocation4 + $0x2be8] sm:$0xff] }
 0x3e1   :  { %9667 = vmatpush1.bf16.msra.mxu1 %v9666_v34  ;;  %9157 = vmatprep.subr.bf16.mxu0 %v9156_v35  ;;  %v1446_v34 = vld [vmem:[#allocation4 + $0x28f0] sm:$0xff]  ;;  %v1453_v35 = vld [vmem:[#allocation4 + $0x2928] sm:$0xff]  ;;  %v9196_v52 = vpack.c.bf16 %v1541_v46, %v1533_v45  ;;  %v1564_v15 = vld [vmem:[#allocation4 + $0x2ca0] sm:$0xff] }
 0x3e2   :  { %9669 = vmatprep.subr.bf16.mxu1 %v9668_v41  ;;  %v1463_v41 = vld [vmem:[#allocation4 + $0x2978] sm:$0xff]  ;;  %v9686_v42 = vpack.c.bf16 %v1446_v34, %v1438_v31  ;;  %v9176_v43 = vpack.c.bf16 %v1461_v27, %v1453_v35  ;;  %v1525_v31 = vld [vmem:[#allocation4 + $0x2b68] sm:$0xff]  ;;  %v1596_v46 = vld [vmem:[#allocation4 + $0x2da0] sm:$0xff] }
 0x3e3   :  { %v1527_v34 = vld [vmem:[#allocation4 + $0x2b78] sm:$0xff] }
 0x3e4   :  { %9159 = vmatpush1.bf16.msra.mxu0 %v9158_v47  ;;  %v1454_v47 = vld [vmem:[#allocation4 + $0x2930] sm:$0xff] }
 0x3e5   :  { %9671 = vmatpush1.bf16.msra.mxu1 %v9670_v48  ;;  %9161 = vmatprep.subr.bf16.mxu0 %v9160_v49  ;;  %v9688_v48 = vpack.c.bf16 %v1463_v41, %v1455_v40  ;;  %v1462_v49 = vld [vmem:[#allocation4 + $0x2970] sm:$0xff]  ;;  %v1516_v40 = vld [vmem:[#allocation4 + $0x2b20] sm:$0xff] }
 0x3e6   :  { %9673 = vmatprep.subr.bf16.mxu1 %v9672_v0  ;;  %v1471_v0 = vld [vmem:[#allocation4 + $0x29b8] sm:$0xff]  ;;  %v9690_v56 = vpack.c.bf16 %v1462_v49, %v1454_v47  ;;  %v1524_v41 = vld [vmem:[#allocation4 + $0x2b60] sm:$0xff] }
 0x3e7   :  { %v1535_v47 = vld [vmem:[#allocation4 + $0x2bb8] sm:$0xff]  ;;  %v9194_v49 = vpack.c.bf16 %v1524_v41, %v1516_v40  ;;  %v1605_v40 = vld [vmem:[#allocation4 + $0x2de8] sm:$0xff] }
 0x3e8   :  { %9163 = vmatpush1.bf16.msra.mxu0 %v9162_v59  ;;  %v1476_v59 = vld [vmem:[#allocation4 + $0x29e0] sm:$0xff]  ;;  %v1599_v41 = vld [vmem:[#allocation4 + $0x2db8] sm:$0xff] }
 0x3e9   :  { %9675 = vmatpush1.bf16.msra.mxu1 %v9674_v60  ;;  %9165 = vmatprep.subr.bf16.mxu0 %v9164_v61  ;;  %v1470_v60 = vld [vmem:[#allocation4 + $0x29b0] sm:$0xff]  ;;  %v9692_v61 = vpack.c.bf16 %v1479_v54, %v1471_v0  ;;  %v9182_v5 = vpack.c.bf16 %v1476_v59, %v1468_v58  ;;  %v1540_v0 = vld [vmem:[#allocation4 + $0x2be0] sm:$0xff]  ;;  %v1557_v58 = vld [vmem:[#allocation4 + $0x2c68] sm:$0xff] }
 0x3ea   :  { %9677 = vmatprep.subr.bf16.mxu1 %v9676_v3  ;;  %v1487_v3 = vld [vmem:[#allocation4 + $0x2a38] sm:$0xff]  ;;  %v9694_v6 = vpack.c.bf16 %v1478_v63, %v1470_v60  ;;  %v1534_v54 = vld [vmem:[#allocation4 + $0x2bb0] sm:$0xff] }
 0x3eb   :  { %v1551_v59 = vld [vmem:[#allocation4 + $0x2c38] sm:$0xff] }
 0x3ec   :  { %9167 = vmatpush1.bf16.msra.mxu0 %v9166_v9  ;;  %v1492_v9 = vld [vmem:[#allocation4 + $0x2a60] sm:$0xff]  ;;  %v1559_v60 = vld [vmem:[#allocation4 + $0x2c78] sm:$0xff] }
 0x3ed   :  { %9679 = vmatpush1.bf16.msra.mxu1 %v9678_v10  ;;  %9169 = vmatprep.subr.bf16.mxu0 %v9168_v11  ;;  %v1486_v10 = vld [vmem:[#allocation4 + $0x2a30] sm:$0xff]  ;;  %v9696_v11 = vpack.c.bf16 %v1495_v4, %v1487_v3  ;;  %v9186_v19 = vpack.c.bf16 %v1492_v9, %v1484_v8  ;;  %v1556_v3 = vld [vmem:[#allocation4 + $0x2c60] sm:$0xff]  ;;  %v1573_v8 = vld [vmem:[#allocation4 + $0x2ce8] sm:$0xff] }
 0x3ee   :  { %9681 = vmatprep.subr.bf16.mxu1 %v9680_v16  ;;  %v1503_v16 = vld [vmem:[#allocation4 + $0x2ab8] sm:$0xff]  ;;  %v9698_v20 = vpack.c.bf16 %v1494_v13, %v1486_v10  ;;  %v1550_v4 = vld [vmem:[#allocation4 + $0x2c30] sm:$0xff] }
 0x3ef   :  { %4102 = vmatmul.mubr.f32.vlgmr.msra.gmra.mrb[6].mxu0 %v11139_v38  ;;  %v1567_v9 = vld [vmem:[#allocation4 + $0x2cb8] sm:$0xff] }
 0x3f0   :  { %9171 = vmatpush1.bf16.msra.mxu0 %v9170_v24  ;;  %4670 = vmatmul.mubr.f32.vlgmr.msra.gmra.mrb[6].mxu1 %v11139_v38  ;;  %v1508_v24 = vld [vmem:[#allocation4 + $0x2ae0] sm:$0xff]  ;;  %v9192_v38 = vpack.c.bf16 %v1525_v31, %v1517_v17  ;;  %v1575_v10 = vld [vmem:[#allocation4 + $0x2cf8] sm:$0xff] }
 0x3f1   :  { %9683 = vmatpush1.bf16.msra.mxu1 %v9682_v25  ;;  %9173 = vmatprep.subr.bf16.mxu0 %v9172_v26  ;;  %v1502_v25 = vld [vmem:[#allocation4 + $0x2ab0] sm:$0xff]  ;;  %v9700_v26 = vpack.c.bf16 %v1511_v18, %v1503_v16  ;;  %v9190_v35 = vpack.c.bf16 %v1508_v24, %v1500_v23  ;;  %v1572_v16 = vld [vmem:[#allocation4 + $0x2ce0] sm:$0xff]  ;;  %v1589_v23 = vld [vmem:[#allocation4 + $0x2d68] sm:$0xff] }
 0x3f2   :  { %9685 = vmatprep.subr.bf16.mxu1 %v9684_v32  ;;  %4172 = vmatprep.mubr.f32.mxu0 %v11140_v53  ;;  %v1519_v32 = vld [vmem:[#allocation4 + $0x2b38] sm:$0xff]  ;;  %v9702_v27 = vpack.c.bf16 %v1510_v28, %v1502_v25  ;;  %v1566_v18 = vld [vmem:[#allocation4 + $0x2cb0] sm:$0xff]  ;;  %v1580_v31 = vld [vmem:[#allocation4 + $0x2d20] sm:$0xff] }
 0x3f3   :  { %4740 = vmatprep.mubr.f32.mxu1 %v11140_v53  ;;  %v1532_v53 = vld [vmem:[#allocation4 + $0x2ba0] sm:$0xff]  ;;  %v1583_v24 = vld [vmem:[#allocation4 + $0x2d38] sm:$0xff] }
 0x3f4   :  { %9175 = vmatpush1.bf16.msra.mxu0 %v9174_v33  ;;  %v1518_v33 = vld [vmem:[#allocation4 + $0x2b30] sm:$0xff]  ;;  %v1591_v25 = vld [vmem:[#allocation4 + $0x2d78] sm:$0xff] }
 0x3f5   :  { %9687 = vmatpush1.bf16.msra.mxu1 %v9686_v42  ;;  %9177 = vmatprep.subr.bf16.mxu0 %v9176_v43  ;;  %v9704_v42 = vpack.c.bf16 %v1527_v34, %v1519_v32  ;;  %v1526_v43 = vld [vmem:[#allocation4 + $0x2b70] sm:$0xff]  ;;  %v1588_v32 = vld [vmem:[#allocation4 + $0x2d60] sm:$0xff] }
 0x3f6   :  { %9689 = vmatprep.subr.bf16.mxu1 %v9688_v48  ;;  %v1543_v48 = vld [vmem:[#allocation4 + $0x2bf8] sm:$0xff]  ;;  %v9706_v51 = vpack.c.bf16 %v1526_v43, %v1518_v33  ;;  %v1582_v34 = vld [vmem:[#allocation4 + $0x2d30] sm:$0xff] }
 0x3f7   :  { %v1607_v33 = vld [vmem:[#allocation4 + $0x2df8] sm:$0xff] }
 0x3f8   :  { %9179 = vmatpush1.bf16.msra.mxu0 %v9178_v55  ;;  %v9708_v55 = vpack.c.bf16 %v1543_v48, %v1535_v47  ;;  %v1604_v47 = vld [vmem:[#allocation4 + $0x2de0] sm:$0xff]  ;;  %v1598_v48 = vld [vmem:[#allocation4 + $0x2db0] sm:$0xff] }
 0x3f9   :  { %9691 = vmatpush1.bf16.msra.mxu1 %v9690_v56  ;;  %9181 = vmatprep.subr.bf16.mxu0 %v9180_v57  ;;  %v1542_v56 = vld [vmem:[#allocation4 + $0x2bf0] sm:$0xff]  ;;  %v1549_v57 = vld [vmem:[#allocation4 + $0x2c28] sm:$0xff] }
 0x3fa   :  { %9693 = vmatprep.subr.bf16.mxu1 %v9692_v61  ;;  %v9198_v61 = vpack.c.bf16 %v1540_v0, %v1532_v53  ;;  %v9710_v63 = vpack.c.bf16 %v1542_v56, %v1534_v54  ;;  %v9200_v1 = vpack.c.bf16 %v1557_v58, %v1549_v57  ;;  %v1621_v53 = vld [vmem:[#allocation4 + $0x2e68] sm:$0xff]  ;;  %v1615_v0 = vld [vmem:[#allocation4 + $0x2e38] sm:$0xff]  ;;  %v1612_v58 = vld [vmem:[#allocation4 + $0x2e20] sm:$0xff] }
 0x3fb   :  { %v1623_v54 = vld [vmem:[#allocation4 + $0x2e78] sm:$0xff] }
 0x3fc   :  { %9183 = vmatpush1.bf16.msra.mxu0 %v9182_v5  ;;  %v9712_v5 = vpack.c.bf16 %v1559_v60, %v1551_v59  ;;  %v1620_v59 = vld [vmem:[#allocation4 + $0x2e60] sm:$0xff]  ;;  %v1614_v60 = vld [vmem:[#allocation4 + $0x2e30] sm:$0xff] }
 0x3fd   :  { %9695 = vmatpush1.bf16.msra.mxu1 %v9694_v6  ;;  %9185 = vmatprep.subr.bf16.mxu0 %v9184_v7  ;;  %v1558_v6 = vld [vmem:[#allocation4 + $0x2c70] sm:$0xff]  ;;  %v1565_v7 = vld [vmem:[#allocation4 + $0x2ca8] sm:$0xff] }
 0x3fe   :  { %9697 = vmatprep.subr.bf16.mxu1 %v9696_v11  ;;  %v9202_v11 = vpack.c.bf16 %v1556_v3, %v1548_v2  ;;  %v9714_v13 = vpack.c.bf16 %v1558_v6, %v1550_v4  ;;  %v9204_v14 = vpack.c.bf16 %v1573_v8, %v1565_v7  ;;  %v1637_v2 = vld [vmem:[#allocation4 + $0x2ee8] sm:$0xff]  ;;  %v1631_v3 = vld [vmem:[#allocation4 + $0x2eb8] sm:$0xff]  ;;  %v1628_v8 = vld [vmem:[#allocation4 + $0x2ea0] sm:$0xff] }
 0x3ff   :  { %v1639_v4 = vld [vmem:[#allocation4 + $0x2ef8] sm:$0xff] }
 0x400   :  { %9187 = vmatpush1.bf16.msra.mxu0 %v9186_v19  ;;  %v9716_v19 = vpack.c.bf16 %v1575_v10, %v1567_v9  ;;  %v1636_v9 = vld [vmem:[#allocation4 + $0x2ee0] sm:$0xff]  ;;  %v1630_v10 = vld [vmem:[#allocation4 + $0x2eb0] sm:$0xff] }
 0x401   :  { %9699 = vmatpush1.bf16.msra.mxu1 %v9698_v20  ;;  %9189 = vmatprep.subr.bf16.mxu0 %v9188_v21  ;;  %v1574_v20 = vld [vmem:[#allocation4 + $0x2cf0] sm:$0xff]  ;;  %v1581_v21 = vld [vmem:[#allocation4 + $0x2d28] sm:$0xff] }
 0x402   :  { %9701 = vmatprep.subr.bf16.mxu1 %v9700_v26  ;;  %v9206_v26 = vpack.c.bf16 %v1572_v16, %v1564_v15  ;;  %v9718_v28 = vpack.c.bf16 %v1574_v20, %v1566_v18  ;;  %v9208_v17 = vpack.c.bf16 %v1589_v23, %v1581_v21  ;;  %v1653_v15 = vld [vmem:[#allocation4 + $0x2f68] sm:$0xff]  ;;  %v1647_v16 = vld [vmem:[#allocation4 + $0x2f38] sm:$0xff]  ;;  %v1644_v23 = vld [vmem:[#allocation4 + $0x2f20] sm:$0xff] }
 0x403   :  { %v1655_v18 = vld [vmem:[#allocation4 + $0x2f78] sm:$0xff] }
 0x404   :  { %9191 = vmatpush1.bf16.msra.mxu0 %v9190_v35  ;;  %v9720_v35 = vpack.c.bf16 %v1591_v25, %v1583_v24  ;;  %v1652_v24 = vld [vmem:[#allocation4 + $0x2f60] sm:$0xff]  ;;  %v1646_v25 = vld [vmem:[#allocation4 + $0x2f30] sm:$0xff] }
 0x405   :  { %9703 = vmatpush1.bf16.msra.mxu1 %v9702_v27  ;;  %9193 = vmatprep.subr.bf16.mxu0 %v9192_v38  ;;  %v1590_v27 = vld [vmem:[#allocation4 + $0x2d70] sm:$0xff]  ;;  %v1597_v38 = vld [vmem:[#allocation4 + $0x2da8] sm:$0xff] }
 0x406   :  { %9705 = vmatprep.subr.bf16.mxu1 %v9704_v42  ;;  %v9210_v42 = vpack.c.bf16 %v1588_v32, %v1580_v31  ;;  %v9722_v43 = vpack.c.bf16 %v1590_v27, %v1582_v34  ;;  %v9212_v45 = vpack.c.bf16 %v1605_v40, %v1597_v38  ;;  %v1669_v31 = vld [vmem:[#allocation4 + $0x2fe8] sm:$0xff]  ;;  %v1663_v32 = vld [vmem:[#allocation4 + $0x2fb8] sm:$0xff]  ;;  %v1660_v40 = vld [vmem:[#allocation4 + $0x2fa0] sm:$0xff] }
 0x407   :  { %v1671_v34 = vld [vmem:[#allocation4 + $0x2ff8] sm:$0xff] }
 0x408   :  { %9195 = vmatpush1.bf16.msra.mxu0 %v9194_v49  ;;  %v9724_v49 = vpack.c.bf16 %v1607_v33, %v1599_v41  ;;  %v1668_v41 = vld [vmem:[#allocation4 + $0x2fe0] sm:$0xff]  ;;  %v1662_v33 = vld [vmem:[#allocation4 + $0x2fb0] sm:$0xff] }
 0x409   :  { %9707 = vmatpush1.bf16.msra.mxu1 %v9706_v51  ;;  %9197 = vmatprep.subr.bf16.mxu0 %v9196_v52  ;;  %v1606_v51 = vld [vmem:[#allocation4 + $0x2df0] sm:$0xff]  ;;  %v1613_v52 = vld [vmem:[#allocation4 + $0x2e28] sm:$0xff] }
 0x40a   :  { %9709 = vmatprep.subr.bf16.mxu1 %v9708_v55  ;;  %v9214_v55 = vpack.c.bf16 %v1604_v47, %v1596_v46  ;;  %v9726_v56 = vpack.c.bf16 %v1606_v51, %v1598_v48  ;;  %v9216_v57 = vpack.c.bf16 %v1621_v53, %v1613_v52  ;;  %v1685_v46 = vld [vmem:[#allocation4 + $0x3068] sm:$0xff]  ;;  %v1679_v47 = vld [vmem:[#allocation4 + $0x3038] sm:$0xff]  ;;  %v1676_v53 = vld [vmem:[#allocation4 + $0x3020] sm:$0xff] }
 0x40b   :  { %v1687_v48 = vld [vmem:[#allocation4 + $0x3078] sm:$0xff] }
 0x40c   :  { %9199 = vmatpush1.bf16.msra.mxu0 %v9198_v61  ;;  %v9728_v61 = vpack.c.bf16 %v1623_v54, %v1615_v0  ;;  %v1684_v0 = vld [vmem:[#allocation4 + $0x3060] sm:$0xff]  ;;  %v1678_v54 = vld [vmem:[#allocation4 + $0x3030] sm:$0xff] }
 0x40d   :  { %9711 = vmatpush1.bf16.msra.mxu1 %v9710_v63  ;;  %9201 = vmatprep.subr.bf16.mxu0 %v9200_v1  ;;  %v1622_v63 = vld [vmem:[#allocation4 + $0x2e70] sm:$0xff]  ;;  %v1629_v1 = vld [vmem:[#allocation4 + $0x2ea8] sm:$0xff] }
 0x40e   :  { %9713 = vmatprep.subr.bf16.mxu1 %v9712_v5  ;;  %v9218_v5 = vpack.c.bf16 %v1620_v59, %v1612_v58  ;;  %v9730_v6 = vpack.c.bf16 %v1622_v63, %v1614_v60  ;;  %v9220_v7 = vpack.c.bf16 %v1637_v2, %v1629_v1  ;;  %v1701_v58 = vld [vmem:[#allocation4 + $0x30e8] sm:$0xff]  ;;  %v1695_v59 = vld [vmem:[#allocation4 + $0x30b8] sm:$0xff]  ;;  %v1692_v2 = vld [vmem:[#allocation4 + $0x30a0] sm:$0xff] }
 0x40f   :  { %v1703_v60 = vld [vmem:[#allocation4 + $0x30f8] sm:$0xff] }
 0x410   :  { %9203 = vmatpush1.bf16.msra.mxu0 %v9202_v11  ;;  %v9732_v11 = vpack.c.bf16 %v1639_v4, %v1631_v3  ;;  %v1700_v3 = vld [vmem:[#allocation4 + $0x30e0] sm:$0xff]  ;;  %v1694_v4 = vld [vmem:[#allocation4 + $0x30b0] sm:$0xff] }
 0x411   :  { %9715 = vmatpush1.bf16.msra.mxu1 %v9714_v13  ;;  %9205 = vmatprep.subr.bf16.mxu0 %v9204_v14  ;;  %v1638_v13 = vld [vmem:[#allocation4 + $0x2ef0] sm:$0xff]  ;;  %v1645_v14 = vld [vmem:[#allocation4 + $0x2f28] sm:$0xff] }
 0x412   :  { %9717 = vmatprep.subr.bf16.mxu1 %v9716_v19  ;;  %v9222_v19 = vpack.c.bf16 %v1636_v9, %v1628_v8  ;;  %v9734_v20 = vpack.c.bf16 %v1638_v13, %v1630_v10  ;;  %v9224_v21 = vpack.c.bf16 %v1653_v15, %v1645_v14  ;;  %v1717_v8 = vld [vmem:[#allocation4 + $0x3168] sm:$0xff]  ;;  %v1711_v10 = vld [vmem:[#allocation4 + $0x3138] sm:$0xff]  ;;  %v9238_v13 = vpack.c.bf16 %v1700_v3, %v1692_v2  ;;  %v1766_v2 = vld [vmem:[#allocation4 + $0x32f0] sm:$0xff] }
 0x413   :  { %v11141_v9 = vld [vmem:[%s12141_s0 + $0x50] sm:$0xff] }
 0x414   :  { %9207 = vmatpush1.bf16.msra.mxu0 %v9206_v26  ;;  %v9736_v26 = vpack.c.bf16 %v1655_v18, %v1647_v16  ;;  %v1708_v16 = vld [vmem:[#allocation4 + $0x3120] sm:$0xff]  ;;  %v1773_v3 = vld [vmem:[#allocation4 + $0x3328] sm:$0xff] }
 0x415   :  { %9719 = vmatpush1.bf16.msra.mxu1 %v9718_v28  ;;  %9209 = vmatprep.subr.bf16.mxu0 %v9208_v17  ;;  %v1654_v28 = vld [vmem:[#allocation4 + $0x2f70] sm:$0xff]  ;;  %v1661_v17 = vld [vmem:[#allocation4 + $0x2fa8] sm:$0xff]  ;;  %v1716_v18 = vld [vmem:[#allocation4 + $0x3160] sm:$0xff] }
 0x416   :  { %9721 = vmatprep.subr.bf16.mxu1 %v9720_v35  ;;  %v9226_v35 = vpack.c.bf16 %v1652_v24, %v1644_v23  ;;  %v9738_v27 = vpack.c.bf16 %v1654_v28, %v1646_v25  ;;  %v9228_v38 = vpack.c.bf16 %v1669_v31, %v1661_v17  ;;  %v1725_v23 = vld [vmem:[#allocation4 + $0x31a8] sm:$0xff]  ;;  %v11142_v25 = vld [vmem:[%s12141_s0 + $0x68] sm:$0xff]  ;;  %v9242_v17 = vpack.c.bf16 %v1716_v18, %v1708_v16 }
 0x417   :  { %v1733_v24 = vld [vmem:[#allocation4 + $0x31e8] sm:$0xff]  ;;  %v1735_v28 = vld [vmem:[#allocation4 + $0x31f8] sm:$0xff] }
 0x418   :  { %9211 = vmatpush1.bf16.msra.mxu0 %v9210_v42  ;;  %v9740_v42 = vpack.c.bf16 %v1671_v34, %v1663_v32  ;;  %v9244_v32 = vpack.c.bf16 %v1733_v24, %v1725_v23  ;;  %v1724_v34 = vld [vmem:[#allocation4 + $0x31a0] sm:$0xff]  ;;  %v1789_v16 = vld [vmem:[#allocation4 + $0x33a8] sm:$0xff] }
 0x419   :  { %9723 = vmatpush1.bf16.msra.mxu1 %v9722_v43  ;;  %9213 = vmatprep.subr.bf16.mxu0 %v9212_v45  ;;  %v1670_v43 = vld [vmem:[#allocation4 + $0x2ff0] sm:$0xff]  ;;  %v1677_v45 = vld [vmem:[#allocation4 + $0x3028] sm:$0xff] }
 0x41a   :  { %9725 = vmatprep.subr.bf16.mxu1 %v9724_v49  ;;  %v9230_v49 = vpack.c.bf16 %v1668_v41, %v1660_v40  ;;  %v9742_v51 = vpack.c.bf16 %v1670_v43, %v1662_v33  ;;  %v9232_v52 = vpack.c.bf16 %v1685_v46, %v1677_v45  ;;  %v1734_v40 = vld [vmem:[#allocation4 + $0x31f0] sm:$0xff]  ;;  %v1741_v41 = vld [vmem:[#allocation4 + $0x3228] sm:$0xff]  ;;  %v1751_v43 = vld [vmem:[#allocation4 + $0x3278] sm:$0xff] }
 0x41b   :  { %v1749_v33 = vld [vmem:[#allocation4 + $0x3268] sm:$0xff] }
 0x41c   :  { %9215 = vmatpush1.bf16.msra.mxu0 %v9214_v55  ;;  %v9744_v55 = vpack.c.bf16 %v1687_v48, %v1679_v47  ;;  %v9248_v47 = vpack.c.bf16 %v1749_v33, %v1741_v41  ;;  %v1740_v48 = vld [vmem:[#allocation4 + $0x3220] sm:$0xff]  ;;  %v1797_v18 = vld [vmem:[#allocation4 + $0x33e8] sm:$0xff] }
 0x41d   :  { %9727 = vmatpush1.bf16.msra.mxu1 %v9726_v56  ;;  %9217 = vmatprep.subr.bf16.mxu0 %v9216_v57  ;;  %v1686_v56 = vld [vmem:[#allocation4 + $0x3070] sm:$0xff]  ;;  %v1693_v57 = vld [vmem:[#allocation4 + $0x30a8] sm:$0xff]  ;;  %v9260_v24 = vpack.c.bf16 %v1797_v18, %v1789_v16  ;;  %v1804_v33 = vld [vmem:[#allocation4 + $0x3420] sm:$0xff] }
 0x41e   :  { %9729 = vmatprep.subr.bf16.mxu1 %v9728_v61  ;;  %v9234_v61 = vpack.c.bf16 %v1684_v0, %v1676_v53  ;;  %v9746_v63 = vpack.c.bf16 %v1686_v56, %v1678_v54  ;;  %v9236_v1 = vpack.c.bf16 %v1701_v58, %v1693_v57  ;;  %v1750_v53 = vld [vmem:[#allocation4 + $0x3270] sm:$0xff]  ;;  %v1757_v0 = vld [vmem:[#allocation4 + $0x32a8] sm:$0xff]  ;;  %v1767_v56 = vld [vmem:[#allocation4 + $0x32f8] sm:$0xff] }
 0x41f   :  { %v1765_v54 = vld [vmem:[#allocation4 + $0x32e8] sm:$0xff]  ;;  %v1852_v18 = vld [vmem:[#allocation4 + $0x35a0] sm:$0xff] }
 0x420   :  { %9219 = vmatpush1.bf16.msra.mxu0 %v9218_v5  ;;  %v9748_v5 = vpack.c.bf16 %v1703_v60, %v1695_v59  ;;  %v9252_v59 = vpack.c.bf16 %v1765_v54, %v1757_v0  ;;  %v1756_v60 = vld [vmem:[#allocation4 + $0x32a0] sm:$0xff] }
 0x421   :  { %9731 = vmatpush1.bf16.msra.mxu1 %v9730_v6  ;;  %9221 = vmatprep.subr.bf16.mxu0 %v9220_v7  ;;  %v1702_v6 = vld [vmem:[#allocation4 + $0x30f0] sm:$0xff]  ;;  %v1709_v7 = vld [vmem:[#allocation4 + $0x3128] sm:$0xff]  ;;  %v1820_v54 = vld [vmem:[#allocation4 + $0x34a0] sm:$0xff] }
 0x422   :  { %9733 = vmatprep.subr.bf16.mxu1 %v9732_v11  ;;  %v1719_v11 = vld [vmem:[#allocation4 + $0x3178] sm:$0xff]  ;;  %v9750_v14 = vpack.c.bf16 %v1702_v6, %v1694_v4  ;;  %v9240_v15 = vpack.c.bf16 %v1717_v8, %v1709_v7  ;;  %v1781_v4 = vld [vmem:[#allocation4 + $0x3368] sm:$0xff] }
 0x423   :  { %v1783_v6 = vld [vmem:[#allocation4 + $0x3378] sm:$0xff] }
 0x424   :  { %9223 = vmatpush1.bf16.msra.mxu0 %v9222_v19  ;;  %v1710_v19 = vld [vmem:[#allocation4 + $0x3130] sm:$0xff] }
 0x425   :  { %9735 = vmatpush1.bf16.msra.mxu1 %v9734_v20  ;;  %9225 = vmatprep.subr.bf16.mxu0 %v9224_v21  ;;  %v9752_v20 = vpack.c.bf16 %v1719_v11, %v1711_v10  ;;  %v1718_v21 = vld [vmem:[#allocation4 + $0x3170] sm:$0xff]  ;;  %v1772_v10 = vld [vmem:[#allocation4 + $0x3320] sm:$0xff] }
 0x426   :  { %9737 = vmatprep.subr.bf16.mxu1 %v9736_v26  ;;  %v1727_v26 = vld [vmem:[#allocation4 + $0x31b8] sm:$0xff]  ;;  %v9754_v31 = vpack.c.bf16 %v1718_v21, %v1710_v19  ;;  %v1780_v11 = vld [vmem:[#allocation4 + $0x3360] sm:$0xff] }
 0x427   :  { %v1791_v19 = vld [vmem:[#allocation4 + $0x33b8] sm:$0xff]  ;;  %v9258_v21 = vpack.c.bf16 %v1780_v11, %v1772_v10  ;;  %v1861_v10 = vld [vmem:[#allocation4 + $0x35e8] sm:$0xff] }
 0x428   :  { %9227 = vmatpush1.bf16.msra.mxu0 %v9226_v35  ;;  %v1732_v35 = vld [vmem:[#allocation4 + $0x31e0] sm:$0xff]  ;;  %v1855_v11 = vld [vmem:[#allocation4 + $0x35b8] sm:$0xff] }
 0x429   :  { %9739 = vmatpush1.bf16.msra.mxu1 %v9738_v27  ;;  %9229 = vmatprep.subr.bf16.mxu0 %v9228_v38  ;;  %v1726_v27 = vld [vmem:[#allocation4 + $0x31b0] sm:$0xff]  ;;  %v9756_v38 = vpack.c.bf16 %v1735_v28, %v1727_v26  ;;  %v9246_v45 = vpack.c.bf16 %v1732_v35, %v1724_v34  ;;  %v1796_v26 = vld [vmem:[#allocation4 + $0x33e0] sm:$0xff]  ;;  %v1813_v34 = vld [vmem:[#allocation4 + $0x3468] sm:$0xff] }
 0x42a   :  { %9741 = vmatprep.subr.bf16.mxu1 %v9740_v42  ;;  %v1743_v42 = vld [vmem:[#allocation4 + $0x3238] sm:$0xff]  ;;  %v9758_v46 = vpack.c.bf16 %v1734_v40, %v1726_v27  ;;  %v1790_v28 = vld [vmem:[#allocation4 + $0x33b0] sm:$0xff] }
 0x42b   :  { %v1807_v35 = vld [vmem:[#allocation4 + $0x3438] sm:$0xff] }
 0x42c   :  { %9231 = vmatpush1.bf16.msra.mxu0 %v9230_v49  ;;  %v1748_v49 = vld [vmem:[#allocation4 + $0x3260] sm:$0xff]  ;;  %v1815_v27 = vld [vmem:[#allocation4 + $0x3478] sm:$0xff] }
 0x42d   :  { %9743 = vmatpush1.bf16.msra.mxu1 %v9742_v51  ;;  %9233 = vmatprep.subr.bf16.mxu0 %v9232_v52  ;;  %v1742_v51 = vld [vmem:[#allocation4 + $0x3230] sm:$0xff]  ;;  %v9760_v52 = vpack.c.bf16 %v1751_v43, %v1743_v42  ;;  %v9250_v57 = vpack.c.bf16 %v1748_v49, %v1740_v48  ;;  %v1812_v42 = vld [vmem:[#allocation4 + $0x3460] sm:$0xff]  ;;  %v1829_v48 = vld [vmem:[#allocation4 + $0x34e8] sm:$0xff] }
 0x42e   :  { %9745 = vmatprep.subr.bf16.mxu1 %v9744_v55  ;;  %v1759_v55 = vld [vmem:[#allocation4 + $0x32b8] sm:$0xff]  ;;  %v9762_v58 = vpack.c.bf16 %v1750_v53, %v1742_v51  ;;  %v1806_v43 = vld [vmem:[#allocation4 + $0x3430] sm:$0xff] }
 0x42f   :  { %4173 = vmatmul.mubr.f32.vlgmr.msra.gmra.mrb[6].mxu0 %v11141_v9  ;;  %v1823_v49 = vld [vmem:[#allocation4 + $0x34b8] sm:$0xff] }
 0x430   :  { %9235 = vmatpush1.bf16.msra.mxu0 %v9234_v61  ;;  %4741 = vmatmul.mubr.f32.vlgmr.msra.gmra.mrb[6].mxu1 %v11141_v9  ;;  %v1764_v61 = vld [vmem:[#allocation4 + $0x32e0] sm:$0xff]  ;;  %v9256_v9 = vpack.c.bf16 %v1781_v4, %v1773_v3  ;;  %v1831_v51 = vld [vmem:[#allocation4 + $0x34f8] sm:$0xff] }
 0x431   :  { %9747 = vmatpush1.bf16.msra.mxu1 %v9746_v63  ;;  %9237 = vmatprep.subr.bf16.mxu0 %v9236_v1  ;;  %v1758_v63 = vld [vmem:[#allocation4 + $0x32b0] sm:$0xff]  ;;  %v9764_v1 = vpack.c.bf16 %v1767_v56, %v1759_v55  ;;  %v9254_v7 = vpack.c.bf16 %v1764_v61, %v1756_v60  ;;  %v1828_v55 = vld [vmem:[#allocation4 + $0x34e0] sm:$0xff]  ;;  %v1845_v60 = vld [vmem:[#allocation4 + $0x3568] sm:$0xff] }
 0x432   :  { %9749 = vmatprep.subr.bf16.mxu1 %v9748_v5  ;;  %4243 = vmatprep.mubr.f32.mxu0 %v11142_v25  ;;  %v1775_v5 = vld [vmem:[#allocation4 + $0x3338] sm:$0xff]  ;;  %v9766_v8 = vpack.c.bf16 %v1766_v2, %v1758_v63  ;;  %v1822_v56 = vld [vmem:[#allocation4 + $0x34b0] sm:$0xff]  ;;  %v1836_v4 = vld [vmem:[#allocation4 + $0x3520] sm:$0xff] }
 0x433   :  { %4811 = vmatprep.mubr.f32.mxu1 %v11142_v25  ;;  %v1788_v25 = vld [vmem:[#allocation4 + $0x33a0] sm:$0xff]  ;;  %v1839_v61 = vld [vmem:[#allocation4 + $0x3538] sm:$0xff] }
 0x434   :  { %9239 = vmatpush1.bf16.msra.mxu0 %v9238_v13  ;;  %v1774_v13 = vld [vmem:[#allocation4 + $0x3330] sm:$0xff]  ;;  %v1847_v63 = vld [vmem:[#allocation4 + $0x3578] sm:$0xff] }
 0x435   :  { %9751 = vmatpush1.bf16.msra.mxu1 %v9750_v14  ;;  %9241 = vmatprep.subr.bf16.mxu0 %v9240_v15  ;;  %v9768_v14 = vpack.c.bf16 %v1783_v6, %v1775_v5  ;;  %v1782_v15 = vld [vmem:[#allocation4 + $0x3370] sm:$0xff]  ;;  %v1844_v5 = vld [vmem:[#allocation4 + $0x3560] sm:$0xff] }
 0x436   :  { %9753 = vmatprep.subr.bf16.mxu1 %v9752_v20  ;;  %v1799_v20 = vld [vmem:[#allocation4 + $0x33f8] sm:$0xff]  ;;  %v9770_v23 = vpack.c.bf16 %v1782_v15, %v1774_v13  ;;  %v1838_v6 = vld [vmem:[#allocation4 + $0x3530] sm:$0xff] }
 0x437   :  { %v1863_v13 = vld [vmem:[#allocation4 + $0x35f8] sm:$0xff] }
 0x438   :  { %9243 = vmatpush1.bf16.msra.mxu0 %v9242_v17  ;;  %v9772_v17 = vpack.c.bf16 %v1799_v20, %v1791_v19  ;;  %v1860_v19 = vld [vmem:[#allocation4 + $0x35e0] sm:$0xff]  ;;  %v1854_v20 = vld [vmem:[#allocation4 + $0x35b0] sm:$0xff] }
 0x439   :  { %9755 = vmatpush1.bf16.msra.mxu1 %v9754_v31  ;;  %9245 = vmatprep.subr.bf16.mxu0 %v9244_v32  ;;  %v1798_v31 = vld [vmem:[#allocation4 + $0x33f0] sm:$0xff]  ;;  %v1805_v32 = vld [vmem:[#allocation4 + $0x3428] sm:$0xff] }
 0x43a   :  { %9757 = vmatprep.subr.bf16.mxu1 %v9756_v38  ;;  %v9262_v38 = vpack.c.bf16 %v1796_v26, %v1788_v25  ;;  %v9774_v40 = vpack.c.bf16 %v1798_v31, %v1790_v28  ;;  %v9264_v41 = vpack.c.bf16 %v1813_v34, %v1805_v32  ;;  %v1877_v25 = vld [vmem:[#allocation4 + $0x3668] sm:$0xff]  ;;  %v1871_v26 = vld [vmem:[#allocation4 + $0x3638] sm:$0xff]  ;;  %v1868_v34 = vld [vmem:[#allocation4 + $0x3620] sm:$0xff] }
 0x43b   :  { %v1879_v28 = vld [vmem:[#allocation4 + $0x3678] sm:$0xff] }
 0x43c   :  { %9247 = vmatpush1.bf16.msra.mxu0 %v9246_v45  ;;  %v9776_v45 = vpack.c.bf16 %v1815_v27, %v1807_v35  ;;  %v1876_v35 = vld [vmem:[#allocation4 + $0x3660] sm:$0xff]  ;;  %v1870_v27 = vld [vmem:[#allocation4 + $0x3630] sm:$0xff] }
 0x43d   :  { %9759 = vmatpush1.bf16.msra.mxu1 %v9758_v46  ;;  %9249 = vmatprep.subr.bf16.mxu0 %v9248_v47  ;;  %v1814_v46 = vld [vmem:[#allocation4 + $0x3470] sm:$0xff]  ;;  %v1821_v47 = vld [vmem:[#allocation4 + $0x34a8] sm:$0xff] }
 0x43e   :  { %9761 = vmatprep.subr.bf16.mxu1 %v9760_v52  ;;  %v9266_v52 = vpack.c.bf16 %v1812_v42, %v1804_v33  ;;  %v9778_v53 = vpack.c.bf16 %v1814_v46, %v1806_v43  ;;  %v9268_v0 = vpack.c.bf16 %v1829_v48, %v1821_v47  ;;  %v1893_v33 = vld [vmem:[#allocation4 + $0x36e8] sm:$0xff]  ;;  %v1887_v42 = vld [vmem:[#allocation4 + $0x36b8] sm:$0xff]  ;;  %v1884_v48 = vld [vmem:[#allocation4 + $0x36a0] sm:$0xff] }
 0x43f   :  { %v1895_v43 = vld [vmem:[#allocation4 + $0x36f8] sm:$0xff] }
 0x440   :  { %9251 = vmatpush1.bf16.msra.mxu0 %v9250_v57  ;;  %v9780_v57 = vpack.c.bf16 %v1831_v51, %v1823_v49  ;;  %v1892_v49 = vld [vmem:[#allocation4 + $0x36e0] sm:$0xff]  ;;  %v1886_v51 = vld [vmem:[#allocation4 + $0x36b0] sm:$0xff] }
 0x441   :  { %9763 = vmatpush1.bf16.msra.mxu1 %v9762_v58  ;;  %9253 = vmatprep.subr.bf16.mxu0 %v9252_v59  ;;  %v1830_v58 = vld [vmem:[#allocation4 + $0x34f0] sm:$0xff]  ;;  %v1837_v59 = vld [vmem:[#allocation4 + $0x3528] sm:$0xff] }
 0x442   :  { %9765 = vmatprep.subr.bf16.mxu1 %v9764_v1  ;;  %v9270_v1 = vpack.c.bf16 %v1828_v55, %v1820_v54  ;;  %v9782_v2 = vpack.c.bf16 %v1830_v58, %v1822_v56  ;;  %v9272_v3 = vpack.c.bf16 %v1845_v60, %v1837_v59  ;;  %v1909_v54 = vld [vmem:[#allocation4 + $0x3768] sm:$0xff]  ;;  %v1903_v55 = vld [vmem:[#allocation4 + $0x3738] sm:$0xff]  ;;  %v1900_v60 = vld [vmem:[#allocation4 + $0x3720] sm:$0xff] }
 0x443   :  { %v1911_v56 = vld [vmem:[#allocation4 + $0x3778] sm:$0xff] }
 0x444   :  { %9255 = vmatpush1.bf16.msra.mxu0 %v9254_v7  ;;  %v9784_v7 = vpack.c.bf16 %v1847_v63, %v1839_v61  ;;  %v1908_v61 = vld [vmem:[#allocation4 + $0x3760] sm:$0xff]  ;;  %v1902_v63 = vld [vmem:[#allocation4 + $0x3730] sm:$0xff] }
 0x445   :  { %9767 = vmatpush1.bf16.msra.mxu1 %v9766_v8  ;;  %9257 = vmatprep.subr.bf16.mxu0 %v9256_v9  ;;  %v1846_v8 = vld [vmem:[#allocation4 + $0x3570] sm:$0xff]  ;;  %v1853_v9 = vld [vmem:[#allocation4 + $0x35a8] sm:$0xff] }
 0x446   :  { %9769 = vmatprep.subr.bf16.mxu1 %v9768_v14  ;;  %v9274_v14 = vpack.c.bf16 %v1844_v5, %v1836_v4  ;;  %v9786_v15 = vpack.c.bf16 %v1846_v8, %v1838_v6  ;;  %v9276_v16 = vpack.c.bf16 %v1861_v10, %v1853_v9  ;;  %v1925_v4 = vld [vmem:[#allocation4 + $0x37e8] sm:$0xff]  ;;  %v1919_v5 = vld [vmem:[#allocation4 + $0x37b8] sm:$0xff]  ;;  %v1916_v10 = vld [vmem:[#allocation4 + $0x37a0] sm:$0xff] }
 0x447   :  { %v1927_v6 = vld [vmem:[#allocation4 + $0x37f8] sm:$0xff] }
 0x448   :  { %9259 = vmatpush1.bf16.msra.mxu0 %v9258_v21  ;;  %v9788_v21 = vpack.c.bf16 %v1863_v13, %v1855_v11  ;;  %v1924_v11 = vld [vmem:[#allocation4 + $0x37e0] sm:$0xff]  ;;  %v1918_v13 = vld [vmem:[#allocation4 + $0x37b0] sm:$0xff] }
 0x449   :  { %9771 = vmatpush1.bf16.msra.mxu1 %v9770_v23  ;;  %9261 = vmatprep.subr.bf16.mxu0 %v9260_v24  ;;  %v1862_v23 = vld [vmem:[#allocation4 + $0x35f0] sm:$0xff]  ;;  %v1869_v24 = vld [vmem:[#allocation4 + $0x3628] sm:$0xff] }
 0x44a   :  { %9773 = vmatprep.subr.bf16.mxu1 %v9772_v17  ;;  %v9278_v17 = vpack.c.bf16 %v1860_v19, %v1852_v18  ;;  %v9790_v31 = vpack.c.bf16 %v1862_v23, %v1854_v20  ;;  %v9280_v32 = vpack.c.bf16 %v1877_v25, %v1869_v24  ;;  %v1941_v18 = vld [vmem:[#allocation4 + $0x3868] sm:$0xff]  ;;  %v1935_v19 = vld [vmem:[#allocation4 + $0x3838] sm:$0xff]  ;;  %v1932_v25 = vld [vmem:[#allocation4 + $0x3820] sm:$0xff] }
 0x44b   :  { %v1943_v20 = vld [vmem:[#allocation4 + $0x3878] sm:$0xff] }
 0x44c   :  { %9263 = vmatpush1.bf16.msra.mxu0 %v9262_v38  ;;  %v9792_v38 = vpack.c.bf16 %v1879_v28, %v1871_v26  ;;  %v1940_v26 = vld [vmem:[#allocation4 + $0x3860] sm:$0xff]  ;;  %v1934_v28 = vld [vmem:[#allocation4 + $0x3830] sm:$0xff] }
 0x44d   :  { %9775 = vmatpush1.bf16.msra.mxu1 %v9774_v40  ;;  %9265 = vmatprep.subr.bf16.mxu0 %v9264_v41  ;;  %v1878_v40 = vld [vmem:[#allocation4 + $0x3670] sm:$0xff]  ;;  %v1885_v41 = vld [vmem:[#allocation4 + $0x36a8] sm:$0xff] }
 0x44e   :  { %9777 = vmatprep.subr.bf16.mxu1 %v9776_v45  ;;  %v9282_v45 = vpack.c.bf16 %v1876_v35, %v1868_v34  ;;  %v9794_v46 = vpack.c.bf16 %v1878_v40, %v1870_v27  ;;  %v9284_v47 = vpack.c.bf16 %v1893_v33, %v1885_v41  ;;  %v1957_v34 = vld [vmem:[#allocation4 + $0x38e8] sm:$0xff]  ;;  %v1951_v35 = vld [vmem:[#allocation4 + $0x38b8] sm:$0xff]  ;;  %v1948_v33 = vld [vmem:[#allocation4 + $0x38a0] sm:$0xff] }
 0x44f   :  { %v1959_v27 = vld [vmem:[#allocation4 + $0x38f8] sm:$0xff] }
 0x450   :  { %9267 = vmatpush1.bf16.msra.mxu0 %v9266_v52  ;;  %v9796_v52 = vpack.c.bf16 %v1895_v43, %v1887_v42  ;;  %v1956_v42 = vld [vmem:[#allocation4 + $0x38e0] sm:$0xff]  ;;  %v1950_v43 = vld [vmem:[#allocation4 + $0x38b0] sm:$0xff] }
 0x451   :  { %9779 = vmatpush1.bf16.msra.mxu1 %v9778_v53  ;;  %9269 = vmatprep.subr.bf16.mxu0 %v9268_v0  ;;  %v1894_v53 = vld [vmem:[#allocation4 + $0x36f0] sm:$0xff]  ;;  %v1901_v0 = vld [vmem:[#allocation4 + $0x3728] sm:$0xff] }
 0x452   :  { %9781 = vmatprep.subr.bf16.mxu1 %v9780_v57  ;;  %v9286_v57 = vpack.c.bf16 %v1892_v49, %v1884_v48  ;;  %v9798_v58 = vpack.c.bf16 %v1894_v53, %v1886_v51  ;;  %v9288_v59 = vpack.c.bf16 %v1909_v54, %v1901_v0  ;;  %v1973_v48 = vld [vmem:[#allocation4 + $0x3968] sm:$0xff]  ;;  %v11143_v49 = vld [vmem:[%s12141_s0 + $0x60] sm:$0xff]  ;;  %v9302_v53 = vpack.c.bf16 %v1956_v42, %v1948_v33 }
 0x453   :  { %v1967_v51 = vld [vmem:[#allocation4 + $0x3938] sm:$0xff]  ;;  %v2022_v33 = vld [vmem:[#allocation4 + $0x3af0] sm:$0xff]  ;;  %v2029_v42 = vld [vmem:[#allocation4 + $0x3b28] sm:$0xff] }
 0x454   :  { %9271 = vmatpush1.bf16.msra.mxu0 %v9270_v1  ;;  %v9800_v1 = vpack.c.bf16 %v1911_v56, %v1903_v55  ;;  %v1964_v55 = vld [vmem:[#allocation4 + $0x3920] sm:$0xff] }
 0x455   :  { %9783 = vmatpush1.bf16.msra.mxu1 %v9782_v2  ;;  %9273 = vmatprep.subr.bf16.mxu0 %v9272_v3  ;;  %v1910_v2 = vld [vmem:[#allocation4 + $0x3770] sm:$0xff]  ;;  %v1917_v3 = vld [vmem:[#allocation4 + $0x37a8] sm:$0xff]  ;;  %v1972_v56 = vld [vmem:[#allocation4 + $0x3960] sm:$0xff] }
 0x456   :  { %9785 = vmatprep.subr.bf16.mxu1 %v9784_v7  ;;  %v9290_v7 = vpack.c.bf16 %v1908_v61, %v1900_v60  ;;  %v9802_v8 = vpack.c.bf16 %v1910_v2, %v1902_v63  ;;  %v9292_v9 = vpack.c.bf16 %v1925_v4, %v1917_v3  ;;  %v1981_v60 = vld [vmem:[#allocation4 + $0x39a8] sm:$0xff]  ;;  %v1991_v2 = vld [vmem:[#allocation4 + $0x39f8] sm:$0xff]  ;;  %v9306_v3 = vpack.c.bf16 %v1972_v56, %v1964_v55 }
 0x457   :  { %v1989_v61 = vld [vmem:[#allocation4 + $0x39e8] sm:$0xff] }
 0x458   :  { %9275 = vmatpush1.bf16.msra.mxu0 %v9274_v14  ;;  %v9804_v14 = vpack.c.bf16 %v1927_v6, %v1919_v5  ;;  %v11144_v63 = vld [vmem:[%s12141_s0 + $0x78] sm:$0xff]  ;;  %v9308_v5 = vpack.c.bf16 %v1989_v61, %v1981_v60  ;;  %v1980_v6 = vld [vmem:[#allocation4 + $0x39a0] sm:$0xff] }
 0x459   :  { %9787 = vmatpush1.bf16.msra.mxu1 %v9786_v15  ;;  %9277 = vmatprep.subr.bf16.mxu0 %v9276_v16  ;;  %v1926_v15 = vld [vmem:[#allocation4 + $0x37f0] sm:$0xff]  ;;  %v1933_v16 = vld [vmem:[#allocation4 + $0x3828] sm:$0xff] }
 0x45a   :  { %9789 = vmatprep.subr.bf16.mxu1 %v9788_v21  ;;  %v9294_v21 = vpack.c.bf16 %v1924_v11, %v1916_v10  ;;  %v9806_v23 = vpack.c.bf16 %v1926_v15, %v1918_v13  ;;  %v9296_v24 = vpack.c.bf16 %v1941_v18, %v1933_v16  ;;  %v1990_v10 = vld [vmem:[#allocation4 + $0x39f0] sm:$0xff]  ;;  %v1997_v11 = vld [vmem:[#allocation4 + $0x3a28] sm:$0xff]  ;;  %v2007_v15 = vld [vmem:[#allocation4 + $0x3a78] sm:$0xff] }
 0x45b   :  { %v2005_v13 = vld [vmem:[#allocation4 + $0x3a68] sm:$0xff] }
 0x45c   :  { %9279 = vmatpush1.bf16.msra.mxu0 %v9278_v17  ;;  %v9808_v17 = vpack.c.bf16 %v1943_v20, %v1935_v19  ;;  %v9312_v19 = vpack.c.bf16 %v2005_v13, %v1997_v11  ;;  %v1996_v20 = vld [vmem:[#allocation4 + $0x3a20] sm:$0xff]  ;;  %v2045_v55 = vld [vmem:[#allocation4 + $0x3ba8] sm:$0xff] }
 0x45d   :  { %9791 = vmatpush1.bf16.msra.mxu1 %v9790_v31  ;;  %9281 = vmatprep.subr.bf16.mxu0 %v9280_v32  ;;  %v1942_v31 = vld [vmem:[#allocation4 + $0x3870] sm:$0xff]  ;;  %v1949_v32 = vld [vmem:[#allocation4 + $0x38a8] sm:$0xff]  ;;  %v2060_v13 = vld [vmem:[#allocation4 + $0x3c20] sm:$0xff] }
 0x45e   :  { %9793 = vmatprep.subr.bf16.mxu1 %v9792_v38  ;;  %v9298_v38 = vpack.c.bf16 %v1940_v26, %v1932_v25  ;;  %v9810_v40 = vpack.c.bf16 %v1942_v31, %v1934_v28  ;;  %v9300_v41 = vpack.c.bf16 %v1957_v34, %v1949_v32  ;;  %v2006_v25 = vld [vmem:[#allocation4 + $0x3a70] sm:$0xff]  ;;  %v2013_v26 = vld [vmem:[#allocation4 + $0x3aa8] sm:$0xff]  ;;  %v2023_v31 = vld [vmem:[#allocation4 + $0x3af8] sm:$0xff] }
 0x45f   :  { %v2021_v28 = vld [vmem:[#allocation4 + $0x3ae8] sm:$0xff] }
 0x460   :  { %9283 = vmatpush1.bf16.msra.mxu0 %v9282_v45  ;;  %v9812_v45 = vpack.c.bf16 %v1959_v27, %v1951_v35  ;;  %v9316_v35 = vpack.c.bf16 %v2021_v28, %v2013_v26  ;;  %v2012_v27 = vld [vmem:[#allocation4 + $0x3aa0] sm:$0xff]  ;;  %v2053_v56 = vld [vmem:[#allocation4 + $0x3be8] sm:$0xff] }
 0x461   :  { %9795 = vmatpush1.bf16.msra.mxu1 %v9794_v46  ;;  %9285 = vmatprep.subr.bf16.mxu0 %v9284_v47  ;;  %v1958_v46 = vld [vmem:[#allocation4 + $0x38f0] sm:$0xff]  ;;  %v1965_v47 = vld [vmem:[#allocation4 + $0x3928] sm:$0xff]  ;;  %v9324_v61 = vpack.c.bf16 %v2053_v56, %v2045_v55  ;;  %v2076_v28 = vld [vmem:[#allocation4 + $0x3ca0] sm:$0xff] }
 0x462   :  { %9797 = vmatprep.subr.bf16.mxu1 %v9796_v52  ;;  %v1975_v52 = vld [vmem:[#allocation4 + $0x3978] sm:$0xff]  ;;  %v9814_v0 = vpack.c.bf16 %v1958_v46, %v1950_v43  ;;  %v9304_v54 = vpack.c.bf16 %v1973_v48, %v1965_v47  ;;  %v2037_v43 = vld [vmem:[#allocation4 + $0x3b68] sm:$0xff]  ;;  %v2108_v56 = vld [vmem:[#allocation4 + $0x3da0] sm:$0xff] }
 0x463   :  { %v2039_v46 = vld [vmem:[#allocation4 + $0x3b78] sm:$0xff] }
 0x464   :  { %9287 = vmatpush1.bf16.msra.mxu0 %v9286_v57  ;;  %v1966_v57 = vld [vmem:[#allocation4 + $0x3930] sm:$0xff] }
 0x465   :  { %9799 = vmatpush1.bf16.msra.mxu1 %v9798_v58  ;;  %9289 = vmatprep.subr.bf16.mxu0 %v9288_v59  ;;  %v9816_v58 = vpack.c.bf16 %v1975_v52, %v1967_v51  ;;  %v1974_v59 = vld [vmem:[#allocation4 + $0x3970] sm:$0xff]  ;;  %v2028_v51 = vld [vmem:[#allocation4 + $0x3b20] sm:$0xff] }
 0x466   :  { %9801 = vmatprep.subr.bf16.mxu1 %v9800_v1  ;;  %v1983_v1 = vld [vmem:[#allocation4 + $0x39b8] sm:$0xff]  ;;  %v9818_v4 = vpack.c.bf16 %v1974_v59, %v1966_v57  ;;  %v2036_v52 = vld [vmem:[#allocation4 + $0x3b60] sm:$0xff] }
 0x467   :  { %v2047_v57 = vld [vmem:[#allocation4 + $0x3bb8] sm:$0xff]  ;;  %v9322_v59 = vpack.c.bf16 %v2036_v52, %v2028_v51  ;;  %v2117_v51 = vld [vmem:[#allocation4 + $0x3de8] sm:$0xff] }
 0x468   :  { %9291 = vmatpush1.bf16.msra.mxu0 %v9290_v7  ;;  %v1988_v7 = vld [vmem:[#allocation4 + $0x39e0] sm:$0xff]  ;;  %v2111_v52 = vld [vmem:[#allocation4 + $0x3db8] sm:$0xff] }
 0x469   :  { %9803 = vmatpush1.bf16.msra.mxu1 %v9802_v8  ;;  %9293 = vmatprep.subr.bf16.mxu0 %v9292_v9  ;;  %v1982_v8 = vld [vmem:[#allocation4 + $0x39b0] sm:$0xff]  ;;  %v9820_v9 = vpack.c.bf16 %v1991_v2, %v1983_v1  ;;  %v9310_v16 = vpack.c.bf16 %v1988_v7, %v1980_v6  ;;  %v2052_v1 = vld [vmem:[#allocation4 + $0x3be0] sm:$0xff]  ;;  %v2069_v6 = vld [vmem:[#allocation4 + $0x3c68] sm:$0xff] }
 0x46a   :  { %9805 = vmatprep.subr.bf16.mxu1 %v9804_v14  ;;  %v1999_v14 = vld [vmem:[#allocation4 + $0x3a38] sm:$0xff]  ;;  %v9822_v18 = vpack.c.bf16 %v1990_v10, %v1982_v8  ;;  %v2046_v2 = vld [vmem:[#allocation4 + $0x3bb0] sm:$0xff] }
 0x46b   :  { %v2063_v7 = vld [vmem:[#allocation4 + $0x3c38] sm:$0xff] }
 0x46c   :  { %9295 = vmatpush1.bf16.msra.mxu0 %v9294_v21  ;;  %v2004_v21 = vld [vmem:[#allocation4 + $0x3a60] sm:$0xff]  ;;  %v2071_v8 = vld [vmem:[#allocation4 + $0x3c78] sm:$0xff] }
 0x46d   :  { %9807 = vmatpush1.bf16.msra.mxu1 %v9806_v23  ;;  %9297 = vmatprep.subr.bf16.mxu0 %v9296_v24  ;;  %v1998_v23 = vld [vmem:[#allocation4 + $0x3a30] sm:$0xff]  ;;  %v9824_v24 = vpack.c.bf16 %v2007_v15, %v1999_v14  ;;  %v9314_v32 = vpack.c.bf16 %v2004_v21, %v1996_v20  ;;  %v2068_v14 = vld [vmem:[#allocation4 + $0x3c60] sm:$0xff]  ;;  %v2085_v20 = vld [vmem:[#allocation4 + $0x3ce8] sm:$0xff] }
 0x46e   :  { %9809 = vmatprep.subr.bf16.mxu1 %v9808_v17  ;;  %v2015_v17 = vld [vmem:[#allocation4 + $0x3ab8] sm:$0xff]  ;;  %v9826_v34 = vpack.c.bf16 %v2006_v25, %v1998_v23  ;;  %v2062_v15 = vld [vmem:[#allocation4 + $0x3c30] sm:$0xff] }
 0x46f   :  { %4244 = vmatmul.mubr.f32.vlgmr.msra.gmra.mrb[6].mxu0 %v11143_v49  ;;  %v2079_v21 = vld [vmem:[#allocation4 + $0x3cb8] sm:$0xff] }
 0x470   :  { %9299 = vmatpush1.bf16.msra.mxu0 %v9298_v38  ;;  %4812 = vmatmul.mubr.f32.vlgmr.msra.gmra.mrb[6].mxu1 %v11143_v49  ;;  %v2020_v38 = vld [vmem:[#allocation4 + $0x3ae0] sm:$0xff]  ;;  %v9320_v49 = vpack.c.bf16 %v2037_v43, %v2029_v42  ;;  %v2087_v23 = vld [vmem:[#allocation4 + $0x3cf8] sm:$0xff] }
 0x471   :  { %9811 = vmatpush1.bf16.msra.mxu1 %v9810_v40  ;;  %9301 = vmatprep.subr.bf16.mxu0 %v9300_v41  ;;  %v2014_v40 = vld [vmem:[#allocation4 + $0x3ab0] sm:$0xff]  ;;  %v9828_v41 = vpack.c.bf16 %v2023_v31, %v2015_v17  ;;  %v9318_v47 = vpack.c.bf16 %v2020_v38, %v2012_v27  ;;  %v2084_v17 = vld [vmem:[#allocation4 + $0x3ce0] sm:$0xff]  ;;  %v2101_v27 = vld [vmem:[#allocation4 + $0x3d68] sm:$0xff] }
 0x472   :  { %9813 = vmatprep.subr.bf16.mxu1 %v9812_v45  ;;  %4314 = vmatprep.mubr.f32.mxu0 %v11144_v63  ;;  %v2031_v45 = vld [vmem:[#allocation4 + $0x3b38] sm:$0xff]  ;;  %v9830_v48 = vpack.c.bf16 %v2022_v33, %v2014_v40  ;;  %v2078_v31 = vld [vmem:[#allocation4 + $0x3cb0] sm:$0xff]  ;;  %v2092_v43 = vld [vmem:[#allocation4 + $0x3d20] sm:$0xff] }
 0x473   :  { %4882 = vmatprep.mubr.f32.mxu1 %v11144_v63  ;;  %v2044_v63 = vld [vmem:[#allocation4 + $0x3ba0] sm:$0xff]  ;;  %v2095_v38 = vld [vmem:[#allocation4 + $0x3d38] sm:$0xff] }
 0x474   :  { %9303 = vmatpush1.bf16.msra.mxu0 %v9302_v53  ;;  %v2030_v53 = vld [vmem:[#allocation4 + $0x3b30] sm:$0xff]  ;;  %v2103_v40 = vld [vmem:[#allocation4 + $0x3d78] sm:$0xff] }
 0x475   :  { %9815 = vmatpush1.bf16.msra.mxu1 %v9814_v0  ;;  %9305 = vmatprep.subr.bf16.mxu0 %v9304_v54  ;;  %v9832_v0 = vpack.c.bf16 %v2039_v46, %v2031_v45  ;;  %v2038_v54 = vld [vmem:[#allocation4 + $0x3b70] sm:$0xff]  ;;  %v2100_v45 = vld [vmem:[#allocation4 + $0x3d60] sm:$0xff] }
 0x476   :  { %9817 = vmatprep.subr.bf16.mxu1 %v9816_v58  ;;  %v2055_v58 = vld [vmem:[#allocation4 + $0x3bf8] sm:$0xff]  ;;  %v9834_v60 = vpack.c.bf16 %v2038_v54, %v2030_v53  ;;  %v2094_v46 = vld [vmem:[#allocation4 + $0x3d30] sm:$0xff] }
 0x477   :  { %v2119_v53 = vld [vmem:[#allocation4 + $0x3df8] sm:$0xff] }
 0x478   :  { %9307 = vmatpush1.bf16.msra.mxu0 %v9306_v3  ;;  %v9836_v3 = vpack.c.bf16 %v2055_v58, %v2047_v57  ;;  %v2116_v57 = vld [vmem:[#allocation4 + $0x3de0] sm:$0xff]  ;;  %v2110_v58 = vld [vmem:[#allocation4 + $0x3db0] sm:$0xff] }
 0x479   :  { %9819 = vmatpush1.bf16.msra.mxu1 %v9818_v4  ;;  %9309 = vmatprep.subr.bf16.mxu0 %v9308_v5  ;;  %v2054_v4 = vld [vmem:[#allocation4 + $0x3bf0] sm:$0xff]  ;;  %v2061_v5 = vld [vmem:[#allocation4 + $0x3c28] sm:$0xff] }
 0x47a   :  { %9821 = vmatprep.subr.bf16.mxu1 %v9820_v9  ;;  %v9326_v9 = vpack.c.bf16 %v2052_v1, %v2044_v63  ;;  %v9838_v10 = vpack.c.bf16 %v2054_v4, %v2046_v2  ;;  %v9328_v11 = vpack.c.bf16 %v2069_v6, %v2061_v5  ;;  %v2133_v63 = vld [vmem:[#allocation4 + $0x3e68] sm:$0xff]  ;;  %v2127_v1 = vld [vmem:[#allocation4 + $0x3e38] sm:$0xff]  ;;  %v2124_v6 = vld [vmem:[#allocation4 + $0x3e20] sm:$0xff] }
 0x47b   :  { %v2135_v2 = vld [vmem:[#allocation4 + $0x3e78] sm:$0xff] }
 0x47c   :  { %9311 = vmatpush1.bf16.msra.mxu0 %v9310_v16  ;;  %v9840_v16 = vpack.c.bf16 %v2071_v8, %v2063_v7  ;;  %v2132_v7 = vld [vmem:[#allocation4 + $0x3e60] sm:$0xff]  ;;  %v2126_v8 = vld [vmem:[#allocation4 + $0x3e30] sm:$0xff] }
 0x47d   :  { %9823 = vmatpush1.bf16.msra.mxu1 %v9822_v18  ;;  %9313 = vmatprep.subr.bf16.mxu0 %v9312_v19  ;;  %v2070_v18 = vld [vmem:[#allocation4 + $0x3c70] sm:$0xff]  ;;  %v2077_v19 = vld [vmem:[#allocation4 + $0x3ca8] sm:$0xff] }
 0x47e   :  { %9825 = vmatprep.subr.bf16.mxu1 %v9824_v24  ;;  %v9330_v24 = vpack.c.bf16 %v2068_v14, %v2060_v13  ;;  %v9842_v25 = vpack.c.bf16 %v2070_v18, %v2062_v15  ;;  %v9332_v26 = vpack.c.bf16 %v2085_v20, %v2077_v19  ;;  %v2149_v13 = vld [vmem:[#allocation4 + $0x3ee8] sm:$0xff]  ;;  %v2143_v14 = vld [vmem:[#allocation4 + $0x3eb8] sm:$0xff]  ;;  %v2140_v20 = vld [vmem:[#allocation4 + $0x3ea0] sm:$0xff] }
 0x47f   :  { %v2151_v15 = vld [vmem:[#allocation4 + $0x3ef8] sm:$0xff] }
 0x480   :  { %9315 = vmatpush1.bf16.msra.mxu0 %v9314_v32  ;;  %v9844_v32 = vpack.c.bf16 %v2087_v23, %v2079_v21  ;;  %v2148_v21 = vld [vmem:[#allocation4 + $0x3ee0] sm:$0xff]  ;;  %v2142_v23 = vld [vmem:[#allocation4 + $0x3eb0] sm:$0xff] }
 0x481   :  { %9827 = vmatpush1.bf16.msra.mxu1 %v9826_v34  ;;  %9317 = vmatprep.subr.bf16.mxu0 %v9316_v35  ;;  %v2086_v34 = vld [vmem:[#allocation4 + $0x3cf0] sm:$0xff]  ;;  %v2093_v35 = vld [vmem:[#allocation4 + $0x3d28] sm:$0xff] }
 0x482   :  { %9829 = vmatprep.subr.bf16.mxu1 %v9828_v41  ;;  %v9334_v41 = vpack.c.bf16 %v2084_v17, %v2076_v28  ;;  %v9846_v33 = vpack.c.bf16 %v2086_v34, %v2078_v31  ;;  %v9336_v42 = vpack.c.bf16 %v2101_v27, %v2093_v35  ;;  %v2165_v28 = vld [vmem:[#allocation4 + $0x3f68] sm:$0xff]  ;;  %v2159_v17 = vld [vmem:[#allocation4 + $0x3f38] sm:$0xff]  ;;  %v2156_v27 = vld [vmem:[#allocation4 + $0x3f20] sm:$0xff] }
 0x483   :  { %v2167_v31 = vld [vmem:[#allocation4 + $0x3f78] sm:$0xff] }
 0x484   :  { %9319 = vmatpush1.bf16.msra.mxu0 %v9318_v47  ;;  %v9848_v47 = vpack.c.bf16 %v2103_v40, %v2095_v38  ;;  %v2164_v38 = vld [vmem:[#allocation4 + $0x3f60] sm:$0xff]  ;;  %v2158_v40 = vld [vmem:[#allocation4 + $0x3f30] sm:$0xff] }
 0x485   :  { %9831 = vmatpush1.bf16.msra.mxu1 %v9830_v48  ;;  %9321 = vmatprep.subr.bf16.mxu0 %v9320_v49  ;;  %v2102_v48 = vld [vmem:[#allocation4 + $0x3d70] sm:$0xff]  ;;  %v2109_v49 = vld [vmem:[#allocation4 + $0x3da8] sm:$0xff] }
 0x486   :  { %9833 = vmatprep.subr.bf16.mxu1 %v9832_v0  ;;  %v9338_v0 = vpack.c.bf16 %v2100_v45, %v2092_v43  ;;  %v9850_v54 = vpack.c.bf16 %v2102_v48, %v2094_v46  ;;  %v9340_v55 = vpack.c.bf16 %v2117_v51, %v2109_v49  ;;  %v2181_v43 = vld [vmem:[#allocation4 + $0x3fe8] sm:$0xff]  ;;  %v4897_v45 = vsub.s32 1, %v11572_v50  ;;  %v2175_v46 = vld [vmem:[#allocation4 + $0x3fb8] sm:$0xff]  ;;  %v11618_v48 = vld [vmem:[#allocation7] sm:$0xff] }
 0x487   :  { %v9354_v49 = vpack.c.bf16 %v2164_v38, %v2156_v27  ;;  %v4987_v27 = vld [vmem:[#allocation9 + $0x140] sm:$0xff]  ;;  %v4981_v38 = vld [vmem:[#allocation9 + $0x110] sm:$0xff] }
 0x488   :  { %9323 = vmatpush1.bf16.msra.mxu0 %v9322_v59  ;;  %v9852_v59 = vpack.c.bf16 %v2119_v53, %v2111_v52  ;;  %v2172_v53 = vld [vmem:[#allocation4 + $0x3fa0] sm:$0xff] }
 0x489   :  { %9835 = vmatpush1.bf16.msra.mxu1 %v9834_v60  ;;  %9325 = vmatprep.subr.bf16.mxu0 %v9324_v61  ;;  %v2118_v60 = vld [vmem:[#allocation4 + $0x3df0] sm:$0xff]  ;;  %v2125_v61 = vld [vmem:[#allocation4 + $0x3e28] sm:$0xff] }
 0x48a   :  { %9837 = vmatprep.subr.bf16.mxu1 %v9836_v3  ;;  %v9342_v3 = vpack.c.bf16 %v2116_v57, %v2108_v56  ;;  %v9854_v4 = vpack.c.bf16 %v2118_v60, %v2110_v58  ;;  %v9344_v5 = vpack.c.bf16 %v2133_v63, %v2125_v61  ;;  %v2182_v56 = vld [vmem:[#allocation4 + $0x3ff0] sm:$0xff]  ;;  %v4950_v60 = vld [vmem:[#allocation9 + $0x18] sm:$0xff] }
 0x48b   :  { %v4948_v57 = vld [vmem:[#allocation9 + $0x8] sm:$0xff]  ;;  %v4958_v61 = vld [vmem:[#allocation9 + $0x58] sm:$0xff] }
 0x48c   :  { %9327 = vmatpush1.bf16.msra.mxu0 %v9326_v9  ;;  %v9856_v9 = vpack.c.bf16 %v2135_v2, %v2127_v1  ;;  %v4956_v58 = vld [vmem:[#allocation9 + $0x48] sm:$0xff] }
 0x48d   :  { %9839 = vmatpush1.bf16.msra.mxu1 %v9838_v10  ;;  %9329 = vmatprep.subr.bf16.mxu0 %v9328_v11  ;;  %v2134_v10 = vld [vmem:[#allocation4 + $0x3e70] sm:$0xff]  ;;  %v2141_v11 = vld [vmem:[#allocation4 + $0x3ea8] sm:$0xff]  ;;  %v9872_v2 = vpack.c.bf16 %v4956_v58, %v4948_v57  ;;  %v5014_v58 = vld [vmem:[#allocation9 + $0x218] sm:$0xff] }
 0x48e   :  { %9841 = vmatprep.subr.bf16.mxu1 %v9840_v16  ;;  %v9346_v16 = vpack.c.bf16 %v2132_v7, %v2124_v6  ;;  %v9858_v18 = vpack.c.bf16 %v2134_v10, %v2126_v8  ;;  %v9348_v19 = vpack.c.bf16 %v2149_v13, %v2141_v11  ;;  %v4949_v6 = vld [vmem:[#allocation9 + $0x10] sm:$0xff]  ;;  %v4972_v10 = vld [vmem:[#allocation9 + $0xc8] sm:$0xff]  ;;  %v4966_v13 = vld [vmem:[#allocation9 + $0x98] sm:$0xff] }
 0x48f   :  { %v4957_v7 = vld [vmem:[#allocation9 + $0x50] sm:$0xff]  ;;  %v5020_v57 = vld [vmem:[#allocation9 + $0x248] sm:$0xff] }
 0x490   :  { %9331 = vmatpush1.bf16.msra.mxu0 %v9330_v24  ;;  %v9860_v24 = vpack.c.bf16 %v2151_v15, %v2143_v14  ;;  %v4974_v14 = vld [vmem:[#allocation9 + $0xd8] sm:$0xff]  ;;  %v10130_v15 = vpack.c.bf16 %v4957_v7, %v4949_v6  ;;  %v5028_v6 = vld [vmem:[#allocation9 + $0x288] sm:$0xff] }
 0x491   :  { %9843 = vmatpush1.bf16.msra.mxu1 %v9842_v25  ;;  %9333 = vmatprep.subr.bf16.mxu0 %v9332_v26  ;;  %v2150_v25 = vld [vmem:[#allocation4 + $0x3ef0] sm:$0xff]  ;;  %v2157_v26 = vld [vmem:[#allocation4 + $0x3f28] sm:$0xff] }
 0x492   :  { %9845 = vmatprep.subr.bf16.mxu1 %v9844_v32  ;;  %v9350_v32 = vpack.c.bf16 %v2148_v21, %v2140_v20  ;;  %v9862_v34 = vpack.c.bf16 %v2150_v25, %v2142_v23  ;;  %v9352_v35 = vpack.c.bf16 %v2165_v28, %v2157_v26  ;;  %v4973_v21 = vld [vmem:[#allocation9 + $0xd0] sm:$0xff]  ;;  %v4980_v23 = vld [vmem:[#allocation9 + $0x108] sm:$0xff]  ;;  %v10132_v26 = vpack.c.bf16 %v4974_v14, %v4966_v13  ;;  %v4982_v28 = vld [vmem:[#allocation9 + $0x118] sm:$0xff] }
 0x493   :  { %v5036_v7 = vld [vmem:[#allocation9 + $0x2c8] sm:$0xff]  ;;  %v5027_v14 = vld [vmem:[#allocation9 + $0x280] sm:$0xff] }
 0x494   :  { %9335 = vmatpush1.bf16.msra.mxu0 %v9334_v41  ;;  %v9864_v41 = vpack.c.bf16 %v2167_v31, %v2159_v17  ;;  %v4990_v17 = vld [vmem:[#allocation9 + $0x158] sm:$0xff]  ;;  %v9892_v13 = vpack.c.bf16 %v5036_v7, %v5028_v6 }
 0x495   :  { %9847 = vmatpush1.bf16.msra.mxu1 %v9846_v33  ;;  %9337 = vmatprep.subr.bf16.mxu0 %v9336_v42  ;;  %v2166_v33 = vld [vmem:[#allocation4 + $0x3f70] sm:$0xff]  ;;  %v2173_v42 = vld [vmem:[#allocation4 + $0x3fa8] sm:$0xff] }
 0x496   :  { %9849 = vmatprep.subr.bf16.mxu1 %v9848_v47  ;;  %v2183_v47 = vld [vmem:[#allocation4 + $0x3ff8] sm:$0xff]  ;;  %v9866_v51 = vpack.c.bf16 %v2166_v33, %v2158_v40  ;;  %v9356_v52 = vpack.c.bf16 %v2181_v43, %v2173_v42  ;;  %v10136_v40 = vpack.c.bf16 %v4990_v17, %v4982_v28  ;;  %v4996_v33 = vld [vmem:[#allocation9 + $0x188] sm:$0xff]  ;;  %v4998_v43 = vld [vmem:[#allocation9 + $0x198] sm:$0xff] }
 0x497   :  { %v5004_v42 = vld [vmem:[#allocation9 + $0x1c8] sm:$0xff]  ;;  %v5043_v17 = vld [vmem:[#allocation9 + $0x300] sm:$0xff] }
 0x498   :  { %9339 = vmatpush1.bf16.msra.mxu0 %v9338_v0  ;;  %v2180_v0 = vld [vmem:[#allocation4 + $0x3fe0] sm:$0xff] }
 0x499   :  { %9851 = vmatpush1.bf16.msra.mxu1 %v9850_v54  ;;  %9341 = vmatprep.subr.bf16.mxu0 %v9340_v55  ;;  %v2174_v54 = vld [vmem:[#allocation4 + $0x3fb0] sm:$0xff]  ;;  %v9868_v55 = vpack.c.bf16 %v2183_v47, %v2175_v46  ;;  %v9358_v63 = vpack.c.bf16 %v2180_v0, %v2172_v53  ;;  %v5006_v46 = vld [vmem:[#allocation9 + $0x1d8] sm:$0xff]  ;;  %v5003_v53 = vld [vmem:[#allocation9 + $0x1c0] sm:$0xff] }
 0x49a   :  { %9853 = vmatprep.subr.bf16.mxu1 %v9852_v59  ;;  %v4898_v59 = vrot.slane %v11618_v48, %v4897_v45  ;;  %v9870_v1 = vpack.c.bf16 %v2182_v56, %v2174_v54  ;;  %v4997_v0 = vld [vmem:[#allocation9 + $0x190] sm:$0xff]  ;;  %v10140_v54 = vpack.c.bf16 %v5006_v46, %v4998_v43  ;;  %v5012_v56 = vld [vmem:[#allocation9 + $0x208] sm:$0xff]  ;;  %v5059_v46 = vld [vmem:[#allocation9 + $0x380] sm:$0xff] }
 0x49c   :  { %9343 = vmatpush1.bf16.msra.mxu0 %v9342_v3  ;;  %v4947_v3 = vld [vmem:[#allocation9] sm:$0xff]  ;;  %v4932_v8 = vadd.f32 %v11589_v22, %v4898_v59  ;;  %v5022_v59 = vld [vmem:[#allocation9 + $0x258] sm:$0xff] }
 0x49d   :  { %9855 = vmatpush1.bf16.msra.mxu1 %v9854_v4  ;;  %9345 = vmatprep.subr.bf16.mxu0 %v9344_v5  ;;  %v4955_v4 = vld [vmem:[#allocation9 + $0x40] sm:$0xff]  ;;  %v10128_v5 = vpack.c.bf16 %v4958_v61, %v4950_v60 }
 0x49e   :  { %9857 = vmatprep.subr.bf16.mxu1 %v9856_v9  ;;  %v4964_v9 = vld [vmem:[#allocation9 + $0x88] sm:$0xff]  ;;  %v9874_v11 = vpack.c.bf16 %v4955_v4, %v4947_v3  ;;  %v11624_v25 = vmax.f32 %v4932_v8, 0.0  ;;  %v11145_v22 = vld [vmem:[%s12141_s0 + $0x70] sm:$0xff]  ;;  %v5013_v3 = vld [vmem:[#allocation9 + $0x210] sm:$0xff]  ;;  %v10144_v4 = vpack.c.bf16 %v5022_v59, %v5014_v58 }
 0x49f   :  { %v9876_v20 = vpack.c.bf16 %v4972_v10, %v4964_v9  ;;  %v5030_v8 = vld [vmem:[#allocation9 + $0x298] sm:$0xff]  ;;  %v5075_v59 = vld [vmem:[#allocation9 + $0x400] sm:$0xff] }
 0x4a0   :  { %9347 = vmatpush1.bf16.msra.mxu0 %v9346_v16  ;;  %v4963_v16 = vld [vmem:[#allocation9 + $0x80] sm:$0xff]  ;;  %v5038_v9 = vld [vmem:[#allocation9 + $0x2d8] sm:$0xff] }
 0x4a1   :  { %9859 = vmatpush1.bf16.msra.mxu1 %v9858_v18  ;;  %9349 = vmatprep.subr.bf16.mxu0 %v9348_v19  ;;  %v4971_v18 = vld [vmem:[#allocation9 + $0xc0] sm:$0xff]  ;;  %v4965_v19 = vld [vmem:[#allocation9 + $0x90] sm:$0xff] }
 0x4a2   :  { %9861 = vmatprep.subr.bf16.mxu1 %v9860_v24  ;;  %v4988_v24 = vld [vmem:[#allocation9 + $0x148] sm:$0xff]  ;;  %v9878_v31 = vpack.c.bf16 %v4971_v18, %v4963_v16  ;;  %v5029_v16 = vld [vmem:[#allocation9 + $0x290] sm:$0xff]  ;;  %v10148_v18 = vpack.c.bf16 %v5038_v9, %v5030_v8  ;;  %v5091_v9 = vld [vmem:[#allocation9 + $0x480] sm:$0xff] }
 0x4a4   :  { %9351 = vmatpush1.bf16.msra.mxu0 %v9350_v32  ;;  %v10134_v32 = vpack.c.bf16 %v4973_v21, %v4965_v19  ;;  %v5037_v19 = vld [vmem:[#allocation9 + $0x2d0] sm:$0xff]  ;;  %v5052_v21 = vld [vmem:[#allocation9 + $0x348] sm:$0xff] }
 0x4a5   :  { %9863 = vmatpush1.bf16.msra.mxu1 %v9862_v34  ;;  %9353 = vmatprep.subr.bf16.mxu0 %v9352_v35  ;;  %v9880_v34 = vpack.c.bf16 %v4988_v24, %v4980_v23  ;;  %v4979_v35 = vld [vmem:[#allocation9 + $0x100] sm:$0xff]  ;;  %v5046_v23 = vld [vmem:[#allocation9 + $0x318] sm:$0xff] }
 0x4a6   :  { %9865 = vmatprep.subr.bf16.mxu1 %v9864_v41  ;;  %v4989_v41 = vld [vmem:[#allocation9 + $0x150] sm:$0xff]  ;;  %v9882_v47 = vpack.c.bf16 %v4987_v27, %v4979_v35  ;;  %v5054_v24 = vld [vmem:[#allocation9 + $0x358] sm:$0xff]  ;;  %v5060_v27 = vld [vmem:[#allocation9 + $0x388] sm:$0xff] }
 0x4a7   :  { %v5053_v35 = vld [vmem:[#allocation9 + $0x350] sm:$0xff] }
 0x4a8   :  { %9355 = vmatpush1.bf16.msra.mxu0 %v9354_v49  ;;  %v10138_v49 = vpack.c.bf16 %v4989_v41, %v4981_v38  ;;  %v5068_v38 = vld [vmem:[#allocation9 + $0x3c8] sm:$0xff]  ;;  %v5070_v41 = vld [vmem:[#allocation9 + $0x3d8] sm:$0xff] }
 0x4a9   :  { %9867 = vmatpush1.bf16.msra.mxu1 %v9866_v51  ;;  %9357 = vmatprep.subr.bf16.mxu0 %v9356_v52  ;;  %v9884_v51 = vpack.c.bf16 %v5004_v42, %v4996_v33  ;;  %v4995_v52 = vld [vmem:[#allocation9 + $0x180] sm:$0xff]  ;;  %v9900_v43 = vpack.c.bf16 %v5068_v38, %v5060_v27 }
 0x4aa   :  { %9869 = vmatprep.subr.bf16.mxu1 %v9868_v55  ;;  %v5005_v55 = vld [vmem:[#allocation9 + $0x1d0] sm:$0xff]  ;;  %v9886_v60 = vpack.c.bf16 %v5003_v53, %v4995_v52  ;;  %v5076_v53 = vld [vmem:[#allocation9 + $0x408] sm:$0xff] }
 0x4ab   :  { %v10142_v61 = vpack.c.bf16 %v5005_v55, %v4997_v0  ;;  %v5069_v52 = vld [vmem:[#allocation9 + $0x3d0] sm:$0xff]  ;;  %v5084_v0 = vld [vmem:[#allocation9 + $0x448] sm:$0xff]  ;;  %v5086_v55 = vld [vmem:[#allocation9 + $0x458] sm:$0xff] }
 0x4ac   :  { %9359 = vmatpush1.bf16.msra.mxu0 %v9358_v63  ;;  %v9888_v63 = vpack.c.bf16 %v5020_v57, %v5012_v56  ;;  %v9904_v58 = vpack.c.bf16 %v5084_v0, %v5076_v53 }
 0x4ad   :  { %9871 = vmatpush1.bf16.msra.mxu1 %v9870_v1  ;;  %9873 = vmatprep.subr.bf16.mxu0 %v9872_v2  ;;  %v5011_v1 = vld [vmem:[#allocation9 + $0x200] sm:$0xff] }
 0x4ae   :  { %10129 = vmatprep.subr.bf16.mxu1 %v10128_v5  ;;  %v5019_v2 = vld [vmem:[#allocation9 + $0x240] sm:$0xff]  ;;  %v5021_v5 = vld [vmem:[#allocation9 + $0x250] sm:$0xff] }
 0x4af   :  { %4315 = vmatmul.mubr.f32.vlgmr.msra.gmra.mrb[6].mxu0 %v11145_v22  ;;  %v9890_v10 = vpack.c.bf16 %v5019_v2, %v5011_v1  ;;  %v5085_v1 = vld [vmem:[#allocation9 + $0x450] sm:$0xff]  ;;  %v5092_v2 = vld [vmem:[#allocation9 + $0x488] sm:$0xff] }
 0x4b0   :  { %4883 = vmatmul.mubr.f32.vlgmr.msra.gmra.mrb[6].mxu1 %v11145_v22  ;;  %9875 = vmatpush1.bf16.msra.mxu0 %v9874_v11  ;;  %v10146_v11 = vpack.c.bf16 %v5021_v5, %v5013_v3  ;;  %v5100_v3 = vld [vmem:[#allocation9 + $0x4c8] sm:$0xff]  ;;  %v5102_v5 = vld [vmem:[#allocation9 + $0x4d8] sm:$0xff] }
 0x4b1   :  { %6077 = vmatprep.mubr.f32.mxu0 %v11624_v25  ;;  %10131 = vmatpush1.bf16.msra.mxu1 %v10130_v15  ;;  %v5035_v15 = vld [vmem:[#allocation9 + $0x2c0] sm:$0xff]  ;;  %v9908_v8 = vpack.c.bf16 %v5100_v3, %v5092_v2 }
 0x4b2   :  { %6361 = vmatprep.mubr.f32.mxu1 %v11624_v25  ;;  %9877 = vmatprep.subr.bf16.mxu0 %v9876_v20  ;;  %v5044_v20 = vld [vmem:[#allocation9 + $0x308] sm:$0xff]  ;;  %v9894_v22 = vpack.c.bf16 %v5035_v15, %v5027_v14  ;;  %v5101_v14 = vld [vmem:[#allocation9 + $0x4d0] sm:$0xff] }
 0x4b3   :  { %10133 = vmatprep.subr.bf16.mxu1 %v10132_v26  ;;  %v10150_v26 = vpack.c.bf16 %v5037_v19, %v5029_v16  ;;  %v9896_v28 = vpack.c.bf16 %v5052_v21, %v5044_v20  ;;  %v5108_v15 = vld [vmem:[#allocation9 + $0x508] sm:$0xff]  ;;  %v5118_v19 = vld [vmem:[#allocation9 + $0x558] sm:$0xff] }
 0x4b4   :  { %9879 = vmatpush1.bf16.msra.mxu0 %v9878_v31  ;;  %v5051_v31 = vld [vmem:[#allocation9 + $0x340] sm:$0xff]  ;;  %v5116_v16 = vld [vmem:[#allocation9 + $0x548] sm:$0xff] }
 0x4b5   :  { %10135 = vmatpush1.bf16.msra.mxu1 %v10134_v32  ;;  %9881 = vmatprep.subr.bf16.mxu0 %v9880_v34  ;;  %v5045_v32 = vld [vmem:[#allocation9 + $0x310] sm:$0xff]  ;;  %v10152_v34 = vpack.c.bf16 %v5054_v24, %v5046_v23  ;;  %v9898_v33 = vpack.c.bf16 %v5051_v31, %v5043_v17  ;;  %v9912_v23 = vpack.c.bf16 %v5116_v16, %v5108_v15  ;;  %v5107_v24 = vld [vmem:[#allocation9 + $0x500] sm:$0xff]  ;;  %v5124_v31 = vld [vmem:[#allocation9 + $0x588] sm:$0xff] }
 0x4b6   :  { %10137 = vmatprep.subr.bf16.mxu1 %v10136_v40  ;;  %v5062_v40 = vld [vmem:[#allocation9 + $0x398] sm:$0xff]  ;;  %v10154_v42 = vpack.c.bf16 %v5053_v35, %v5045_v32  ;;  %v5117_v17 = vld [vmem:[#allocation9 + $0x550] sm:$0xff]  ;;  %v5132_v32 = vld [vmem:[#allocation9 + $0x5c8] sm:$0xff] }
 0x4b7   :  { %v5134_v35 = vld [vmem:[#allocation9 + $0x5d8] sm:$0xff] }
 0x4b8   :  { %9883 = vmatpush1.bf16.msra.mxu0 %v9882_v47  ;;  %v5067_v47 = vld [vmem:[#allocation9 + $0x3c0] sm:$0xff] }
 0x4b9   :  { %10139 = vmatpush1.bf16.msra.mxu1 %v10138_v49  ;;  %9885 = vmatprep.subr.bf16.mxu0 %v9884_v51  ;;  %v5061_v49 = vld [vmem:[#allocation9 + $0x390] sm:$0xff]  ;;  %v10156_v51 = vpack.c.bf16 %v5070_v41, %v5062_v40  ;;  %v9902_v56 = vpack.c.bf16 %v5067_v47, %v5059_v46  ;;  %v9916_v40 = vpack.c.bf16 %v5132_v32, %v5124_v31  ;;  %v5123_v41 = vld [vmem:[#allocation9 + $0x580] sm:$0xff]  ;;  %v5140_v47 = vld [vmem:[#allocation9 + $0x608] sm:$0xff] }
 0x4ba   :  { %10141 = vmatprep.subr.bf16.mxu1 %v10140_v54  ;;  %v5078_v54 = vld [vmem:[#allocation9 + $0x418] sm:$0xff]  ;;  %v10158_v57 = vpack.c.bf16 %v5069_v52, %v5061_v49  ;;  %v5133_v46 = vld [vmem:[#allocation9 + $0x5d0] sm:$0xff]  ;;  %v5148_v49 = vld [vmem:[#allocation9 + $0x648] sm:$0xff] }
 0x4bb   :  { %v5150_v52 = vld [vmem:[#allocation9 + $0x658] sm:$0xff] }
 0x4bc   :  { %9887 = vmatpush1.bf16.msra.mxu0 %v9886_v60  ;;  %v5083_v60 = vld [vmem:[#allocation9 + $0x440] sm:$0xff]  ;;  %v5198_v31 = vld [vmem:[#allocation9 + $0x7d8] sm:$0xff] }
 0x4bd   :  { %10143 = vmatpush1.bf16.msra.mxu1 %v10142_v61  ;;  %9889 = vmatprep.subr.bf16.mxu0 %v9888_v63  ;;  %v5077_v61 = vld [vmem:[#allocation9 + $0x410] sm:$0xff]  ;;  %v10160_v63 = vpack.c.bf16 %v5086_v55, %v5078_v54  ;;  %v9906_v6 = vpack.c.bf16 %v5083_v60, %v5075_v59  ;;  %v9920_v54 = vpack.c.bf16 %v5148_v49, %v5140_v47  ;;  %v5139_v55 = vld [vmem:[#allocation9 + $0x600] sm:$0xff]  ;;  %v5156_v60 = vld [vmem:[#allocation9 + $0x688] sm:$0xff] }
 0x4be   :  { %10145 = vmatprep.subr.bf16.mxu1 %v10144_v4  ;;  %v5094_v4 = vld [vmem:[#allocation9 + $0x498] sm:$0xff]  ;;  %v10162_v7 = vpack.c.bf16 %v5085_v1, %v5077_v61  ;;  %v5149_v59 = vld [vmem:[#allocation9 + $0x650] sm:$0xff]  ;;  %v5164_v61 = vld [vmem:[#allocation9 + $0x6c8] sm:$0xff] }
 0x4bf   :  { %v5166_v1 = vld [vmem:[#allocation9 + $0x6d8] sm:$0xff] }
 0x4c0   :  { %9891 = vmatpush1.bf16.msra.mxu0 %v9890_v10  ;;  %v5099_v10 = vld [vmem:[#allocation9 + $0x4c0] sm:$0xff]  ;;  %v5206_v49 = vld [vmem:[#allocation9 + $0x818] sm:$0xff] }
 0x4c1   :  { %10147 = vmatpush1.bf16.msra.mxu1 %v10146_v11  ;;  %9893 = vmatprep.subr.bf16.mxu0 %v9892_v13  ;;  %v5093_v11 = vld [vmem:[#allocation9 + $0x490] sm:$0xff]  ;;  %v10164_v13 = vpack.c.bf16 %v5102_v5, %v5094_v4  ;;  %v9910_v20 = vpack.c.bf16 %v5099_v10, %v5091_v9  ;;  %v9924_v4 = vpack.c.bf16 %v5164_v61, %v5156_v60  ;;  %v5155_v5 = vld [vmem:[#allocation9 + $0x680] sm:$0xff]  ;;  %v5172_v10 = vld [vmem:[#allocation9 + $0x708] sm:$0xff] }
 0x4c2   :  { %10149 = vmatprep.subr.bf16.mxu1 %v10148_v18  ;;  %v5110_v18 = vld [vmem:[#allocation9 + $0x518] sm:$0xff]  ;;  %v10166_v21 = vpack.c.bf16 %v5101_v14, %v5093_v11  ;;  %v5165_v9 = vld [vmem:[#allocation9 + $0x6d0] sm:$0xff]  ;;  %v5180_v11 = vld [vmem:[#allocation9 + $0x748] sm:$0xff] }
 0x4c3   :  { %v5182_v14 = vld [vmem:[#allocation9 + $0x758] sm:$0xff]  ;;  %v5220_v61 = vld [vmem:[#allocation9 + $0x888] sm:$0xff] }
 0x4c4   :  { %9895 = vmatpush1.bf16.msra.mxu0 %v9894_v22  ;;  %v5115_v22 = vld [vmem:[#allocation9 + $0x540] sm:$0xff] }
 0x4c5   :  { %10151 = vmatpush1.bf16.msra.mxu1 %v10150_v26  ;;  %9897 = vmatprep.subr.bf16.mxu0 %v9896_v28  ;;  %v5109_v26 = vld [vmem:[#allocation9 + $0x510] sm:$0xff]  ;;  %v10168_v28 = vpack.c.bf16 %v5118_v19, %v5110_v18  ;;  %v9914_v27 = vpack.c.bf16 %v5115_v22, %v5107_v24  ;;  %v9928_v18 = vpack.c.bf16 %v5180_v11, %v5172_v10  ;;  %v5171_v19 = vld [vmem:[#allocation9 + $0x700] sm:$0xff]  ;;  %v5188_v22 = vld [vmem:[#allocation9 + $0x788] sm:$0xff] }
 0x4c6   :  { %10153 = vmatprep.subr.bf16.mxu1 %v10152_v34  ;;  %v5126_v34 = vld [vmem:[#allocation9 + $0x598] sm:$0xff]  ;;  %v10170_v38 = vpack.c.bf16 %v5117_v17, %v5109_v26  ;;  %v5181_v24 = vld [vmem:[#allocation9 + $0x750] sm:$0xff]  ;;  %v5196_v26 = vld [vmem:[#allocation9 + $0x7c8] sm:$0xff] }
 0x4c7   :  { %v5190_v17 = vld [vmem:[#allocation9 + $0x798] sm:$0xff]  ;;  %v5244_v10 = vld [vmem:[#allocation9 + $0x948] sm:$0xff] }
 0x4c8   :  { %9899 = vmatpush1.bf16.msra.mxu0 %v9898_v33  ;;  %v5131_v33 = vld [vmem:[#allocation9 + $0x5c0] sm:$0xff] }
 0x4c9   :  { %10155 = vmatpush1.bf16.msra.mxu1 %v10154_v42  ;;  %9901 = vmatprep.subr.bf16.mxu0 %v9900_v43  ;;  %v5125_v42 = vld [vmem:[#allocation9 + $0x590] sm:$0xff]  ;;  %v10172_v43 = vpack.c.bf16 %v5134_v35, %v5126_v34  ;;  %v9918_v53 = vpack.c.bf16 %v5131_v33, %v5123_v41  ;;  %v4894_v34 = vrot.slane %v11618_v48, %v11575_v62 }
 0x4ca   :  { %10157 = vmatprep.subr.bf16.mxu1 %v10156_v51  ;;  %v5142_v51 = vld [vmem:[#allocation9 + $0x618] sm:$0xff]  ;;  %v10174_v0 = vpack.c.bf16 %v5133_v46, %v5125_v42  ;;  %v5189_v41 = vld [vmem:[#allocation9 + $0x790] sm:$0xff]  ;;  %v10188_v33 = vpack.c.bf16 %v5198_v31, %v5190_v17  ;;  %v5212_v46 = vld [vmem:[#allocation9 + $0x848] sm:$0xff] }
 0x4cb   :  { %v5197_v42 = vld [vmem:[#allocation9 + $0x7d0] sm:$0xff]  ;;  %v5254_v17 = vld [vmem:[#allocation9 + $0x998] sm:$0xff] }
 0x4cc   :  { %9903 = vmatpush1.bf16.msra.mxu0 %v9902_v56  ;;  %v5147_v56 = vld [vmem:[#allocation9 + $0x640] sm:$0xff]  ;;  %v5262_v31 = vld [vmem:[#allocation9 + $0x9d8] sm:$0xff] }
 0x4cd   :  { %10159 = vmatpush1.bf16.msra.mxu1 %v10158_v57  ;;  %9905 = vmatprep.subr.bf16.mxu0 %v9904_v58  ;;  %v5141_v57 = vld [vmem:[#allocation9 + $0x610] sm:$0xff]  ;;  %v10176_v58 = vpack.c.bf16 %v5150_v52, %v5142_v51  ;;  %v9922_v2 = vpack.c.bf16 %v5147_v56, %v5139_v55  ;;  %v5214_v51 = vld [vmem:[#allocation9 + $0x858] sm:$0xff]  ;;  %v5203_v55 = vld [vmem:[#allocation9 + $0x800] sm:$0xff] }
 0x4ce   :  { %10161 = vmatprep.subr.bf16.mxu1 %v10160_v63  ;;  %v5158_v63 = vld [vmem:[#allocation9 + $0x698] sm:$0xff]  ;;  %v10178_v3 = vpack.c.bf16 %v5149_v59, %v5141_v57  ;;  %v5211_v56 = vld [vmem:[#allocation9 + $0x840] sm:$0xff]  ;;  %v10192_v57 = vpack.c.bf16 %v5214_v51, %v5206_v49  ;;  %v5213_v59 = vld [vmem:[#allocation9 + $0x850] sm:$0xff] }
 0x4d0   :  { %9907 = vmatpush1.bf16.msra.mxu0 %v9906_v6  ;;  %v5163_v6 = vld [vmem:[#allocation9 + $0x6c0] sm:$0xff] }
 0x4d1   :  { %10163 = vmatpush1.bf16.msra.mxu1 %v10162_v7  ;;  %9909 = vmatprep.subr.bf16.mxu0 %v9908_v8  ;;  %v5157_v7 = vld [vmem:[#allocation9 + $0x690] sm:$0xff]  ;;  %v10180_v8 = vpack.c.bf16 %v5166_v1, %v5158_v63  ;;  %v9926_v15 = vpack.c.bf16 %v5163_v6, %v5155_v5  ;;  %v9938_v63 = vpack.c.bf16 %v5211_v56, %v5203_v55  ;;  %v5222_v1 = vld [vmem:[#allocation9 + $0x898] sm:$0xff]  ;;  %v5227_v5 = vld [vmem:[#allocation9 + $0x8c0] sm:$0xff] }
 0x4d2   :  { %10165 = vmatprep.subr.bf16.mxu1 %v10164_v13  ;;  %v5174_v13 = vld [vmem:[#allocation9 + $0x718] sm:$0xff]  ;;  %v10182_v16 = vpack.c.bf16 %v5165_v9, %v5157_v7  ;;  %v5221_v6 = vld [vmem:[#allocation9 + $0x890] sm:$0xff]  ;;  %v5236_v9 = vld [vmem:[#allocation9 + $0x908] sm:$0xff] }
 0x4d3   :  { %v5277_v56 = vld [vmem:[#allocation9 + $0xa50] sm:$0xff] }
 0x4d4   :  { %9911 = vmatpush1.bf16.msra.mxu0 %v9910_v20  ;;  %v5179_v20 = vld [vmem:[#allocation9 + $0x740] sm:$0xff] }
 0x4d5   :  { %10167 = vmatpush1.bf16.msra.mxu1 %v10166_v21  ;;  %9913 = vmatprep.subr.bf16.mxu0 %v9912_v23  ;;  %v5173_v21 = vld [vmem:[#allocation9 + $0x710] sm:$0xff]  ;;  %v10184_v23 = vpack.c.bf16 %v5182_v14, %v5174_v13  ;;  %v9930_v32 = vpack.c.bf16 %v5179_v20, %v5171_v19  ;;  %v5238_v13 = vld [vmem:[#allocation9 + $0x918] sm:$0xff]  ;;  %v5235_v19 = vld [vmem:[#allocation9 + $0x900] sm:$0xff] }
 0x4d6   :  { %10169 = vmatprep.subr.bf16.mxu1 %v10168_v28  ;;  %v4905_v28 = vsub.s32 3, %v11572_v50  ;;  %v10186_v35 = vpack.c.bf16 %v5181_v24, %v5173_v21  ;;  %v5246_v14 = vld [vmem:[#allocation9 + $0x958] sm:$0xff]  ;;  %v5243_v20 = vld [vmem:[#allocation9 + $0x940] sm:$0xff]  ;;  %v5237_v21 = vld [vmem:[#allocation9 + $0x910] sm:$0xff] }
 0x4d7   :  { %v5245_v24 = vld [vmem:[#allocation9 + $0x950] sm:$0xff] }
 0x4d8   :  { %9915 = vmatpush1.bf16.msra.mxu0 %v9914_v27  ;;  %v9932_v27 = vpack.c.bf16 %v5196_v26, %v5188_v22  ;;  %v4906_v47 = vrot.slane %v11618_v48, %v4905_v28  ;;  %v5228_v48 = vld [vmem:[#allocation9 + $0x8c8] sm:$0xff] }
 0x4d9   :  { %10171 = vmatpush1.bf16.msra.mxu1 %v10170_v38  ;;  %9917 = vmatprep.subr.bf16.mxu0 %v9916_v40  ;;  %v5187_v38 = vld [vmem:[#allocation9 + $0x780] sm:$0xff]  ;;  %v9940_v7 = vpack.c.bf16 %v5228_v48, %v5220_v61  ;;  %v5252_v22 = vld [vmem:[#allocation9 + $0x988] sm:$0xff] }
 0x4da   :  { %10173 = vmatprep.subr.bf16.mxu1 %v10172_v43  ;;  %v5195_v40 = vld [vmem:[#allocation9 + $0x7c0] sm:$0xff]  ;;  %v5204_v43 = vld [vmem:[#allocation9 + $0x808] sm:$0xff]  ;;  %v4934_v60 = vadd.f32 %v11591_v39, %v4906_v47  ;;  %v5278_v47 = vld [vmem:[#allocation9 + $0xa58] sm:$0xff] }
 0x4db   :  { %v9934_v52 = vpack.c.bf16 %v5195_v40, %v5187_v38  ;;  %v5260_v26 = vld [vmem:[#allocation9 + $0x9c8] sm:$0xff]  ;;  %v5259_v38 = vld [vmem:[#allocation9 + $0x9c0] sm:$0xff]  ;;  %v5253_v40 = vld [vmem:[#allocation9 + $0x990] sm:$0xff] }
 0x4dc   :  { %9919 = vmatpush1.bf16.msra.mxu0 %v9918_v53  ;;  %v4931_v53 = vadd.f32 %v11585_v30, %v4894_v34  ;;  %v11641_v39 = vmax.f32 %v4934_v60, 0.0  ;;  %v10202_v34 = vpack.c.bf16 %v5245_v24, %v5237_v21  ;;  %v5294_v60 = vld [vmem:[#allocation9 + $0xad8] sm:$0xff]  ;;  %v5324_v21 = vld [vmem:[#allocation9 + $0xbc8] sm:$0xff] }
 0x4dd   :  { %10175 = vmatpush1.bf16.msra.mxu1 %v10174_v0  ;;  %9921 = vmatprep.subr.bf16.mxu0 %v9920_v54  ;;  %v10190_v0 = vpack.c.bf16 %v5197_v42, %v5189_v41  ;;  %v9936_v54 = vpack.c.bf16 %v5212_v46, %v5204_v43  ;;  %v10204_v41 = vpack.c.bf16 %v5262_v31, %v5254_v17  ;;  %v5268_v42 = vld [vmem:[#allocation9 + $0xa08] sm:$0xff]  ;;  %v5270_v46 = vld [vmem:[#allocation9 + $0xa18] sm:$0xff]  ;;  %v5315_v31 = vld [vmem:[#allocation9 + $0xb80] sm:$0xff] }
 0x4de   :  { %10177 = vmatprep.subr.bf16.mxu1 %v10176_v58  ;;  %v5205_v58 = vld [vmem:[#allocation9 + $0x810] sm:$0xff]  ;;  %v5276_v43 = vld [vmem:[#allocation9 + $0xa48] sm:$0xff]  ;;  %v10208_v55 = vpack.c.bf16 %v5278_v47, %v5270_v46  ;;  %v5326_v24 = vld [vmem:[#allocation9 + $0xbd8] sm:$0xff] }
 0x4df   :  { %v10194_v30 = vpack.c.bf16 %v5213_v59, %v5205_v58  ;;  %v5292_v58 = vld [vmem:[#allocation9 + $0xac8] sm:$0xff]  ;;  %v5286_v59 = vld [vmem:[#allocation9 + $0xa98] sm:$0xff]  ;;  %v5331_v47 = vld [vmem:[#allocation9 + $0xc00] sm:$0xff] }
 0x4e0   :  { %9923 = vmatpush1.bf16.msra.mxu0 %v9922_v2  ;;  %v5230_v2 = vld [vmem:[#allocation9 + $0x8d8] sm:$0xff] }
 0x4e1   :  { %10179 = vmatpush1.bf16.msra.mxu1 %v10178_v3  ;;  %9925 = vmatprep.subr.bf16.mxu0 %v9924_v4  ;;  %v11639_v3 = vmax.f32 %v4931_v53, 0.0  ;;  %v5219_v4 = vld [vmem:[#allocation9 + $0x880] sm:$0xff]  ;;  %v10196_v11 = vpack.c.bf16 %v5230_v2, %v5222_v1 }
 0x4e2   :  { %10181 = vmatprep.subr.bf16.mxu1 %v10180_v8  ;;  %v5229_v8 = vld [vmem:[#allocation9 + $0x8d0] sm:$0xff]  ;;  %v5267_v53 = vld [vmem:[#allocation9 + $0xa00] sm:$0xff] }
 0x4e3   :  { %v5283_v1 = vld [vmem:[#allocation9 + $0xa80] sm:$0xff] }
 0x4e4   :  { %9927 = vmatpush1.bf16.msra.mxu0 %v9926_v15  ;;  %v9942_v15 = vpack.c.bf16 %v5227_v5, %v5219_v4  ;;  %v5291_v2 = vld [vmem:[#allocation9 + $0xac0] sm:$0xff]  ;;  %v10212_v4 = vpack.c.bf16 %v5294_v60, %v5286_v59  ;;  %v5293_v5 = vld [vmem:[#allocation9 + $0xad0] sm:$0xff] }
 0x4e5   :  { %10183 = vmatpush1.bf16.msra.mxu1 %v10182_v16  ;;  %9929 = vmatprep.subr.bf16.mxu0 %v9928_v18  ;;  %v10198_v16 = vpack.c.bf16 %v5229_v8, %v5221_v6  ;;  %v9944_v18 = vpack.c.bf16 %v5244_v10, %v5236_v9  ;;  %v5300_v6 = vld [vmem:[#allocation9 + $0xb08] sm:$0xff]  ;;  %v5302_v8 = vld [vmem:[#allocation9 + $0xb18] sm:$0xff]  ;;  %v9958_v10 = vpack.c.bf16 %v5291_v2, %v5283_v1  ;;  %v5347_v60 = vld [vmem:[#allocation9 + $0xc80] sm:$0xff] }
 0x4e6   :  { %10185 = vmatprep.subr.bf16.mxu1 %v10184_v23  ;;  %v10200_v23 = vpack.c.bf16 %v5246_v14, %v5238_v13  ;;  %v5310_v9 = vld [vmem:[#allocation9 + $0xb58] sm:$0xff]  ;;  %v5299_v14 = vld [vmem:[#allocation9 + $0xb00] sm:$0xff]  ;;  %v5357_v1 = vld [vmem:[#allocation9 + $0xcd0] sm:$0xff] }
 0x4e7   :  { %v5364_v2 = vld [vmem:[#allocation9 + $0xd08] sm:$0xff] }
 0x4e8   :  { %9931 = vmatpush1.bf16.msra.mxu0 %v9930_v32  ;;  %v9946_v32 = vpack.c.bf16 %v5243_v20, %v5235_v19  ;;  %v5309_v19 = vld [vmem:[#allocation9 + $0xb50] sm:$0xff]  ;;  %v5316_v20 = vld [vmem:[#allocation9 + $0xb88] sm:$0xff] }
 0x4e9   :  { %10187 = vmatpush1.bf16.msra.mxu1 %v10186_v35  ;;  %9933 = vmatprep.subr.bf16.mxu0 %v9932_v27  ;;  %v9948_v35 = vpack.c.bf16 %v5260_v26, %v5252_v22  ;;  %v5251_v27 = vld [vmem:[#allocation9 + $0x980] sm:$0xff]  ;;  %v9964_v17 = vpack.c.bf16 %v5324_v21, %v5316_v20 }
 0x4ea   :  { %10189 = vmatprep.subr.bf16.mxu1 %v10188_v33  ;;  %v5261_v33 = vld [vmem:[#allocation9 + $0x9d0] sm:$0xff]  ;;  %v9950_v49 = vpack.c.bf16 %v5259_v38, %v5251_v27  ;;  %v5332_v38 = vld [vmem:[#allocation9 + $0xc08] sm:$0xff] }
 0x4eb   :  { %v10206_v51 = vpack.c.bf16 %v5261_v33, %v5253_v40  ;;  %v5325_v27 = vld [vmem:[#allocation9 + $0xbd0] sm:$0xff]  ;;  %v5340_v40 = vld [vmem:[#allocation9 + $0xc48] sm:$0xff]  ;;  %v5342_v33 = vld [vmem:[#allocation9 + $0xc58] sm:$0xff] }
 0x4ec   :  { %9935 = vmatpush1.bf16.msra.mxu0 %v9934_v52  ;;  %v9952_v52 = vpack.c.bf16 %v5276_v43, %v5268_v42  ;;  %v9968_v46 = vpack.c.bf16 %v5340_v40, %v5332_v38 }
 0x4ed   :  { %10191 = vmatpush1.bf16.msra.mxu1 %v10190_v0  ;;  %9937 = vmatprep.subr.bf16.mxu0 %v9936_v54  ;;  %v5275_v0 = vld [vmem:[#allocation9 + $0xa40] sm:$0xff]  ;;  %v5269_v54 = vld [vmem:[#allocation9 + $0xa10] sm:$0xff] }
 0x4ee   :  { %10193 = vmatprep.subr.bf16.mxu1 %v10192_v57  ;;  %v5284_v57 = vld [vmem:[#allocation9 + $0xa88] sm:$0xff]  ;;  %v9954_v61 = vpack.c.bf16 %v5275_v0, %v5267_v53  ;;  %v10210_v48 = vpack.c.bf16 %v5277_v56, %v5269_v54  ;;  %v5341_v53 = vld [vmem:[#allocation9 + $0xc50] sm:$0xff]  ;;  %v5358_v56 = vld [vmem:[#allocation9 + $0xcd8] sm:$0xff] }
 0x4ef   :  { %6078 = vmatmul.mubr.f32.vlgmr.msra.gmra.mrb[8].mxu0 %v11639_v3  ;;  %v5348_v0 = vld [vmem:[#allocation9 + $0xc88] sm:$0xff] }
 0x4f0   :  { %6362 = vmatmul.mubr.f32.vlgmr.msra.gmra.mrb[8].mxu1 %v11639_v3  ;;  %9939 = vmatpush1.bf16.msra.mxu0 %v9938_v63  ;;  %v9956_v63 = vpack.c.bf16 %v5292_v58, %v5284_v57  ;;  %v5356_v54 = vld [vmem:[#allocation9 + $0xcc8] sm:$0xff] }
 0x4f1   :  { %6148 = vmatprep.mubr.f32.mxu0 %v11641_v39  ;;  %10195 = vmatpush1.bf16.msra.mxu1 %v10194_v30  ;;  %v5285_v30 = vld [vmem:[#allocation9 + $0xa90] sm:$0xff]  ;;  %v9972_v59 = vpack.c.bf16 %v5356_v54, %v5348_v0 }
 0x4f2   :  { %6432 = vmatprep.mubr.f32.mxu1 %v11641_v39  ;;  %9941 = vmatprep.subr.bf16.mxu0 %v9940_v7  ;;  %v5308_v7 = vld [vmem:[#allocation9 + $0xb48] sm:$0xff] }
 0x4f3   :  { %10197 = vmatprep.subr.bf16.mxu1 %v10196_v11  ;;  %v10214_v11 = vpack.c.bf16 %v5293_v5, %v5285_v30  ;;  %v9960_v13 = vpack.c.bf16 %v5308_v7, %v5300_v6  ;;  %v5372_v30 = vld [vmem:[#allocation9 + $0xd48] sm:$0xff]  ;;  %v5374_v5 = vld [vmem:[#allocation9 + $0xd58] sm:$0xff] }
 0x4f4   :  { %9943 = vmatpush1.bf16.msra.mxu0 %v9942_v15  ;;  %v5307_v15 = vld [vmem:[#allocation9 + $0xb40] sm:$0xff] }
 0x4f5   :  { %10199 = vmatpush1.bf16.msra.mxu1 %v10198_v16  ;;  %9945 = vmatprep.subr.bf16.mxu0 %v9944_v18  ;;  %v5301_v16 = vld [vmem:[#allocation9 + $0xb10] sm:$0xff]  ;;  %v10216_v18 = vpack.c.bf16 %v5310_v9, %v5302_v8  ;;  %v9962_v22 = vpack.c.bf16 %v5307_v15, %v5299_v14  ;;  %v9976_v8 = vpack.c.bf16 %v5372_v30, %v5364_v2  ;;  %v5363_v9 = vld [vmem:[#allocation9 + $0xd00] sm:$0xff]  ;;  %v5380_v15 = vld [vmem:[#allocation9 + $0xd88] sm:$0xff]  ;;  %v4901_v30 = vsub.s32 2, %v11572_v50 }
 0x4f6   :  { %10201 = vmatprep.subr.bf16.mxu1 %v10200_v23  ;;  %v5318_v23 = vld [vmem:[#allocation9 + $0xb98] sm:$0xff]  ;;  %v10218_v26 = vpack.c.bf16 %v5309_v19, %v5301_v16  ;;  %v5373_v14 = vld [vmem:[#allocation9 + $0xd50] sm:$0xff]  ;;  %v5388_v16 = vld [vmem:[#allocation9 + $0xdc8] sm:$0xff] }
 0x4f7   :  { %v5390_v19 = vld [vmem:[#allocation9 + $0xdd8] sm:$0xff] }
 0x4f8   :  { %9947 = vmatpush1.bf16.msra.mxu0 %v9946_v32  ;;  %v5323_v32 = vld [vmem:[#allocation9 + $0xbc0] sm:$0xff] }
 0x4f9   :  { %10203 = vmatpush1.bf16.msra.mxu1 %v10202_v34  ;;  %9949 = vmatprep.subr.bf16.mxu0 %v9948_v35  ;;  %v5317_v34 = vld [vmem:[#allocation9 + $0xb90] sm:$0xff]  ;;  %v10220_v35 = vpack.c.bf16 %v5326_v24, %v5318_v23  ;;  %v9966_v42 = vpack.c.bf16 %v5323_v32, %v5315_v31  ;;  %v9980_v23 = vpack.c.bf16 %v5388_v16, %v5380_v15  ;;  %v5379_v24 = vld [vmem:[#allocation9 + $0xd80] sm:$0xff]  ;;  %v5396_v32 = vld [vmem:[#allocation9 + $0xe08] sm:$0xff] }
 0x4fa   :  { %10205 = vmatprep.subr.bf16.mxu1 %v10204_v41  ;;  %v5334_v41 = vld [vmem:[#allocation9 + $0xc18] sm:$0xff]  ;;  %v10222_v43 = vpack.c.bf16 %v5325_v27, %v5317_v34  ;;  %v5389_v31 = vld [vmem:[#allocation9 + $0xdd0] sm:$0xff]  ;;  %v5404_v34 = vld [vmem:[#allocation9 + $0xe48] sm:$0xff] }
 0x4fb   :  { %v5406_v27 = vld [vmem:[#allocation9 + $0xe58] sm:$0xff] }
 0x4fc   :  { %9951 = vmatpush1.bf16.msra.mxu0 %v9950_v49  ;;  %v5339_v49 = vld [vmem:[#allocation9 + $0xc40] sm:$0xff]  ;;  %v5454_v15 = vld [vmem:[#allocation9 + $0xfd8] sm:$0xff] }
 0x4fd   :  { %10207 = vmatpush1.bf16.msra.mxu1 %v10206_v51  ;;  %9953 = vmatprep.subr.bf16.mxu0 %v9952_v52  ;;  %v5333_v51 = vld [vmem:[#allocation9 + $0xc10] sm:$0xff]  ;;  %v10224_v52 = vpack.c.bf16 %v5342_v33, %v5334_v41  ;;  %v9970_v57 = vpack.c.bf16 %v5339_v49, %v5331_v47  ;;  %v9984_v41 = vpack.c.bf16 %v5404_v34, %v5396_v32  ;;  %v5395_v33 = vld [vmem:[#allocation9 + $0xe00] sm:$0xff]  ;;  %v5412_v49 = vld [vmem:[#allocation9 + $0xe88] sm:$0xff] }
 0x4fe   :  { %10209 = vmatprep.subr.bf16.mxu1 %v10208_v55  ;;  %v5350_v55 = vld [vmem:[#allocation9 + $0xc98] sm:$0xff]  ;;  %v10226_v58 = vpack.c.bf16 %v5341_v53, %v5333_v51  ;;  %v5405_v47 = vld [vmem:[#allocation9 + $0xe50] sm:$0xff]  ;;  %v5420_v51 = vld [vmem:[#allocation9 + $0xec8] sm:$0xff] }
 0x4ff   :  { %v5422_v53 = vld [vmem:[#allocation9 + $0xed8] sm:$0xff]  ;;  %v5468_v32 = vld [vmem:[#allocation9 + $0x1048] sm:$0xff] }
 0x500   :  { %9955 = vmatpush1.bf16.msra.mxu0 %v9954_v61  ;;  %v5355_v61 = vld [vmem:[#allocation9 + $0xcc0] sm:$0xff]  ;;  %v5462_v34 = vld [vmem:[#allocation9 + $0x1018] sm:$0xff] }
 0x501   :  { %10211 = vmatpush1.bf16.msra.mxu1 %v10210_v48  ;;  %9957 = vmatprep.subr.bf16.mxu0 %v9956_v63  ;;  %v5349_v48 = vld [vmem:[#allocation9 + $0xc90] sm:$0xff]  ;;  %v10228_v63 = vpack.c.bf16 %v5358_v56, %v5350_v55  ;;  %v9974_v6 = vpack.c.bf16 %v5355_v61, %v5347_v60  ;;  %v9988_v55 = vpack.c.bf16 %v5420_v51, %v5412_v49  ;;  %v5411_v56 = vld [vmem:[#allocation9 + $0xe80] sm:$0xff]  ;;  %v5428_v61 = vld [vmem:[#allocation9 + $0xf08] sm:$0xff] }
 0x502   :  { %10213 = vmatprep.subr.bf16.mxu1 %v10212_v4  ;;  %v5366_v4 = vld [vmem:[#allocation9 + $0xd18] sm:$0xff]  ;;  %v10230_v7 = vpack.c.bf16 %v5357_v1, %v5349_v48  ;;  %v5421_v60 = vld [vmem:[#allocation9 + $0xed0] sm:$0xff]  ;;  %v5436_v48 = vld [vmem:[#allocation9 + $0xf48] sm:$0xff] }
 0x503   :  { %v5438_v1 = vld [vmem:[#allocation9 + $0xf58] sm:$0xff]  ;;  %v5476_v49 = vld [vmem:[#allocation9 + $0x1088] sm:$0xff] }
 0x504   :  { %9959 = vmatpush1.bf16.msra.mxu0 %v9958_v10  ;;  %v5371_v10 = vld [vmem:[#allocation9 + $0xd40] sm:$0xff]  ;;  %v5484_v51 = vld [vmem:[#allocation9 + $0x10c8] sm:$0xff] }
 0x505   :  { %10215 = vmatpush1.bf16.msra.mxu1 %v10214_v11  ;;  %9961 = vmatprep.subr.bf16.mxu0 %v9960_v13  ;;  %v5365_v11 = vld [vmem:[#allocation9 + $0xd10] sm:$0xff]  ;;  %v10232_v13 = vpack.c.bf16 %v5374_v5, %v5366_v4  ;;  %v9978_v20 = vpack.c.bf16 %v5371_v10, %v5363_v9  ;;  %v9992_v5 = vpack.c.bf16 %v5436_v48, %v5428_v61  ;;  %v5492_v61 = vld [vmem:[#allocation9 + $0x1108] sm:$0xff] }
 0x506   :  { %10217 = vmatprep.subr.bf16.mxu1 %v10216_v18  ;;  %v5382_v18 = vld [vmem:[#allocation9 + $0xd98] sm:$0xff]  ;;  %v10234_v21 = vpack.c.bf16 %v5373_v14, %v5365_v11  ;;  %v5437_v10 = vld [vmem:[#allocation9 + $0xf50] sm:$0xff]  ;;  %v5444_v11 = vld [vmem:[#allocation9 + $0xf88] sm:$0xff] }
 0x507   :  { %v5446_v14 = vld [vmem:[#allocation9 + $0xf98] sm:$0xff]  ;;  %v5500_v48 = vld [vmem:[#allocation9 + $0x1148] sm:$0xff] }
 0x508   :  { %9963 = vmatpush1.bf16.msra.mxu0 %v9962_v22  ;;  %v5387_v22 = vld [vmem:[#allocation9 + $0xdc0] sm:$0xff] }
 0x509   :  { %10219 = vmatpush1.bf16.msra.mxu1 %v10218_v26  ;;  %9965 = vmatprep.subr.bf16.mxu0 %v9964_v17  ;;  %v5381_v26 = vld [vmem:[#allocation9 + $0xd90] sm:$0xff]  ;;  %v10236_v17 = vpack.c.bf16 %v5390_v19, %v5382_v18  ;;  %v9982_v38 = vpack.c.bf16 %v5387_v22, %v5379_v24  ;;  %v11648_v18 = vld [vmem:[#allocation7] sm:$0xff]  ;;  %v5451_v24 = vld [vmem:[#allocation9 + $0xfc0] sm:$0xff] }
 0x50a   :  { %10221 = vmatprep.subr.bf16.mxu1 %v10220_v35  ;;  %v5398_v35 = vld [vmem:[#allocation9 + $0xe18] sm:$0xff]  ;;  %v10238_v40 = vpack.c.bf16 %v5389_v31, %v5381_v26  ;;  %v4902_v19 = vrot.slane %v11648_v18, %v4901_v30  ;;  %v5445_v22 = vld [vmem:[#allocation9 + $0xf90] sm:$0xff]  ;;  %v10252_v26 = vpack.c.bf16 %v5454_v15, %v5446_v14  ;;  %v5460_v31 = vld [vmem:[#allocation9 + $0x1008] sm:$0xff] }
 0x50b   :  { %v5510_v14 = vld [vmem:[#allocation9 + $0x1198] sm:$0xff] }
 0x50c   :  { %9967 = vmatpush1.bf16.msra.mxu0 %v9966_v42  ;;  %v5403_v42 = vld [vmem:[#allocation9 + $0xe40] sm:$0xff]  ;;  %v5518_v15 = vld [vmem:[#allocation9 + $0x11d8] sm:$0xff] }
 0x50d   :  { %10223 = vmatpush1.bf16.msra.mxu1 %v10222_v43  ;;  %9969 = vmatprep.subr.bf16.mxu0 %v9968_v46  ;;  %v5397_v43 = vld [vmem:[#allocation9 + $0xe10] sm:$0xff]  ;;  %v10240_v46 = vpack.c.bf16 %v5406_v27, %v5398_v35  ;;  %v9986_v0 = vpack.c.bf16 %v5403_v42, %v5395_v33  ;;  %v5470_v35 = vld [vmem:[#allocation9 + $0x1058] sm:$0xff]  ;;  %v5459_v33 = vld [vmem:[#allocation9 + $0x1000] sm:$0xff] }
 0x50e   :  { %10225 = vmatprep.subr.bf16.mxu1 %v10224_v52  ;;  %v5414_v52 = vld [vmem:[#allocation9 + $0xe98] sm:$0xff]  ;;  %v10242_v54 = vpack.c.bf16 %v5405_v47, %v5397_v43  ;;  %v5467_v42 = vld [vmem:[#allocation9 + $0x1040] sm:$0xff]  ;;  %v5461_v43 = vld [vmem:[#allocation9 + $0x1010] sm:$0xff] }
 0x50f   :  { %v5469_v47 = vld [vmem:[#allocation9 + $0x1050] sm:$0xff] }
 0x510   :  { %9971 = vmatpush1.bf16.msra.mxu0 %v9970_v57  ;;  %v5419_v57 = vld [vmem:[#allocation9 + $0xec0] sm:$0xff] }
 0x511   :  { %10227 = vmatpush1.bf16.msra.mxu1 %v10226_v58  ;;  %9973 = vmatprep.subr.bf16.mxu0 %v9972_v59  ;;  %v5413_v58 = vld [vmem:[#allocation9 + $0xe90] sm:$0xff]  ;;  %v10244_v59 = vpack.c.bf16 %v5422_v53, %v5414_v52  ;;  %v9990_v2 = vpack.c.bf16 %v5419_v57, %v5411_v56  ;;  %v5478_v52 = vld [vmem:[#allocation9 + $0x1098] sm:$0xff]  ;;  %v5475_v56 = vld [vmem:[#allocation9 + $0x1080] sm:$0xff] }
 0x512   :  { %10229 = vmatprep.subr.bf16.mxu1 %v10228_v63  ;;  %v5430_v63 = vld [vmem:[#allocation9 + $0xf18] sm:$0xff]  ;;  %v10246_v4 = vpack.c.bf16 %v5421_v60, %v5413_v58  ;;  %v5483_v57 = vld [vmem:[#allocation9 + $0x10c0] sm:$0xff]  ;;  %v5477_v58 = vld [vmem:[#allocation9 + $0x1090] sm:$0xff] }
 0x513   :  { %v10248_v9 = vpack.c.bf16 %v5438_v1, %v5430_v63  ;;  %v5486_v53 = vld [vmem:[#allocation9 + $0x10d8] sm:$0xff]  ;;  %v5485_v60 = vld [vmem:[#allocation9 + $0x10d0] sm:$0xff] }
 0x514   :  { %9975 = vmatpush1.bf16.msra.mxu0 %v9974_v6  ;;  %v5427_v6 = vld [vmem:[#allocation9 + $0xf00] sm:$0xff]  ;;  %v5494_v63 = vld [vmem:[#allocation9 + $0x1118] sm:$0xff] }
 0x515   :  { %10231 = vmatpush1.bf16.msra.mxu1 %v10230_v7  ;;  %9977 = vmatprep.subr.bf16.mxu0 %v9976_v8  ;;  %v5435_v7 = vld [vmem:[#allocation9 + $0xf40] sm:$0xff]  ;;  %v5429_v8 = vld [vmem:[#allocation9 + $0xf10] sm:$0xff]  ;;  %v5502_v1 = vld [vmem:[#allocation9 + $0x1158] sm:$0xff] }
 0x516   :  { %10233 = vmatprep.subr.bf16.mxu1 %v10232_v13  ;;  %v5452_v13 = vld [vmem:[#allocation9 + $0xfc8] sm:$0xff]  ;;  %v9994_v16 = vpack.c.bf16 %v5435_v7, %v5427_v6  ;;  %v5491_v6 = vld [vmem:[#allocation9 + $0x1100] sm:$0xff] }
 0x517   :  { %v5499_v7 = vld [vmem:[#allocation9 + $0x1140] sm:$0xff] }
 0x518   :  { %9979 = vmatpush1.bf16.msra.mxu0 %v9978_v20  ;;  %v10250_v20 = vpack.c.bf16 %v5437_v10, %v5429_v8  ;;  %v5493_v8 = vld [vmem:[#allocation9 + $0x1110] sm:$0xff] }
 0x519   :  { %10235 = vmatpush1.bf16.msra.mxu1 %v10234_v21  ;;  %9981 = vmatprep.subr.bf16.mxu0 %v9980_v23  ;;  %v9996_v21 = vpack.c.bf16 %v5452_v13, %v5444_v11  ;;  %v5443_v23 = vld [vmem:[#allocation9 + $0xf80] sm:$0xff]  ;;  %v5501_v10 = vld [vmem:[#allocation9 + $0x1150] sm:$0xff]  ;;  %v5508_v11 = vld [vmem:[#allocation9 + $0x1188] sm:$0xff] }
 0x51a   :  { %10237 = vmatprep.subr.bf16.mxu1 %v10236_v17  ;;  %v5453_v17 = vld [vmem:[#allocation9 + $0xfd0] sm:$0xff]  ;;  %v9998_v27 = vpack.c.bf16 %v5451_v24, %v5443_v23  ;;  %v5516_v13 = vld [vmem:[#allocation9 + $0x11c8] sm:$0xff]  ;;  %v5515_v23 = vld [vmem:[#allocation9 + $0x11c0] sm:$0xff] }
 0x51b   :  { %v5509_v24 = vld [vmem:[#allocation9 + $0x1190] sm:$0xff] }
 0x51c   :  { %9983 = vmatpush1.bf16.msra.mxu0 %v9982_v38  ;;  %v4933_v38 = vadd.f32 %v11587_v37, %v4902_v19  ;;  %v10258_v37 = vpack.c.bf16 %v5469_v47, %v5461_v43  ;;  %v10266_v19 = vpack.c.bf16 %v5501_v10, %v5493_v8  ;;  %v5533_v43 = vld [vmem:[#allocation9 + $0x1250] sm:$0xff]  ;;  %v5548_v47 = vld [vmem:[#allocation9 + $0x12c8] sm:$0xff] }
 0x51d   :  { %10239 = vmatpush1.bf16.msra.mxu1 %v10238_v40  ;;  %9985 = vmatprep.subr.bf16.mxu0 %v9984_v41  ;;  %v10254_v40 = vpack.c.bf16 %v5453_v17, %v5445_v22  ;;  %v10000_v41 = vpack.c.bf16 %v5468_v32, %v5460_v31  ;;  %v10268_v22 = vpack.c.bf16 %v5518_v15, %v5510_v14  ;;  %v5524_v17 = vld [vmem:[#allocation9 + $0x1208] sm:$0xff]  ;;  %v5526_v32 = vld [vmem:[#allocation9 + $0x1218] sm:$0xff]  ;;  %v5565_v8 = vld [vmem:[#allocation9 + $0x1350] sm:$0xff] }
 0x51e   :  { %10241 = vmatprep.subr.bf16.mxu1 %v10240_v46  ;;  %v10256_v46 = vpack.c.bf16 %v5470_v35, %v5462_v34  ;;  %v5532_v31 = vld [vmem:[#allocation9 + $0x1248] sm:$0xff]  ;;  %v5534_v34 = vld [vmem:[#allocation9 + $0x1258] sm:$0xff] }
 0x51f   :  { %v5580_v10 = vld [vmem:[#allocation9 + $0x13c8] sm:$0xff] }
 0x520   :  { %9987 = vmatpush1.bf16.msra.mxu0 %v9986_v0  ;;  %v10002_v0 = vpack.c.bf16 %v5467_v42, %v5459_v33  ;;  %v5525_v33 = vld [vmem:[#allocation9 + $0x1210] sm:$0xff]  ;;  %v10272_v42 = vpack.c.bf16 %v5534_v34, %v5526_v32 }
 0x521   :  { %10243 = vmatpush1.bf16.msra.mxu1 %v10242_v54  ;;  %9989 = vmatprep.subr.bf16.mxu0 %v9988_v55  ;;  %v11654_v54 = vmax.f32 %v4933_v38, 0.0  ;;  %v10004_v55 = vpack.c.bf16 %v5484_v51, %v5476_v49  ;;  %v10016_v38 = vpack.c.bf16 %v5532_v31, %v5524_v17  ;;  %v5542_v49 = vld [vmem:[#allocation9 + $0x1298] sm:$0xff] }
 0x522   :  { %10245 = vmatprep.subr.bf16.mxu1 %v10244_v59  ;;  %v10260_v59 = vpack.c.bf16 %v5486_v53, %v5478_v52  ;;  %v5550_v51 = vld [vmem:[#allocation9 + $0x12d8] sm:$0xff]  ;;  %v10274_v53 = vpack.c.bf16 %v5533_v43, %v5525_v33  ;;  %v5597_v33 = vld [vmem:[#allocation9 + $0x1450] sm:$0xff]  ;;  %v5612_v43 = vld [vmem:[#allocation9 + $0x14c8] sm:$0xff] }
 0x523   :  { %v5590_v17 = vld [vmem:[#allocation9 + $0x1418] sm:$0xff] }
 0x524   :  { %9991 = vmatpush1.bf16.msra.mxu0 %v9990_v2  ;;  %v10006_v2 = vpack.c.bf16 %v5483_v57, %v5475_v56  ;;  %v5541_v56 = vld [vmem:[#allocation9 + $0x1290] sm:$0xff]  ;;  %v10276_v57 = vpack.c.bf16 %v5550_v51, %v5542_v49  ;;  %v5598_v31 = vld [vmem:[#allocation9 + $0x1458] sm:$0xff] }
 0x525   :  { %10247 = vmatpush1.bf16.msra.mxu1 %v10246_v4  ;;  %9993 = vmatprep.subr.bf16.mxu0 %v9992_v5  ;;  %v10262_v4 = vpack.c.bf16 %v5485_v60, %v5477_v58  ;;  %v10008_v5 = vpack.c.bf16 %v5500_v48, %v5492_v61  ;;  %v5549_v58 = vld [vmem:[#allocation9 + $0x12d0] sm:$0xff]  ;;  %v5564_v60 = vld [vmem:[#allocation9 + $0x1348] sm:$0xff]  ;;  %v5558_v61 = vld [vmem:[#allocation9 + $0x1318] sm:$0xff] }
 0x526   :  { %10249 = vmatprep.subr.bf16.mxu1 %v10248_v9  ;;  %v10264_v9 = vpack.c.bf16 %v5502_v1, %v5494_v63  ;;  %v5566_v48 = vld [vmem:[#allocation9 + $0x1358] sm:$0xff]  ;;  %v10278_v1 = vpack.c.bf16 %v5549_v58, %v5541_v56  ;;  %v5613_v56 = vld [vmem:[#allocation9 + $0x14d0] sm:$0xff]  ;;  %v5628_v58 = vld [vmem:[#allocation9 + $0x1548] sm:$0xff] }
 0x528   :  { %9995 = vmatpush1.bf16.msra.mxu0 %v9994_v16  ;;  %v10010_v16 = vpack.c.bf16 %v5499_v7, %v5491_v6  ;;  %v5557_v6 = vld [vmem:[#allocation9 + $0x1310] sm:$0xff]  ;;  %v10280_v7 = vpack.c.bf16 %v5566_v48, %v5558_v61 }
 0x529   :  { %10251 = vmatpush1.bf16.msra.mxu1 %v10250_v20  ;;  %9997 = vmatprep.subr.bf16.mxu0 %v9996_v21  ;;  %v10012_v20 = vpack.c.bf16 %v5516_v13, %v5508_v11  ;;  %v5507_v21 = vld [vmem:[#allocation9 + $0x1180] sm:$0xff]  ;;  %v5574_v11 = vld [vmem:[#allocation9 + $0x1398] sm:$0xff]  ;;  %v10282_v15 = vpack.c.bf16 %v5565_v8, %v5557_v6  ;;  %v5629_v6 = vld [vmem:[#allocation9 + $0x1550] sm:$0xff] }
 0x52a   :  { %10253 = vmatprep.subr.bf16.mxu1 %v10252_v26  ;;  %v5517_v26 = vld [vmem:[#allocation9 + $0x11d0] sm:$0xff]  ;;  %v10014_v35 = vpack.c.bf16 %v5515_v23, %v5507_v21  ;;  %v5582_v13 = vld [vmem:[#allocation9 + $0x13d8] sm:$0xff]  ;;  %v5644_v8 = vld [vmem:[#allocation9 + $0x15c8] sm:$0xff] }
 0x52b   :  { %v5573_v21 = vld [vmem:[#allocation9 + $0x1390] sm:$0xff]  ;;  %v10284_v23 = vpack.c.bf16 %v5582_v13, %v5574_v11 }
 0x52c   :  { %9999 = vmatpush1.bf16.msra.mxu0 %v9998_v27  ;;  %v10270_v27 = vpack.c.bf16 %v5517_v26, %v5509_v24  ;;  %v5581_v24 = vld [vmem:[#allocation9 + $0x13d0] sm:$0xff]  ;;  %v5596_v26 = vld [vmem:[#allocation9 + $0x1448] sm:$0xff] }
 0x52d   :  { %10255 = vmatpush1.bf16.msra.mxu1 %v10254_v40  ;;  %10001 = vmatprep.subr.bf16.mxu0 %v10000_v41  ;;  %v5523_v40 = vld [vmem:[#allocation9 + $0x1200] sm:$0xff]  ;;  %v10286_v34 = vpack.c.bf16 %v5581_v24, %v5573_v21  ;;  %v5645_v21 = vld [vmem:[#allocation9 + $0x15d0] sm:$0xff]  ;;  %v5660_v24 = vld [vmem:[#allocation9 + $0x1648] sm:$0xff] }
 0x52e   :  { %10257 = vmatprep.subr.bf16.mxu1 %v10256_v46  ;;  %v5531_v41 = vld [vmem:[#allocation9 + $0x1240] sm:$0xff]  ;;  %v5540_v46 = vld [vmem:[#allocation9 + $0x1288] sm:$0xff] }
 0x52f   :  { %6149 = vmatmul.mubr.f32.vlgmr.msra.gmra.mrb[8].mxu0 %v11654_v54  ;;  %v10018_v52 = vpack.c.bf16 %v5531_v41, %v5523_v40  ;;  %v5589_v40 = vld [vmem:[#allocation9 + $0x1410] sm:$0xff]  ;;  %v10288_v41 = vpack.c.bf16 %v5598_v31, %v5590_v17 }
 0x530   :  { %6433 = vmatmul.mubr.f32.vlgmr.msra.gmra.mrb[8].mxu1 %v11654_v54  ;;  %10003 = vmatpush1.bf16.msra.mxu0 %v10002_v0  ;;  %v10020_v0 = vpack.c.bf16 %v5548_v47, %v5540_v46  ;;  %v5606_v46 = vld [vmem:[#allocation9 + $0x1498] sm:$0xff]  ;;  %v10290_v51 = vpack.c.bf16 %v5597_v33, %v5589_v40  ;;  %v5661_v40 = vld [vmem:[#allocation9 + $0x1650] sm:$0xff]  ;;  %v5676_v33 = vld [vmem:[#allocation9 + $0x16c8] sm:$0xff] }
 0x531   :  { %10259 = vmatpush1.bf16.msra.mxu1 %v10258_v37  ;;  %10005 = vmatprep.subr.bf16.mxu0 %v10004_v55  ;;  %v5539_v37 = vld [vmem:[#allocation9 + $0x1280] sm:$0xff]  ;;  %v5614_v47 = vld [vmem:[#allocation9 + $0x14d8] sm:$0xff] }
 0x532   :  { %10261 = vmatprep.subr.bf16.mxu1 %v10260_v59  ;;  %v5547_v55 = vld [vmem:[#allocation9 + $0x12c0] sm:$0xff]  ;;  %v5556_v59 = vld [vmem:[#allocation9 + $0x1308] sm:$0xff] }
 0x533   :  { %v10022_v63 = vpack.c.bf16 %v5547_v55, %v5539_v37  ;;  %v5605_v37 = vld [vmem:[#allocation9 + $0x1490] sm:$0xff]  ;;  %v10292_v55 = vpack.c.bf16 %v5614_v47, %v5606_v46 }
 0x534   :  { %10007 = vmatpush1.bf16.msra.mxu0 %v10006_v2  ;;  %v10024_v2 = vpack.c.bf16 %v5564_v60, %v5556_v59  ;;  %v5622_v59 = vld [vmem:[#allocation9 + $0x1518] sm:$0xff]  ;;  %v10294_v48 = vpack.c.bf16 %v5613_v56, %v5605_v37  ;;  %v5677_v37 = vld [vmem:[#allocation9 + $0x16d0] sm:$0xff]  ;;  %v5692_v56 = vld [vmem:[#allocation9 + $0x1748] sm:$0xff] }
 0x535   :  { %10263 = vmatpush1.bf16.msra.mxu1 %v10262_v4  ;;  %10009 = vmatprep.subr.bf16.mxu0 %v10008_v5  ;;  %v5555_v4 = vld [vmem:[#allocation9 + $0x1300] sm:$0xff]  ;;  %v5630_v60 = vld [vmem:[#allocation9 + $0x1558] sm:$0xff] }
 0x536   :  { %10265 = vmatprep.subr.bf16.mxu1 %v10264_v9  ;;  %v5563_v5 = vld [vmem:[#allocation9 + $0x1340] sm:$0xff]  ;;  %v5572_v9 = vld [vmem:[#allocation9 + $0x1388] sm:$0xff] }
 0x537   :  { %v10026_v14 = vpack.c.bf16 %v5563_v5, %v5555_v4  ;;  %v5621_v4 = vld [vmem:[#allocation9 + $0x1510] sm:$0xff]  ;;  %v10296_v5 = vpack.c.bf16 %v5630_v60, %v5622_v59 }
 0x538   :  { %10011 = vmatpush1.bf16.msra.mxu0 %v10010_v16  ;;  %v10028_v16 = vpack.c.bf16 %v5580_v10, %v5572_v9  ;;  %v5638_v9 = vld [vmem:[#allocation9 + $0x1598] sm:$0xff]  ;;  %v10298_v13 = vpack.c.bf16 %v5629_v6, %v5621_v4  ;;  %v5693_v4 = vld [vmem:[#allocation9 + $0x1750] sm:$0xff]  ;;  %v5708_v6 = vld [vmem:[#allocation9 + $0x17c8] sm:$0xff] }
 0x539   :  { %10267 = vmatpush1.bf16.msra.mxu1 %v10266_v19  ;;  %10013 = vmatprep.subr.bf16.mxu0 %v10012_v20  ;;  %v5571_v19 = vld [vmem:[#allocation9 + $0x1380] sm:$0xff]  ;;  %v5646_v10 = vld [vmem:[#allocation9 + $0x15d8] sm:$0xff] }
 0x53a   :  { %10269 = vmatprep.subr.bf16.mxu1 %v10268_v22  ;;  %v5579_v20 = vld [vmem:[#allocation9 + $0x13c0] sm:$0xff]  ;;  %v5588_v22 = vld [vmem:[#allocation9 + $0x1408] sm:$0xff] }
 0x53b   :  { %v10030_v32 = vpack.c.bf16 %v5579_v20, %v5571_v19  ;;  %v5637_v19 = vld [vmem:[#allocation9 + $0x1590] sm:$0xff]  ;;  %v10300_v20 = vpack.c.bf16 %v5646_v10, %v5638_v9 }
 0x53c   :  { %10015 = vmatpush1.bf16.msra.mxu0 %v10014_v35  ;;  %v10032_v35 = vpack.c.bf16 %v5596_v26, %v5588_v22  ;;  %v5654_v22 = vld [vmem:[#allocation9 + $0x1618] sm:$0xff]  ;;  %v10302_v31 = vpack.c.bf16 %v5645_v21, %v5637_v19  ;;  %v5709_v19 = vld [vmem:[#allocation9 + $0x17d0] sm:$0xff]  ;;  %v5724_v21 = vld [vmem:[#allocation9 + $0x1848] sm:$0xff] }
 0x53d   :  { %10271 = vmatpush1.bf16.msra.mxu1 %v10270_v27  ;;  %10017 = vmatprep.subr.bf16.mxu0 %v10016_v38  ;;  %v5587_v27 = vld [vmem:[#allocation9 + $0x1400] sm:$0xff]  ;;  %v5662_v26 = vld [vmem:[#allocation9 + $0x1658] sm:$0xff] }
 0x53e   :  { %10273 = vmatprep.subr.bf16.mxu1 %v10272_v42  ;;  %v5595_v38 = vld [vmem:[#allocation9 + $0x1440] sm:$0xff]  ;;  %v5604_v42 = vld [vmem:[#allocation9 + $0x1488] sm:$0xff] }
 0x53f   :  { %v10034_v49 = vpack.c.bf16 %v5595_v38, %v5587_v27  ;;  %v5653_v27 = vld [vmem:[#allocation9 + $0x1610] sm:$0xff]  ;;  %v10304_v38 = vpack.c.bf16 %v5662_v26, %v5654_v22 }
 0x540   :  { %10019 = vmatpush1.bf16.msra.mxu0 %v10018_v52  ;;  %v10036_v52 = vpack.c.bf16 %v5612_v43, %v5604_v42  ;;  %v5670_v42 = vld [vmem:[#allocation9 + $0x1698] sm:$0xff]  ;;  %v10306_v47 = vpack.c.bf16 %v5661_v40, %v5653_v27  ;;  %v2604_v27 = vrot.slane %v11516_v29, %v11575_v62  ;;  %v2608_v40 = vrot.slane %v11518_v36, %v11575_v62 }
 0x541   :  { %10275 = vmatpush1.bf16.msra.mxu1 %v10274_v53  ;;  %10021 = vmatprep.subr.bf16.mxu0 %v10020_v0  ;;  %v5603_v53 = vld [vmem:[#allocation9 + $0x1480] sm:$0xff]  ;;  %v5678_v43 = vld [vmem:[#allocation9 + $0x16d8] sm:$0xff] }
 0x542   :  { %10277 = vmatprep.subr.bf16.mxu1 %v10276_v57  ;;  %v5611_v0 = vld [vmem:[#allocation9 + $0x14c0] sm:$0xff]  ;;  %v5620_v57 = vld [vmem:[#allocation9 + $0x1508] sm:$0xff] }
 0x543   :  { %v10038_v61 = vpack.c.bf16 %v5611_v0, %v5603_v53  ;;  %v5669_v53 = vld [vmem:[#allocation9 + $0x1690] sm:$0xff]  ;;  %v10308_v0 = vpack.c.bf16 %v5678_v43, %v5670_v42  ;;  %v2616_v43 = vrot.slane %v11522_v44, %v11575_v62 }
 0x544   :  { %10023 = vmatpush1.bf16.msra.mxu0 %v10022_v63  ;;  %v10040_v63 = vpack.c.bf16 %v5628_v58, %v5620_v57  ;;  %v5686_v57 = vld [vmem:[#allocation9 + $0x1718] sm:$0xff]  ;;  %v10310_v60 = vpack.c.bf16 %v5677_v37, %v5669_v53  ;;  %v5723_v37 = vld [vmem:[#allocation9 + $0x1840] sm:$0xff] }
 0x545   :  { %10279 = vmatpush1.bf16.msra.mxu1 %v10278_v1  ;;  %10025 = vmatprep.subr.bf16.mxu0 %v10024_v2  ;;  %v5619_v1 = vld [vmem:[#allocation9 + $0x1500] sm:$0xff]  ;;  %v5694_v58 = vld [vmem:[#allocation9 + $0x1758] sm:$0xff] }
 0x546   :  { %10281 = vmatprep.subr.bf16.mxu1 %v10280_v7  ;;  %v5627_v2 = vld [vmem:[#allocation9 + $0x1540] sm:$0xff]  ;;  %v5636_v7 = vld [vmem:[#allocation9 + $0x1588] sm:$0xff] }
 0x547   :  { %v10042_v11 = vpack.c.bf16 %v5627_v2, %v5619_v1  ;;  %v5685_v1 = vld [vmem:[#allocation9 + $0x1710] sm:$0xff]  ;;  %v10312_v2 = vpack.c.bf16 %v5694_v58, %v5686_v57  ;;  %v5732_v58 = vld [vmem:[#allocation9 + $0x1888] sm:$0xff] }
 0x548   :  { %10027 = vmatpush1.bf16.msra.mxu0 %v10026_v14  ;;  %v10044_v14 = vpack.c.bf16 %v5644_v8, %v5636_v7  ;;  %v5702_v7 = vld [vmem:[#allocation9 + $0x1798] sm:$0xff]  ;;  %v10314_v10 = vpack.c.bf16 %v5693_v4, %v5685_v1  ;;  %v5731_v1 = vld [vmem:[#allocation9 + $0x1880] sm:$0xff] }
 0x549   :  { %10283 = vmatpush1.bf16.msra.mxu1 %v10282_v15  ;;  %10029 = vmatprep.subr.bf16.mxu0 %v10028_v16  ;;  %v5635_v15 = vld [vmem:[#allocation9 + $0x1580] sm:$0xff]  ;;  %v5710_v8 = vld [vmem:[#allocation9 + $0x17d8] sm:$0xff] }
 0x54a   :  { %10285 = vmatprep.subr.bf16.mxu1 %v10284_v23  ;;  %v5643_v16 = vld [vmem:[#allocation9 + $0x15c0] sm:$0xff]  ;;  %v5652_v23 = vld [vmem:[#allocation9 + $0x1608] sm:$0xff] }
 0x54b   :  { %v10046_v17 = vpack.c.bf16 %v5643_v16, %v5635_v15  ;;  %v5701_v15 = vld [vmem:[#allocation9 + $0x1790] sm:$0xff]  ;;  %v10316_v16 = vpack.c.bf16 %v5710_v8, %v5702_v7  ;;  %v5748_v7 = vld [vmem:[#allocation9 + $0x1908] sm:$0xff] }
 0x54c   :  { %10031 = vmatpush1.bf16.msra.mxu0 %v10030_v32  ;;  %v10048_v32 = vpack.c.bf16 %v5660_v24, %v5652_v23  ;;  %v5718_v23 = vld [vmem:[#allocation9 + $0x1818] sm:$0xff]  ;;  %v10318_v26 = vpack.c.bf16 %v5709_v19, %v5701_v15  ;;  %v5747_v19 = vld [vmem:[#allocation9 + $0x1900] sm:$0xff] }
 0x54d   :  { %10287 = vmatpush1.bf16.msra.mxu1 %v10286_v34  ;;  %10033 = vmatprep.subr.bf16.mxu0 %v10032_v35  ;;  %v5651_v34 = vld [vmem:[#allocation9 + $0x1600] sm:$0xff]  ;;  %v5726_v24 = vld [vmem:[#allocation9 + $0x1858] sm:$0xff] }
 0x54e   :  { %10289 = vmatprep.subr.bf16.mxu1 %v10288_v41  ;;  %v5659_v35 = vld [vmem:[#allocation9 + $0x1640] sm:$0xff]  ;;  %v5668_v41 = vld [vmem:[#allocation9 + $0x1688] sm:$0xff] }
 0x54f   :  { %v10050_v46 = vpack.c.bf16 %v5659_v35, %v5651_v34  ;;  %v4913_v34 = vsub.s32 5, %v11572_v50  ;;  %v4921_v35 = vsub.s32 7, %v11572_v50 }
 0x550   :  { %10035 = vmatpush1.bf16.msra.mxu0 %v10034_v49  ;;  %v10052_v49 = vpack.c.bf16 %v5676_v33, %v5668_v41  ;;  %v2612_v41 = vrot.slane %v11520_v12, %v11575_v62  ;;  %v5715_v12 = vld [vmem:[#allocation9 + $0x1800] sm:$0xff] }
 0x551   :  { %10291 = vmatpush1.bf16.msra.mxu1 %v10290_v51  ;;  %10037 = vmatprep.subr.bf16.mxu0 %v10036_v52  ;;  %v5667_v51 = vld [vmem:[#allocation9 + $0x1680] sm:$0xff]  ;;  %v4914_v42 = vrot.slane %v11648_v18, %v4913_v34 }
 0x552   :  { %10293 = vmatprep.subr.bf16.mxu1 %v10292_v55  ;;  %v5675_v52 = vld [vmem:[#allocation9 + $0x16c0] sm:$0xff]  ;;  %v5684_v55 = vld [vmem:[#allocation9 + $0x1708] sm:$0xff] }
 0x553   :  { %v10054_v59 = vpack.c.bf16 %v5675_v52, %v5667_v51 }
 0x554   :  { %10039 = vmatpush1.bf16.msra.mxu0 %v10038_v61  ;;  %v10056_v61 = vpack.c.bf16 %v5692_v56, %v5684_v55  ;;  %v5717_v55 = vld [vmem:[#allocation9 + $0x1810] sm:$0xff] }
 0x555   :  { %10295 = vmatpush1.bf16.msra.mxu1 %v10294_v48  ;;  %10041 = vmatprep.subr.bf16.mxu0 %v10040_v63  ;;  %v5683_v48 = vld [vmem:[#allocation9 + $0x1700] sm:$0xff]  ;;  %v5725_v56 = vld [vmem:[#allocation9 + $0x1850] sm:$0xff] }
 0x556   :  { %10297 = vmatprep.subr.bf16.mxu1 %v10296_v5  ;;  %v5691_v63 = vld [vmem:[#allocation9 + $0x1740] sm:$0xff]  ;;  %v5700_v5 = vld [vmem:[#allocation9 + $0x1788] sm:$0xff] }
 0x557   :  { %v10058_v9 = vpack.c.bf16 %v5691_v63, %v5683_v48  ;;  %v10066_v63 = vpack.c.bf16 %v5723_v37, %v5715_v12  ;;  %v5787_v37 = vld [vmem:[#allocation9 + $0x1a40] sm:$0xff] }
 0x558   :  { %10043 = vmatpush1.bf16.msra.mxu0 %v10042_v11  ;;  %v10060_v11 = vpack.c.bf16 %v5708_v6, %v5700_v5  ;;  %v5733_v5 = vld [vmem:[#allocation9 + $0x1890] sm:$0xff] }
 0x559   :  { %10299 = vmatpush1.bf16.msra.mxu1 %v10298_v13  ;;  %10045 = vmatprep.subr.bf16.mxu0 %v10044_v14  ;;  %v5699_v13 = vld [vmem:[#allocation9 + $0x1780] sm:$0xff]  ;;  %v5741_v6 = vld [vmem:[#allocation9 + $0x18d0] sm:$0xff] }
 0x55a   :  { %10301 = vmatprep.subr.bf16.mxu1 %v10300_v20  ;;  %v5707_v14 = vld [vmem:[#allocation9 + $0x17c0] sm:$0xff]  ;;  %v5716_v20 = vld [vmem:[#allocation9 + $0x1808] sm:$0xff] }
 0x55b   :  { %v10062_v22 = vpack.c.bf16 %v5707_v14, %v5699_v13  ;;  %v5758_v13 = vld [vmem:[#allocation9 + $0x1958] sm:$0xff] }
 0x55c   :  { %10047 = vmatpush1.bf16.msra.mxu0 %v10046_v17  ;;  %v10064_v17 = vpack.c.bf16 %v5724_v21, %v5716_v20  ;;  %v5755_v20 = vld [vmem:[#allocation9 + $0x1940] sm:$0xff] }
 0x55d   :  { %10303 = vmatpush1.bf16.msra.mxu1 %v10302_v31  ;;  %10049 = vmatprep.subr.bf16.mxu0 %v10048_v32  ;;  %v10320_v31 = vpack.c.bf16 %v5726_v24, %v5718_v23  ;;  %v4909_v32 = vsub.s32 4, %v11572_v50  ;;  %v5749_v24 = vld [vmem:[#allocation9 + $0x1910] sm:$0xff] }
 0x55e   :  { %10305 = vmatprep.subr.bf16.mxu1 %v10304_v38 }
 0x55f   :  { %v4910_v38 = vrot.slane %v11648_v18, %v4909_v32 }
 0x560   :  { %10051 = vmatpush1.bf16.msra.mxu0 %v10050_v46 }
 0x561   :  { %10307 = vmatpush1.bf16.msra.mxu1 %v10306_v47  ;;  %10053 = vmatprep.subr.bf16.mxu0 %v10052_v49  ;;  %v4922_v49 = vrot.slane %v11648_v18, %v4921_v35  ;;  %v10322_v18 = vpack.c.bf16 %v5725_v56, %v5717_v55 }
 0x562   :  { %10309 = vmatprep.subr.bf16.mxu1 %v10308_v0 }
 0x564   :  { %10055 = vmatpush1.bf16.msra.mxu0 %v10054_v59  ;;  %v5740_v59 = vld [vmem:[#allocation9 + $0x18c8] sm:$0xff] }
 0x565   :  { %10311 = vmatpush1.bf16.msra.mxu1 %v10310_v60  ;;  %10057 = vmatprep.subr.bf16.mxu0 %v10056_v61  ;;  %v5734_v60 = vld [vmem:[#allocation9 + $0x1898] sm:$0xff]  ;;  %v10068_v8 = vpack.c.bf16 %v5740_v59, %v5732_v58  ;;  %v5789_v58 = vld [vmem:[#allocation9 + $0x1a50] sm:$0xff]  ;;  %v5804_v59 = vld [vmem:[#allocation9 + $0x1ac8] sm:$0xff] }
 0x566   :  { %10313 = vmatprep.subr.bf16.mxu1 %v10312_v2  ;;  %v5742_v61 = vld [vmem:[#allocation9 + $0x18d8] sm:$0xff]  ;;  %v5739_v2 = vld [vmem:[#allocation9 + $0x18c0] sm:$0xff] }
 0x567   :  { %v10070_v15 = vpack.c.bf16 %v5739_v2, %v5731_v1  ;;  %v5795_v1 = vld [vmem:[#allocation9 + $0x1a80] sm:$0xff] }
 0x568   :  { %10059 = vmatpush1.bf16.msra.mxu0 %v10058_v9  ;;  %v10324_v9 = vpack.c.bf16 %v5742_v61, %v5734_v60  ;;  %v5798_v60 = vld [vmem:[#allocation9 + $0x1a98] sm:$0xff]  ;;  %v5803_v2 = vld [vmem:[#allocation9 + $0x1ac0] sm:$0xff] }
 0x569   :  { %10315 = vmatpush1.bf16.msra.mxu1 %v10314_v10  ;;  %10061 = vmatprep.subr.bf16.mxu0 %v10060_v11  ;;  %v5756_v10 = vld [vmem:[#allocation9 + $0x1948] sm:$0xff]  ;;  %v5750_v11 = vld [vmem:[#allocation9 + $0x1918] sm:$0xff] }
 0x56a   :  { %10317 = vmatprep.subr.bf16.mxu1 %v10316_v16  ;;  %v10326_v16 = vpack.c.bf16 %v5741_v6, %v5733_v5  ;;  %v10072_v21 = vpack.c.bf16 %v5756_v10, %v5748_v7  ;;  %v10328_v23 = vpack.c.bf16 %v5758_v13, %v5750_v11  ;;  %v5806_v61 = vld [vmem:[#allocation9 + $0x1ad8] sm:$0xff]  ;;  %v5797_v7 = vld [vmem:[#allocation9 + $0x1a90] sm:$0xff]  ;;  %v5820_v10 = vld [vmem:[#allocation9 + $0x1b48] sm:$0xff] }
 0x56b   :  { %v10340_v6 = vpack.c.bf16 %v5806_v61, %v5798_v60  ;;  %v5814_v11 = vld [vmem:[#allocation9 + $0x1b18] sm:$0xff] }
 0x56c   :  { %10063 = vmatpush1.bf16.msra.mxu0 %v10062_v22  ;;  %v5757_v22 = vld [vmem:[#allocation9 + $0x1950] sm:$0xff]  ;;  %v5822_v13 = vld [vmem:[#allocation9 + $0x1b58] sm:$0xff] }
 0x56d   :  { %10319 = vmatpush1.bf16.msra.mxu1 %v10318_v26  ;;  %10065 = vmatprep.subr.bf16.mxu0 %v10064_v17  ;;  %v5764_v26 = vld [vmem:[#allocation9 + $0x1988] sm:$0xff]  ;;  %v5862_v60 = vld [vmem:[#allocation9 + $0x1c98] sm:$0xff] }
 0x56e   :  { %10321 = vmatprep.subr.bf16.mxu1 %v10320_v31  ;;  %v5772_v17 = vld [vmem:[#allocation9 + $0x19c8] sm:$0xff]  ;;  %v5766_v31 = vld [vmem:[#allocation9 + $0x1998] sm:$0xff] }
 0x56f   :  { %v5870_v61 = vld [vmem:[#allocation9 + $0x1cd8] sm:$0xff] }
 0x582   :  { %v4316_v33 = vpop.f32.mrb[6].mxu0 }
 0x583   :  { %v11028_v46 = vadd.f32 %v4316_v33, %v2604_v27  ;;  %v4884_v29 = vpop.f32.mrb[6].mxu1  ;;  %v4318_v47 = vpop.f32.mrb[7].mxu0  ;;  %v5774_v27 = vld [vmem:[#allocation9 + $0x19d8] sm:$0xff]  ;;  %v5771_v33 = vld [vmem:[#allocation9 + $0x19c0] sm:$0xff] }
 0x584   :  { %v11678_v51 = vadd.f32 %v4884_v29, %v2612_v41  ;;  %v11029_v36 = vadd.f32 %v4318_v47, %v2608_v40  ;;  %v4886_v52 = vpop.f32.mrb[7].mxu1  ;;  %v10330_v40 = vpack.c.bf16 %v5757_v22, %v5749_v24  ;;  %v5763_v41 = vld [vmem:[#allocation9 + $0x1980] sm:$0xff]  ;;  %v5773_v29 = vld [vmem:[#allocation9 + $0x19d0] sm:$0xff]  ;;  %v5780_v47 = vld [vmem:[#allocation9 + $0x1a08] sm:$0xff] }
 0x585   :  { %v4935_v53 = vadd.f32 %v11028_v46, %v4910_v38  ;;  %v11031_v0 = vadd.f32 %v4886_v52, %v2616_v43  ;;  %v10074_v38 = vpack.c.bf16 %v5755_v20, %v5747_v19  ;;  %v10332_v43 = vpack.c.bf16 %v5774_v27, %v5766_v31  ;;  %v5765_v46 = vld [vmem:[#allocation9 + $0x1990] sm:$0xff]  ;;  %v5790_v52 = vld [vmem:[#allocation9 + $0x1a58] sm:$0xff]  ;;  %v5811_v19 = vld [vmem:[#allocation9 + $0x1b00] sm:$0xff] }
 0x586   :  { %v4936_v57 = vadd.f32 %v11029_v36, %v4914_v42  ;;  %v10076_v42 = vpack.c.bf16 %v5772_v17, %v5764_v26  ;;  %v5782_v36 = vld [vmem:[#allocation9 + $0x1a18] sm:$0xff]  ;;  %v10078_v12 = vpack.c.bf16 %v5771_v33, %v5763_v41  ;;  %v5819_v20 = vld [vmem:[#allocation9 + $0x1b40] sm:$0xff]  ;;  %v5813_v24 = vld [vmem:[#allocation9 + $0x1b10] sm:$0xff] }
 0x587   :  { %v4938_v44 = vadd.f32 %v11031_v0, %v4922_v49  ;;  %v11682_v4 = vmax.f32 %v4935_v53, 0.0  ;;  %v5788_v49 = vld [vmem:[#allocation9 + $0x1a48] sm:$0xff]  ;;  %v10334_v53 = vpack.c.bf16 %v5773_v29, %v5765_v46  ;;  %v5779_v0 = vld [vmem:[#allocation9 + $0x1a00] sm:$0xff]  ;;  %v10336_v56 = vpack.c.bf16 %v5790_v52, %v5782_v36  ;;  %v5821_v22 = vld [vmem:[#allocation9 + $0x1b50] sm:$0xff] }
 0x588   :  { %v11680_v48 = vmax.f32 %v4936_v57, 0.0  ;;  %v10080_v55 = vpack.c.bf16 %v5788_v49, %v5780_v47  ;;  %v5781_v57 = vld [vmem:[#allocation9 + $0x1a10] sm:$0xff]  ;;  %v5828_v26 = vld [vmem:[#allocation9 + $0x1b88] sm:$0xff]  ;;  %v5830_v31 = vld [vmem:[#allocation9 + $0x1b98] sm:$0xff] }
 0x589   :  { %v11686_v14 = vmax.f32 %v4938_v44, 0.0  ;;  %v5796_v44 = vld [vmem:[#allocation9 + $0x1a88] sm:$0xff]  ;;  %v5838_v27 = vld [vmem:[#allocation9 + $0x1bd8] sm:$0xff]  ;;  %v5827_v41 = vld [vmem:[#allocation9 + $0x1b80] sm:$0xff] }
 0x58a   :  { %6219 = vmatprep.mubr.f32.mxu0 %v11680_v48  ;;  %6503 = vmatprep.mubr.f32.mxu1 %v11680_v48  ;;  %v10084_v5 = vpack.c.bf16 %v5804_v59, %v5796_v44  ;;  %v5836_v17 = vld [vmem:[#allocation9 + $0x1bc8] sm:$0xff]  ;;  %v5835_v33 = vld [vmem:[#allocation9 + $0x1bc0] sm:$0xff]  ;;  %v5829_v46 = vld [vmem:[#allocation9 + $0x1b90] sm:$0xff] }
 0x58b   :  { %6220 = vmatmul.mubr.f32.vlgmr.msra.gmra.mrb[8].mxu0 %v11682_v4  ;;  %6504 = vmatmul.mubr.f32.vlgmr.msra.gmra.mrb[8].mxu1 %v11682_v4  ;;  %v5837_v29 = vld [vmem:[#allocation9 + $0x1bd0] sm:$0xff]  ;;  %v5844_v47 = vld [vmem:[#allocation9 + $0x1c08] sm:$0xff]  ;;  %v5846_v36 = vld [vmem:[#allocation9 + $0x1c18] sm:$0xff] }
 0x58c   :  { %10067 = vmatpush1.bf16.msra.mxu0 %v10066_v63  ;;  %10323 = vmatpush1.bf16.msra.mxu1 %v10322_v18  ;;  %v10082_v63 = vpack.c.bf16 %v5787_v37, %v5779_v0  ;;  %v10338_v18 = vpack.c.bf16 %v5789_v58, %v5781_v57  ;;  %v5852_v49 = vld [vmem:[#allocation9 + $0x1c48] sm:$0xff]  ;;  %v5854_v52 = vld [vmem:[#allocation9 + $0x1c58] sm:$0xff]  ;;  %v5843_v0 = vld [vmem:[#allocation9 + $0x1c00] sm:$0xff] }
 0x58d   :  { %6290 = vmatprep.mubr.f32.mxu0 %v11686_v14  ;;  %6574 = vmatprep.mubr.f32.mxu1 %v11686_v14  ;;  %v5851_v37 = vld [vmem:[#allocation9 + $0x1c40] sm:$0xff]  ;;  %v5845_v57 = vld [vmem:[#allocation9 + $0x1c10] sm:$0xff]  ;;  %v5860_v44 = vld [vmem:[#allocation9 + $0x1c88] sm:$0xff] }
 0x58e   :  { %10069 = vmatprep.subr.bf16.mxu0 %v10068_v8  ;;  %10325 = vmatprep.subr.bf16.mxu1 %v10324_v9  ;;  %v5805_v8 = vld [vmem:[#allocation9 + $0x1ad0] sm:$0xff]  ;;  %v5812_v9 = vld [vmem:[#allocation9 + $0x1b08] sm:$0xff] }
 0x58f   :  { %v5853_v58 = vld [vmem:[#allocation9 + $0x1c50] sm:$0xff]  ;;  %v5868_v59 = vld [vmem:[#allocation9 + $0x1cc8] sm:$0xff] }
 0x590   :  { %10071 = vmatpush1.bf16.msra.mxu0 %v10070_v15  ;;  %10327 = vmatpush1.bf16.msra.mxu1 %v10326_v16  ;;  %v10086_v15 = vpack.c.bf16 %v5803_v2, %v5795_v1  ;;  %v10342_v16 = vpack.c.bf16 %v5805_v8, %v5797_v7  ;;  %v5859_v1 = vld [vmem:[#allocation9 + $0x1c80] sm:$0xff]  ;;  %v5861_v7 = vld [vmem:[#allocation9 + $0x1c90] sm:$0xff] }
 0x591   :  { %10073 = vmatprep.subr.bf16.mxu0 %v10072_v21  ;;  %10329 = vmatprep.subr.bf16.mxu1 %v10328_v23  ;;  %v10088_v21 = vpack.c.bf16 %v5820_v10, %v5812_v9  ;;  %v10344_v23 = vpack.c.bf16 %v5822_v13, %v5814_v11  ;;  %v5867_v2 = vld [vmem:[#allocation9 + $0x1cc0] sm:$0xff]  ;;  %v5869_v8 = vld [vmem:[#allocation9 + $0x1cd0] sm:$0xff]  ;;  %v5876_v9 = vld [vmem:[#allocation9 + $0x1d08] sm:$0xff] }
 0x592   :  { %v5884_v10 = vld [vmem:[#allocation9 + $0x1d48] sm:$0xff]  ;;  %v5878_v11 = vld [vmem:[#allocation9 + $0x1d18] sm:$0xff] }
 0x593   :  { %v5886_v13 = vld [vmem:[#allocation9 + $0x1d58] sm:$0xff] }
 0x594   :  { %10075 = vmatpush1.bf16.msra.mxu0 %v10074_v38  ;;  %10331 = vmatpush1.bf16.msra.mxu1 %v10330_v40  ;;  %v10090_v38 = vpack.c.bf16 %v5819_v20, %v5811_v19  ;;  %v10346_v40 = vpack.c.bf16 %v5821_v22, %v5813_v24  ;;  %v5875_v19 = vld [vmem:[#allocation9 + $0x1d00] sm:$0xff]  ;;  %v5877_v24 = vld [vmem:[#allocation9 + $0x1d10] sm:$0xff] }
 0x595   :  { %10077 = vmatprep.subr.bf16.mxu0 %v10076_v42  ;;  %10333 = vmatprep.subr.bf16.mxu1 %v10332_v43  ;;  %v10092_v42 = vpack.c.bf16 %v5836_v17, %v5828_v26  ;;  %v10348_v43 = vpack.c.bf16 %v5838_v27, %v5830_v31  ;;  %v5883_v20 = vld [vmem:[#allocation9 + $0x1d40] sm:$0xff]  ;;  %v5885_v22 = vld [vmem:[#allocation9 + $0x1d50] sm:$0xff]  ;;  %v5892_v26 = vld [vmem:[#allocation9 + $0x1d88] sm:$0xff] }
 0x596   :  { %v5900_v17 = vld [vmem:[#allocation9 + $0x1dc8] sm:$0xff]  ;;  %v5894_v31 = vld [vmem:[#allocation9 + $0x1d98] sm:$0xff] }
 0x597   :  { %v5902_v27 = vld [vmem:[#allocation9 + $0x1dd8] sm:$0xff] }
 0x598   :  { %10079 = vmatpush1.bf16.msra.mxu0 %v10078_v12  ;;  %10335 = vmatpush1.bf16.msra.mxu1 %v10334_v53  ;;  %v10094_v12 = vpack.c.bf16 %v5835_v33, %v5827_v41  ;;  %v10350_v53 = vpack.c.bf16 %v5837_v29, %v5829_v46  ;;  %v5891_v41 = vld [vmem:[#allocation9 + $0x1d80] sm:$0xff]  ;;  %v5893_v46 = vld [vmem:[#allocation9 + $0x1d90] sm:$0xff] }
 0x599   :  { %10081 = vmatprep.subr.bf16.mxu0 %v10080_v55  ;;  %10337 = vmatprep.subr.bf16.mxu1 %v10336_v56  ;;  %v10096_v55 = vpack.c.bf16 %v5852_v49, %v5844_v47  ;;  %v10352_v56 = vpack.c.bf16 %v5854_v52, %v5846_v36  ;;  %v5899_v33 = vld [vmem:[#allocation9 + $0x1dc0] sm:$0xff]  ;;  %v5901_v29 = vld [vmem:[#allocation9 + $0x1dd0] sm:$0xff]  ;;  %v5908_v47 = vld [vmem:[#allocation9 + $0x1e08] sm:$0xff] }
 0x59a   :  { %v5916_v49 = vld [vmem:[#allocation9 + $0x1e48] sm:$0xff]  ;;  %v5910_v36 = vld [vmem:[#allocation9 + $0x1e18] sm:$0xff] }
 0x59b   :  { %v5918_v52 = vld [vmem:[#allocation9 + $0x1e58] sm:$0xff] }
 0x59c   :  { %10083 = vmatpush1.bf16.msra.mxu0 %v10082_v63  ;;  %10339 = vmatpush1.bf16.msra.mxu1 %v10338_v18  ;;  %v10098_v63 = vpack.c.bf16 %v5851_v37, %v5843_v0  ;;  %v10354_v18 = vpack.c.bf16 %v5853_v58, %v5845_v57  ;;  %v5907_v0 = vld [vmem:[#allocation9 + $0x1e00] sm:$0xff]  ;;  %v5909_v57 = vld [vmem:[#allocation9 + $0x1e10] sm:$0xff] }
 0x59d   :  { %10085 = vmatprep.subr.bf16.mxu0 %v10084_v5  ;;  %10341 = vmatprep.subr.bf16.mxu1 %v10340_v6  ;;  %v10100_v5 = vpack.c.bf16 %v5868_v59, %v5860_v44  ;;  %v10356_v6 = vpack.c.bf16 %v5870_v61, %v5862_v60  ;;  %v5915_v37 = vld [vmem:[#allocation9 + $0x1e40] sm:$0xff]  ;;  %v5917_v58 = vld [vmem:[#allocation9 + $0x1e50] sm:$0xff]  ;;  %v5924_v44 = vld [vmem:[#allocation9 + $0x1e88] sm:$0xff] }
 0x59e   :  { %v5932_v59 = vld [vmem:[#allocation9 + $0x1ec8] sm:$0xff]  ;;  %v5926_v60 = vld [vmem:[#allocation9 + $0x1e98] sm:$0xff] }
 0x59f   :  { %v5934_v61 = vld [vmem:[#allocation9 + $0x1ed8] sm:$0xff] }
 0x5a0   :  { %10087 = vmatpush1.bf16.msra.mxu0 %v10086_v15  ;;  %10343 = vmatpush1.bf16.msra.mxu1 %v10342_v16  ;;  %v10102_v15 = vpack.c.bf16 %v5867_v2, %v5859_v1  ;;  %v10358_v16 = vpack.c.bf16 %v5869_v8, %v5861_v7  ;;  %v5923_v1 = vld [vmem:[#allocation9 + $0x1e80] sm:$0xff]  ;;  %v5925_v7 = vld [vmem:[#allocation9 + $0x1e90] sm:$0xff] }
 0x5a1   :  { %10089 = vmatprep.subr.bf16.mxu0 %v10088_v21  ;;  %10345 = vmatprep.subr.bf16.mxu1 %v10344_v23  ;;  %v10104_v21 = vpack.c.bf16 %v5884_v10, %v5876_v9  ;;  %v10360_v23 = vpack.c.bf16 %v5886_v13, %v5878_v11  ;;  %v5931_v2 = vld [vmem:[#allocation9 + $0x1ec0] sm:$0xff]  ;;  %v5933_v8 = vld [vmem:[#allocation9 + $0x1ed0] sm:$0xff]  ;;  %v5940_v9 = vld [vmem:[#allocation9 + $0x1f08] sm:$0xff] }
 0x5a2   :  { %v5948_v10 = vld [vmem:[#allocation9 + $0x1f48] sm:$0xff]  ;;  %v5942_v11 = vld [vmem:[#allocation9 + $0x1f18] sm:$0xff] }
 0x5a3   :  { %v5950_v13 = vld [vmem:[#allocation9 + $0x1f58] sm:$0xff] }
 0x5a4   :  { %10091 = vmatpush1.bf16.msra.mxu0 %v10090_v38  ;;  %10347 = vmatpush1.bf16.msra.mxu1 %v10346_v40  ;;  %v10106_v38 = vpack.c.bf16 %v5883_v20, %v5875_v19  ;;  %v10362_v40 = vpack.c.bf16 %v5885_v22, %v5877_v24  ;;  %v5939_v19 = vld [vmem:[#allocation9 + $0x1f00] sm:$0xff]  ;;  %v10376_v24 = vpack.c.bf16 %v5950_v13, %v5942_v11  ;;  %v5941_v22 = vld [vmem:[#allocation9 + $0x1f10] sm:$0xff] }
 0x5a5   :  { %10093 = vmatprep.subr.bf16.mxu0 %v10092_v42  ;;  %10349 = vmatprep.subr.bf16.mxu1 %v10348_v43  ;;  %v10108_v42 = vpack.c.bf16 %v5900_v17, %v5892_v26  ;;  %v10364_v43 = vpack.c.bf16 %v5902_v27, %v5894_v31  ;;  %v5947_v20 = vld [vmem:[#allocation9 + $0x1f40] sm:$0xff]  ;;  %v5949_v26 = vld [vmem:[#allocation9 + $0x1f50] sm:$0xff]  ;;  %v5956_v17 = vld [vmem:[#allocation9 + $0x1f88] sm:$0xff] }
 0x5a6   :  { %v5964_v31 = vld [vmem:[#allocation9 + $0x1fc8] sm:$0xff]  ;;  %v5958_v27 = vld [vmem:[#allocation9 + $0x1f98] sm:$0xff]  ;;  %v4977_v13 = vld [vmem:[#allocation9 + $0xf0] sm:$0xff] }
 0x5a8   :  { %10095 = vmatpush1.bf16.msra.mxu0 %v10094_v12  ;;  %10351 = vmatpush1.bf16.msra.mxu1 %v10350_v53  ;;  %v10110_v12 = vpack.c.bf16 %v5899_v33, %v5891_v41  ;;  %v10366_v53 = vpack.c.bf16 %v5901_v29, %v5893_v46  ;;  %v10378_v41 = vpack.c.bf16 %v5949_v26, %v5941_v22  ;;  %v5955_v33 = vld [vmem:[#allocation9 + $0x1f80] sm:$0xff] }
 0x5a9   :  { %10097 = vmatprep.subr.bf16.mxu0 %v10096_v55  ;;  %10353 = vmatprep.subr.bf16.mxu1 %v10352_v56  ;;  %v10112_v55 = vpack.c.bf16 %v5916_v49, %v5908_v47  ;;  %v10368_v56 = vpack.c.bf16 %v5918_v52, %v5910_v36  ;;  %v10124_v29 = vpack.c.bf16 %v5964_v31, %v5956_v17  ;;  %v5957_v49 = vld [vmem:[#allocation9 + $0x1f90] sm:$0xff]  ;;  %v4952_v52 = vld [vmem:[#allocation9 + $0x28] sm:$0xff]  ;;  %v4983_v26 = vld [vmem:[#allocation9 + $0x120] sm:$0xff] }
 0x5aa   :  { %v5965_v36 = vld [vmem:[#allocation9 + $0x1fd0] sm:$0xff]  ;;  %v4991_v17 = vld [vmem:[#allocation9 + $0x160] sm:$0xff] }
 0x5ab   :  { %v4985_v31 = vld [vmem:[#allocation9 + $0x130] sm:$0xff] }
 0x5ac   :  { %10099 = vmatpush1.bf16.msra.mxu0 %v10098_v63  ;;  %10355 = vmatpush1.bf16.msra.mxu1 %v10354_v18  ;;  %v10114_v63 = vpack.c.bf16 %v5915_v37, %v5907_v0  ;;  %v10370_v18 = vpack.c.bf16 %v5917_v58, %v5909_v57  ;;  %v4962_v0 = vld [vmem:[#allocation9 + $0x78] sm:$0xff] }
 0x5ad   :  { %10101 = vmatprep.subr.bf16.mxu0 %v10100_v5  ;;  %10357 = vmatprep.subr.bf16.mxu1 %v10356_v6  ;;  %v10116_v5 = vpack.c.bf16 %v5932_v59, %v5924_v44  ;;  %v10372_v6 = vpack.c.bf16 %v5934_v61, %v5926_v60  ;;  %v4951_v44 = vld [vmem:[#allocation9 + $0x20] sm:$0xff]  ;;  %v4953_v60 = vld [vmem:[#allocation9 + $0x30] sm:$0xff] }
 0x5ae   :  { %v4959_v59 = vld [vmem:[#allocation9 + $0x60] sm:$0xff]  ;;  %v4961_v61 = vld [vmem:[#allocation9 + $0x70] sm:$0xff] }
 0x5b0   :  { %10103 = vmatpush1.bf16.msra.mxu0 %v10102_v15  ;;  %10359 = vmatpush1.bf16.msra.mxu1 %v10358_v16  ;;  %v10118_v15 = vpack.c.bf16 %v5931_v2, %v5923_v1  ;;  %v10374_v16 = vpack.c.bf16 %v5933_v8, %v5925_v7  ;;  %v4970_v1 = vld [vmem:[#allocation9 + $0xb8] sm:$0xff]  ;;  %v4967_v7 = vld [vmem:[#allocation9 + $0xa0] sm:$0xff] }
 0x5b1   :  { %10105 = vmatprep.subr.bf16.mxu0 %v10104_v21  ;;  %10361 = vmatprep.subr.bf16.mxu1 %v10360_v23  ;;  %v4917_v21 = vsub.s32 6, %v11572_v50  ;;  %v10120_v23 = vpack.c.bf16 %v5948_v10, %v5940_v9  ;;  %v4978_v2 = vld [vmem:[#allocation9 + $0xf8] sm:$0xff]  ;;  %v4975_v8 = vld [vmem:[#allocation9 + $0xe0] sm:$0xff]  ;;  %v4969_v9 = vld [vmem:[#allocation9 + $0xb0] sm:$0xff] }
 0x5b2   :  { %v10644_v11 = vpack.c.bf16 %v4978_v2, %v4970_v1  ;;  %v5034_v1 = vld [vmem:[#allocation9 + $0x2b8] sm:$0xff] }
 0x5b3   :  { %v5042_v2 = vld [vmem:[#allocation9 + $0x2f8] sm:$0xff] }
 0x5b4   :  { %10107 = vmatpush1.bf16.msra.mxu0 %v10106_v38  ;;  %10363 = vmatpush1.bf16.msra.mxu1 %v10362_v40  ;;  %v5966_v38 = vld [vmem:[#allocation9 + $0x1fd8] sm:$0xff]  ;;  %v10122_v40 = vpack.c.bf16 %v5947_v20, %v5939_v19 }
 0x5b5   :  { %10109 = vmatprep.subr.bf16.mxu0 %v10108_v42  ;;  %10365 = vmatprep.subr.bf16.mxu1 %v10364_v43  ;;  %v5963_v42 = vld [vmem:[#allocation9 + $0x1fc0] sm:$0xff]  ;;  %v11147_v43 = vld [vmem:[#allocation7] sm:$0xff]  ;;  %v10380_v47 = vpack.c.bf16 %v5966_v38, %v5958_v27  ;;  %v4993_v38 = vld [vmem:[#allocation9 + $0x170] sm:$0xff] }
 0x5b6   :  { %v4918_v46 = vrot.slane %v11147_v43, %v4917_v21  ;;  %v10126_v37 = vpack.c.bf16 %v5963_v42, %v5955_v33  ;;  %v4986_v19 = vld [vmem:[#allocation9 + $0x138] sm:$0xff]  ;;  %v10394_v43 = vpack.c.bf16 %v4991_v17, %v4983_v26  ;;  %v5047_v26 = vld [vmem:[#allocation9 + $0x320] sm:$0xff] }
 0x5b7   :  { %v4994_v20 = vld [vmem:[#allocation9 + $0x178] sm:$0xff]  ;;  %v5055_v17 = vld [vmem:[#allocation9 + $0x360] sm:$0xff] }
 0x5b8   :  { %10111 = vmatpush1.bf16.msra.mxu0 %v10110_v12  ;;  %10367 = vmatpush1.bf16.msra.mxu1 %v10366_v53  ;;  %v4960_v12 = vld [vmem:[#allocation9 + $0x68] sm:$0xff]  ;;  %v4954_v53 = vld [vmem:[#allocation9 + $0x38] sm:$0xff]  ;;  %v10648_v27 = vpack.c.bf16 %v4994_v20, %v4986_v19 }
 0x5b9   :  { %10113 = vmatprep.subr.bf16.mxu0 %v10112_v55  ;;  %10369 = vmatprep.subr.bf16.mxu1 %v10368_v56  ;;  %v10382_v55 = vpack.c.bf16 %v5965_v36, %v5957_v49  ;;  %v4937_v56 = vadd.f32 %v11678_v51, %v4918_v46  ;;  %v10384_v57 = vpack.c.bf16 %v4960_v12, %v4952_v52  ;;  %v5002_v33 = vld [vmem:[#allocation9 + $0x1b8] sm:$0xff]  ;;  %v5001_v49 = vld [vmem:[#allocation9 + $0x1b0] sm:$0xff]  ;;  %v5016_v12 = vld [vmem:[#allocation9 + $0x228] sm:$0xff] }
 0x5ba   :  { %v10640_v58 = vpack.c.bf16 %v4962_v0, %v4954_v53  ;;  %v10642_v51 = vpack.c.bf16 %v4961_v61, %v4953_v60  ;;  %v5010_v42 = vld [vmem:[#allocation9 + $0x1f8] sm:$0xff]  ;;  %v10650_v46 = vpack.c.bf16 %v4993_v38, %v4985_v31  ;;  %v5009_v52 = vld [vmem:[#allocation9 + $0x1f0] sm:$0xff]  ;;  %v5024_v53 = vld [vmem:[#allocation9 + $0x268] sm:$0xff] }
 0x5bb   :  { %v10652_v36 = vpack.c.bf16 %v5010_v42, %v5002_v33  ;;  %v5018_v0 = vld [vmem:[#allocation9 + $0x238] sm:$0xff]  ;;  %v5025_v61 = vld [vmem:[#allocation9 + $0x270] sm:$0xff] }
 0x5bc   :  { %10115 = vmatpush1.bf16.msra.mxu0 %v10114_v63  ;;  %10371 = vmatpush1.bf16.msra.mxu1 %v10370_v18  ;;  %v4968_v63 = vld [vmem:[#allocation9 + $0xa8] sm:$0xff]  ;;  %v5050_v19 = vld [vmem:[#allocation9 + $0x338] sm:$0xff]  ;;  %v5049_v31 = vld [vmem:[#allocation9 + $0x330] sm:$0xff] }
 0x5bd   :  { %10117 = vmatprep.subr.bf16.mxu0 %v10116_v5  ;;  %10373 = vmatprep.subr.bf16.mxu1 %v10372_v6  ;;  %v4976_v18 = vld [vmem:[#allocation9 + $0xe8] sm:$0xff]  ;;  %v10386_v5 = vpack.c.bf16 %v4959_v59, %v4951_v44  ;;  %v11696_v6 = vmax.f32 %v4937_v56, 0.0  ;;  %v10654_v56 = vpack.c.bf16 %v5009_v52, %v5001_v49  ;;  %v5023_v44 = vld [vmem:[#allocation9 + $0x260] sm:$0xff]  ;;  %v5017_v59 = vld [vmem:[#allocation9 + $0x230] sm:$0xff] }
 0x5be   :  { %v10388_v10 = vpack.c.bf16 %v4976_v18, %v4968_v63  ;;  %v5032_v63 = vld [vmem:[#allocation9 + $0x2a8] sm:$0xff]  ;;  %v5058_v20 = vld [vmem:[#allocation9 + $0x378] sm:$0xff]  ;;  %v5057_v38 = vld [vmem:[#allocation9 + $0x370] sm:$0xff] }
 0x5bf   :  { %v5040_v18 = vld [vmem:[#allocation9 + $0x2e8] sm:$0xff]  ;;  %v5066_v33 = vld [vmem:[#allocation9 + $0x3b8] sm:$0xff]  ;;  %v5065_v49 = vld [vmem:[#allocation9 + $0x3b0] sm:$0xff] }
 0x5c0   :  { %10119 = vmatpush1.bf16.msra.mxu0 %v10118_v15  ;;  %10375 = vmatpush1.bf16.msra.mxu1 %v10374_v16  ;;  %v4984_v15 = vld [vmem:[#allocation9 + $0x128] sm:$0xff]  ;;  %v5074_v42 = vld [vmem:[#allocation9 + $0x3f8] sm:$0xff]  ;;  %v5073_v52 = vld [vmem:[#allocation9 + $0x3f0] sm:$0xff] }
 0x5c1   :  { %10121 = vmatprep.subr.bf16.mxu0 %v10120_v23  ;;  %10377 = vmatprep.subr.bf16.mxu1 %v10376_v24  ;;  %v4992_v16 = vld [vmem:[#allocation9 + $0x168] sm:$0xff]  ;;  %v10390_v23 = vpack.c.bf16 %v4975_v8, %v4967_v7  ;;  %v10646_v24 = vpack.c.bf16 %v4977_v13, %v4969_v9  ;;  %v10404_v7 = vpack.c.bf16 %v5040_v18, %v5032_v63  ;;  %v5031_v8 = vld [vmem:[#allocation9 + $0x2a0] sm:$0xff]  ;;  %v5041_v13 = vld [vmem:[#allocation9 + $0x2f0] sm:$0xff] }
 0x5c2   :  { %v10392_v22 = vpack.c.bf16 %v4992_v16, %v4984_v15  ;;  %v5039_v9 = vld [vmem:[#allocation9 + $0x2e0] sm:$0xff]  ;;  %v5048_v15 = vld [vmem:[#allocation9 + $0x328] sm:$0xff] }
 0x5c3   :  { %v5056_v16 = vld [vmem:[#allocation9 + $0x368] sm:$0xff] }
 0x5c4   :  { %10123 = vmatpush1.bf16.msra.mxu0 %v10122_v40  ;;  %10379 = vmatpush1.bf16.msra.mxu1 %v10378_v41  ;;  %v5000_v40 = vld [vmem:[#allocation9 + $0x1a8] sm:$0xff] }
 0x5c5   :  { %10125 = vmatprep.subr.bf16.mxu0 %v10124_v29  ;;  %10381 = vmatprep.subr.bf16.mxu1 %v10380_v47  ;;  %v5008_v41 = vld [vmem:[#allocation9 + $0x1e8] sm:$0xff]  ;;  %v5007_v47 = vld [vmem:[#allocation9 + $0x1e0] sm:$0xff] }
 0x5c6   :  { %v10396_v29 = vpack.c.bf16 %v5008_v41, %v5000_v40  ;;  %v5064_v40 = vld [vmem:[#allocation9 + $0x3a8] sm:$0xff] }
 0x5c7   :  { %v5072_v41 = vld [vmem:[#allocation9 + $0x3e8] sm:$0xff] }
 0x5c8   :  { %10127 = vmatpush1.bf16.msra.mxu0 %v10126_v37  ;;  %10383 = vmatpush1.bf16.msra.mxu1 %v10382_v55  ;;  %v5026_v37 = vld [vmem:[#allocation9 + $0x278] sm:$0xff]  ;;  %v5096_v63 = vld [vmem:[#allocation9 + $0x4a8] sm:$0xff] }
 0x5c9   :  { %10385 = vmatprep.subr.bf16.mxu0 %v10384_v57  ;;  %10641 = vmatprep.subr.bf16.mxu1 %v10640_v58  ;;  %v10400_v57 = vpack.c.bf16 %v5024_v53, %v5016_v12  ;;  %v5015_v58 = vld [vmem:[#allocation9 + $0x220] sm:$0xff]  ;;  %v10656_v60 = vpack.c.bf16 %v5026_v37, %v5018_v0  ;;  %v5080_v12 = vld [vmem:[#allocation9 + $0x428] sm:$0xff]  ;;  %v5082_v0 = vld [vmem:[#allocation9 + $0x438] sm:$0xff] }
 0x5ca   :  { %v5088_v53 = vld [vmem:[#allocation9 + $0x468] sm:$0xff]  ;;  %v5090_v37 = vld [vmem:[#allocation9 + $0x478] sm:$0xff] }
 0x5cb   :  { %6291 = vmatmul.mubr.f32.vlgmr.msra.gmra.mrb[8].mxu0 %v11696_v6  ;;  %6575 = vmatmul.mubr.f32.vlgmr.msra.gmra.mrb[8].mxu1 %v11696_v6  ;;  %v5104_v18 = vld [vmem:[#allocation9 + $0x4e8] sm:$0xff] }
 0x5cc   :  { %10387 = vmatpush1.bf16.msra.mxu0 %v10386_v5  ;;  %6645 = vmatprep.mubr.f32.mxu0 %v11624_v25  ;;  %v10402_v5 = vpack.c.bf16 %v5023_v44, %v5015_v58  ;;  %v5079_v58 = vld [vmem:[#allocation9 + $0x420] sm:$0xff] }
 0x5cd   :  { %10643 = vmatpush1.bf16.msra.mxu1 %v10642_v51  ;;  %6929 = vmatprep.mubr.f32.mxu1 %v11624_v25  ;;  %v4999_v25 = vld [vmem:[#allocation9 + $0x1a0] sm:$0xff]  ;;  %v10658_v51 = vpack.c.bf16 %v5025_v61, %v5017_v59  ;;  %v5081_v59 = vld [vmem:[#allocation9 + $0x430] sm:$0xff] }
 0x5ce   :  { %10389 = vmatprep.subr.bf16.mxu0 %v10388_v10  ;;  %10645 = vmatprep.subr.bf16.mxu1 %v10644_v11  ;;  %v10398_v55 = vpack.c.bf16 %v5007_v47, %v4999_v25  ;;  %v5033_v10 = vld [vmem:[#allocation9 + $0x2b0] sm:$0xff]  ;;  %v10660_v11 = vpack.c.bf16 %v5042_v2, %v5034_v1  ;;  %v5063_v25 = vld [vmem:[#allocation9 + $0x3a0] sm:$0xff]  ;;  %v5098_v1 = vld [vmem:[#allocation9 + $0x4b8] sm:$0xff] }
 0x5cf   :  { %v5071_v47 = vld [vmem:[#allocation9 + $0x3e0] sm:$0xff]  ;;  %v5089_v61 = vld [vmem:[#allocation9 + $0x470] sm:$0xff]  ;;  %v5106_v2 = vld [vmem:[#allocation9 + $0x4f8] sm:$0xff] }
 0x5d0   :  { %10391 = vmatpush1.bf16.msra.mxu0 %v10390_v23  ;;  %v10406_v23 = vpack.c.bf16 %v5039_v9, %v5031_v8  ;;  %v5087_v44 = vld [vmem:[#allocation9 + $0x460] sm:$0xff] }
 0x5d1   :  { %10647 = vmatpush1.bf16.msra.mxu1 %v10646_v24  ;;  %10393 = vmatprep.subr.bf16.mxu0 %v10392_v22  ;;  %v10662_v24 = vpack.c.bf16 %v5041_v13, %v5033_v10  ;;  %v10408_v22 = vpack.c.bf16 %v5056_v16, %v5048_v15  ;;  %v5095_v8 = vld [vmem:[#allocation9 + $0x4a0] sm:$0xff]  ;;  %v5097_v10 = vld [vmem:[#allocation9 + $0x4b0] sm:$0xff]  ;;  %v5112_v15 = vld [vmem:[#allocation9 + $0x528] sm:$0xff] }
 0x5d2   :  { %10649 = vmatprep.subr.bf16.mxu1 %v10648_v27  ;;  %v10664_v27 = vpack.c.bf16 %v5058_v20, %v5050_v19  ;;  %v5103_v9 = vld [vmem:[#allocation9 + $0x4e0] sm:$0xff]  ;;  %v5105_v13 = vld [vmem:[#allocation9 + $0x4f0] sm:$0xff]  ;;  %v5120_v16 = vld [vmem:[#allocation9 + $0x568] sm:$0xff] }
 0x5d3   :  { %v5114_v19 = vld [vmem:[#allocation9 + $0x538] sm:$0xff] }
 0x5d4   :  { %10395 = vmatpush1.bf16.msra.mxu0 %v10394_v43  ;;  %v10410_v43 = vpack.c.bf16 %v5055_v17, %v5047_v26  ;;  %v5122_v20 = vld [vmem:[#allocation9 + $0x578] sm:$0xff]  ;;  %v5111_v26 = vld [vmem:[#allocation9 + $0x520] sm:$0xff] }
 0x5d5   :  { %10651 = vmatpush1.bf16.msra.mxu1 %v10650_v46  ;;  %10397 = vmatprep.subr.bf16.mxu0 %v10396_v29  ;;  %v10666_v46 = vpack.c.bf16 %v5057_v38, %v5049_v31  ;;  %v10412_v29 = vpack.c.bf16 %v5072_v41, %v5064_v40  ;;  %v5119_v17 = vld [vmem:[#allocation9 + $0x560] sm:$0xff]  ;;  %v5113_v31 = vld [vmem:[#allocation9 + $0x530] sm:$0xff]  ;;  %v5128_v40 = vld [vmem:[#allocation9 + $0x5a8] sm:$0xff] }
 0x5d6   :  { %10653 = vmatprep.subr.bf16.mxu1 %v10652_v36  ;;  %v10668_v36 = vpack.c.bf16 %v5074_v42, %v5066_v33  ;;  %v5121_v38 = vld [vmem:[#allocation9 + $0x570] sm:$0xff]  ;;  %v5136_v41 = vld [vmem:[#allocation9 + $0x5e8] sm:$0xff]  ;;  %v5130_v33 = vld [vmem:[#allocation9 + $0x5b8] sm:$0xff] }
 0x5d7   :  { %v5138_v42 = vld [vmem:[#allocation9 + $0x5f8] sm:$0xff] }
 0x5d8   :  { %10399 = vmatpush1.bf16.msra.mxu0 %v10398_v55  ;;  %v10414_v55 = vpack.c.bf16 %v5071_v47, %v5063_v25  ;;  %v5127_v25 = vld [vmem:[#allocation9 + $0x5a0] sm:$0xff] }
 0x5d9   :  { %10655 = vmatpush1.bf16.msra.mxu1 %v10654_v56  ;;  %10401 = vmatprep.subr.bf16.mxu0 %v10400_v57  ;;  %v10670_v56 = vpack.c.bf16 %v5073_v52, %v5065_v49  ;;  %v10416_v57 = vpack.c.bf16 %v5088_v53, %v5080_v12  ;;  %v5135_v47 = vld [vmem:[#allocation9 + $0x5e0] sm:$0xff]  ;;  %v5129_v49 = vld [vmem:[#allocation9 + $0x5b0] sm:$0xff]  ;;  %v5144_v12 = vld [vmem:[#allocation9 + $0x628] sm:$0xff] }
 0x5da   :  { %10657 = vmatprep.subr.bf16.mxu1 %v10656_v60  ;;  %v10672_v60 = vpack.c.bf16 %v5090_v37, %v5082_v0  ;;  %v5137_v52 = vld [vmem:[#allocation9 + $0x5f0] sm:$0xff]  ;;  %v5152_v53 = vld [vmem:[#allocation9 + $0x668] sm:$0xff]  ;;  %v5146_v0 = vld [vmem:[#allocation9 + $0x638] sm:$0xff] }
 0x5db   :  { %v5154_v37 = vld [vmem:[#allocation9 + $0x678] sm:$0xff] }
 0x5dc   :  { %10403 = vmatpush1.bf16.msra.mxu0 %v10402_v5  ;;  %v10418_v5 = vpack.c.bf16 %v5087_v44, %v5079_v58  ;;  %v5143_v58 = vld [vmem:[#allocation9 + $0x620] sm:$0xff] }
 0x5dd   :  { %10659 = vmatpush1.bf16.msra.mxu1 %v10658_v51  ;;  %10405 = vmatprep.subr.bf16.mxu0 %v10404_v7  ;;  %v10674_v51 = vpack.c.bf16 %v5089_v61, %v5081_v59  ;;  %v10420_v7 = vpack.c.bf16 %v5104_v18, %v5096_v63  ;;  %v5151_v44 = vld [vmem:[#allocation9 + $0x660] sm:$0xff]  ;;  %v5145_v59 = vld [vmem:[#allocation9 + $0x630] sm:$0xff]  ;;  %v5160_v63 = vld [vmem:[#allocation9 + $0x6a8] sm:$0xff] }
 0x5de   :  { %10661 = vmatprep.subr.bf16.mxu1 %v10660_v11  ;;  %v10676_v11 = vpack.c.bf16 %v5106_v2, %v5098_v1  ;;  %v5153_v61 = vld [vmem:[#allocation9 + $0x670] sm:$0xff]  ;;  %v5168_v18 = vld [vmem:[#allocation9 + $0x6e8] sm:$0xff]  ;;  %v5162_v1 = vld [vmem:[#allocation9 + $0x6b8] sm:$0xff] }
 0x5df   :  { %v5170_v2 = vld [vmem:[#allocation9 + $0x6f8] sm:$0xff] }
 0x5e0   :  { %10407 = vmatpush1.bf16.msra.mxu0 %v10406_v23  ;;  %v10422_v23 = vpack.c.bf16 %v5103_v9, %v5095_v8  ;;  %v5159_v8 = vld [vmem:[#allocation9 + $0x6a0] sm:$0xff] }
 0x5e1   :  { %10663 = vmatpush1.bf16.msra.mxu1 %v10662_v24  ;;  %10409 = vmatprep.subr.bf16.mxu0 %v10408_v22  ;;  %v10678_v24 = vpack.c.bf16 %v5105_v13, %v5097_v10  ;;  %v10424_v22 = vpack.c.bf16 %v5120_v16, %v5112_v15  ;;  %v5167_v9 = vld [vmem:[#allocation9 + $0x6e0] sm:$0xff]  ;;  %v5161_v10 = vld [vmem:[#allocation9 + $0x6b0] sm:$0xff]  ;;  %v5176_v15 = vld [vmem:[#allocation9 + $0x728] sm:$0xff] }
 0x5e2   :  { %10665 = vmatprep.subr.bf16.mxu1 %v10664_v27  ;;  %v10680_v27 = vpack.c.bf16 %v5122_v20, %v5114_v19  ;;  %v5169_v13 = vld [vmem:[#allocation9 + $0x6f0] sm:$0xff]  ;;  %v5184_v16 = vld [vmem:[#allocation9 + $0x768] sm:$0xff]  ;;  %v5178_v19 = vld [vmem:[#allocation9 + $0x738] sm:$0xff] }
 0x5e3   :  { %v5186_v20 = vld [vmem:[#allocation9 + $0x778] sm:$0xff] }
 0x5e4   :  { %10411 = vmatpush1.bf16.msra.mxu0 %v10410_v43  ;;  %v10426_v43 = vpack.c.bf16 %v5119_v17, %v5111_v26  ;;  %v5175_v26 = vld [vmem:[#allocation9 + $0x720] sm:$0xff] }
 0x5e5   :  { %10667 = vmatpush1.bf16.msra.mxu1 %v10666_v46  ;;  %10413 = vmatprep.subr.bf16.mxu0 %v10412_v29  ;;  %v10682_v46 = vpack.c.bf16 %v5121_v38, %v5113_v31  ;;  %v10428_v29 = vpack.c.bf16 %v5136_v41, %v5128_v40  ;;  %v5183_v17 = vld [vmem:[#allocation9 + $0x760] sm:$0xff]  ;;  %v5177_v31 = vld [vmem:[#allocation9 + $0x730] sm:$0xff]  ;;  %v5192_v40 = vld [vmem:[#allocation9 + $0x7a8] sm:$0xff] }
 0x5e6   :  { %10669 = vmatprep.subr.bf16.mxu1 %v10668_v36  ;;  %v10684_v36 = vpack.c.bf16 %v5138_v42, %v5130_v33  ;;  %v5185_v38 = vld [vmem:[#allocation9 + $0x770] sm:$0xff]  ;;  %v5200_v41 = vld [vmem:[#allocation9 + $0x7e8] sm:$0xff]  ;;  %v5194_v33 = vld [vmem:[#allocation9 + $0x7b8] sm:$0xff] }
 0x5e7   :  { %v5202_v42 = vld [vmem:[#allocation9 + $0x7f8] sm:$0xff] }
 0x5e8   :  { %10415 = vmatpush1.bf16.msra.mxu0 %v10414_v55  ;;  %v10430_v55 = vpack.c.bf16 %v5135_v47, %v5127_v25  ;;  %v5191_v25 = vld [vmem:[#allocation9 + $0x7a0] sm:$0xff] }
 0x5e9   :  { %10671 = vmatpush1.bf16.msra.mxu1 %v10670_v56  ;;  %10417 = vmatprep.subr.bf16.mxu0 %v10416_v57  ;;  %v10686_v56 = vpack.c.bf16 %v5137_v52, %v5129_v49  ;;  %v10432_v57 = vpack.c.bf16 %v5152_v53, %v5144_v12  ;;  %v5199_v47 = vld [vmem:[#allocation9 + $0x7e0] sm:$0xff]  ;;  %v5193_v49 = vld [vmem:[#allocation9 + $0x7b0] sm:$0xff]  ;;  %v5208_v12 = vld [vmem:[#allocation9 + $0x828] sm:$0xff] }
 0x5ea   :  { %10673 = vmatprep.subr.bf16.mxu1 %v10672_v60  ;;  %v10688_v60 = vpack.c.bf16 %v5154_v37, %v5146_v0  ;;  %v5201_v52 = vld [vmem:[#allocation9 + $0x7f0] sm:$0xff]  ;;  %v5216_v53 = vld [vmem:[#allocation9 + $0x868] sm:$0xff]  ;;  %v5210_v0 = vld [vmem:[#allocation9 + $0x838] sm:$0xff] }
 0x5eb   :  { %v5218_v37 = vld [vmem:[#allocation9 + $0x878] sm:$0xff] }
 0x5ec   :  { %10419 = vmatpush1.bf16.msra.mxu0 %v10418_v5  ;;  %v10434_v5 = vpack.c.bf16 %v5151_v44, %v5143_v58  ;;  %v5207_v58 = vld [vmem:[#allocation9 + $0x820] sm:$0xff] }
 0x5ed   :  { %10675 = vmatpush1.bf16.msra.mxu1 %v10674_v51  ;;  %10421 = vmatprep.subr.bf16.mxu0 %v10420_v7  ;;  %v10690_v51 = vpack.c.bf16 %v5153_v61, %v5145_v59  ;;  %v10436_v7 = vpack.c.bf16 %v5168_v18, %v5160_v63  ;;  %v5215_v44 = vld [vmem:[#allocation9 + $0x860] sm:$0xff]  ;;  %v10704_v59 = vpack.c.bf16 %v5218_v37, %v5210_v0  ;;  %v5217_v61 = vld [vmem:[#allocation9 + $0x870] sm:$0xff]  ;;  %v5224_v63 = vld [vmem:[#allocation9 + $0x8a8] sm:$0xff] }
 0x5ee   :  { %10677 = vmatprep.subr.bf16.mxu1 %v10676_v11  ;;  %v10692_v11 = vpack.c.bf16 %v5170_v2, %v5162_v1  ;;  %v5232_v18 = vld [vmem:[#allocation9 + $0x8e8] sm:$0xff]  ;;  %v10450_v1 = vpack.c.bf16 %v5215_v44, %v5207_v58  ;;  %v5226_v2 = vld [vmem:[#allocation9 + $0x8b8] sm:$0xff]  ;;  %v5273_v58 = vld [vmem:[#allocation9 + $0xa30] sm:$0xff] }
 0x5f0   :  { %10423 = vmatpush1.bf16.msra.mxu0 %v10422_v23  ;;  %v10438_v23 = vpack.c.bf16 %v5167_v9, %v5159_v8  ;;  %v5231_v8 = vld [vmem:[#allocation9 + $0x8e0] sm:$0xff]  ;;  %v5225_v9 = vld [vmem:[#allocation9 + $0x8b0] sm:$0xff] }
 0x5f1   :  { %10679 = vmatpush1.bf16.msra.mxu1 %v10678_v24  ;;  %10425 = vmatprep.subr.bf16.mxu0 %v10424_v22  ;;  %v10694_v24 = vpack.c.bf16 %v5169_v13, %v5161_v10  ;;  %v10440_v22 = vpack.c.bf16 %v5184_v16, %v5176_v15  ;;  %v10452_v10 = vpack.c.bf16 %v5232_v18, %v5224_v63  ;;  %v5240_v13 = vld [vmem:[#allocation9 + $0x928] sm:$0xff]  ;;  %v5290_v63 = vld [vmem:[#allocation9 + $0xab8] sm:$0xff] }
 0x5f2   :  { %10681 = vmatprep.subr.bf16.mxu1 %v10680_v27  ;;  %v10696_v27 = vpack.c.bf16 %v5186_v20, %v5178_v19  ;;  %v5248_v15 = vld [vmem:[#allocation9 + $0x968] sm:$0xff]  ;;  %v5242_v19 = vld [vmem:[#allocation9 + $0x938] sm:$0xff] }
 0x5f3   :  { %v5250_v20 = vld [vmem:[#allocation9 + $0x978] sm:$0xff] }
 0x5f4   :  { %10427 = vmatpush1.bf16.msra.mxu0 %v10426_v43  ;;  %v10442_v43 = vpack.c.bf16 %v5183_v17, %v5175_v26  ;;  %v5239_v26 = vld [vmem:[#allocation9 + $0x920] sm:$0xff]  ;;  %v5298_v18 = vld [vmem:[#allocation9 + $0xaf8] sm:$0xff] }
 0x5f5   :  { %10683 = vmatpush1.bf16.msra.mxu1 %v10682_v46  ;;  %10429 = vmatprep.subr.bf16.mxu0 %v10428_v29  ;;  %v10698_v46 = vpack.c.bf16 %v5185_v38, %v5177_v31  ;;  %v10444_v29 = vpack.c.bf16 %v5200_v41, %v5192_v40  ;;  %v5247_v17 = vld [vmem:[#allocation9 + $0x960] sm:$0xff]  ;;  %v5241_v31 = vld [vmem:[#allocation9 + $0x930] sm:$0xff]  ;;  %v5256_v40 = vld [vmem:[#allocation9 + $0x9a8] sm:$0xff] }
 0x5f6   :  { %10685 = vmatprep.subr.bf16.mxu1 %v10684_v36  ;;  %v10700_v36 = vpack.c.bf16 %v5202_v42, %v5194_v33  ;;  %v5249_v38 = vld [vmem:[#allocation9 + $0x970] sm:$0xff]  ;;  %v5264_v41 = vld [vmem:[#allocation9 + $0x9e8] sm:$0xff]  ;;  %v5258_v33 = vld [vmem:[#allocation9 + $0x9b8] sm:$0xff]  ;;  %v10458_v42 = vpack.c.bf16 %v5247_v17, %v5239_v26 }
 0x5f7   :  { %v5305_v26 = vld [vmem:[#allocation9 + $0xb30] sm:$0xff] }
 0x5f8   :  { %10431 = vmatpush1.bf16.msra.mxu0 %v10430_v55  ;;  %v10446_v55 = vpack.c.bf16 %v5199_v47, %v5191_v25  ;;  %v5263_v25 = vld [vmem:[#allocation9 + $0x9e0] sm:$0xff]  ;;  %v5257_v47 = vld [vmem:[#allocation9 + $0x9b0] sm:$0xff] }
 0x5f9   :  { %10687 = vmatpush1.bf16.msra.mxu1 %v10686_v56  ;;  %10433 = vmatprep.subr.bf16.mxu0 %v10432_v57  ;;  %v10702_v56 = vpack.c.bf16 %v5201_v52, %v5193_v49  ;;  %v10448_v57 = vpack.c.bf16 %v5216_v53, %v5208_v12  ;;  %v5280_v52 = vld [vmem:[#allocation9 + $0xa68] sm:$0xff]  ;;  %v5274_v12 = vld [vmem:[#allocation9 + $0xa38] sm:$0xff] }
 0x5fa   :  { %10689 = vmatprep.subr.bf16.mxu1 %v10688_v60  ;;  %v5209_v60 = vld [vmem:[#allocation9 + $0x830] sm:$0xff]  ;;  %v5282_v53 = vld [vmem:[#allocation9 + $0xa78] sm:$0xff] }
 0x5fb   :  { %v10720_v44 = vpack.c.bf16 %v5282_v53, %v5274_v12 }
 0x5fc   :  { %10435 = vmatpush1.bf16.msra.mxu0 %v10434_v5  ;;  %v5234_v5 = vld [vmem:[#allocation9 + $0x8f8] sm:$0xff] }
 0x5fd   :  { %10691 = vmatpush1.bf16.msra.mxu1 %v10690_v51  ;;  %10437 = vmatprep.subr.bf16.mxu0 %v10436_v7  ;;  %v10706_v51 = vpack.c.bf16 %v5217_v61, %v5209_v60  ;;  %v5223_v7 = vld [vmem:[#allocation9 + $0x8a0] sm:$0xff]  ;;  %v10708_v16 = vpack.c.bf16 %v5234_v5, %v5226_v2  ;;  %v5288_v60 = vld [vmem:[#allocation9 + $0xaa8] sm:$0xff] }
 0x5fe   :  { %10693 = vmatprep.subr.bf16.mxu1 %v10692_v11  ;;  %v5233_v11 = vld [vmem:[#allocation9 + $0x8f0] sm:$0xff]  ;;  %v5296_v61 = vld [vmem:[#allocation9 + $0xae8] sm:$0xff] }
 0x5ff   :  { %v10468_v5 = vpack.c.bf16 %v5296_v61, %v5288_v60  ;;  %v5354_v60 = vld [vmem:[#allocation9 + $0xcb8] sm:$0xff] }
 0x600   :  { %10439 = vmatpush1.bf16.msra.mxu0 %v10438_v23  ;;  %v10454_v23 = vpack.c.bf16 %v5231_v8, %v5223_v7  ;;  %v5295_v7 = vld [vmem:[#allocation9 + $0xae0] sm:$0xff]  ;;  %v5289_v8 = vld [vmem:[#allocation9 + $0xab0] sm:$0xff]  ;;  %v5362_v61 = vld [vmem:[#allocation9 + $0xcf8] sm:$0xff] }
 0x601   :  { %10695 = vmatpush1.bf16.msra.mxu1 %v10694_v24  ;;  %10441 = vmatprep.subr.bf16.mxu0 %v10440_v22  ;;  %v10710_v24 = vpack.c.bf16 %v5233_v11, %v5225_v9  ;;  %v10456_v22 = vpack.c.bf16 %v5248_v15, %v5240_v13  ;;  %v10724_v9 = vpack.c.bf16 %v5298_v18, %v5290_v63  ;;  %v5304_v11 = vld [vmem:[#allocation9 + $0xb28] sm:$0xff]  ;;  %v5306_v15 = vld [vmem:[#allocation9 + $0xb38] sm:$0xff] }
 0x602   :  { %10697 = vmatprep.subr.bf16.mxu1 %v10696_v27  ;;  %v10712_v27 = vpack.c.bf16 %v5250_v20, %v5242_v19  ;;  %v5312_v13 = vld [vmem:[#allocation9 + $0xb68] sm:$0xff] }
 0x604   :  { %10443 = vmatpush1.bf16.msra.mxu0 %v10442_v43  ;;  %v10714_v43 = vpack.c.bf16 %v5249_v38, %v5241_v31  ;;  %v5313_v31 = vld [vmem:[#allocation9 + $0xb70] sm:$0xff]  ;;  %v5328_v38 = vld [vmem:[#allocation9 + $0xbe8] sm:$0xff] }
 0x605   :  { %10699 = vmatpush1.bf16.msra.mxu1 %v10698_v46  ;;  %10445 = vmatprep.subr.bf16.mxu0 %v10444_v29  ;;  %v10460_v46 = vpack.c.bf16 %v5264_v41, %v5256_v40  ;;  %v5255_v29 = vld [vmem:[#allocation9 + $0x9a0] sm:$0xff]  ;;  %v5322_v40 = vld [vmem:[#allocation9 + $0xbb8] sm:$0xff] }
 0x606   :  { %10701 = vmatprep.subr.bf16.mxu1 %v10700_v36  ;;  %v5272_v36 = vld [vmem:[#allocation9 + $0xa28] sm:$0xff]  ;;  %v10462_v0 = vpack.c.bf16 %v5263_v25, %v5255_v29  ;;  %v5330_v41 = vld [vmem:[#allocation9 + $0xbf8] sm:$0xff]  ;;  %v5321_v29 = vld [vmem:[#allocation9 + $0xbb0] sm:$0xff] }
 0x607   :  { %v10732_v25 = vpack.c.bf16 %v5330_v41, %v5322_v40 }
 0x608   :  { %10447 = vmatpush1.bf16.msra.mxu0 %v10446_v55  ;;  %v10464_v55 = vpack.c.bf16 %v5280_v52, %v5272_v36  ;;  %v5338_v36 = vld [vmem:[#allocation9 + $0xc38] sm:$0xff] }
 0x609   :  { %10703 = vmatpush1.bf16.msra.mxu1 %v10702_v56  ;;  %10449 = vmatprep.subr.bf16.mxu0 %v10448_v57  ;;  %v5271_v56 = vld [vmem:[#allocation9 + $0xa20] sm:$0xff]  ;;  %v5346_v52 = vld [vmem:[#allocation9 + $0xc78] sm:$0xff] }
 0x60a   :  { %10705 = vmatprep.subr.bf16.mxu1 %v10704_v59  ;;  %v5279_v57 = vld [vmem:[#allocation9 + $0xa60] sm:$0xff]  ;;  %v5281_v59 = vld [vmem:[#allocation9 + $0xa70] sm:$0xff] }
 0x60b   :  { %6646 = vmatmul.mubr.f32.vlgmr.msra.gmra.mrb[10].mxu0 %v11639_v3  ;;  %v10722_v2 = vpack.c.bf16 %v5281_v59, %v5273_v58  ;;  %v5345_v58 = vld [vmem:[#allocation9 + $0xc70] sm:$0xff]  ;;  %v5360_v59 = vld [vmem:[#allocation9 + $0xce8] sm:$0xff] }
 0x60c   :  { %6930 = vmatmul.mubr.f32.vlgmr.msra.gmra.mrb[10].mxu1 %v11639_v3  ;;  %10451 = vmatpush1.bf16.msra.mxu0 %v10450_v1  ;;  %v5266_v3 = vld [vmem:[#allocation9 + $0x9f8] sm:$0xff]  ;;  %v10466_v1 = vpack.c.bf16 %v5279_v57, %v5271_v56  ;;  %v5337_v56 = vld [vmem:[#allocation9 + $0xc30] sm:$0xff]  ;;  %v10736_v57 = vpack.c.bf16 %v5346_v52, %v5338_v36 }
 0x60d   :  { %6716 = vmatprep.mubr.f32.mxu0 %v11641_v39  ;;  %10707 = vmatpush1.bf16.msra.mxu1 %v10706_v51  ;;  %v10716_v49 = vpack.c.bf16 %v5266_v3, %v5258_v33  ;;  %v5287_v51 = vld [vmem:[#allocation9 + $0xaa0] sm:$0xff]  ;;  %v10730_v3 = vpack.c.bf16 %v5313_v31, %v5305_v26  ;;  %v10738_v18 = vpack.c.bf16 %v5345_v58, %v5337_v56  ;;  %v5377_v26 = vld [vmem:[#allocation9 + $0xd70] sm:$0xff]  ;;  %v5392_v31 = vld [vmem:[#allocation9 + $0xde8] sm:$0xff] }
 0x60e   :  { %7000 = vmatprep.mubr.f32.mxu1 %v11641_v39  ;;  %10453 = vmatprep.subr.bf16.mxu0 %v10452_v10  ;;  %v5265_v39 = vld [vmem:[#allocation9 + $0x9f0] sm:$0xff]  ;;  %v10470_v19 = vpack.c.bf16 %v5295_v7, %v5287_v51  ;;  %v10740_v7 = vpack.c.bf16 %v5362_v61, %v5354_v60  ;;  %v5424_v58 = vld [vmem:[#allocation9 + $0xee8] sm:$0xff] }
 0x60f   :  { %10709 = vmatprep.subr.bf16.mxu1 %v10708_v16  ;;  %v10718_v37 = vpack.c.bf16 %v5265_v39, %v5257_v47  ;;  %v5297_v10 = vld [vmem:[#allocation9 + $0xaf0] sm:$0xff]  ;;  %v5314_v16 = vld [vmem:[#allocation9 + $0xb78] sm:$0xff]  ;;  %v5344_v39 = vld [vmem:[#allocation9 + $0xc68] sm:$0xff] }
 0x610   :  { %10455 = vmatpush1.bf16.msra.mxu0 %v10454_v23  ;;  %v10726_v20 = vpack.c.bf16 %v5297_v10, %v5289_v8  ;;  %v10472_v23 = vpack.c.bf16 %v5312_v13, %v5304_v11  ;;  %v10728_v17 = vpack.c.bf16 %v5314_v16, %v5306_v15  ;;  %v5329_v47 = vld [vmem:[#allocation9 + $0xbf0] sm:$0xff]  ;;  %v5376_v10 = vld [vmem:[#allocation9 + $0xd68] sm:$0xff]  ;;  %v5370_v11 = vld [vmem:[#allocation9 + $0xd38] sm:$0xff] }
 0x611   :  { %10711 = vmatpush1.bf16.msra.mxu1 %v10710_v24  ;;  %10457 = vmatprep.subr.bf16.mxu0 %v10456_v22  ;;  %v5303_v24 = vld [vmem:[#allocation9 + $0xb20] sm:$0xff]  ;;  %v10734_v53 = vpack.c.bf16 %v5329_v47, %v5321_v29  ;;  %v5353_v51 = vld [vmem:[#allocation9 + $0xcb0] sm:$0xff]  ;;  %v5378_v13 = vld [vmem:[#allocation9 + $0xd78] sm:$0xff] }
 0x612   :  { %10713 = vmatprep.subr.bf16.mxu1 %v10712_v27  ;;  %v5311_v22 = vld [vmem:[#allocation9 + $0xb60] sm:$0xff]  ;;  %v5320_v27 = vld [vmem:[#allocation9 + $0xba8] sm:$0xff]  ;;  %v5361_v8 = vld [vmem:[#allocation9 + $0xcf0] sm:$0xff] }
 0x613   :  { %v10474_v33 = vpack.c.bf16 %v5311_v22, %v5303_v24  ;;  %v10742_v16 = vpack.c.bf16 %v5361_v8, %v5353_v51  ;;  %v5369_v24 = vld [vmem:[#allocation9 + $0xd30] sm:$0xff]  ;;  %v10744_v22 = vpack.c.bf16 %v5378_v13, %v5370_v11  ;;  %v5408_v47 = vld [vmem:[#allocation9 + $0xe68] sm:$0xff] }
 0x614   :  { %10459 = vmatpush1.bf16.msra.mxu0 %v10458_v42  ;;  %v10476_v42 = vpack.c.bf16 %v5328_v38, %v5320_v27  ;;  %v5386_v27 = vld [vmem:[#allocation9 + $0xdb8] sm:$0xff]  ;;  %v10746_v41 = vpack.c.bf16 %v5377_v26, %v5369_v24  ;;  %v5393_v29 = vld [vmem:[#allocation9 + $0xdf0] sm:$0xff]  ;;  %v5440_v8 = vld [vmem:[#allocation9 + $0xf68] sm:$0xff] }
 0x615   :  { %10715 = vmatpush1.bf16.msra.mxu1 %v10714_v43  ;;  %10461 = vmatprep.subr.bf16.mxu0 %v10460_v46  ;;  %v5319_v43 = vld [vmem:[#allocation9 + $0xba0] sm:$0xff]  ;;  %v5394_v38 = vld [vmem:[#allocation9 + $0xdf8] sm:$0xff]  ;;  %v5409_v56 = vld [vmem:[#allocation9 + $0xe70] sm:$0xff] }
 0x616   :  { %10717 = vmatprep.subr.bf16.mxu1 %v10716_v49  ;;  %v5327_v46 = vld [vmem:[#allocation9 + $0xbe0] sm:$0xff]  ;;  %v5336_v49 = vld [vmem:[#allocation9 + $0xc28] sm:$0xff]  ;;  %v5425_v51 = vld [vmem:[#allocation9 + $0xef0] sm:$0xff] }
 0x617   :  { %v10478_v12 = vpack.c.bf16 %v5327_v46, %v5319_v43  ;;  %v5385_v43 = vld [vmem:[#allocation9 + $0xdb0] sm:$0xff]  ;;  %v10748_v46 = vpack.c.bf16 %v5394_v38, %v5386_v27  ;;  %v5456_v26 = vld [vmem:[#allocation9 + $0xfe8] sm:$0xff] }
 0x618   :  { %10463 = vmatpush1.bf16.msra.mxu0 %v10462_v0  ;;  %v10480_v0 = vpack.c.bf16 %v5344_v39, %v5336_v49  ;;  %v5402_v49 = vld [vmem:[#allocation9 + $0xe38] sm:$0xff]  ;;  %v10750_v52 = vpack.c.bf16 %v5393_v29, %v5385_v43  ;;  %v5441_v24 = vld [vmem:[#allocation9 + $0xf70] sm:$0xff]  ;;  %v5472_v29 = vld [vmem:[#allocation9 + $0x1068] sm:$0xff] }
 0x619   :  { %10719 = vmatpush1.bf16.msra.mxu1 %v10718_v37  ;;  %10465 = vmatprep.subr.bf16.mxu0 %v10464_v55  ;;  %v5335_v37 = vld [vmem:[#allocation9 + $0xc20] sm:$0xff]  ;;  %v5410_v39 = vld [vmem:[#allocation9 + $0xe78] sm:$0xff]  ;;  %v5457_v43 = vld [vmem:[#allocation9 + $0xff0] sm:$0xff] }
 0x61a   :  { %10721 = vmatprep.subr.bf16.mxu1 %v10720_v44  ;;  %v5343_v55 = vld [vmem:[#allocation9 + $0xc60] sm:$0xff]  ;;  %v5352_v44 = vld [vmem:[#allocation9 + $0xca8] sm:$0xff] }
 0x61b   :  { %v10482_v63 = vpack.c.bf16 %v5343_v55, %v5335_v37  ;;  %v5401_v37 = vld [vmem:[#allocation9 + $0xe30] sm:$0xff]  ;;  %v10752_v55 = vpack.c.bf16 %v5410_v39, %v5402_v49 }
 0x61c   :  { %10467 = vmatpush1.bf16.msra.mxu0 %v10466_v1  ;;  %v10484_v1 = vpack.c.bf16 %v5360_v59, %v5352_v44  ;;  %v5418_v44 = vld [vmem:[#allocation9 + $0xeb8] sm:$0xff]  ;;  %v10754_v61 = vpack.c.bf16 %v5409_v56, %v5401_v37  ;;  %v5473_v37 = vld [vmem:[#allocation9 + $0x1070] sm:$0xff]  ;;  %v5488_v56 = vld [vmem:[#allocation9 + $0x10e8] sm:$0xff] }
 0x61d   :  { %10723 = vmatpush1.bf16.msra.mxu1 %v10722_v2  ;;  %10469 = vmatprep.subr.bf16.mxu0 %v10468_v5  ;;  %v5351_v2 = vld [vmem:[#allocation9 + $0xca0] sm:$0xff]  ;;  %v5426_v59 = vld [vmem:[#allocation9 + $0xef8] sm:$0xff] }
 0x61e   :  { %10725 = vmatprep.subr.bf16.mxu1 %v10724_v9  ;;  %v5359_v5 = vld [vmem:[#allocation9 + $0xce0] sm:$0xff]  ;;  %v5368_v9 = vld [vmem:[#allocation9 + $0xd28] sm:$0xff] }
 0x61f   :  { %v10486_v15 = vpack.c.bf16 %v5359_v5, %v5351_v2  ;;  %v5417_v2 = vld [vmem:[#allocation9 + $0xeb0] sm:$0xff]  ;;  %v10756_v5 = vpack.c.bf16 %v5426_v59, %v5418_v44  ;;  %v5490_v44 = vld [vmem:[#allocation9 + $0x10f8] sm:$0xff] }
 0x620   :  { %10471 = vmatpush1.bf16.msra.mxu0 %v10470_v19  ;;  %v10488_v19 = vpack.c.bf16 %v5376_v10, %v5368_v9  ;;  %v5434_v9 = vld [vmem:[#allocation9 + $0xf38] sm:$0xff]  ;;  %v10758_v13 = vpack.c.bf16 %v5425_v51, %v5417_v2  ;;  %v5496_v2 = vld [vmem:[#allocation9 + $0x1128] sm:$0xff] }
 0x621   :  { %10727 = vmatpush1.bf16.msra.mxu1 %v10726_v20  ;;  %10473 = vmatprep.subr.bf16.mxu0 %v10472_v23  ;;  %v5367_v20 = vld [vmem:[#allocation9 + $0xd20] sm:$0xff]  ;;  %v5442_v10 = vld [vmem:[#allocation9 + $0xf78] sm:$0xff] }
 0x622   :  { %10729 = vmatprep.subr.bf16.mxu1 %v10728_v17  ;;  %v5375_v23 = vld [vmem:[#allocation9 + $0xd60] sm:$0xff]  ;;  %v5384_v17 = vld [vmem:[#allocation9 + $0xda8] sm:$0xff] }
 0x623   :  { %v10490_v40 = vpack.c.bf16 %v5375_v23, %v5367_v20  ;;  %v5433_v20 = vld [vmem:[#allocation9 + $0xf30] sm:$0xff]  ;;  %v10760_v23 = vpack.c.bf16 %v5442_v10, %v5434_v9 }
 0x624   :  { %10475 = vmatpush1.bf16.msra.mxu0 %v10474_v33  ;;  %v10492_v33 = vpack.c.bf16 %v5392_v31, %v5384_v17  ;;  %v5450_v17 = vld [vmem:[#allocation9 + $0xfb8] sm:$0xff]  ;;  %v10762_v38 = vpack.c.bf16 %v5441_v24, %v5433_v20  ;;  %v5505_v20 = vld [vmem:[#allocation9 + $0x1170] sm:$0xff]  ;;  %v5520_v24 = vld [vmem:[#allocation9 + $0x11e8] sm:$0xff] }
 0x625   :  { %10731 = vmatpush1.bf16.msra.mxu1 %v10730_v3  ;;  %10477 = vmatprep.subr.bf16.mxu0 %v10476_v42  ;;  %v5383_v3 = vld [vmem:[#allocation9 + $0xda0] sm:$0xff]  ;;  %v5458_v31 = vld [vmem:[#allocation9 + $0xff8] sm:$0xff] }
 0x626   :  { %10733 = vmatprep.subr.bf16.mxu1 %v10732_v25  ;;  %v5391_v42 = vld [vmem:[#allocation9 + $0xde0] sm:$0xff]  ;;  %v5400_v25 = vld [vmem:[#allocation9 + $0xe28] sm:$0xff] }
 0x627   :  { %v10494_v36 = vpack.c.bf16 %v5391_v42, %v5383_v3  ;;  %v5449_v3 = vld [vmem:[#allocation9 + $0xfb0] sm:$0xff]  ;;  %v10764_v42 = vpack.c.bf16 %v5458_v31, %v5450_v17 }
 0x628   :  { %10479 = vmatpush1.bf16.msra.mxu0 %v10478_v12  ;;  %v10496_v12 = vpack.c.bf16 %v5408_v47, %v5400_v25  ;;  %v5466_v25 = vld [vmem:[#allocation9 + $0x1038] sm:$0xff]  ;;  %v10766_v39 = vpack.c.bf16 %v5457_v43, %v5449_v3  ;;  %v5536_v3 = vld [vmem:[#allocation9 + $0x1268] sm:$0xff] }
 0x629   :  { %10735 = vmatpush1.bf16.msra.mxu1 %v10734_v53  ;;  %10481 = vmatprep.subr.bf16.mxu0 %v10480_v0  ;;  %v5399_v53 = vld [vmem:[#allocation9 + $0xe20] sm:$0xff]  ;;  %v5474_v47 = vld [vmem:[#allocation9 + $0x1078] sm:$0xff] }
 0x62a   :  { %10737 = vmatprep.subr.bf16.mxu1 %v10736_v57  ;;  %v5407_v0 = vld [vmem:[#allocation9 + $0xe60] sm:$0xff]  ;;  %v5416_v57 = vld [vmem:[#allocation9 + $0xea8] sm:$0xff]  ;;  %v5538_v43 = vld [vmem:[#allocation9 + $0x1278] sm:$0xff] }
 0x62b   :  { %v10498_v60 = vpack.c.bf16 %v5407_v0, %v5399_v53  ;;  %v10768_v53 = vpack.c.bf16 %v5474_v47, %v5466_v25  ;;  %v5465_v0 = vld [vmem:[#allocation9 + $0x1030] sm:$0xff]  ;;  %v5527_v47 = vld [vmem:[#allocation9 + $0x1220] sm:$0xff] }
 0x62c   :  { %10483 = vmatpush1.bf16.msra.mxu0 %v10482_v63  ;;  %v10500_v63 = vpack.c.bf16 %v5424_v58, %v5416_v57  ;;  %v5482_v58 = vld [vmem:[#allocation9 + $0x10b8] sm:$0xff]  ;;  %v10770_v59 = vpack.c.bf16 %v5473_v37, %v5465_v0 }
 0x62d   :  { %10739 = vmatpush1.bf16.msra.mxu1 %v10738_v18  ;;  %10485 = vmatprep.subr.bf16.mxu0 %v10484_v1  ;;  %v5415_v18 = vld [vmem:[#allocation9 + $0xea0] sm:$0xff]  ;;  %v10772_v51 = vpack.c.bf16 %v5490_v44, %v5482_v58  ;;  %v5546_v0 = vld [vmem:[#allocation9 + $0x12b8] sm:$0xff] }
 0x62e   :  { %10741 = vmatprep.subr.bf16.mxu1 %v10740_v7  ;;  %v5423_v1 = vld [vmem:[#allocation9 + $0xee0] sm:$0xff]  ;;  %v5432_v7 = vld [vmem:[#allocation9 + $0xf28] sm:$0xff]  ;;  %v5554_v37 = vld [vmem:[#allocation9 + $0x12f8] sm:$0xff] }
 0x62f   :  { %v10502_v11 = vpack.c.bf16 %v5423_v1, %v5415_v18  ;;  %v5489_v1 = vld [vmem:[#allocation9 + $0x10f0] sm:$0xff]  ;;  %v5543_v58 = vld [vmem:[#allocation9 + $0x12a0] sm:$0xff] }
 0x630   :  { %10487 = vmatpush1.bf16.msra.mxu0 %v10486_v15  ;;  %v10504_v15 = vpack.c.bf16 %v5440_v8, %v5432_v7  ;;  %v5498_v7 = vld [vmem:[#allocation9 + $0x1138] sm:$0xff]  ;;  %v5551_v44 = vld [vmem:[#allocation9 + $0x12e0] sm:$0xff] }
 0x631   :  { %10743 = vmatpush1.bf16.msra.mxu1 %v10742_v16  ;;  %10489 = vmatprep.subr.bf16.mxu0 %v10488_v19  ;;  %v5431_v16 = vld [vmem:[#allocation9 + $0xf20] sm:$0xff]  ;;  %v5506_v8 = vld [vmem:[#allocation9 + $0x1178] sm:$0xff] }
 0x632   :  { %10745 = vmatprep.subr.bf16.mxu1 %v10744_v22  ;;  %v5439_v19 = vld [vmem:[#allocation9 + $0xf60] sm:$0xff]  ;;  %v5448_v22 = vld [vmem:[#allocation9 + $0xfa8] sm:$0xff] }
 0x633   :  { %v10506_v27 = vpack.c.bf16 %v5439_v19, %v5431_v16  ;;  %v5497_v16 = vld [vmem:[#allocation9 + $0x1130] sm:$0xff]  ;;  %v10776_v19 = vpack.c.bf16 %v5506_v8, %v5498_v7  ;;  %v5559_v8 = vld [vmem:[#allocation9 + $0x1320] sm:$0xff] }
 0x634   :  { %10491 = vmatpush1.bf16.msra.mxu0 %v10490_v40  ;;  %v10508_v40 = vpack.c.bf16 %v5456_v26, %v5448_v22  ;;  %v5514_v22 = vld [vmem:[#allocation9 + $0x11b8] sm:$0xff]  ;;  %v10778_v17 = vpack.c.bf16 %v5505_v20, %v5497_v16  ;;  %v5584_v16 = vld [vmem:[#allocation9 + $0x13e8] sm:$0xff] }
 0x635   :  { %10747 = vmatpush1.bf16.msra.mxu1 %v10746_v41  ;;  %10493 = vmatprep.subr.bf16.mxu0 %v10492_v33  ;;  %v5447_v41 = vld [vmem:[#allocation9 + $0xfa0] sm:$0xff]  ;;  %v5586_v20 = vld [vmem:[#allocation9 + $0x13f8] sm:$0xff] }
 0x636   :  { %10749 = vmatprep.subr.bf16.mxu1 %v10748_v46  ;;  %v5455_v33 = vld [vmem:[#allocation9 + $0xfe0] sm:$0xff]  ;;  %v5464_v46 = vld [vmem:[#allocation9 + $0x1028] sm:$0xff] }
 0x637   :  { %v10510_v49 = vpack.c.bf16 %v5455_v33, %v5447_v41  ;;  %v5528_v33 = vld [vmem:[#allocation9 + $0x1228] sm:$0xff] }
 0x638   :  { %10495 = vmatpush1.bf16.msra.mxu0 %v10494_v36  ;;  %v10512_v36 = vpack.c.bf16 %v5472_v29, %v5464_v46  ;;  %v10528_v25 = vpack.c.bf16 %v5536_v3, %v5528_v33 }
 0x639   :  { %10751 = vmatpush1.bf16.msra.mxu1 %v10750_v52  ;;  %10497 = vmatprep.subr.bf16.mxu0 %v10496_v12  ;;  %v5463_v52 = vld [vmem:[#allocation9 + $0x1020] sm:$0xff] }
 0x63a   :  { %10753 = vmatprep.subr.bf16.mxu1 %v10752_v55  ;;  %v5471_v12 = vld [vmem:[#allocation9 + $0x1060] sm:$0xff]  ;;  %v5480_v55 = vld [vmem:[#allocation9 + $0x10a8] sm:$0xff] }
 0x63b   :  { %v10514_v57 = vpack.c.bf16 %v5471_v12, %v5463_v52  ;;  %v10516_v18 = vpack.c.bf16 %v5488_v56, %v5480_v55  ;;  %v5537_v52 = vld [vmem:[#allocation9 + $0x1270] sm:$0xff]  ;;  %v5544_v12 = vld [vmem:[#allocation9 + $0x12a8] sm:$0xff] }
 0x63c   :  { %10499 = vmatpush1.bf16.msra.mxu0 %v10498_v60  ;;  %v5479_v60 = vld [vmem:[#allocation9 + $0x10a0] sm:$0xff] }
 0x63d   :  { %10755 = vmatpush1.bf16.msra.mxu1 %v10754_v61  ;;  %10501 = vmatprep.subr.bf16.mxu0 %v10500_v63  ;;  %v5487_v61 = vld [vmem:[#allocation9 + $0x10e0] sm:$0xff]  ;;  %v5481_v63 = vld [vmem:[#allocation9 + $0x10b0] sm:$0xff] }
 0x63e   :  { %10757 = vmatprep.subr.bf16.mxu1 %v10756_v5  ;;  %v5504_v5 = vld [vmem:[#allocation9 + $0x1168] sm:$0xff]  ;;  %v10518_v9 = vpack.c.bf16 %v5487_v61, %v5479_v60  ;;  %v10774_v10 = vpack.c.bf16 %v5489_v1, %v5481_v63  ;;  %v10788_v60 = vpack.c.bf16 %v5554_v37, %v5546_v0  ;;  %v5553_v61 = vld [vmem:[#allocation9 + $0x12f0] sm:$0xff]  ;;  %v5562_v1 = vld [vmem:[#allocation9 + $0x1338] sm:$0xff] }
 0x63f   :  { %v5560_v63 = vld [vmem:[#allocation9 + $0x1328] sm:$0xff]  ;;  %v5607_v37 = vld [vmem:[#allocation9 + $0x14a0] sm:$0xff] }
 0x640   :  { %10503 = vmatpush1.bf16.msra.mxu0 %v10502_v11  ;;  %v10520_v11 = vpack.c.bf16 %v5504_v5, %v5496_v2  ;;  %v5570_v2 = vld [vmem:[#allocation9 + $0x1378] sm:$0xff]  ;;  %v10534_v5 = vpack.c.bf16 %v5551_v44, %v5543_v58  ;;  %v5617_v58 = vld [vmem:[#allocation9 + $0x14f0] sm:$0xff]  ;;  %v5624_v44 = vld [vmem:[#allocation9 + $0x1528] sm:$0xff] }
 0x641   :  { %10759 = vmatpush1.bf16.msra.mxu1 %v10758_v13  ;;  %10505 = vmatprep.subr.bf16.mxu0 %v10504_v15  ;;  %v5495_v13 = vld [vmem:[#allocation9 + $0x1120] sm:$0xff] }
 0x642   :  { %10761 = vmatprep.subr.bf16.mxu1 %v10760_v23  ;;  %v5503_v15 = vld [vmem:[#allocation9 + $0x1160] sm:$0xff]  ;;  %v5512_v23 = vld [vmem:[#allocation9 + $0x11a8] sm:$0xff] }
 0x643   :  { %v10522_v26 = vpack.c.bf16 %v5503_v15, %v5495_v13  ;;  %v10524_v31 = vpack.c.bf16 %v5520_v24, %v5512_v23  ;;  %v5569_v13 = vld [vmem:[#allocation9 + $0x1370] sm:$0xff]  ;;  %v5576_v15 = vld [vmem:[#allocation9 + $0x13a8] sm:$0xff] }
 0x644   :  { %10507 = vmatpush1.bf16.msra.mxu0 %v10506_v27  ;;  %v5511_v27 = vld [vmem:[#allocation9 + $0x11a0] sm:$0xff] }
 0x645   :  { %10763 = vmatpush1.bf16.msra.mxu1 %v10762_v38  ;;  %10509 = vmatprep.subr.bf16.mxu0 %v10508_v40  ;;  %v5519_v38 = vld [vmem:[#allocation9 + $0x11e0] sm:$0xff]  ;;  %v5513_v40 = vld [vmem:[#allocation9 + $0x11b0] sm:$0xff] }
 0x646   :  { %10765 = vmatprep.subr.bf16.mxu1 %v10764_v42  ;;  %v5530_v42 = vld [vmem:[#allocation9 + $0x1238] sm:$0xff]  ;;  %v10526_v46 = vpack.c.bf16 %v5519_v38, %v5511_v27  ;;  %v5585_v27 = vld [vmem:[#allocation9 + $0x13f0] sm:$0xff]  ;;  %v5592_v38 = vld [vmem:[#allocation9 + $0x1428] sm:$0xff] }
 0x648   :  { %10511 = vmatpush1.bf16.msra.mxu0 %v10510_v49  ;;  %v5535_v49 = vld [vmem:[#allocation9 + $0x1260] sm:$0xff] }
 0x649   :  { %10767 = vmatpush1.bf16.msra.mxu1 %v10766_v39  ;;  %10513 = vmatprep.subr.bf16.mxu0 %v10512_v36  ;;  %v5529_v39 = vld [vmem:[#allocation9 + $0x1230] sm:$0xff]  ;;  %v10784_v36 = vpack.c.bf16 %v5538_v43, %v5530_v42  ;;  %v10530_v55 = vpack.c.bf16 %v5535_v49, %v5527_v47  ;;  %v5591_v43 = vld [vmem:[#allocation9 + $0x1420] sm:$0xff]  ;;  %v5608_v49 = vld [vmem:[#allocation9 + $0x14a8] sm:$0xff] }
 0x64a   :  { %10769 = vmatprep.subr.bf16.mxu1 %v10768_v53  ;;  %v5552_v53 = vld [vmem:[#allocation9 + $0x12e8] sm:$0xff]  ;;  %v10786_v56 = vpack.c.bf16 %v5537_v52, %v5529_v39  ;;  %v5601_v47 = vld [vmem:[#allocation9 + $0x1470] sm:$0xff]  ;;  %v5618_v52 = vld [vmem:[#allocation9 + $0x14f8] sm:$0xff] }
 0x64b   :  { %6717 = vmatmul.mubr.f32.vlgmr.msra.gmra.mrb[10].mxu0 %v11654_v54  ;;  %v5616_v39 = vld [vmem:[#allocation9 + $0x14e8] sm:$0xff] }
 0x64c   :  { %7001 = vmatmul.mubr.f32.vlgmr.msra.gmra.mrb[10].mxu1 %v11654_v54  ;;  %10515 = vmatpush1.bf16.msra.mxu0 %v10514_v57  ;;  %v5522_v54 = vld [vmem:[#allocation9 + $0x11f8] sm:$0xff]  ;;  %v10532_v57 = vpack.c.bf16 %v5552_v53, %v5544_v12  ;;  %v10548_v0 = vpack.c.bf16 %v5616_v39, %v5608_v49 }
 0x64d   :  { %6787 = vmatprep.mubr.f32.mxu0 %v11680_v48  ;;  %10771 = vmatpush1.bf16.msra.mxu1 %v10770_v59  ;;  %v10780_v41 = vpack.c.bf16 %v5522_v54, %v5514_v22  ;;  %v5545_v59 = vld [vmem:[#allocation9 + $0x12b0] sm:$0xff]  ;;  %v10540_v22 = vpack.c.bf16 %v5584_v16, %v5576_v15  ;;  %v5575_v54 = vld [vmem:[#allocation9 + $0x13a0] sm:$0xff] }
 0x64e   :  { %7071 = vmatprep.mubr.f32.mxu1 %v11680_v48  ;;  %10517 = vmatprep.subr.bf16.mxu0 %v10516_v18  ;;  %v5521_v48 = vld [vmem:[#allocation9 + $0x11f0] sm:$0xff]  ;;  %v5568_v18 = vld [vmem:[#allocation9 + $0x1368] sm:$0xff] }
 0x64f   :  { %10773 = vmatprep.subr.bf16.mxu1 %v10772_v51  ;;  %v10782_v29 = vpack.c.bf16 %v5521_v48, %v5513_v40  ;;  %v10790_v51 = vpack.c.bf16 %v5553_v61, %v5545_v59  ;;  %v10536_v7 = vpack.c.bf16 %v5568_v18, %v5560_v63  ;;  %v5600_v40 = vld [vmem:[#allocation9 + $0x1468] sm:$0xff]  ;;  %v5602_v48 = vld [vmem:[#allocation9 + $0x1478] sm:$0xff] }
 0x650   :  { %10519 = vmatpush1.bf16.msra.mxu0 %v10518_v9  ;;  %v5567_v9 = vld [vmem:[#allocation9 + $0x1360] sm:$0xff]  ;;  %v10544_v42 = vpack.c.bf16 %v5600_v40, %v5592_v38  ;;  %v5632_v59 = vld [vmem:[#allocation9 + $0x1568] sm:$0xff]  ;;  %v5634_v61 = vld [vmem:[#allocation9 + $0x1578] sm:$0xff] }
 0x651   :  { %10775 = vmatpush1.bf16.msra.mxu1 %v10774_v10  ;;  %10521 = vmatprep.subr.bf16.mxu0 %v10520_v11  ;;  %v5561_v10 = vld [vmem:[#allocation9 + $0x1330] sm:$0xff]  ;;  %v10792_v11 = vpack.c.bf16 %v5570_v2, %v5562_v1  ;;  %v10538_v23 = vpack.c.bf16 %v5567_v9, %v5559_v8  ;;  %v10552_v1 = vpack.c.bf16 %v5632_v59, %v5624_v44  ;;  %v5623_v2 = vld [vmem:[#allocation9 + $0x1520] sm:$0xff]  ;;  %v5640_v9 = vld [vmem:[#allocation9 + $0x15a8] sm:$0xff] }
 0x652   :  { %10777 = vmatprep.subr.bf16.mxu1 %v10776_v19  ;;  %v5578_v19 = vld [vmem:[#allocation9 + $0x13b8] sm:$0xff]  ;;  %v10794_v24 = vpack.c.bf16 %v5569_v13, %v5561_v10  ;;  %v5633_v8 = vld [vmem:[#allocation9 + $0x1570] sm:$0xff]  ;;  %v5648_v10 = vld [vmem:[#allocation9 + $0x15e8] sm:$0xff] }
 0x653   :  { %v5650_v13 = vld [vmem:[#allocation9 + $0x15f8] sm:$0xff] }
 0x654   :  { %10523 = vmatpush1.bf16.msra.mxu0 %v10522_v26  ;;  %v5583_v26 = vld [vmem:[#allocation9 + $0x13e0] sm:$0xff] }
 0x655   :  { %10779 = vmatpush1.bf16.msra.mxu1 %v10778_v17  ;;  %10525 = vmatprep.subr.bf16.mxu0 %v10524_v31  ;;  %v5577_v17 = vld [vmem:[#allocation9 + $0x13b0] sm:$0xff]  ;;  %v10796_v31 = vpack.c.bf16 %v5586_v20, %v5578_v19  ;;  %v10542_v33 = vpack.c.bf16 %v5583_v26, %v5575_v54  ;;  %v10556_v19 = vpack.c.bf16 %v5648_v10, %v5640_v9  ;;  %v5639_v20 = vld [vmem:[#allocation9 + $0x15a0] sm:$0xff]  ;;  %v5656_v26 = vld [vmem:[#allocation9 + $0x1628] sm:$0xff] }
 0x656   :  { %10781 = vmatprep.subr.bf16.mxu1 %v10780_v41  ;;  %v5594_v41 = vld [vmem:[#allocation9 + $0x1438] sm:$0xff]  ;;  %v10798_v3 = vpack.c.bf16 %v5585_v27, %v5577_v17  ;;  %v5649_v54 = vld [vmem:[#allocation9 + $0x15f0] sm:$0xff]  ;;  %v5664_v17 = vld [vmem:[#allocation9 + $0x1668] sm:$0xff] }
 0x657   :  { %v5666_v27 = vld [vmem:[#allocation9 + $0x1678] sm:$0xff] }
 0x658   :  { %10527 = vmatpush1.bf16.msra.mxu0 %v10526_v46  ;;  %v5599_v46 = vld [vmem:[#allocation9 + $0x1460] sm:$0xff] }
 0x659   :  { %10783 = vmatpush1.bf16.msra.mxu1 %v10782_v29  ;;  %10529 = vmatprep.subr.bf16.mxu0 %v10528_v25  ;;  %v5593_v29 = vld [vmem:[#allocation9 + $0x1430] sm:$0xff]  ;;  %v10800_v25 = vpack.c.bf16 %v5602_v48, %v5594_v41  ;;  %v10546_v12 = vpack.c.bf16 %v5599_v46, %v5591_v43  ;;  %v10560_v41 = vpack.c.bf16 %v5664_v17, %v5656_v26  ;;  %v5655_v48 = vld [vmem:[#allocation9 + $0x1620] sm:$0xff]  ;;  %v5672_v46 = vld [vmem:[#allocation9 + $0x16a8] sm:$0xff] }
 0x65a   :  { %10785 = vmatprep.subr.bf16.mxu1 %v10784_v36  ;;  %v5610_v36 = vld [vmem:[#allocation9 + $0x14b8] sm:$0xff]  ;;  %v10802_v53 = vpack.c.bf16 %v5601_v47, %v5593_v29  ;;  %v5665_v43 = vld [vmem:[#allocation9 + $0x1670] sm:$0xff]  ;;  %v5680_v29 = vld [vmem:[#allocation9 + $0x16e8] sm:$0xff] }
 0x65b   :  { %v5682_v47 = vld [vmem:[#allocation9 + $0x16f8] sm:$0xff] }
 0x65c   :  { %10531 = vmatpush1.bf16.msra.mxu0 %v10530_v55  ;;  %v5615_v55 = vld [vmem:[#allocation9 + $0x14e0] sm:$0xff] }
 0x65d   :  { %10787 = vmatpush1.bf16.msra.mxu1 %v10786_v56  ;;  %10533 = vmatprep.subr.bf16.mxu0 %v10532_v57  ;;  %v5609_v56 = vld [vmem:[#allocation9 + $0x14b0] sm:$0xff]  ;;  %v10804_v57 = vpack.c.bf16 %v5618_v52, %v5610_v36  ;;  %v10550_v63 = vpack.c.bf16 %v5615_v55, %v5607_v37  ;;  %v10564_v36 = vpack.c.bf16 %v5680_v29, %v5672_v46  ;;  %v5671_v52 = vld [vmem:[#allocation9 + $0x16a0] sm:$0xff]  ;;  %v5688_v55 = vld [vmem:[#allocation9 + $0x1728] sm:$0xff] }
 0x65e   :  { %10789 = vmatprep.subr.bf16.mxu1 %v10788_v60  ;;  %v5626_v60 = vld [vmem:[#allocation9 + $0x1538] sm:$0xff]  ;;  %v10806_v18 = vpack.c.bf16 %v5617_v58, %v5609_v56  ;;  %v5681_v37 = vld [vmem:[#allocation9 + $0x16f0] sm:$0xff]  ;;  %v5696_v56 = vld [vmem:[#allocation9 + $0x1768] sm:$0xff] }
 0x65f   :  { %v5698_v58 = vld [vmem:[#allocation9 + $0x1778] sm:$0xff] }
 0x660   :  { %10535 = vmatpush1.bf16.msra.mxu0 %v10534_v5  ;;  %v5631_v5 = vld [vmem:[#allocation9 + $0x1560] sm:$0xff]  ;;  %v5746_v46 = vld [vmem:[#allocation9 + $0x18f8] sm:$0xff] }
 0x661   :  { %10791 = vmatpush1.bf16.msra.mxu1 %v10790_v51  ;;  %10537 = vmatprep.subr.bf16.mxu0 %v10536_v7  ;;  %v5625_v51 = vld [vmem:[#allocation9 + $0x1530] sm:$0xff]  ;;  %v10808_v7 = vpack.c.bf16 %v5634_v61, %v5626_v60  ;;  %v10554_v15 = vpack.c.bf16 %v5631_v5, %v5623_v2  ;;  %v10568_v60 = vpack.c.bf16 %v5696_v56, %v5688_v55  ;;  %v5687_v61 = vld [vmem:[#allocation9 + $0x1720] sm:$0xff]  ;;  %v5704_v5 = vld [vmem:[#allocation9 + $0x17a8] sm:$0xff] }
 0x662   :  { %10793 = vmatprep.subr.bf16.mxu1 %v10792_v11  ;;  %v5642_v11 = vld [vmem:[#allocation9 + $0x15b8] sm:$0xff]  ;;  %v10810_v16 = vpack.c.bf16 %v5633_v8, %v5625_v51  ;;  %v5697_v2 = vld [vmem:[#allocation9 + $0x1770] sm:$0xff]  ;;  %v5712_v51 = vld [vmem:[#allocation9 + $0x17e8] sm:$0xff] }
 0x663   :  { %v5714_v8 = vld [vmem:[#allocation9 + $0x17f8] sm:$0xff] }
 0x664   :  { %10539 = vmatpush1.bf16.msra.mxu0 %v10538_v23  ;;  %v5647_v23 = vld [vmem:[#allocation9 + $0x15e0] sm:$0xff] }
 0x665   :  { %10795 = vmatpush1.bf16.msra.mxu1 %v10794_v24  ;;  %10541 = vmatprep.subr.bf16.mxu0 %v10540_v22  ;;  %v5641_v24 = vld [vmem:[#allocation9 + $0x15b0] sm:$0xff]  ;;  %v10812_v22 = vpack.c.bf16 %v5650_v13, %v5642_v11  ;;  %v10558_v38 = vpack.c.bf16 %v5647_v23, %v5639_v20  ;;  %v10572_v11 = vpack.c.bf16 %v5712_v51, %v5704_v5  ;;  %v5703_v13 = vld [vmem:[#allocation9 + $0x17a0] sm:$0xff]  ;;  %v5720_v23 = vld [vmem:[#allocation9 + $0x1828] sm:$0xff] }
 0x666   :  { %10797 = vmatprep.subr.bf16.mxu1 %v10796_v31  ;;  %v5658_v31 = vld [vmem:[#allocation9 + $0x1638] sm:$0xff]  ;;  %v10814_v40 = vpack.c.bf16 %v5649_v54, %v5641_v24  ;;  %v5713_v20 = vld [vmem:[#allocation9 + $0x17f0] sm:$0xff]  ;;  %v5728_v24 = vld [vmem:[#allocation9 + $0x1868] sm:$0xff] }
 0x667   :  { %v5730_v54 = vld [vmem:[#allocation9 + $0x1878] sm:$0xff] }
 0x668   :  { %10543 = vmatpush1.bf16.msra.mxu0 %v10542_v33  ;;  %v5663_v33 = vld [vmem:[#allocation9 + $0x1660] sm:$0xff] }
 0x669   :  { %10799 = vmatpush1.bf16.msra.mxu1 %v10798_v3  ;;  %10545 = vmatprep.subr.bf16.mxu0 %v10544_v42  ;;  %v5657_v3 = vld [vmem:[#allocation9 + $0x1630] sm:$0xff]  ;;  %v10816_v42 = vpack.c.bf16 %v5666_v27, %v5658_v31  ;;  %v10562_v49 = vpack.c.bf16 %v5663_v33, %v5655_v48  ;;  %v10576_v31 = vpack.c.bf16 %v5728_v24, %v5720_v23  ;;  %v5719_v27 = vld [vmem:[#allocation9 + $0x1820] sm:$0xff]  ;;  %v5736_v33 = vld [vmem:[#allocation9 + $0x18a8] sm:$0xff] }
 0x66a   :  { %10801 = vmatprep.subr.bf16.mxu1 %v10800_v25  ;;  %v5674_v25 = vld [vmem:[#allocation9 + $0x16b8] sm:$0xff]  ;;  %v10818_v39 = vpack.c.bf16 %v5665_v43, %v5657_v3  ;;  %v5729_v48 = vld [vmem:[#allocation9 + $0x1870] sm:$0xff]  ;;  %v5744_v3 = vld [vmem:[#allocation9 + $0x18e8] sm:$0xff] }
 0x66b   :  { %v5738_v43 = vld [vmem:[#allocation9 + $0x18b8] sm:$0xff]  ;;  %v5783_v24 = vld [vmem:[#allocation9 + $0x1a20] sm:$0xff] }
 0x66c   :  { %10547 = vmatpush1.bf16.msra.mxu0 %v10546_v12  ;;  %v5679_v12 = vld [vmem:[#allocation9 + $0x16e0] sm:$0xff] }
 0x66d   :  { %10803 = vmatpush1.bf16.msra.mxu1 %v10802_v53  ;;  %10549 = vmatprep.subr.bf16.mxu0 %v10548_v0  ;;  %v5673_v53 = vld [vmem:[#allocation9 + $0x16b0] sm:$0xff]  ;;  %v10820_v0 = vpack.c.bf16 %v5682_v47, %v5674_v25  ;;  %v10566_v44 = vpack.c.bf16 %v5679_v12, %v5671_v52  ;;  %v5735_v25 = vld [vmem:[#allocation9 + $0x18a0] sm:$0xff]  ;;  %v5752_v52 = vld [vmem:[#allocation9 + $0x1928] sm:$0xff] }
 0x66e   :  { %10805 = vmatprep.subr.bf16.mxu1 %v10804_v57  ;;  %v5690_v57 = vld [vmem:[#allocation9 + $0x1738] sm:$0xff]  ;;  %v10822_v59 = vpack.c.bf16 %v5681_v37, %v5673_v53  ;;  %v5743_v47 = vld [vmem:[#allocation9 + $0x18e0] sm:$0xff]  ;;  %v5760_v12 = vld [vmem:[#allocation9 + $0x1968] sm:$0xff]  ;;  %v10836_v53 = vpack.c.bf16 %v5746_v46, %v5738_v43 }
 0x66f   :  { %v5762_v37 = vld [vmem:[#allocation9 + $0x1978] sm:$0xff]  ;;  %v10582_v55 = vpack.c.bf16 %v5743_v47, %v5735_v25  ;;  %v5801_v43 = vld [vmem:[#allocation9 + $0x1ab0] sm:$0xff]  ;;  %v5816_v25 = vld [vmem:[#allocation9 + $0x1b28] sm:$0xff] }
 0x670   :  { %10551 = vmatpush1.bf16.msra.mxu0 %v10550_v63  ;;  %v5695_v63 = vld [vmem:[#allocation9 + $0x1760] sm:$0xff]  ;;  %v5824_v47 = vld [vmem:[#allocation9 + $0x1b68] sm:$0xff] }
 0x671   :  { %10807 = vmatpush1.bf16.msra.mxu1 %v10806_v18  ;;  %10553 = vmatprep.subr.bf16.mxu0 %v10552_v1  ;;  %v5689_v18 = vld [vmem:[#allocation9 + $0x1730] sm:$0xff]  ;;  %v10824_v1 = vpack.c.bf16 %v5698_v58, %v5690_v57  ;;  %v10570_v9 = vpack.c.bf16 %v5695_v63, %v5687_v61  ;;  %v10584_v57 = vpack.c.bf16 %v5760_v12, %v5752_v52  ;;  %v5751_v58 = vld [vmem:[#allocation9 + $0x1920] sm:$0xff]  ;;  %v5768_v63 = vld [vmem:[#allocation9 + $0x19a8] sm:$0xff] }
 0x672   :  { %10809 = vmatprep.subr.bf16.mxu1 %v10808_v7  ;;  %v5706_v7 = vld [vmem:[#allocation9 + $0x17b8] sm:$0xff]  ;;  %v10826_v10 = vpack.c.bf16 %v5697_v2, %v5689_v18  ;;  %v5761_v61 = vld [vmem:[#allocation9 + $0x1970] sm:$0xff]  ;;  %v5776_v18 = vld [vmem:[#allocation9 + $0x19e8] sm:$0xff]  ;;  %v10600_v12 = vpack.c.bf16 %v5824_v47, %v5816_v25 }
 0x673   :  { %v10588_v51 = vpack.c.bf16 %v5776_v18, %v5768_v63  ;;  %v5834_v63 = vld [vmem:[#allocation9 + $0x1bb8] sm:$0xff] }
 0x674   :  { %10555 = vmatpush1.bf16.msra.mxu0 %v10554_v15  ;;  %v5711_v15 = vld [vmem:[#allocation9 + $0x17e0] sm:$0xff]  ;;  %v5842_v18 = vld [vmem:[#allocation9 + $0x1bf8] sm:$0xff] }
 0x675   :  { %10811 = vmatpush1.bf16.msra.mxu1 %v10810_v16  ;;  %10557 = vmatprep.subr.bf16.mxu0 %v10556_v19  ;;  %v5705_v16 = vld [vmem:[#allocation9 + $0x17b0] sm:$0xff]  ;;  %v10828_v19 = vpack.c.bf16 %v5714_v8, %v5706_v7  ;;  %v10574_v26 = vpack.c.bf16 %v5711_v15, %v5703_v13  ;;  %v5767_v7 = vld [vmem:[#allocation9 + $0x19a0] sm:$0xff]  ;;  %v5792_v13 = vld [vmem:[#allocation9 + $0x1a68] sm:$0xff] }
 0x676   :  { %10813 = vmatprep.subr.bf16.mxu1 %v10812_v22  ;;  %v5722_v22 = vld [vmem:[#allocation9 + $0x1838] sm:$0xff]  ;;  %v10830_v17 = vpack.c.bf16 %v5713_v20, %v5705_v16  ;;  %v5775_v8 = vld [vmem:[#allocation9 + $0x19e0] sm:$0xff] }
 0x677   :  { %v5786_v15 = vld [vmem:[#allocation9 + $0x1a38] sm:$0xff] }
 0x678   :  { %10559 = vmatpush1.bf16.msra.mxu0 %v10558_v38  ;;  %v5727_v38 = vld [vmem:[#allocation9 + $0x1860] sm:$0xff]  ;;  %v5794_v16 = vld [vmem:[#allocation9 + $0x1a78] sm:$0xff] }
 0x679   :  { %10815 = vmatpush1.bf16.msra.mxu1 %v10814_v40  ;;  %10561 = vmatprep.subr.bf16.mxu0 %v10560_v41  ;;  %v10832_v40 = vpack.c.bf16 %v5730_v54, %v5722_v22  ;;  %v5721_v41 = vld [vmem:[#allocation9 + $0x1830] sm:$0xff]  ;;  %v5791_v22 = vld [vmem:[#allocation9 + $0x1a60] sm:$0xff]  ;;  %v5882_v25 = vld [vmem:[#allocation9 + $0x1d38] sm:$0xff] }
 0x67a   :  { %10817 = vmatprep.subr.bf16.mxu1 %v10816_v42  ;;  %v10578_v42 = vpack.c.bf16 %v5727_v38, %v5719_v27  ;;  %v10834_v29 = vpack.c.bf16 %v5729_v48, %v5721_v41  ;;  %v5785_v54 = vld [vmem:[#allocation9 + $0x1a30] sm:$0xff]  ;;  %v5808_v27 = vld [vmem:[#allocation9 + $0x1ae8] sm:$0xff]  ;;  %v5802_v38 = vld [vmem:[#allocation9 + $0x1ab8] sm:$0xff]  ;;  %v10594_v41 = vpack.c.bf16 %v5791_v22, %v5783_v24 }
 0x67b   :  { %v5849_v24 = vld [vmem:[#allocation9 + $0x1c30] sm:$0xff]  ;;  %v5890_v47 = vld [vmem:[#allocation9 + $0x1d78] sm:$0xff] }
 0x67c   :  { %10563 = vmatpush1.bf16.msra.mxu0 %v10562_v49  ;;  %v5737_v49 = vld [vmem:[#allocation9 + $0x18b0] sm:$0xff] }
 0x67d   :  { %10819 = vmatpush1.bf16.msra.mxu1 %v10818_v39  ;;  %10565 = vmatprep.subr.bf16.mxu0 %v10564_v36  ;;  %v10580_v39 = vpack.c.bf16 %v5744_v3, %v5736_v33  ;;  %v5745_v36 = vld [vmem:[#allocation9 + $0x18f0] sm:$0xff]  ;;  %v5799_v3 = vld [vmem:[#allocation9 + $0x1aa0] sm:$0xff] }
 0x67e   :  { %10821 = vmatprep.subr.bf16.mxu1 %v10820_v0  ;;  %v5754_v0 = vld [vmem:[#allocation9 + $0x1938] sm:$0xff]  ;;  %v10838_v56 = vpack.c.bf16 %v5745_v36, %v5737_v49 }
 0x67f   :  { %v5818_v49 = vld [vmem:[#allocation9 + $0x1b38] sm:$0xff] }
 0x680   :  { %10567 = vmatpush1.bf16.msra.mxu0 %v10566_v44  ;;  %v5759_v44 = vld [vmem:[#allocation9 + $0x1960] sm:$0xff] }
 0x681   :  { %10823 = vmatpush1.bf16.msra.mxu1 %v10822_v59  ;;  %10569 = vmatprep.subr.bf16.mxu0 %v10568_v60  ;;  %v5753_v59 = vld [vmem:[#allocation9 + $0x1930] sm:$0xff]  ;;  %v10840_v60 = vpack.c.bf16 %v5762_v37, %v5754_v0  ;;  %v10586_v2 = vpack.c.bf16 %v5759_v44, %v5751_v58  ;;  %v5823_v0 = vld [vmem:[#allocation9 + $0x1b60] sm:$0xff]  ;;  %v5832_v44 = vld [vmem:[#allocation9 + $0x1ba8] sm:$0xff] }
 0x682   :  { %10825 = vmatprep.subr.bf16.mxu1 %v10824_v1  ;;  %v5770_v1 = vld [vmem:[#allocation9 + $0x19b8] sm:$0xff]  ;;  %v10842_v5 = vpack.c.bf16 %v5761_v61, %v5753_v59  ;;  %v5817_v37 = vld [vmem:[#allocation9 + $0x1b30] sm:$0xff]  ;;  %v5840_v59 = vld [vmem:[#allocation9 + $0x1be8] sm:$0xff] }
 0x683   :  { %v5825_v58 = vld [vmem:[#allocation9 + $0x1b70] sm:$0xff] }
 0x684   :  { %10571 = vmatpush1.bf16.msra.mxu0 %v10570_v9  ;;  %v5769_v9 = vld [vmem:[#allocation9 + $0x19b0] sm:$0xff] }
 0x685   :  { %10827 = vmatpush1.bf16.msra.mxu1 %v10826_v10  ;;  %10573 = vmatprep.subr.bf16.mxu0 %v10572_v11  ;;  %v5784_v11 = vld [vmem:[#allocation9 + $0x1a28] sm:$0xff] }
 0x686   :  { %10829 = vmatprep.subr.bf16.mxu1 %v10828_v19  ;;  %v10590_v19 = vpack.c.bf16 %v5775_v8, %v5767_v7  ;;  %v10592_v23 = vpack.c.bf16 %v5792_v13, %v5784_v11  ;;  %v5833_v7 = vld [vmem:[#allocation9 + $0x1bb0] sm:$0xff]  ;;  %v10860_v8 = vpack.c.bf16 %v5842_v18, %v5834_v63  ;;  %v5850_v11 = vld [vmem:[#allocation9 + $0x1c38] sm:$0xff] }
 0x687   :  { %v5858_v13 = vld [vmem:[#allocation9 + $0x1c78] sm:$0xff] }
 0x688   :  { %10575 = vmatpush1.bf16.msra.mxu0 %v10574_v26  ;;  %v10848_v26 = vpack.c.bf16 %v5794_v16, %v5786_v15  ;;  %v10864_v22 = vpack.c.bf16 %v5858_v13, %v5850_v11 }
 0x689   :  { %10831 = vmatpush1.bf16.msra.mxu1 %v10830_v17  ;;  %10577 = vmatprep.subr.bf16.mxu0 %v10576_v31  ;;  %v5793_v17 = vld [vmem:[#allocation9 + $0x1a70] sm:$0xff]  ;;  %v5800_v31 = vld [vmem:[#allocation9 + $0x1aa8] sm:$0xff] }
 0x68a   :  { %10833 = vmatprep.subr.bf16.mxu1 %v10832_v40  ;;  %v5810_v40 = vld [vmem:[#allocation9 + $0x1af8] sm:$0xff]  ;;  %v10850_v48 = vpack.c.bf16 %v5793_v17, %v5785_v54  ;;  %v10596_v33 = vpack.c.bf16 %v5808_v27, %v5800_v31  ;;  %v5857_v54 = vld [vmem:[#allocation9 + $0x1c70] sm:$0xff]  ;;  %v5872_v17 = vld [vmem:[#allocation9 + $0x1ce8] sm:$0xff] }
 0x68b   :  { %6788 = vmatmul.mubr.f32.vlgmr.msra.gmra.mrb[10].mxu0 %v11682_v4  ;;  %v10852_v46 = vpack.c.bf16 %v5810_v40, %v5802_v38  ;;  %v5866_v31 = vld [vmem:[#allocation9 + $0x1cb8] sm:$0xff]  ;;  %v10866_v40 = vpack.c.bf16 %v5857_v54, %v5849_v24  ;;  %v5921_v24 = vld [vmem:[#allocation9 + $0x1e70] sm:$0xff]  ;;  %v5936_v54 = vld [vmem:[#allocation9 + $0x1ee8] sm:$0xff] }
 0x68c   :  { %7072 = vmatmul.mubr.f32.vlgmr.msra.gmra.mrb[10].mxu1 %v11682_v4  ;;  %10579 = vmatpush1.bf16.msra.mxu0 %v10578_v42  ;;  %v5778_v4 = vld [vmem:[#allocation9 + $0x19f8] sm:$0xff]  ;;  %v5807_v42 = vld [vmem:[#allocation9 + $0x1ae0] sm:$0xff] }
 0x68d   :  { %6858 = vmatprep.mubr.f32.mxu0 %v11686_v14  ;;  %10835 = vmatpush1.bf16.msra.mxu1 %v10834_v29  ;;  %v10844_v10 = vpack.c.bf16 %v5778_v4, %v5770_v1  ;;  %v5809_v29 = vld [vmem:[#allocation9 + $0x1af0] sm:$0xff]  ;;  %v10598_v36 = vpack.c.bf16 %v5807_v42, %v5799_v3  ;;  %v10858_v4 = vpack.c.bf16 %v5825_v58, %v5817_v37  ;;  %v5874_v27 = vld [vmem:[#allocation9 + $0x1cf8] sm:$0xff]  ;;  %v5904_v58 = vld [vmem:[#allocation9 + $0x1de8] sm:$0xff] }
 0x68e   :  { %7142 = vmatprep.mubr.f32.mxu1 %v11686_v14  ;;  %10581 = vmatprep.subr.bf16.mxu0 %v10580_v39  ;;  %v5777_v14 = vld [vmem:[#allocation9 + $0x19f0] sm:$0xff]  ;;  %v5826_v39 = vld [vmem:[#allocation9 + $0x1b78] sm:$0xff]  ;;  %v10854_v52 = vpack.c.bf16 %v5809_v29, %v5801_v43  ;;  %v10868_v42 = vpack.c.bf16 %v5874_v27, %v5866_v31  ;;  %v5888_v29 = vld [vmem:[#allocation9 + $0x1d68] sm:$0xff] }
 0x68f   :  { %10837 = vmatprep.subr.bf16.mxu1 %v10836_v53  ;;  %v10846_v20 = vpack.c.bf16 %v5777_v14, %v5769_v9  ;;  %v5815_v53 = vld [vmem:[#allocation9 + $0x1b20] sm:$0xff]  ;;  %v5841_v9 = vld [vmem:[#allocation9 + $0x1bf0] sm:$0xff]  ;;  %v5856_v14 = vld [vmem:[#allocation9 + $0x1c68] sm:$0xff] }
 0x690   :  { %10583 = vmatpush1.bf16.msra.mxu0 %v10582_v55  ;;  %v10602_v1 = vpack.c.bf16 %v5823_v0, %v5815_v53  ;;  %v10862_v16 = vpack.c.bf16 %v5841_v9, %v5833_v7  ;;  %v5865_v3 = vld [vmem:[#allocation9 + $0x1cb0] sm:$0xff]  ;;  %v10872_v0 = vpack.c.bf16 %v5890_v47, %v5882_v25  ;;  %v5920_v9 = vld [vmem:[#allocation9 + $0x1e68] sm:$0xff] }
 0x691   :  { %10839 = vmatpush1.bf16.msra.mxu1 %v10838_v56  ;;  %10585 = vmatprep.subr.bf16.mxu0 %v10584_v57  ;;  %v10856_v57 = vpack.c.bf16 %v5826_v39, %v5818_v49  ;;  %v5873_v43 = vld [vmem:[#allocation9 + $0x1cf0] sm:$0xff] }
 0x692   :  { %10841 = vmatprep.subr.bf16.mxu1 %v10840_v60  ;;  %v10870_v39 = vpack.c.bf16 %v5873_v43, %v5865_v3  ;;  %v5881_v53 = vld [vmem:[#allocation9 + $0x1d30] sm:$0xff]  ;;  %v5952_v43 = vld [vmem:[#allocation9 + $0x1f68] sm:$0xff] }
 0x693   :  { %v5889_v37 = vld [vmem:[#allocation9 + $0x1d70] sm:$0xff] }
 0x694   :  { %10587 = vmatpush1.bf16.msra.mxu0 %v10586_v2  ;;  %v10604_v2 = vpack.c.bf16 %v5840_v59, %v5832_v44  ;;  %v5898_v44 = vld [vmem:[#allocation9 + $0x1db8] sm:$0xff]  ;;  %v10874_v18 = vpack.c.bf16 %v5889_v37, %v5881_v53  ;;  %v5905_v7 = vld [vmem:[#allocation9 + $0x1df0] sm:$0xff]  ;;  %v5968_v37 = vld [vmem:[#allocation9 + $0x1fe8] sm:$0xff] }
 0x695   :  { %10843 = vmatpush1.bf16.msra.mxu1 %v10842_v5  ;;  %10589 = vmatprep.subr.bf16.mxu0 %v10588_v51  ;;  %v5831_v5 = vld [vmem:[#allocation9 + $0x1ba0] sm:$0xff]  ;;  %v5906_v59 = vld [vmem:[#allocation9 + $0x1df8] sm:$0xff]  ;;  %v5937_v3 = vld [vmem:[#allocation9 + $0x1ef0] sm:$0xff] }
 0x696   :  { %10845 = vmatprep.subr.bf16.mxu1 %v10844_v10  ;;  %v5839_v51 = vld [vmem:[#allocation9 + $0x1be0] sm:$0xff]  ;;  %v5848_v10 = vld [vmem:[#allocation9 + $0x1c28] sm:$0xff]  ;;  %v5953_v53 = vld [vmem:[#allocation9 + $0x1f70] sm:$0xff] }
 0x697   :  { %v10606_v15 = vpack.c.bf16 %v5839_v51, %v5831_v5  ;;  %v5897_v5 = vld [vmem:[#allocation9 + $0x1db0] sm:$0xff]  ;;  %v10876_v51 = vpack.c.bf16 %v5906_v59, %v5898_v44  ;;  %v11722_v44 = vld [vmem:[#allocation10] sm:$0xff] }
 0x698   :  { %10591 = vmatpush1.bf16.msra.mxu0 %v10590_v19  ;;  %v10608_v19 = vpack.c.bf16 %v5856_v14, %v5848_v10  ;;  %v5914_v10 = vld [vmem:[#allocation9 + $0x1e38] sm:$0xff]  ;;  %v10878_v13 = vpack.c.bf16 %v5905_v7, %v5897_v5  ;;  %v7173_v7 = vld [vmem:[%s12148_s7 + $0x80] sm:$0xff] }
 0x699   :  { %10847 = vmatpush1.bf16.msra.mxu1 %v10846_v20  ;;  %10593 = vmatprep.subr.bf16.mxu0 %v10592_v23  ;;  %v5847_v20 = vld [vmem:[#allocation9 + $0x1c20] sm:$0xff]  ;;  %v5922_v14 = vld [vmem:[#allocation9 + $0x1e78] sm:$0xff] }
 0x69a   :  { %10849 = vmatprep.subr.bf16.mxu1 %v10848_v26  ;;  %v5855_v23 = vld [vmem:[#allocation9 + $0x1c60] sm:$0xff]  ;;  %v5864_v26 = vld [vmem:[#allocation9 + $0x1ca8] sm:$0xff] }
 0x69b   :  { %v10610_v38 = vpack.c.bf16 %v5855_v23, %v5847_v20  ;;  %v5913_v20 = vld [vmem:[#allocation9 + $0x1e30] sm:$0xff]  ;;  %v10880_v23 = vpack.c.bf16 %v5922_v14, %v5914_v10 }
 0x69c   :  { %10595 = vmatpush1.bf16.msra.mxu0 %v10594_v41  ;;  %v10612_v41 = vpack.c.bf16 %v5872_v17, %v5864_v26  ;;  %v5930_v26 = vld [vmem:[#allocation9 + $0x1eb8] sm:$0xff]  ;;  %v10882_v27 = vpack.c.bf16 %v5921_v24, %v5913_v20  ;;  %v7205_v10 = vld [vmem:[%s12148_s7 + $0x180] sm:$0xff] }
 0x69d   :  { %10851 = vmatpush1.bf16.msra.mxu1 %v10850_v48  ;;  %10597 = vmatprep.subr.bf16.mxu0 %v10596_v33  ;;  %v5863_v48 = vld [vmem:[#allocation9 + $0x1ca0] sm:$0xff]  ;;  %v5938_v17 = vld [vmem:[#allocation9 + $0x1ef8] sm:$0xff] }
 0x69e   :  { %v11714_v55 = vpop.f32.mrb[8].mxu0  ;;  %v11716_v56 = vpop.f32.mrb[8].mxu1  ;;  %10853 = vmatprep.subr.bf16.mxu1 %v10852_v46  ;;  %v5871_v33 = vld [vmem:[#allocation9 + $0x1ce0] sm:$0xff]  ;;  %v5880_v46 = vld [vmem:[#allocation9 + $0x1d28] sm:$0xff]  ;;  %v7206_v14 = vld [vmem:[%s12148_s7 + $0x188] sm:$0xff] }
 0x69f   :  { %v11718_v60 = vpop.f32.mrb[9].mxu0  ;;  %v11720_v61 = vpop.f32.mrb[9].mxu1  ;;  %v10614_v49 = vpack.c.bf16 %v5871_v33, %v5863_v48  ;;  %v5929_v48 = vld [vmem:[#allocation9 + $0x1eb0] sm:$0xff]  ;;  %v10884_v33 = vpack.c.bf16 %v5938_v17, %v5930_v26  ;;  %v10928_v20 = vpack.c.bf16 %v7206_v14, %v7205_v10 }
 0x6a0   :  { %10599 = vmatpush1.bf16.msra.mxu0 %v10598_v36  ;;  %v10616_v36 = vpack.c.bf16 %v5888_v29, %v5880_v46  ;;  %v5946_v46 = vld [vmem:[#allocation9 + $0x1f38] sm:$0xff]  ;;  %v10886_v47 = vpack.c.bf16 %v5937_v3, %v5929_v48  ;;  %v7192_v48 = vld [vmem:[%s12148_s7 + $0x118] sm:$0xff] }
 0x6a1   :  { %10855 = vmatpush1.bf16.msra.mxu1 %v10854_v52  ;;  %10601 = vmatprep.subr.bf16.mxu0 %v10600_v12  ;;  %v5879_v52 = vld [vmem:[#allocation9 + $0x1d20] sm:$0xff]  ;;  %v5954_v29 = vld [vmem:[#allocation9 + $0x1f78] sm:$0xff] }
 0x6a2   :  { %10857 = vmatprep.subr.bf16.mxu1 %v10856_v57  ;;  %v5887_v12 = vld [vmem:[#allocation9 + $0x1d60] sm:$0xff]  ;;  %v5896_v57 = vld [vmem:[#allocation9 + $0x1da8] sm:$0xff]  ;;  %v7178_v3 = vld [vmem:[%s12148_s7 + $0xa8] sm:$0xff] }
 0x6a3   :  { %v10618_v63 = vpack.c.bf16 %v5887_v12, %v5879_v52  ;;  %v5945_v52 = vld [vmem:[#allocation9 + $0x1f30] sm:$0xff]  ;;  %v10888_v12 = vpack.c.bf16 %v5954_v29, %v5946_v46 }
 0x6a4   :  { %10603 = vmatpush1.bf16.msra.mxu0 %v10602_v1  ;;  %v10620_v1 = vpack.c.bf16 %v5904_v58, %v5896_v57  ;;  %v5962_v57 = vld [vmem:[#allocation9 + $0x1fb8] sm:$0xff]  ;;  %v7209_v46 = vld [vmem:[%s12148_s7 + $0x1a0] sm:$0xff] }
 0x6a5   :  { %10859 = vmatpush1.bf16.msra.mxu1 %v10858_v4  ;;  %10605 = vmatprep.subr.bf16.mxu0 %v10604_v2  ;;  %v5895_v4 = vld [vmem:[#allocation9 + $0x1da0] sm:$0xff]  ;;  %v5970_v58 = vld [vmem:[#allocation9 + $0x1ff8] sm:$0xff] }
 0x6a6   :  { %10861 = vmatprep.subr.bf16.mxu1 %v10860_v8  ;;  %v5903_v2 = vld [vmem:[#allocation9 + $0x1de0] sm:$0xff]  ;;  %v5912_v8 = vld [vmem:[#allocation9 + $0x1e28] sm:$0xff]  ;;  %v10892_v5 = vpack.c.bf16 %v5970_v58, %v5962_v57  ;;  %v7210_v29 = vld [vmem:[%s12148_s7 + $0x1a8] sm:$0xff] }
 0x6a7   :  { %v10622_v11 = vpack.c.bf16 %v5903_v2, %v5895_v4  ;;  %v5967_v4 = vld [vmem:[#allocation9 + $0x1fe0] sm:$0xff]  ;;  %v5961_v2 = vld [vmem:[#allocation9 + $0x1fb0] sm:$0xff] }
 0x6a8   :  { %10607 = vmatpush1.bf16.msra.mxu0 %v10606_v15  ;;  %v10624_v15 = vpack.c.bf16 %v5920_v9, %v5912_v8  ;;  %v7174_v8 = vld [vmem:[%s12148_s7 + $0x88] sm:$0xff]  ;;  %v5980_v9 = vrot.slane %v11722_v44, %v4897_v45  ;;  %v7157_v45 = vld [vmem:[%s12148_s7] sm:$0xff]  ;;  %v7211_v57 = vld [vmem:[%s12148_s7 + $0x1b0] sm:$0xff] }
 0x6a9   :  { %10863 = vmatpush1.bf16.msra.mxu1 %v10862_v16  ;;  %10609 = vmatprep.subr.bf16.mxu0 %v10608_v19  ;;  %v5911_v16 = vld [vmem:[#allocation9 + $0x1e20] sm:$0xff]  ;;  %v7214_v10 = vld [vmem:[%s12148_s7 + $0x1c8] sm:$0xff] }
 0x6aa   :  { %10865 = vmatprep.subr.bf16.mxu1 %v10864_v22  ;;  %v5919_v19 = vld [vmem:[#allocation9 + $0x1e60] sm:$0xff]  ;;  %v5928_v22 = vld [vmem:[#allocation9 + $0x1ea8] sm:$0xff]  ;;  %v11033_v24 = vadd.f32 %v11718_v60, %v5980_v9 }
 0x6ab   :  { %v10626_v31 = vpack.c.bf16 %v5919_v19, %v5911_v16  ;;  %v10896_v16 = vpack.c.bf16 %v7174_v8, %v7173_v7  ;;  %v7158_v19 = vld [vmem:[%s12148_s7 + $0x8] sm:$0xff]  ;;  %v7208_v60 = vld [vmem:[%s12148_s7 + $0x198] sm:$0xff]  ;;  %v7181_v7 = vld [vmem:[%s12148_s7 + $0xc0] sm:$0xff] }
 0x6ac   :  { %10611 = vmatpush1.bf16.msra.mxu0 %v10610_v38  ;;  %v10628_v38 = vpack.c.bf16 %v5936_v54, %v5928_v22  ;;  %v7175_v22 = vld [vmem:[%s12148_s7 + $0x90] sm:$0xff]  ;;  %v7176_v54 = vld [vmem:[%s12148_s7 + $0x98] sm:$0xff]  ;;  %v10898_v17 = vpack.c.bf16 %v7158_v19, %v7157_v45  ;;  %v7182_v8 = vld [vmem:[%s12148_s7 + $0xc8] sm:$0xff] }
 0x6ad   :  { %10867 = vmatpush1.bf16.msra.mxu1 %v10866_v40  ;;  %10613 = vmatprep.subr.bf16.mxu0 %v10612_v41  ;;  %v5927_v40 = vld [vmem:[#allocation9 + $0x1ea0] sm:$0xff]  ;;  %v7213_v9 = vld [vmem:[%s12148_s7 + $0x1c0] sm:$0xff] }
 0x6ae   :  { %10869 = vmatprep.subr.bf16.mxu1 %v10868_v42  ;;  %v5935_v41 = vld [vmem:[#allocation9 + $0x1ee0] sm:$0xff]  ;;  %v5944_v42 = vld [vmem:[#allocation9 + $0x1f28] sm:$0xff]  ;;  %v10944_v19 = vpack.c.bf16 %v7214_v10, %v7213_v9  ;;  %v7222_v10 = vld [vmem:[%s12148_s7 + $0x208] sm:$0xff] }
 0x6af   :  { %v10630_v25 = vpack.c.bf16 %v5935_v41, %v5927_v40  ;;  %v7191_v40 = vld [vmem:[%s12148_s7 + $0x110] sm:$0xff]  ;;  %v10900_v41 = vpack.c.bf16 %v7176_v54, %v7175_v22  ;;  %v7212_v58 = vld [vmem:[%s12148_s7 + $0x1b8] sm:$0xff]  ;;  %v7197_v45 = vld [vmem:[%s12148_s7 + $0x140] sm:$0xff] }
 0x6b0   :  { %10615 = vmatpush1.bf16.msra.mxu0 %v10614_v49  ;;  %v10632_v49 = vpack.c.bf16 %v5952_v43, %v5944_v42  ;;  %v7150_v42 = vmax.f32 %v11033_v24, 0.0  ;;  %v7215_v24 = vld [vmem:[%s12148_s7 + $0x1d0] sm:$0xff]  ;;  %v7216_v22 = vld [vmem:[%s12148_s7 + $0x1d8] sm:$0xff]  ;;  %v7221_v9 = vld [vmem:[%s12148_s7 + $0x200] sm:$0xff] }
 0x6b1   :  { %10871 = vmatpush1.bf16.msra.mxu1 %v10870_v39  ;;  %10617 = vmatprep.subr.bf16.mxu0 %v10616_v36  ;;  %v5943_v39 = vld [vmem:[#allocation9 + $0x1f20] sm:$0xff] }
 0x6b2   :  { %10873 = vmatprep.subr.bf16.mxu1 %v10872_v0  ;;  %v5951_v36 = vld [vmem:[#allocation9 + $0x1f60] sm:$0xff]  ;;  %v5960_v0 = vld [vmem:[#allocation9 + $0x1fa8] sm:$0xff] }
 0x6b3   :  { %v10634_v59 = vpack.c.bf16 %v5951_v36, %v5943_v39  ;;  %v7161_v36 = vld [vmem:[%s12148_s7 + $0x20] sm:$0xff] }
 0x6b4   :  { %10619 = vmatpush1.bf16.msra.mxu0 %v10618_v63  ;;  %v10890_v63 = vpack.c.bf16 %v5953_v53, %v5945_v52  ;;  %v7162_v52 = vld [vmem:[%s12148_s7 + $0x28] sm:$0xff] }
 0x6b5   :  { %10875 = vmatpush1.bf16.msra.mxu1 %v10874_v18  ;;  %10621 = vmatprep.subr.bf16.mxu0 %v10620_v1  ;;  %v10636_v18 = vpack.c.bf16 %v5968_v37, %v5960_v0  ;;  %v5959_v1 = vld [vmem:[#allocation9 + $0x1fa0] sm:$0xff]  ;;  %v7194_v53 = vld [vmem:[%s12148_s7 + $0x128] sm:$0xff] }
 0x6b6   :  { %10877 = vmatprep.subr.bf16.mxu1 %v10876_v51  ;;  %v5969_v51 = vld [vmem:[#allocation9 + $0x1ff0] sm:$0xff]  ;;  %v7179_v0 = vld [vmem:[%s12148_s7 + $0xb0] sm:$0xff]  ;;  %v7180_v37 = vld [vmem:[%s12148_s7 + $0xb8] sm:$0xff] }
 0x6b8   :  { %10623 = vmatpush1.bf16.msra.mxu0 %v10622_v11  ;;  %v5988_v11 = vrot.slane %v11722_v44, %v4905_v28  ;;  %v7189_v28 = vld [vmem:[%s12148_s7 + $0x100] sm:$0xff] }
 0x6b9   :  { %10879 = vmatpush1.bf16.msra.mxu1 %v10878_v13  ;;  %10625 = vmatprep.subr.bf16.mxu0 %v10624_v15  ;;  %v10638_v13 = vpack.c.bf16 %v5967_v4, %v5959_v1  ;;  %v10894_v15 = vpack.c.bf16 %v5969_v51, %v5961_v2  ;;  %v7163_v1 = vld [vmem:[%s12148_s7 + $0x30] sm:$0xff]  ;;  %v7164_v4 = vld [vmem:[%s12148_s7 + $0x38] sm:$0xff] }
 0x6ba   :  { %10881 = vmatprep.subr.bf16.mxu1 %v10880_v23  ;;  %v7190_v23 = vld [vmem:[%s12148_s7 + $0x108] sm:$0xff]  ;;  %v11035_v26 = vadd.f32 %v11720_v61, %v5988_v11  ;;  %v7160_v61 = vld [vmem:[%s12148_s7 + $0x18] sm:$0xff]  ;;  %v7195_v2 = vld [vmem:[%s12148_s7 + $0x130] sm:$0xff]  ;;  %v10910_v14 = vpack.c.bf16 %v7164_v4, %v7163_v1 }
 0x6bb   :  { %v7196_v51 = vld [vmem:[%s12148_s7 + $0x138] sm:$0xff]  ;;  %v7237_v1 = vld [vmem:[%s12148_s7 + $0x280] sm:$0xff]  ;;  %v7238_v4 = vld [vmem:[%s12148_s7 + $0x288] sm:$0xff] }
 0x6bc   :  { %10627 = vmatpush1.bf16.msra.mxu0 %v10626_v31  ;;  %v7207_v31 = vld [vmem:[%s12148_s7 + $0x190] sm:$0xff]  ;;  %v10942_v11 = vpack.c.bf16 %v7196_v51, %v7195_v2  ;;  %v7269_v2 = vld [vmem:[%s12148_s7 + $0x380] sm:$0xff] }
 0x6bd   :  { %10883 = vmatpush1.bf16.msra.mxu1 %v10882_v27  ;;  %10629 = vmatprep.subr.bf16.mxu0 %v10628_v38  ;;  %v10930_v27 = vpack.c.bf16 %v7190_v23, %v7189_v28  ;;  %v7159_v38 = vld [vmem:[%s12148_s7 + $0x10] sm:$0xff]  ;;  %v10932_v43 = vpack.c.bf16 %v7208_v60, %v7207_v31  ;;  %v7184_v23 = vld [vmem:[%s12148_s7 + $0xd8] sm:$0xff] }
 0x6be   :  { %10885 = vmatprep.subr.bf16.mxu1 %v10884_v33  ;;  %v7177_v33 = vld [vmem:[%s12148_s7 + $0xa0] sm:$0xff]  ;;  %v7183_v28 = vld [vmem:[%s12148_s7 + $0xd0] sm:$0xff]  ;;  %v7168_v60 = vld [vmem:[%s12148_s7 + $0x58] sm:$0xff] }
 0x6bf   :  { %v10904_v39 = vpack.c.bf16 %v7178_v3, %v7177_v33  ;;  %v7167_v31 = vld [vmem:[%s12148_s7 + $0x50] sm:$0xff]  ;;  %v7218_v33 = vld [vmem:[%s12148_s7 + $0x1e8] sm:$0xff] }
 0x6c0   :  { %10631 = vmatpush1.bf16.msra.mxu0 %v10630_v25  ;;  %v7152_v25 = vmax.f32 %v11035_v26, 0.0  ;;  %v10918_v3 = vpack.c.bf16 %v7168_v60, %v7167_v31  ;;  %v7256_v31 = vld [vmem:[%s12148_s7 + $0x318] sm:$0xff]  ;;  %v7241_v60 = vld [vmem:[%s12148_s7 + $0x2a0] sm:$0xff] }
 0x6c1   :  { %10887 = vmatpush1.bf16.msra.mxu1 %v10886_v47  ;;  %10633 = vmatprep.subr.bf16.mxu0 %v10632_v49  ;;  %v10902_v47 = vpack.c.bf16 %v7160_v61, %v7159_v38  ;;  %v10934_v49 = vpack.c.bf16 %v7192_v48, %v7191_v40  ;;  %v10948_v38 = vpack.c.bf16 %v7216_v22, %v7215_v24  ;;  %v7200_v61 = vld [vmem:[%s12148_s7 + $0x158] sm:$0xff]  ;;  %v7185_v40 = vld [vmem:[%s12148_s7 + $0xe0] sm:$0xff]  ;;  %v7223_v24 = vld [vmem:[%s12148_s7 + $0x210] sm:$0xff] }
 0x6c2   :  { %10889 = vmatprep.subr.bf16.mxu1 %v10888_v12  ;;  %v7193_v12 = vld [vmem:[%s12148_s7 + $0x120] sm:$0xff]  ;;  %v7224_v22 = vld [vmem:[%s12148_s7 + $0x218] sm:$0xff] }
 0x6c3   :  { %v7217_v48 = vld [vmem:[%s12148_s7 + $0x1e0] sm:$0xff] }
 0x6c4   :  { %10635 = vmatpush1.bf16.msra.mxu0 %v10634_v59  ;;  %v10906_v59 = vpack.c.bf16 %v7162_v52, %v7161_v36  ;;  %v7188_v36 = vld [vmem:[%s12148_s7 + $0xf8] sm:$0xff]  ;;  %v7219_v52 = vld [vmem:[%s12148_s7 + $0x1f0] sm:$0xff] }
 0x6c5   :  { %10891 = vmatpush1.bf16.msra.mxu1 %v10890_v63  ;;  %10637 = vmatprep.subr.bf16.mxu0 %v10636_v18  ;;  %v10938_v63 = vpack.c.bf16 %v7194_v53, %v7193_v12  ;;  %v10908_v18 = vpack.c.bf16 %v7180_v37, %v7179_v0  ;;  %v7220_v12 = vld [vmem:[%s12148_s7 + $0x1f8] sm:$0xff]  ;;  %v5976_v53 = vrot.slane %v11722_v44, %v11575_v62 }
 0x6c6   :  { %10893 = vmatprep.subr.bf16.mxu1 %v10892_v5  ;;  %v10940_v5 = vpack.c.bf16 %v7212_v58, %v7211_v57  ;;  %v7171_v57 = vld [vmem:[%s12148_s7 + $0x70] sm:$0xff]  ;;  %v7172_v58 = vld [vmem:[%s12148_s7 + $0x78] sm:$0xff]  ;;  %v5984_v62 = vrot.slane %v11722_v44, %v4901_v30  ;;  %v7270_v30 = vld [vmem:[%s12148_s7 + $0x388] sm:$0xff] }
 0x6c7   :  { %v11032_v51 = vadd.f32 %v11714_v55, %v5976_v53  ;;  %v10992_v55 = vpack.c.bf16 %v7270_v30, %v7269_v2  ;;  %v7259_v53 = vld [vmem:[%s12148_s7 + $0x330] sm:$0xff]  ;;  %v7230_v2 = vld [vmem:[%s12148_s7 + $0x248] sm:$0xff]  ;;  %v7261_v30 = vld [vmem:[%s12148_s7 + $0x340] sm:$0xff] }
 0x6c8   :  { %10639 = vmatpush1.bf16.msra.mxu0 %v10638_v13  ;;  %v10912_v13 = vpack.c.bf16 %v7182_v8, %v7181_v7  ;;  %v10960_v8 = vpack.c.bf16 %v7238_v4, %v7237_v1  ;;  %v7229_v4 = vld [vmem:[%s12148_s7 + $0x240] sm:$0xff] }
 0x6c9   :  { %10895 = vmatpush1.bf16.msra.mxu1 %v10894_v15  ;;  %10897 = vmatprep.subr.bf16.mxu0 %v10896_v16  ;;  %v7165_v15 = vld [vmem:[%s12148_s7 + $0x40] sm:$0xff]  ;;  %v7166_v16 = vld [vmem:[%s12148_s7 + $0x48] sm:$0xff] }
 0x6ca   :  { %10929 = vmatprep.subr.bf16.mxu1 %v10928_v20  ;;  %v7198_v20 = vld [vmem:[%s12148_s7 + $0x148] sm:$0xff]  ;;  %v10914_v54 = vpack.c.bf16 %v7166_v16, %v7165_v15  ;;  %v7239_v15 = vld [vmem:[%s12148_s7 + $0x290] sm:$0xff]  ;;  %v7240_v16 = vld [vmem:[%s12148_s7 + $0x298] sm:$0xff] }
 0x6cb   :  { %6859 = vmatmul.mubr.f32.vlgmr.msra.gmra.mrb[10].mxu0 %v11696_v6  ;;  %v10946_v26 = vpack.c.bf16 %v7198_v20, %v7197_v45  ;;  %v7271_v45 = vld [vmem:[%s12148_s7 + $0x390] sm:$0xff]  ;;  %v7149_v20 = vmax.f32 %v11032_v51, 0.0  ;;  %v7262_v51 = vld [vmem:[%s12148_s7 + $0x348] sm:$0xff] }
 0x6cc   :  { %7143 = vmatmul.mubr.f32.vlgmr.msra.gmra.mrb[10].mxu1 %v11696_v6  ;;  %10899 = vmatpush3.bf16.msra.mxu0 %v10898_v17  ;;  %v10936_v6 = vpack.c.bf16 %v7210_v29, %v7209_v46  ;;  %v10916_v17 = vpack.c.bf16 %v7184_v23, %v7183_v28  ;;  %v7169_v46 = vld [vmem:[%s12148_s7 + $0x60] sm:$0xff]  ;;  %v7170_v29 = vld [vmem:[%s12148_s7 + $0x68] sm:$0xff]  ;;  %v10964_v23 = vpack.c.bf16 %v7240_v16, %v7239_v15  ;;  %v7232_v15 = vld [vmem:[%s12148_s7 + $0x258] sm:$0xff] }
 0x6cd   :  { %7356 = vmatprep.mubr.f32.mxu0 %v7150_v42  ;;  %10931 = vmatpush3.bf16.msra.mxu1 %v10930_v27  ;;  %v7199_v27 = vld [vmem:[%s12148_s7 + $0x150] sm:$0xff] }
 0x6ce   :  { %7426 = vmatprep.mubr.f32.mxu1 %v7152_v25  ;;  %10901 = vmatprep.subr.bf16.mxu0 %v10900_v41  ;;  %v7186_v41 = vld [vmem:[%s12148_s7 + $0xe8] sm:$0xff]  ;;  %v10950_v42 = vpack.c.bf16 %v7200_v61, %v7199_v27  ;;  %v7201_v25 = vld [vmem:[%s12148_s7 + $0x160] sm:$0xff]  ;;  %v7263_v16 = vld [vmem:[%s12148_s7 + $0x350] sm:$0xff] }
 0x6cf   :  { %10933 = vmatprep.subr.bf16.mxu1 %v10932_v43  ;;  %v10920_v43 = vpack.c.bf16 %v7186_v41, %v7185_v40  ;;  %v7242_v27 = vld [vmem:[%s12148_s7 + $0x2a8] sm:$0xff]  ;;  %v10966_v40 = vpack.c.bf16 %v7224_v22, %v7223_v24 }
 0x6d0   :  { %10903 = vmatpush3.bf16.msra.mxu0 %v10902_v47  ;;  %v10952_v47 = vpack.c.bf16 %v7218_v33, %v7217_v48  ;;  %v7274_v61 = vld [vmem:[%s12148_s7 + $0x3a8] sm:$0xff]  ;;  %v10968_v48 = vpack.c.bf16 %v7242_v27, %v7241_v60  ;;  %v7225_v33 = vld [vmem:[%s12148_s7 + $0x220] sm:$0xff] }
 0x6d1   :  { %10935 = vmatpush3.bf16.msra.mxu1 %v10934_v49  ;;  %10905 = vmatprep.subr.bf16.mxu0 %v10904_v39  ;;  %v7202_v49 = vld [vmem:[%s12148_s7 + $0x168] sm:$0xff]  ;;  %v7187_v39 = vld [vmem:[%s12148_s7 + $0xf0] sm:$0xff]  ;;  %v7265_v60 = vld [vmem:[%s12148_s7 + $0x360] sm:$0xff] }
 0x6d2   :  { %10937 = vmatprep.subr.bf16.mxu1 %v10936_v6  ;;  %v10922_v6 = vpack.c.bf16 %v7170_v29, %v7169_v46  ;;  %v10954_v0 = vpack.c.bf16 %v7202_v49, %v7201_v25  ;;  %v10924_v37 = vpack.c.bf16 %v7188_v36, %v7187_v39  ;;  %v7258_v46 = vld [vmem:[%s12148_s7 + $0x328] sm:$0xff]  ;;  %v7243_v29 = vld [vmem:[%s12148_s7 + $0x2b0] sm:$0xff]  ;;  %v7244_v25 = vld [vmem:[%s12148_s7 + $0x2b8] sm:$0xff] }
 0x6d3   :  { %v7276_v49 = vld [vmem:[%s12148_s7 + $0x3b8] sm:$0xff] }
 0x6d4   :  { %10907 = vmatpush3.bf16.msra.mxu0 %v10906_v59  ;;  %v7203_v59 = vld [vmem:[%s12148_s7 + $0x170] sm:$0xff] }
 0x6d5   :  { %10939 = vmatpush3.bf16.msra.mxu1 %v10938_v63  ;;  %10909 = vmatprep.subr.bf16.mxu0 %v10908_v18  ;;  %v10956_v63 = vpack.c.bf16 %v7220_v12, %v7219_v52  ;;  %v7204_v18 = vld [vmem:[%s12148_s7 + $0x178] sm:$0xff]  ;;  %v10972_v52 = vpack.c.bf16 %v7244_v25, %v7243_v29  ;;  %v7227_v12 = vld [vmem:[%s12148_s7 + $0x230] sm:$0xff] }
 0x6d6   :  { %10941 = vmatprep.subr.bf16.mxu1 %v10940_v5  ;;  %v10926_v5 = vpack.c.bf16 %v7172_v58, %v7171_v57  ;;  %v10958_v7 = vpack.c.bf16 %v7204_v18, %v7203_v59  ;;  %v7245_v57 = vld [vmem:[%s12148_s7 + $0x2c0] sm:$0xff]  ;;  %v7246_v58 = vld [vmem:[%s12148_s7 + $0x2c8] sm:$0xff]  ;;  %v7267_v25 = vld [vmem:[%s12148_s7 + $0x370] sm:$0xff] }
 0x6d7   :  { %v7277_v59 = vld [vmem:[%s12148_s7 + $0x3c0] sm:$0xff]  ;;  %v10976_v1 = vpack.c.bf16 %v7246_v58, %v7245_v57 }
 0x6d8   :  { %10911 = vmatpush3.bf16.msra.mxu0 %v10910_v14  ;;  %v7253_v14 = vld [vmem:[%s12148_s7 + $0x300] sm:$0xff] }
 0x6d9   :  { %10943 = vmatpush3.bf16.msra.mxu1 %v10942_v11  ;;  %10913 = vmatprep.subr.bf16.mxu0 %v10912_v13  ;;  %v11034_v11 = vadd.f32 %v11716_v56, %v5984_v62  ;;  %v7254_v13 = vld [vmem:[%s12148_s7 + $0x308] sm:$0xff]  ;;  %v7272_v56 = vld [vmem:[%s12148_s7 + $0x398] sm:$0xff] }
 0x6da   :  { %10945 = vmatprep.subr.bf16.mxu1 %v10944_v19  ;;  %v10962_v19 = vpack.c.bf16 %v7222_v10, %v7221_v9  ;;  %v10994_v28 = vpack.c.bf16 %v7254_v13, %v7253_v14  ;;  %v7278_v62 = vld [vmem:[%s12148_s7 + $0x3c8] sm:$0xff]  ;;  %v7279_v9 = vld [vmem:[%s12148_s7 + $0x3d0] sm:$0xff]  ;;  %v7280_v10 = vld [vmem:[%s12148_s7 + $0x3d8] sm:$0xff]  ;;  %v10978_v14 = vpack.c.bf16 %v7230_v2, %v7229_v4 }
 0x6db   :  { %v7231_v13 = vld [vmem:[%s12148_s7 + $0x250] sm:$0xff] }
 0x6dc   :  { %10915 = vmatpush3.bf16.msra.mxu0 %v10914_v54  ;;  %v7255_v54 = vld [vmem:[%s12148_s7 + $0x310] sm:$0xff]  ;;  %v10982_v24 = vpack.c.bf16 %v7232_v15, %v7231_v13 }
 0x6dd   :  { %10947 = vmatpush3.bf16.msra.mxu1 %v10946_v26  ;;  %10917 = vmatprep.subr.bf16.mxu0 %v10916_v17  ;;  %v7151_v26 = vmax.f32 %v11034_v11, 0.0  ;;  %v10996_v17 = vpack.c.bf16 %v7272_v56, %v7271_v45  ;;  %v10998_v41 = vpack.c.bf16 %v7256_v31, %v7255_v54  ;;  %v11010_v11 = vpack.c.bf16 %v7262_v51, %v7261_v30  ;;  %v7264_v56 = vld [vmem:[%s12148_s7 + $0x358] sm:$0xff]  ;;  %v7234_v31 = vld [vmem:[%s12148_s7 + $0x268] sm:$0xff] }
 0x6de   :  { %10949 = vmatprep.subr.bf16.mxu1 %v10948_v38  ;;  %v7273_v38 = vld [vmem:[%s12148_s7 + $0x3a0] sm:$0xff]  ;;  %v11012_v45 = vpack.c.bf16 %v7280_v10, %v7279_v9  ;;  %v11014_v22 = vpack.c.bf16 %v7264_v56, %v7263_v16 }
 0x6e0   :  { %10919 = vmatpush3.bf16.msra.mxu0 %v10918_v3  ;;  %v7226_v3 = vld [vmem:[%s12148_s7 + $0x228] sm:$0xff] }
 0x6e1   :  { %10951 = vmatpush3.bf16.msra.mxu1 %v10950_v42  ;;  %10921 = vmatprep.subr.bf16.mxu0 %v10920_v43  ;;  %v7257_v42 = vld [vmem:[%s12148_s7 + $0x320] sm:$0xff]  ;;  %v11000_v43 = vpack.c.bf16 %v7274_v61, %v7273_v38  ;;  %v10970_v39 = vpack.c.bf16 %v7226_v3, %v7225_v33  ;;  %v7266_v38 = vld [vmem:[%s12148_s7 + $0x368] sm:$0xff]  ;;  %v7284_v3 = vld [vmem:[%s12148_s7 + $0x3f8] sm:$0xff] }
 0x6e2   :  { %10953 = vmatprep.subr.bf16.mxu1 %v10952_v47  ;;  %v7275_v47 = vld [vmem:[%s12148_s7 + $0x3b0] sm:$0xff]  ;;  %v11002_v36 = vpack.c.bf16 %v7258_v46, %v7257_v42  ;;  %v11018_v61 = vpack.c.bf16 %v7266_v38, %v7265_v60 }
 0x6e3   :  { %v7235_v42 = vld [vmem:[%s12148_s7 + $0x270] sm:$0xff] }
 0x6e4   :  { %10923 = vmatpush3.bf16.msra.mxu0 %v10922_v6  ;;  %v7228_v6 = vld [vmem:[%s12148_s7 + $0x238] sm:$0xff] }
 0x6e5   :  { %10955 = vmatpush3.bf16.msra.mxu1 %v10954_v0  ;;  %10925 = vmatprep.subr.bf16.mxu0 %v10924_v37  ;;  %v11004_v0 = vpack.c.bf16 %v7276_v49, %v7275_v47  ;;  %v7260_v37 = vld [vmem:[%s12148_s7 + $0x338] sm:$0xff] }
 0x6e6   :  { %10957 = vmatprep.subr.bf16.mxu1 %v10956_v63  ;;  %v10974_v63 = vpack.c.bf16 %v7228_v6, %v7227_v12  ;;  %v11006_v18 = vpack.c.bf16 %v7260_v37, %v7259_v53  ;;  %v7268_v47 = vld [vmem:[%s12148_s7 + $0x378] sm:$0xff]  ;;  %v6004_v12 = vrot.slane %v11722_v44, %v4921_v35 }
 0x6e7   :  { %v11022_v49 = vpack.c.bf16 %v7268_v47, %v7267_v25 }
 0x6e8   :  { %10927 = vmatpush3.bf16.msra.mxu0 %v10926_v5  ;;  %v11008_v5 = vpack.c.bf16 %v7278_v62, %v7277_v59 }
 0x6e9   :  { %10959 = vmatpush3.bf16.msra.mxu1 %v10958_v7  ;;  %10961 = vmatprep.subr.bf16.mxu0 %v10960_v8  ;;  %v7247_v7 = vld [vmem:[%s12148_s7 + $0x2d0] sm:$0xff]  ;;  %v7248_v8 = vld [vmem:[%s12148_s7 + $0x2d8] sm:$0xff] }
 0x6ea   :  { %10993 = vmatprep.subr.bf16.mxu1 %v10992_v55  ;;  %v10980_v55 = vpack.c.bf16 %v7248_v8, %v7247_v7 }
 0x6eb   :  { %7357 = vmatmul.mubr.f32.vlgmr.msra.gmra.mrb[12].mxu0 %v7149_v20  ;;  %v7250_v20 = vld [vmem:[%s12148_s7 + $0x2e8] sm:$0xff] }
 0x6ec   :  { %7427 = vmatmul.mubr.f32.vlgmr.msra.gmra.mrb[12].mxu1 %v7151_v26  ;;  %10963 = vmatpush3.bf16.msra.mxu0 %v10962_v19  ;;  %v7249_v19 = vld [vmem:[%s12148_s7 + $0x2e0] sm:$0xff] }
 0x6ed   :  { %10995 = vmatpush3.bf16.msra.mxu1 %v10994_v28  ;;  %10965 = vmatprep.subr.bf16.mxu0 %v10964_v23  ;;  %v7281_v28 = vld [vmem:[%s12148_s7 + $0x3e0] sm:$0xff]  ;;  %v7282_v23 = vld [vmem:[%s12148_s7 + $0x3e8] sm:$0xff]  ;;  %v10984_v54 = vpack.c.bf16 %v7250_v20, %v7249_v19 }
 0x6ee   :  { %10997 = vmatprep.subr.bf16.mxu1 %v10996_v17  ;;  %v11016_v26 = vpack.c.bf16 %v7282_v23, %v7281_v28  ;;  %v7233_v17 = vld [vmem:[%s12148_s7 + $0x260] sm:$0xff] }
 0x6ef   :  { %v10986_v27 = vpack.c.bf16 %v7234_v31, %v7233_v17 }
 0x6f0   :  { %10967 = vmatpush3.bf16.msra.mxu0 %v10966_v40  ;;  %v7251_v40 = vld [vmem:[%s12148_s7 + $0x2f0] sm:$0xff] }
 0x6f1   :  { %10999 = vmatpush3.bf16.msra.mxu1 %v10998_v41  ;;  %10969 = vmatprep.subr.bf16.mxu0 %v10968_v48  ;;  %v7252_v41 = vld [vmem:[%s12148_s7 + $0x2f8] sm:$0xff]  ;;  %v7283_v48 = vld [vmem:[%s12148_s7 + $0x3f0] sm:$0xff] }
 0x6f2   :  { %11001 = vmatprep.subr.bf16.mxu1 %v11000_v43  ;;  %v10988_v33 = vpack.c.bf16 %v7252_v41, %v7251_v40  ;;  %v7236_v43 = vld [vmem:[%s12148_s7 + $0x278] sm:$0xff]  ;;  %v11020_v46 = vpack.c.bf16 %v7284_v3, %v7283_v48 }
 0x6f3   :  { %v10990_v29 = vpack.c.bf16 %v7236_v43, %v7235_v42 }
 0x6f4   :  { %10971 = vmatpush3.bf16.msra.mxu0 %v10970_v39  ;;  %v5992_v39 = vrot.slane %v11722_v44, %v4909_v32 }
 0x6f5   :  { %11003 = vmatpush3.bf16.msra.mxu1 %v11002_v36  ;;  %10973 = vmatprep.subr.bf16.mxu0 %v10972_v52  ;;  %v6000_v36 = vrot.slane %v11722_v44, %v4917_v21  ;;  %v5996_v52 = vrot.slane %v11722_v44, %v4913_v34 }
 0x6f6   :  { %11005 = vmatprep.subr.bf16.mxu1 %v11004_v0 }
 0x6f8   :  { %10975 = vmatpush3.bf16.msra.mxu0 %v10974_v63 }
 0x6f9   :  { %11007 = vmatpush3.bf16.msra.mxu1 %v11006_v18  ;;  %10977 = vmatprep.subr.bf16.mxu0 %v10976_v1  ;;  %v7603_v1 = vld [vmem:[#allocation12] ss:$0 sm:$0xff] }
 0x6fa   :  { %11009 = vmatprep.subr.bf16.mxu1 %v11008_v5 }
 0x6fc   :  { %10979 = vmatpush3.bf16.msra.mxu0 %v10978_v14 }
 0x6fd   :  { %11011 = vmatpush3.bf16.msra.mxu1 %v11010_v11  ;;  %10981 = vmatprep.subr.bf16.mxu0 %v10980_v55  ;;  %v11149_v11 = vld [vmem:[#allocation2] ss:$0 sm:$0xff] }
 0x6fe   :  { %11013 = vmatprep.subr.bf16.mxu1 %v11012_v45 }
 0x700   :  { %10983 = vmatpush3.bf16.msra.mxu0 %v10982_v24 }
 0x701   :  { %11015 = vmatpush3.bf16.msra.mxu1 %v11014_v22  ;;  %10985 = vmatprep.subr.bf16.mxu0 %v10984_v54 }
 0x702   :  { %11017 = vmatprep.subr.bf16.mxu1 %v11016_v26 }
 0x704   :  { %10987 = vmatpush3.bf16.msra.mxu0 %v10986_v27 }
 0x705   :  { %11019 = vmatpush3.bf16.msra.mxu1 %v11018_v61  ;;  %10989 = vmatprep.subr.bf16.mxu0 %v10988_v33 }
 0x706   :  { %11021 = vmatprep.subr.bf16.mxu1 %v11020_v46 }
 0x708   :  { %10991 = vmatpush3.bf16.msra.mxu0 %v10990_v29 }
 0x709   :  { %11023 = vmatpush3.bf16.msra.mxu1 %v11022_v49 }
 0x79e   :  { %v6860_v6 = vpop.f32.mrb[10].mxu0 }
 0x79f   :  { %v11036_v53 = vadd.f32 %v6860_v6, %v5992_v39  ;;  %v7144_v0 = vpop.f32.mrb[10].mxu1  ;;  %v6862_v37 = vpop.f32.mrb[11].mxu0 }
 0x7a0   :  { %v11038_v57 = vadd.f32 %v7144_v0, %v6000_v36  ;;  %v11037_v58 = vadd.f32 %v6862_v37, %v5996_v52  ;;  %v7146_v59 = vpop.f32.mrb[11].mxu1 }
 0x7a1   :  { %v11039_v32 = vadd.f32 %v7146_v59, %v6004_v12  ;;  %v7153_v63 = vmax.f32 %v11036_v53, 0.0 }
 0x7a2   :  { %v7154_v62 = vmax.f32 %v11037_v58, 0.0  ;;  %v7155_v21 = vmax.f32 %v11038_v57, 0.0 }
 0x7a3   :  { %v7156_v18 = vmax.f32 %v11039_v32, 0.0 }
 0x7a4   :  { %7496 = vmatprep.mubr.f32.mxu0 %v7154_v62 }
 0x7a5   :  { %7566 = vmatprep.mubr.f32.mxu1 %v7156_v18  ;;  %7497 = vmatmul.mubr.f32.vlgmr.msra.gmra.mrb[14].mxu0 %v7153_v63 }
 0x7a6   :  { %7567 = vmatmul.mubr.f32.vlgmr.msra.gmra.mrb[14].mxu1 %v7155_v21 }
 0x7be   :  { %v7636_v34 = vpop.f32.mrb[12].mxu0 }
 0x7bf   :  { %v7671_v50 = vpop.f32.mrb[12].mxu1  ;;  %v7637_v35 = vpop.f32.mrb[13].mxu0 }
 0x7c0   :  { %v7638_v44 = vadd.f32 %v7637_v35, %v7636_v34  ;;  %v7672_v4 = vpop.f32.mrb[13].mxu1 }
 0x7c1   :  { %v7673_v2 = vadd.f32 %v7672_v4, %v7671_v50 }
 0x7c2   :  { %v7359_v30 = vadd.f32 %v7638_v44, %v7603_v1 }
 0x7c4   :  { %v7429_v5 = vadd.f32 %v7673_v2, %v7359_v30 }
 0x878   :  { %v7706_v51 = vpop.f32.mrb[14].mxu0 }
 0x879   :  { %v7741_v7 = vpop.f32.mrb[14].mxu1  ;;  %v7707_v8 = vpop.f32.mrb[15].mxu0 }
 0x87a   :  { %v7708_v9 = vadd.f32 %v7707_v8, %v7706_v51  ;;  %v7742_v10 = vpop.f32.mrb[15].mxu1 }
 0x87b   :  { %v7743_v14 = vadd.f32 %v7742_v10, %v7741_v7 }
 0x87c   :  { %v7499_v55 = vadd.f32 %v7708_v9, %v7429_v5 }
 0x87e   :  { %v7569_v13 = vadd.f32 %v7743_v14, %v7499_v55 }
 0x880   :  { %v7577_v15 = vadd.f32 %v11149_v11, %v7569_v13 }
 0x882   :  { %v7578_v16 = vadd.f32 %v7577_v15, %v7569_v13 }
 0x884   :  { %v7579_v45 = vadd.f32 %v7578_v16, %v7569_v13 }
 0x886   :  { %v7580_v56 = vadd.f32 %v7579_v45, %v7569_v13 }
 0x888   :  { %v7581_v19 = vadd.f32 %v7580_v56, %v7569_v13 }
 0x88a   :  { %7582 = vst.msk [vmem:[%s12150_s9] sm:$0xff] %vm2272_vm1, %v7581_v19 }
 0x88b   :  { %7587 = vsyncpa [#allocation3], 1 }
 0x88c   :  { %7588 = vsyncpa [#allocation5], 1 }
 0x88d   :  { %7589 = vsyncpa [#allocation8], 1 }
 0x88e   :  { %7590 = vsyncpa [#allocation11], 1 }

</bundles_post_ra>
